<compile_context>
chip_gen: v7x
topology: tpu7x:2x2x1
jax: 0.10.0
libtpu: 0.0.40
codegen_flags: <defaults>
</compile_context>

<pallas_src>
import functools

import jax
import jax.numpy as jnp
from jax.experimental import pallas as pl
from jax.experimental.pallas import tpu as pltpu

K = 4                   # all ConvTranspose2d layers use a 4x4 kernel
BN_EPS = 1e-5
LRELU_SLOPE = 0.2

# Sub-pixel decomposition of a stride-2, pad-1, 4x4 ConvTranspose2d:
#   out[b, 2m+ph, 2n+pw, co] =
#     sum_{dh,dw,ci} xpad[b, m+ph+dh, n+pw+dw, ci]
#                    * w[ci, co, _KIDX[ph][dh], _KIDX[pw][dw]]
# where xpad is the input zero-padded by 1 pixel on each spatial border.
_KIDX = ((3, 1), (2, 0))


# ---------------------------------------------------------------------------
# Pallas kernels
# ---------------------------------------------------------------------------
def _block1_kernel(x_ref, w_ref, gamma_ref, beta_ref, o_ref, *, cout, count):
    """Fused block 1: (B,Cin)@(Cin,16*Cout) conv-transpose matmul on the 1x1
    input + training-mode BatchNorm (two-pass variance) + LeakyReLU.
    Output columns are ordered (kh, kw, c): 16 channel groups of width cout."""
    y = jnp.dot(x_ref[...], w_ref[...], preferred_element_type=jnp.float32)
    inv = 1.0 / count
    s1 = jnp.zeros((1, cout), jnp.float32)
    for s in range(16):                          # 256-lane-aligned slices
        s1 = s1 + jnp.sum(y[:, s * cout:(s + 1) * cout], axis=0, keepdims=True)
    mean = s1 * inv
    var = jnp.zeros((1, cout), jnp.float32)
    for s in range(16):
        d = y[:, s * cout:(s + 1) * cout] - mean
        var = var + jnp.sum(d * d, axis=0, keepdims=True)
    var = var * inv
    scale = gamma_ref[...] * jax.lax.rsqrt(var + BN_EPS)
    shift = beta_ref[...] - mean * scale
    for s in range(16):
        a = y[:, s * cout:(s + 1) * cout] * scale + shift
        o_ref[:, s * cout:(s + 1) * cout] = jnp.where(a >= 0, a, LRELU_SLOPE * a)


def _conv_bn_act_kernel(pat_ref, w_ref, gamma_ref, beta_ref, out_ref, s1_ref,
                        *, count, single_tile):
    """Fused stride-2 block: per-parity transposed conv matmul into the
    VMEM-resident output block, per-channel sum accumulation in scratch, and on
    the last grid step a two-pass variance + BatchNorm + LeakyReLU sweep over
    the resident data."""
    p = pl.program_id(0)
    j = pl.program_id(1)

    @pl.when((p == 0) & (j == 0))
    def _():
        s1_ref[...] = jnp.zeros_like(s1_ref)

    # (Cout, Kd) @ (Kd, tn) -> (Cout, tn), f32 accumulation, lane dim = tn.
    y = jnp.dot(w_ref[0], pat_ref[0], preferred_element_type=jnp.float32)
    if single_tile:
        out_ref[p] = y
    else:
        tn = y.shape[1]
        out_ref[p, :, pl.ds(j * tn, tn)] = y
    s1_ref[...] += jnp.sum(y, axis=1, keepdims=True)

    @pl.when((p == pl.num_programs(0) - 1) & (j == pl.num_programs(1) - 1))
    def _():
        inv = 1.0 / count
        mean = s1_ref[...] * inv                          # (Cout, 1)
        var = jnp.zeros_like(mean)
        for q in range(4):                                # two-pass variance
            d = out_ref[q] - mean
            var = var + jnp.sum(d * d, axis=1, keepdims=True)
        var = var * inv
        scale = gamma_ref[...] * jax.lax.rsqrt(var + BN_EPS)
        shift = beta_ref[...] - mean * scale
        for q in range(4):                                # normalize in place
            a = out_ref[q] * scale + shift
            out_ref[q] = jnp.where(a >= 0, a, LRELU_SLOPE * a)


def _final_tanh_kernel(pat_ref, w_ref, b_ref, o_ref):
    """Final layer: lane-dense o = tanh(w @ pat + bias), output (Cout, tn)."""
    y = jnp.dot(w_ref[0], pat_ref[0], preferred_element_type=jnp.float32)
    o_ref[0] = jnp.tanh(y + b_ref[...])


# ---------------------------------------------------------------------------
# Helpers
# ---------------------------------------------------------------------------
def _pick_m_tile(m, kd, cout, budget=4 << 20):
    """Largest divisor of m (by halving) whose per-step footprint (double
    buffered bf16 patch tile + f32 result tile) stays under `budget` bytes.
    Keeps the kernel portable to v5e's smaller default scoped VMEM."""
    per_col = 2 * (2 * kd) + 4 * cout
    t = m
    while t % 2 == 0 and t > 256 and t * per_col > budget:
        t //= 2
    return t


def _subpixel_slabs_T(act_cm):
    """act_cm: (Cin, B, H, W) f32 channel-major activation ->
       (4, 4*Cin, B*H*W) bf16 transposed per-parity patch slabs."""
    Cin, B, H, W = act_cm.shape
    xp = jnp.pad(act_cm.astype(jnp.bfloat16),
                 ((0, 0), (0, 0), (1, 1), (1, 1)))
    slabs = []
    for ph in range(2):
        for pw in range(2):
            taps = [xp[:, :, ph + dh:ph + dh + H, pw + dw:pw + dw + W]
                    for dh in range(2) for dw in range(2)]
            slabs.append(jnp.stack(taps, axis=0).reshape(4 * Cin, B * H * W))
    return jnp.stack(slabs, axis=0)
    # TODO(synk): gather the 2x2 taps in-kernel from the padded channel-major
    # activation (memory_space=pl.ANY + manual DMA) to avoid materializing this
    # bf16 slab in HBM.


def _subpixel_weights_T(w):
    """w: (Cin, Cout, 4, 4) -> (4, Cout, 4*Cin) bf16 transposed sub-kernels,
    row/tap ordering matched to _subpixel_slabs_T (tap = dh*2+dw, then ci)."""
    Cin, Cout = w.shape[0], w.shape[1]
    mats = []
    for ph in range(2):
        for pw in range(2):
            sub = jnp.stack(
                [jnp.stack([w[:, :, _KIDX[ph][dh], _KIDX[pw][dw]]
                            for dw in range(2)], axis=0)
                 for dh in range(2)], axis=0)            # (dh, dw, Cin, Cout)
            mats.append(sub.reshape(4 * Cin, Cout).T)    # (Cout, 4*Cin)
    return jnp.stack(mats, axis=0).astype(jnp.bfloat16)


# ---------------------------------------------------------------------------
# Generator blocks (one fused pallas_call each)
# ---------------------------------------------------------------------------
def fused_block1(noise, w, gamma, beta):
    """ConvTranspose2d(Cin,Cout,4,s=1,p=0) on a 1x1 input (outer product) +
    BatchNorm(train) + LeakyReLU, all in one kernel.
    Returns the channel-major activation (Cout, B, 4, 4)."""
    B, Cin = noise.shape
    Cout = w.shape[1]
    wm = w.transpose(0, 2, 3, 1).reshape(Cin, 16 * Cout).astype(jnp.bfloat16)
    x = noise.astype(jnp.bfloat16)
    y = pl.pallas_call(
        functools.partial(_block1_kernel, cout=Cout, count=16.0 * B),
        out_shape=jax.ShapeDtypeStruct((B, 16 * Cout), jnp.float32),
        grid=(1,),
        in_specs=[pl.BlockSpec((B, Cin), lambda i: (0, 0)),
                  pl.BlockSpec((Cin, 16 * Cout), lambda i: (0, 0)),
                  pl.BlockSpec((1, Cout), lambda i: (0, 0)),
                  pl.BlockSpec((1, Cout), lambda i: (0, 0))],
        out_specs=pl.BlockSpec((B, 16 * Cout), lambda i: (0, 0)),
        compiler_params=pltpu.CompilerParams(
            dimension_semantics=("arbitrary",)),
    )(x, wm, gamma.reshape(1, Cout), beta.reshape(1, Cout))
    # columns (kh, kw, c) -> NHWC (B,4,4,C) -> channel-major (C, B, 4, 4)
    return y.reshape(B, 4, 4, Cout).transpose(3, 0, 1, 2)


def fused_conv_bn_block(act_cm, w, gamma, beta):
    """stride-2 ConvTranspose2d + BatchNorm(train) + LeakyReLU fused in one
    pallas_call.  Channel-major in (Cin,B,H,W) -> channel-major out
    (Cout, B, 2H, 2W)."""
    Cin, B, H, W = act_cm.shape
    Cout = w.shape[1]
    M = B * H * W
    Kd = 4 * Cin
    patT = _subpixel_slabs_T(act_cm)                     # (4, Kd, M) bf16
    wT = _subpixel_weights_T(w)                          # (4, Cout, Kd) bf16
    tn = _pick_m_tile(M, Kd, Cout)
    nj = M // tn
    # NOTE: the whole (4, Cout, M) conv output stays resident in VMEM; fine for
    # small/moderate batch (B=2: <=256 KiB).  TODO(synk): for very large batch
    # split M across multiple pallas_calls or spill the residency budget check.
    out = pl.pallas_call(
        functools.partial(_conv_bn_act_kernel, count=4.0 * M,
                          single_tile=(nj == 1)),
        out_shape=jax.ShapeDtypeStruct((4, Cout, M), jnp.float32),
        grid=(4, nj),
        in_specs=[pl.BlockSpec((1, Kd, tn), lambda p, j: (p, 0, j)),
                  pl.BlockSpec((1, Cout, Kd), lambda p, j: (p, 0, 0)),
                  pl.BlockSpec((Cout, 1), lambda p, j: (0, 0)),
                  pl.BlockSpec((Cout, 1), lambda p, j: (0, 0))],
        out_specs=pl.BlockSpec((4, Cout, M), lambda p, j: (0, 0, 0)),
        scratch_shapes=[pltpu.VMEM((Cout, 1), jnp.float32)],
        compiler_params=pltpu.CompilerParams(
            # stats + the resident output couple every grid step -> arbitrary.
            dimension_semantics=("arbitrary", "arbitrary")),
    )(patT, wT, gamma.reshape(Cout, 1), beta.reshape(Cout, 1))
    # parity-separated (ph*2+pw, C, B*H*W) -> channel-major (C, B, 2H, 2W).
    # TODO(synk): fold this interleave into the out_spec (strided/parity-plane
    # plumbing) to drop the small XLA transpose.
    a = out.reshape(2, 2, Cout, B, H, W).transpose(2, 3, 4, 0, 5, 1)
    return a.reshape(Cout, B, 2 * H, 2 * W)


def final_tanh_block(act_cm, w, b):
    """Final stride-2 ConvTranspose2d + bias + Tanh.  Lane-dense (Cout, M)
    kernel output; returns NCHW (B, Cout, 2H, 2W)."""
    Cin, B, H, W = act_cm.shape
    Cout = w.shape[1]
    M = B * H * W
    Kd = 4 * Cin
    patT = _subpixel_slabs_T(act_cm)                     # (4, Kd, M) bf16
    wT = _subpixel_weights_T(w)                          # (4, Cout, Kd) bf16
    tn = _pick_m_tile(M, Kd, Cout)                       # == M at small batch
    out = pl.pallas_call(
        _final_tanh_kernel,
        out_shape=jax.ShapeDtypeStruct((4, Cout, M), jnp.float32),
        grid=(4, M // tn),
        in_specs=[pl.BlockSpec((1, Kd, tn), lambda p, j: (p, 0, j)),
                  pl.BlockSpec((1, Cout, Kd), lambda p, j: (p, 0, 0)),
                  pl.BlockSpec((Cout, 1), lambda p, j: (0, 0))],
        out_specs=pl.BlockSpec((1, Cout, tn), lambda p, j: (p, 0, j)),
        compiler_params=pltpu.CompilerParams(
            dimension_semantics=("parallel", "parallel")),
    )(patT, wT, b.reshape(Cout, 1))
    # (ph, pw, co, b, m, n) -> NCHW (B, Cout, 2H, 2W)
    o = out.reshape(2, 2, Cout, B, H, W).transpose(3, 2, 4, 0, 5, 1)
    return o.reshape(B, Cout, 2 * H, 2 * W)


# ---------------------------------------------------------------------------
# Parameter init (deterministic, shapes exactly as in the PyTorch module)
# ---------------------------------------------------------------------------
def init_generator_params(key, noise_channels, out_channels=3):
    channels = [noise_channels, 256, 128, 64, 32, out_channels]
    params = []
    for li in range(5):
        cin, cout = channels[li], channels[li + 1]
        key, kw, kb, kg, kbe = jax.random.split(key, 5)
        w = jax.random.normal(kw, (cin, cout, K, K), jnp.float32) * 0.05
        b = jax.random.normal(kb, (cout,), jnp.float32) * 0.05
        if li < 4:  # blocks 1-4 have BatchNorm2d
            gamma = 1.0 + 0.1 * jax.random.normal(kg, (cout,), jnp.float32)
            beta = 0.1 * jax.random.normal(kbe, (cout,), jnp.float32)
        else:
            gamma, beta = None, None
        params.append(dict(w=w, b=b, gamma=gamma, beta=beta))
    return params


def generator_forward(params, noise):
    """noise: (B, noise_channels) -> image (B, out_channels, 64, 64), NCHW."""
    # NOTE: the ConvTranspose bias of blocks 1-4 is kept in the parameter dict
    # for structural parity with the PyTorch module but is not applied:
    # training-mode BatchNorm's mean subtraction cancels a constant per-channel
    # offset exactly.
    x = fused_block1(noise, params[0]["w"], params[0]["gamma"],
                     params[0]["beta"])                   # (256, B, 4, 4)
    for li in range(1, 4):
        p = params[li]
        x = fused_conv_bn_block(x, p["w"], p["gamma"], p["beta"])
    p = params[4]
    return final_tanh_block(x, p["w"], p["b"])
    # TODO(synk): BatchNorm running-mean/var updates (training-time side
    # effect) are not materialized; forward normalization matches train mode.


# ---------------------------------------------------------------------------
# Pure-JAX f32 reference (textbook dilate+pad+flipped-kernel conv transpose)
# ---------------------------------------------------------------------------
def _conv_transpose_ref(x_nchw, w, b, stride, padding):
    B, Cin, H, W = x_nchw.shape
    Cout = w.shape[1]
    Hd, Wd = (H - 1) * stride + 1, (W - 1) * stride + 1
    xd = jnp.zeros((B, Cin, Hd, Wd), jnp.float32)
    xd = xd.at[:, :, ::stride, ::stride].set(x_nchw)
    p = K - 1 - padding
    xp = jnp.pad(xd, ((0, 0), (0, 0), (p, p), (p, p)))
    Hout, Wout = Hd + 2 * p - K + 1, Wd + 2 * p - K + 1
    wf = jnp.flip(w, (2, 3))
    out = jnp.zeros((B, Cout, Hout, Wout), jnp.float32)
    for kh in range(K):
        for kw in range(K):
            out = out + jnp.einsum('bchw,cd->bdhw',
                                   xp[:, :, kh:kh + Hout, kw:kw + Wout],
                                   wf[:, :, kh, kw])
    return out + b.reshape(1, Cout, 1, 1)


def reference_forward(params, noise):
    B = noise.shape[0]
    x = noise.reshape(B, -1, 1, 1)
    strides = [1, 2, 2, 2, 2]
    paddings = [0, 1, 1, 1, 1]
    for li in range(4):
        p = params[li]
        y = _conv_transpose_ref(x, p["w"], p["b"], strides[li], paddings[li])
        mean = jnp.mean(y, axis=(0, 2, 3), keepdims=True)
        var = jnp.mean((y - mean) ** 2, axis=(0, 2, 3), keepdims=True)
        y = (y - mean) * jax.lax.rsqrt(var + BN_EPS)
        y = y * p["gamma"].reshape(1, -1, 1, 1) + p["beta"].reshape(1, -1, 1, 1)
        x = jnp.where(y >= 0, y, LRELU_SLOPE * y)
    p = params[4]
    y = _conv_transpose_ref(x, p["w"], p["b"], strides[4], paddings[4])
    return jnp.tanh(y)


if __name__ == "__main__":
    key = jax.random.PRNGKey(0)
    kp, kn = jax.random.split(key)
    noise_channels, batch, out_channels = 16, 2, 3

    params = init_generator_params(kp, noise_channels, out_channels)
    noise = jax.random.normal(kn, (batch, noise_channels), jnp.float32)

    fwd = jax.jit(functools.partial(generator_forward, params))
    out = jax.block_until_ready(fwd(noise))

    assert out.shape == (batch, out_channels, 64, 64), out.shape
    assert bool(jnp.all(jnp.isfinite(out)))
    assert bool(jnp.all(jnp.abs(out) <= 1.0))  # tanh output range

    # Cross-check against the pure-JAX f32 reference; the Pallas path uses
    # bf16 matmul operands, so allow a loose elementwise tolerance.
    ref = reference_forward(params, noise)
    max_err = float(jnp.max(jnp.abs(out - ref)))
    assert max_err < 0.1, f"max |pallas - reference| = {max_err}"
    print("KERNEL_OK")
</pallas_src>

<mosaic_0001>
module attributes {stable_mosaic.version = 11 : i64} {
  func.func @_block1_kernel(%arg0: i32, %arg1: memref<2x16xbf16, #tpu.memory_space<vmem>>, %arg2: memref<16x4096xbf16, #tpu.memory_space<vmem>>, %arg3: memref<1x256xf32, #tpu.memory_space<vmem>>, %arg4: memref<1x256xf32, #tpu.memory_space<vmem>>, %arg5: memref<2x4096xf32, #tpu.memory_space<vmem>>) attributes {dimension_semantics = [#tpu.dimension_semantics<arbitrary>], iteration_bounds = array<i64: 1>, scalar_prefetch = 0 : i64, scratch_operands = 0 : i64, tpu.core_type = #tpu.core_type<tc>, window_params = [{pipeline_mode = #tpu.pipeline_mode<synchronous>, transform_indices = @transform_0, window_bounds = array<i64: 2, 16>}, {pipeline_mode = #tpu.pipeline_mode<synchronous>, transform_indices = @transform_1, window_bounds = array<i64: 16, 4096>}, {pipeline_mode = #tpu.pipeline_mode<synchronous>, transform_indices = @transform_2, window_bounds = array<i64: 1, 256>}, {pipeline_mode = #tpu.pipeline_mode<synchronous>, transform_indices = @transform_3, window_bounds = array<i64: 1, 256>}, {pipeline_mode = #tpu.pipeline_mode<synchronous>, transform_indices = @transform_4, window_bounds = array<i64: 2, 4096>}]} {
    %c0 = arith.constant 0 : index
    %c0_0 = arith.constant 0 : index
    %0 = vector.load %arg1[%c0, %c0_0] : memref<2x16xbf16, #tpu.memory_space<vmem>>, vector<2x16xbf16>
    %c0_1 = arith.constant 0 : index
    %c0_2 = arith.constant 0 : index
    %1 = vector.load %arg2[%c0_1, %c0_2] : memref<16x4096xbf16, #tpu.memory_space<vmem>>, vector<16x4096xbf16>
    %cst = arith.constant dense<0.000000e+00> : vector<2x4096xf32>
    %2 = tpu.matmul %0, %1, %cst {dimension_numbers = #tpu.dot_dimension_numbers<[1], [0], [0], [1], [0, 0, 1, 1], [], []>} : vector<2x16xbf16>, vector<16x4096xbf16>, vector<2x4096xf32> -> vector<2x4096xf32>
    %cst_3 = arith.constant 0.000000e+00 : f32
    %3 = vector.broadcast %cst_3 : f32 to vector<1x256xf32>
    %4 = vector.extract_strided_slice %2 {offsets = [0, 0], sizes = [2, 256], strides = [1, 1]} : vector<2x4096xf32> to vector<2x256xf32>
    %cst_4 = arith.constant dense<0.000000e+00> : vector<256xf32>
    %5 = vector.multi_reduction <add>, %4, %cst_4 [0] : vector<2x256xf32> to vector<256xf32>
    %6 = vector.shape_cast %5 : vector<256xf32> to vector<1x256xf32>
    %7 = arith.addf %3, %6 : vector<1x256xf32>
    %8 = vector.extract_strided_slice %2 {offsets = [0, 256], sizes = [2, 256], strides = [1, 1]} : vector<2x4096xf32> to vector<2x256xf32>
    %cst_5 = arith.constant dense<0.000000e+00> : vector<256xf32>
    %9 = vector.multi_reduction <add>, %8, %cst_5 [0] : vector<2x256xf32> to vector<256xf32>
    %10 = vector.shape_cast %9 : vector<256xf32> to vector<1x256xf32>
    %11 = arith.addf %7, %10 : vector<1x256xf32>
    %12 = vector.extract_strided_slice %2 {offsets = [0, 512], sizes = [2, 256], strides = [1, 1]} : vector<2x4096xf32> to vector<2x256xf32>
    %cst_6 = arith.constant dense<0.000000e+00> : vector<256xf32>
    %13 = vector.multi_reduction <add>, %12, %cst_6 [0] : vector<2x256xf32> to vector<256xf32>
    %14 = vector.shape_cast %13 : vector<256xf32> to vector<1x256xf32>
    %15 = arith.addf %11, %14 : vector<1x256xf32>
    %16 = vector.extract_strided_slice %2 {offsets = [0, 768], sizes = [2, 256], strides = [1, 1]} : vector<2x4096xf32> to vector<2x256xf32>
    %cst_7 = arith.constant dense<0.000000e+00> : vector<256xf32>
    %17 = vector.multi_reduction <add>, %16, %cst_7 [0] : vector<2x256xf32> to vector<256xf32>
    %18 = vector.shape_cast %17 : vector<256xf32> to vector<1x256xf32>
    %19 = arith.addf %15, %18 : vector<1x256xf32>
    %20 = vector.extract_strided_slice %2 {offsets = [0, 1024], sizes = [2, 256], strides = [1, 1]} : vector<2x4096xf32> to vector<2x256xf32>
    %cst_8 = arith.constant dense<0.000000e+00> : vector<256xf32>
    %21 = vector.multi_reduction <add>, %20, %cst_8 [0] : vector<2x256xf32> to vector<256xf32>
    %22 = vector.shape_cast %21 : vector<256xf32> to vector<1x256xf32>
    %23 = arith.addf %19, %22 : vector<1x256xf32>
    %24 = vector.extract_strided_slice %2 {offsets = [0, 1280], sizes = [2, 256], strides = [1, 1]} : vector<2x4096xf32> to vector<2x256xf32>
    %cst_9 = arith.constant dense<0.000000e+00> : vector<256xf32>
    %25 = vector.multi_reduction <add>, %24, %cst_9 [0] : vector<2x256xf32> to vector<256xf32>
    %26 = vector.shape_cast %25 : vector<256xf32> to vector<1x256xf32>
    %27 = arith.addf %23, %26 : vector<1x256xf32>
    %28 = vector.extract_strided_slice %2 {offsets = [0, 1536], sizes = [2, 256], strides = [1, 1]} : vector<2x4096xf32> to vector<2x256xf32>
    %cst_10 = arith.constant dense<0.000000e+00> : vector<256xf32>
    %29 = vector.multi_reduction <add>, %28, %cst_10 [0] : vector<2x256xf32> to vector<256xf32>
    %30 = vector.shape_cast %29 : vector<256xf32> to vector<1x256xf32>
    %31 = arith.addf %27, %30 : vector<1x256xf32>
    %32 = vector.extract_strided_slice %2 {offsets = [0, 1792], sizes = [2, 256], strides = [1, 1]} : vector<2x4096xf32> to vector<2x256xf32>
    %cst_11 = arith.constant dense<0.000000e+00> : vector<256xf32>
    %33 = vector.multi_reduction <add>, %32, %cst_11 [0] : vector<2x256xf32> to vector<256xf32>
    %34 = vector.shape_cast %33 : vector<256xf32> to vector<1x256xf32>
    %35 = arith.addf %31, %34 : vector<1x256xf32>
    %36 = vector.extract_strided_slice %2 {offsets = [0, 2048], sizes = [2, 256], strides = [1, 1]} : vector<2x4096xf32> to vector<2x256xf32>
    %cst_12 = arith.constant dense<0.000000e+00> : vector<256xf32>
    %37 = vector.multi_reduction <add>, %36, %cst_12 [0] : vector<2x256xf32> to vector<256xf32>
    %38 = vector.shape_cast %37 : vector<256xf32> to vector<1x256xf32>
    %39 = arith.addf %35, %38 : vector<1x256xf32>
    %40 = vector.extract_strided_slice %2 {offsets = [0, 2304], sizes = [2, 256], strides = [1, 1]} : vector<2x4096xf32> to vector<2x256xf32>
    %cst_13 = arith.constant dense<0.000000e+00> : vector<256xf32>
    %41 = vector.multi_reduction <add>, %40, %cst_13 [0] : vector<2x256xf32> to vector<256xf32>
    %42 = vector.shape_cast %41 : vector<256xf32> to vector<1x256xf32>
    %43 = arith.addf %39, %42 : vector<1x256xf32>
    %44 = vector.extract_strided_slice %2 {offsets = [0, 2560], sizes = [2, 256], strides = [1, 1]} : vector<2x4096xf32> to vector<2x256xf32>
    %cst_14 = arith.constant dense<0.000000e+00> : vector<256xf32>
    %45 = vector.multi_reduction <add>, %44, %cst_14 [0] : vector<2x256xf32> to vector<256xf32>
    %46 = vector.shape_cast %45 : vector<256xf32> to vector<1x256xf32>
    %47 = arith.addf %43, %46 : vector<1x256xf32>
    %48 = vector.extract_strided_slice %2 {offsets = [0, 2816], sizes = [2, 256], strides = [1, 1]} : vector<2x4096xf32> to vector<2x256xf32>
    %cst_15 = arith.constant dense<0.000000e+00> : vector<256xf32>
    %49 = vector.multi_reduction <add>, %48, %cst_15 [0] : vector<2x256xf32> to vector<256xf32>
    %50 = vector.shape_cast %49 : vector<256xf32> to vector<1x256xf32>
    %51 = arith.addf %47, %50 : vector<1x256xf32>
    %52 = vector.extract_strided_slice %2 {offsets = [0, 3072], sizes = [2, 256], strides = [1, 1]} : vector<2x4096xf32> to vector<2x256xf32>
    %cst_16 = arith.constant dense<0.000000e+00> : vector<256xf32>
    %53 = vector.multi_reduction <add>, %52, %cst_16 [0] : vector<2x256xf32> to vector<256xf32>
    %54 = vector.shape_cast %53 : vector<256xf32> to vector<1x256xf32>
    %55 = arith.addf %51, %54 : vector<1x256xf32>
    %56 = vector.extract_strided_slice %2 {offsets = [0, 3328], sizes = [2, 256], strides = [1, 1]} : vector<2x4096xf32> to vector<2x256xf32>
    %cst_17 = arith.constant dense<0.000000e+00> : vector<256xf32>
    %57 = vector.multi_reduction <add>, %56, %cst_17 [0] : vector<2x256xf32> to vector<256xf32>
    %58 = vector.shape_cast %57 : vector<256xf32> to vector<1x256xf32>
    %59 = arith.addf %55, %58 : vector<1x256xf32>
    %60 = vector.extract_strided_slice %2 {offsets = [0, 3584], sizes = [2, 256], strides = [1, 1]} : vector<2x4096xf32> to vector<2x256xf32>
    %cst_18 = arith.constant dense<0.000000e+00> : vector<256xf32>
    %61 = vector.multi_reduction <add>, %60, %cst_18 [0] : vector<2x256xf32> to vector<256xf32>
    %62 = vector.shape_cast %61 : vector<256xf32> to vector<1x256xf32>
    %63 = arith.addf %59, %62 : vector<1x256xf32>
    %64 = vector.extract_strided_slice %2 {offsets = [0, 3840], sizes = [2, 256], strides = [1, 1]} : vector<2x4096xf32> to vector<2x256xf32>
    %cst_19 = arith.constant dense<0.000000e+00> : vector<256xf32>
    %65 = vector.multi_reduction <add>, %64, %cst_19 [0] : vector<2x256xf32> to vector<256xf32>
    %66 = vector.shape_cast %65 : vector<256xf32> to vector<1x256xf32>
    %67 = arith.addf %63, %66 : vector<1x256xf32>
    %cst_20 = arith.constant 3.125000e-02 : f32
    %68 = vector.broadcast %cst_20 : f32 to vector<1x256xf32>
    %69 = arith.mulf %67, %68 : vector<1x256xf32>
    %cst_21 = arith.constant 0.000000e+00 : f32
    %70 = vector.broadcast %cst_21 : f32 to vector<1x256xf32>
    %71 = vector.extract_strided_slice %2 {offsets = [0, 0], sizes = [2, 256], strides = [1, 1]} : vector<2x4096xf32> to vector<2x256xf32>
    %72 = vector.broadcast %69 : vector<1x256xf32> to vector<2x256xf32>
    %73 = arith.subf %71, %72 : vector<2x256xf32>
    %74 = arith.mulf %73, %73 : vector<2x256xf32>
    %cst_22 = arith.constant dense<0.000000e+00> : vector<256xf32>
    %75 = vector.multi_reduction <add>, %74, %cst_22 [0] : vector<2x256xf32> to vector<256xf32>
    %76 = vector.shape_cast %75 : vector<256xf32> to vector<1x256xf32>
    %77 = arith.addf %70, %76 : vector<1x256xf32>
    %78 = vector.extract_strided_slice %2 {offsets = [0, 256], sizes = [2, 256], strides = [1, 1]} : vector<2x4096xf32> to vector<2x256xf32>
    %79 = vector.broadcast %69 : vector<1x256xf32> to vector<2x256xf32>
    %80 = arith.subf %78, %79 : vector<2x256xf32>
    %81 = arith.mulf %80, %80 : vector<2x256xf32>
    %cst_23 = arith.constant dense<0.000000e+00> : vector<256xf32>
    %82 = vector.multi_reduction <add>, %81, %cst_23 [0] : vector<2x256xf32> to vector<256xf32>
    %83 = vector.shape_cast %82 : vector<256xf32> to vector<1x256xf32>
    %84 = arith.addf %77, %83 : vector<1x256xf32>
    %85 = vector.extract_strided_slice %2 {offsets = [0, 512], sizes = [2, 256], strides = [1, 1]} : vector<2x4096xf32> to vector<2x256xf32>
    %86 = vector.broadcast %69 : vector<1x256xf32> to vector<2x256xf32>
    %87 = arith.subf %85, %86 : vector<2x256xf32>
    %88 = arith.mulf %87, %87 : vector<2x256xf32>
    %cst_24 = arith.constant dense<0.000000e+00> : vector<256xf32>
    %89 = vector.multi_reduction <add>, %88, %cst_24 [0] : vector<2x256xf32> to vector<256xf32>
    %90 = vector.shape_cast %89 : vector<256xf32> to vector<1x256xf32>
    %91 = arith.addf %84, %90 : vector<1x256xf32>
    %92 = vector.extract_strided_slice %2 {offsets = [0, 768], sizes = [2, 256], strides = [1, 1]} : vector<2x4096xf32> to vector<2x256xf32>
    %93 = vector.broadcast %69 : vector<1x256xf32> to vector<2x256xf32>
    %94 = arith.subf %92, %93 : vector<2x256xf32>
    %95 = arith.mulf %94, %94 : vector<2x256xf32>
    %cst_25 = arith.constant dense<0.000000e+00> : vector<256xf32>
    %96 = vector.multi_reduction <add>, %95, %cst_25 [0] : vector<2x256xf32> to vector<256xf32>
    %97 = vector.shape_cast %96 : vector<256xf32> to vector<1x256xf32>
    %98 = arith.addf %91, %97 : vector<1x256xf32>
    %99 = vector.extract_strided_slice %2 {offsets = [0, 1024], sizes = [2, 256], strides = [1, 1]} : vector<2x4096xf32> to vector<2x256xf32>
    %100 = vector.broadcast %69 : vector<1x256xf32> to vector<2x256xf32>
    %101 = arith.subf %99, %100 : vector<2x256xf32>
    %102 = arith.mulf %101, %101 : vector<2x256xf32>
    %cst_26 = arith.constant dense<0.000000e+00> : vector<256xf32>
    %103 = vector.multi_reduction <add>, %102, %cst_26 [0] : vector<2x256xf32> to vector<256xf32>
    %104 = vector.shape_cast %103 : vector<256xf32> to vector<1x256xf32>
    %105 = arith.addf %98, %104 : vector<1x256xf32>
    %106 = vector.extract_strided_slice %2 {offsets = [0, 1280], sizes = [2, 256], strides = [1, 1]} : vector<2x4096xf32> to vector<2x256xf32>
    %107 = vector.broadcast %69 : vector<1x256xf32> to vector<2x256xf32>
    %108 = arith.subf %106, %107 : vector<2x256xf32>
    %109 = arith.mulf %108, %108 : vector<2x256xf32>
    %cst_27 = arith.constant dense<0.000000e+00> : vector<256xf32>
    %110 = vector.multi_reduction <add>, %109, %cst_27 [0] : vector<2x256xf32> to vector<256xf32>
    %111 = vector.shape_cast %110 : vector<256xf32> to vector<1x256xf32>
    %112 = arith.addf %105, %111 : vector<1x256xf32>
    %113 = vector.extract_strided_slice %2 {offsets = [0, 1536], sizes = [2, 256], strides = [1, 1]} : vector<2x4096xf32> to vector<2x256xf32>
    %114 = vector.broadcast %69 : vector<1x256xf32> to vector<2x256xf32>
    %115 = arith.subf %113, %114 : vector<2x256xf32>
    %116 = arith.mulf %115, %115 : vector<2x256xf32>
    %cst_28 = arith.constant dense<0.000000e+00> : vector<256xf32>
    %117 = vector.multi_reduction <add>, %116, %cst_28 [0] : vector<2x256xf32> to vector<256xf32>
    %118 = vector.shape_cast %117 : vector<256xf32> to vector<1x256xf32>
    %119 = arith.addf %112, %118 : vector<1x256xf32>
    %120 = vector.extract_strided_slice %2 {offsets = [0, 1792], sizes = [2, 256], strides = [1, 1]} : vector<2x4096xf32> to vector<2x256xf32>
    %121 = vector.broadcast %69 : vector<1x256xf32> to vector<2x256xf32>
    %122 = arith.subf %120, %121 : vector<2x256xf32>
    %123 = arith.mulf %122, %122 : vector<2x256xf32>
    %cst_29 = arith.constant dense<0.000000e+00> : vector<256xf32>
    %124 = vector.multi_reduction <add>, %123, %cst_29 [0] : vector<2x256xf32> to vector<256xf32>
    %125 = vector.shape_cast %124 : vector<256xf32> to vector<1x256xf32>
    %126 = arith.addf %119, %125 : vector<1x256xf32>
    %127 = vector.extract_strided_slice %2 {offsets = [0, 2048], sizes = [2, 256], strides = [1, 1]} : vector<2x4096xf32> to vector<2x256xf32>
    %128 = vector.broadcast %69 : vector<1x256xf32> to vector<2x256xf32>
    %129 = arith.subf %127, %128 : vector<2x256xf32>
    %130 = arith.mulf %129, %129 : vector<2x256xf32>
    %cst_30 = arith.constant dense<0.000000e+00> : vector<256xf32>
    %131 = vector.multi_reduction <add>, %130, %cst_30 [0] : vector<2x256xf32> to vector<256xf32>
    %132 = vector.shape_cast %131 : vector<256xf32> to vector<1x256xf32>
    %133 = arith.addf %126, %132 : vector<1x256xf32>
    %134 = vector.extract_strided_slice %2 {offsets = [0, 2304], sizes = [2, 256], strides = [1, 1]} : vector<2x4096xf32> to vector<2x256xf32>
    %135 = vector.broadcast %69 : vector<1x256xf32> to vector<2x256xf32>
    %136 = arith.subf %134, %135 : vector<2x256xf32>
    %137 = arith.mulf %136, %136 : vector<2x256xf32>
    %cst_31 = arith.constant dense<0.000000e+00> : vector<256xf32>
    %138 = vector.multi_reduction <add>, %137, %cst_31 [0] : vector<2x256xf32> to vector<256xf32>
    %139 = vector.shape_cast %138 : vector<256xf32> to vector<1x256xf32>
    %140 = arith.addf %133, %139 : vector<1x256xf32>
    %141 = vector.extract_strided_slice %2 {offsets = [0, 2560], sizes = [2, 256], strides = [1, 1]} : vector<2x4096xf32> to vector<2x256xf32>
    %142 = vector.broadcast %69 : vector<1x256xf32> to vector<2x256xf32>
    %143 = arith.subf %141, %142 : vector<2x256xf32>
    %144 = arith.mulf %143, %143 : vector<2x256xf32>
    %cst_32 = arith.constant dense<0.000000e+00> : vector<256xf32>
    %145 = vector.multi_reduction <add>, %144, %cst_32 [0] : vector<2x256xf32> to vector<256xf32>
    %146 = vector.shape_cast %145 : vector<256xf32> to vector<1x256xf32>
    %147 = arith.addf %140, %146 : vector<1x256xf32>
    %148 = vector.extract_strided_slice %2 {offsets = [0, 2816], sizes = [2, 256], strides = [1, 1]} : vector<2x4096xf32> to vector<2x256xf32>
    %149 = vector.broadcast %69 : vector<1x256xf32> to vector<2x256xf32>
    %150 = arith.subf %148, %149 : vector<2x256xf32>
    %151 = arith.mulf %150, %150 : vector<2x256xf32>
    %cst_33 = arith.constant dense<0.000000e+00> : vector<256xf32>
    %152 = vector.multi_reduction <add>, %151, %cst_33 [0] : vector<2x256xf32> to vector<256xf32>
    %153 = vector.shape_cast %152 : vector<256xf32> to vector<1x256xf32>
    %154 = arith.addf %147, %153 : vector<1x256xf32>
    %155 = vector.extract_strided_slice %2 {offsets = [0, 3072], sizes = [2, 256], strides = [1, 1]} : vector<2x4096xf32> to vector<2x256xf32>
    %156 = vector.broadcast %69 : vector<1x256xf32> to vector<2x256xf32>
    %157 = arith.subf %155, %156 : vector<2x256xf32>
    %158 = arith.mulf %157, %157 : vector<2x256xf32>
    %cst_34 = arith.constant dense<0.000000e+00> : vector<256xf32>
    %159 = vector.multi_reduction <add>, %158, %cst_34 [0] : vector<2x256xf32> to vector<256xf32>
    %160 = vector.shape_cast %159 : vector<256xf32> to vector<1x256xf32>
    %161 = arith.addf %154, %160 : vector<1x256xf32>
    %162 = vector.extract_strided_slice %2 {offsets = [0, 3328], sizes = [2, 256], strides = [1, 1]} : vector<2x4096xf32> to vector<2x256xf32>
    %163 = vector.broadcast %69 : vector<1x256xf32> to vector<2x256xf32>
    %164 = arith.subf %162, %163 : vector<2x256xf32>
    %165 = arith.mulf %164, %164 : vector<2x256xf32>
    %cst_35 = arith.constant dense<0.000000e+00> : vector<256xf32>
    %166 = vector.multi_reduction <add>, %165, %cst_35 [0] : vector<2x256xf32> to vector<256xf32>
    %167 = vector.shape_cast %166 : vector<256xf32> to vector<1x256xf32>
    %168 = arith.addf %161, %167 : vector<1x256xf32>
    %169 = vector.extract_strided_slice %2 {offsets = [0, 3584], sizes = [2, 256], strides = [1, 1]} : vector<2x4096xf32> to vector<2x256xf32>
    %170 = vector.broadcast %69 : vector<1x256xf32> to vector<2x256xf32>
    %171 = arith.subf %169, %170 : vector<2x256xf32>
    %172 = arith.mulf %171, %171 : vector<2x256xf32>
    %cst_36 = arith.constant dense<0.000000e+00> : vector<256xf32>
    %173 = vector.multi_reduction <add>, %172, %cst_36 [0] : vector<2x256xf32> to vector<256xf32>
    %174 = vector.shape_cast %173 : vector<256xf32> to vector<1x256xf32>
    %175 = arith.addf %168, %174 : vector<1x256xf32>
    %176 = vector.extract_strided_slice %2 {offsets = [0, 3840], sizes = [2, 256], strides = [1, 1]} : vector<2x4096xf32> to vector<2x256xf32>
    %177 = vector.broadcast %69 : vector<1x256xf32> to vector<2x256xf32>
    %178 = arith.subf %176, %177 : vector<2x256xf32>
    %179 = arith.mulf %178, %178 : vector<2x256xf32>
    %cst_37 = arith.constant dense<0.000000e+00> : vector<256xf32>
    %180 = vector.multi_reduction <add>, %179, %cst_37 [0] : vector<2x256xf32> to vector<256xf32>
    %181 = vector.shape_cast %180 : vector<256xf32> to vector<1x256xf32>
    %182 = arith.addf %175, %181 : vector<1x256xf32>
    %cst_38 = arith.constant 3.125000e-02 : f32
    %183 = vector.broadcast %cst_38 : f32 to vector<1x256xf32>
    %184 = arith.mulf %182, %183 : vector<1x256xf32>
    %c0_39 = arith.constant 0 : index
    %c0_40 = arith.constant 0 : index
    %185 = vector.load %arg3[%c0_39, %c0_40] : memref<1x256xf32, #tpu.memory_space<vmem>>, vector<1x256xf32>
    %cst_41 = arith.constant 9.99999974E-6 : f32
    %186 = vector.broadcast %cst_41 : f32 to vector<1x256xf32>
    %187 = arith.addf %184, %186 : vector<1x256xf32>
    %188 = math.rsqrt %187 : vector<1x256xf32>
    %189 = arith.mulf %185, %188 : vector<1x256xf32>
    %c0_42 = arith.constant 0 : index
    %c0_43 = arith.constant 0 : index
    %190 = vector.load %arg4[%c0_42, %c0_43] : memref<1x256xf32, #tpu.memory_space<vmem>>, vector<1x256xf32>
    %191 = arith.mulf %69, %189 : vector<1x256xf32>
    %192 = arith.subf %190, %191 : vector<1x256xf32>
    %193 = vector.extract_strided_slice %2 {offsets = [0, 0], sizes = [2, 256], strides = [1, 1]} : vector<2x4096xf32> to vector<2x256xf32>
    %194 = vector.broadcast %189 : vector<1x256xf32> to vector<2x256xf32>
    %195 = arith.mulf %193, %194 : vector<2x256xf32>
    %196 = vector.broadcast %192 : vector<1x256xf32> to vector<2x256xf32>
    %197 = arith.addf %195, %196 : vector<2x256xf32>
    %cst_44 = arith.constant 0.000000e+00 : f32
    %198 = vector.broadcast %cst_44 : f32 to vector<2x256xf32>
    %199 = arith.cmpf oge, %197, %198 : vector<2x256xf32>
    %cst_45 = arith.constant 2.000000e-01 : f32
    %200 = vector.broadcast %cst_45 : f32 to vector<2x256xf32>
    %201 = arith.mulf %200, %197 : vector<2x256xf32>
    %202 = arith.select %199, %197, %201 : vector<2x256xi1>, vector<2x256xf32>
    %c0_46 = arith.constant 0 : index
    %c0_47 = arith.constant 0 : index
    %203 = vector.load %arg5[%c0_46, %c0_47] : memref<2x4096xf32, #tpu.memory_space<vmem>>, vector<2x256xf32>
    tpu.vector_store %arg5[%c0_46, %c0_47], %202 {strides = array<i32>} : memref<2x4096xf32, #tpu.memory_space<vmem>>, vector<2x256xf32>,
    %204 = vector.extract_strided_slice %2 {offsets = [0, 256], sizes = [2, 256], strides = [1, 1]} : vector<2x4096xf32> to vector<2x256xf32>
    %205 = vector.broadcast %189 : vector<1x256xf32> to vector<2x256xf32>
    %206 = arith.mulf %204, %205 : vector<2x256xf32>
    %207 = vector.broadcast %192 : vector<1x256xf32> to vector<2x256xf32>
    %208 = arith.addf %206, %207 : vector<2x256xf32>
    %cst_48 = arith.constant 0.000000e+00 : f32
    %209 = vector.broadcast %cst_48 : f32 to vector<2x256xf32>
    %210 = arith.cmpf oge, %208, %209 : vector<2x256xf32>
    %cst_49 = arith.constant 2.000000e-01 : f32
    %211 = vector.broadcast %cst_49 : f32 to vector<2x256xf32>
    %212 = arith.mulf %211, %208 : vector<2x256xf32>
    %213 = arith.select %210, %208, %212 : vector<2x256xi1>, vector<2x256xf32>
    %c0_50 = arith.constant 0 : index
    %c256 = arith.constant 256 : index
    %214 = vector.load %arg5[%c0_50, %c256] : memref<2x4096xf32, #tpu.memory_space<vmem>>, vector<2x256xf32>
    tpu.vector_store %arg5[%c0_50, %c256], %213 {strides = array<i32>} : memref<2x4096xf32, #tpu.memory_space<vmem>>, vector<2x256xf32>,
    %215 = vector.extract_strided_slice %2 {offsets = [0, 512], sizes = [2, 256], strides = [1, 1]} : vector<2x4096xf32> to vector<2x256xf32>
    %216 = vector.broadcast %189 : vector<1x256xf32> to vector<2x256xf32>
    %217 = arith.mulf %215, %216 : vector<2x256xf32>
    %218 = vector.broadcast %192 : vector<1x256xf32> to vector<2x256xf32>
    %219 = arith.addf %217, %218 : vector<2x256xf32>
    %cst_51 = arith.constant 0.000000e+00 : f32
    %220 = vector.broadcast %cst_51 : f32 to vector<2x256xf32>
    %221 = arith.cmpf oge, %219, %220 : vector<2x256xf32>
    %cst_52 = arith.constant 2.000000e-01 : f32
    %222 = vector.broadcast %cst_52 : f32 to vector<2x256xf32>
    %223 = arith.mulf %222, %219 : vector<2x256xf32>
    %224 = arith.select %221, %219, %223 : vector<2x256xi1>, vector<2x256xf32>
    %c0_53 = arith.constant 0 : index
    %c512 = arith.constant 512 : index
    %225 = vector.load %arg5[%c0_53, %c512] : memref<2x4096xf32, #tpu.memory_space<vmem>>, vector<2x256xf32>
    tpu.vector_store %arg5[%c0_53, %c512], %224 {strides = array<i32>} : memref<2x4096xf32, #tpu.memory_space<vmem>>, vector<2x256xf32>,
    %226 = vector.extract_strided_slice %2 {offsets = [0, 768], sizes = [2, 256], strides = [1, 1]} : vector<2x4096xf32> to vector<2x256xf32>
    %227 = vector.broadcast %189 : vector<1x256xf32> to vector<2x256xf32>
    %228 = arith.mulf %226, %227 : vector<2x256xf32>
    %229 = vector.broadcast %192 : vector<1x256xf32> to vector<2x256xf32>
    %230 = arith.addf %228, %229 : vector<2x256xf32>
    %cst_54 = arith.constant 0.000000e+00 : f32
    %231 = vector.broadcast %cst_54 : f32 to vector<2x256xf32>
    %232 = arith.cmpf oge, %230, %231 : vector<2x256xf32>
    %cst_55 = arith.constant 2.000000e-01 : f32
    %233 = vector.broadcast %cst_55 : f32 to vector<2x256xf32>
    %234 = arith.mulf %233, %230 : vector<2x256xf32>
    %235 = arith.select %232, %230, %234 : vector<2x256xi1>, vector<2x256xf32>
    %c0_56 = arith.constant 0 : index
    %c768 = arith.constant 768 : index
    %236 = vector.load %arg5[%c0_56, %c768] : memref<2x4096xf32, #tpu.memory_space<vmem>>, vector<2x256xf32>
    tpu.vector_store %arg5[%c0_56, %c768], %235 {strides = array<i32>} : memref<2x4096xf32, #tpu.memory_space<vmem>>, vector<2x256xf32>,
    %237 = vector.extract_strided_slice %2 {offsets = [0, 1024], sizes = [2, 256], strides = [1, 1]} : vector<2x4096xf32> to vector<2x256xf32>
    %238 = vector.broadcast %189 : vector<1x256xf32> to vector<2x256xf32>
    %239 = arith.mulf %237, %238 : vector<2x256xf32>
    %240 = vector.broadcast %192 : vector<1x256xf32> to vector<2x256xf32>
    %241 = arith.addf %239, %240 : vector<2x256xf32>
    %cst_57 = arith.constant 0.000000e+00 : f32
    %242 = vector.broadcast %cst_57 : f32 to vector<2x256xf32>
    %243 = arith.cmpf oge, %241, %242 : vector<2x256xf32>
    %cst_58 = arith.constant 2.000000e-01 : f32
    %244 = vector.broadcast %cst_58 : f32 to vector<2x256xf32>
    %245 = arith.mulf %244, %241 : vector<2x256xf32>
    %246 = arith.select %243, %241, %245 : vector<2x256xi1>, vector<2x256xf32>
    %c0_59 = arith.constant 0 : index
    %c1024 = arith.constant 1024 : index
    %247 = vector.load %arg5[%c0_59, %c1024] : memref<2x4096xf32, #tpu.memory_space<vmem>>, vector<2x256xf32>
    tpu.vector_store %arg5[%c0_59, %c1024], %246 {strides = array<i32>} : memref<2x4096xf32, #tpu.memory_space<vmem>>, vector<2x256xf32>,
    %248 = vector.extract_strided_slice %2 {offsets = [0, 1280], sizes = [2, 256], strides = [1, 1]} : vector<2x4096xf32> to vector<2x256xf32>
    %249 = vector.broadcast %189 : vector<1x256xf32> to vector<2x256xf32>
    %250 = arith.mulf %248, %249 : vector<2x256xf32>
    %251 = vector.broadcast %192 : vector<1x256xf32> to vector<2x256xf32>
    %252 = arith.addf %250, %251 : vector<2x256xf32>
    %cst_60 = arith.constant 0.000000e+00 : f32
    %253 = vector.broadcast %cst_60 : f32 to vector<2x256xf32>
    %254 = arith.cmpf oge, %252, %253 : vector<2x256xf32>
    %cst_61 = arith.constant 2.000000e-01 : f32
    %255 = vector.broadcast %cst_61 : f32 to vector<2x256xf32>
    %256 = arith.mulf %255, %252 : vector<2x256xf32>
    %257 = arith.select %254, %252, %256 : vector<2x256xi1>, vector<2x256xf32>
    %c0_62 = arith.constant 0 : index
    %c1280 = arith.constant 1280 : index
    %258 = vector.load %arg5[%c0_62, %c1280] : memref<2x4096xf32, #tpu.memory_space<vmem>>, vector<2x256xf32>
    tpu.vector_store %arg5[%c0_62, %c1280], %257 {strides = array<i32>} : memref<2x4096xf32, #tpu.memory_space<vmem>>, vector<2x256xf32>,
    %259 = vector.extract_strided_slice %2 {offsets = [0, 1536], sizes = [2, 256], strides = [1, 1]} : vector<2x4096xf32> to vector<2x256xf32>
    %260 = vector.broadcast %189 : vector<1x256xf32> to vector<2x256xf32>
    %261 = arith.mulf %259, %260 : vector<2x256xf32>
    %262 = vector.broadcast %192 : vector<1x256xf32> to vector<2x256xf32>
    %263 = arith.addf %261, %262 : vector<2x256xf32>
    %cst_63 = arith.constant 0.000000e+00 : f32
    %264 = vector.broadcast %cst_63 : f32 to vector<2x256xf32>
    %265 = arith.cmpf oge, %263, %264 : vector<2x256xf32>
    %cst_64 = arith.constant 2.000000e-01 : f32
    %266 = vector.broadcast %cst_64 : f32 to vector<2x256xf32>
    %267 = arith.mulf %266, %263 : vector<2x256xf32>
    %268 = arith.select %265, %263, %267 : vector<2x256xi1>, vector<2x256xf32>
    %c0_65 = arith.constant 0 : index
    %c1536 = arith.constant 1536 : index
    %269 = vector.load %arg5[%c0_65, %c1536] : memref<2x4096xf32, #tpu.memory_space<vmem>>, vector<2x256xf32>
    tpu.vector_store %arg5[%c0_65, %c1536], %268 {strides = array<i32>} : memref<2x4096xf32, #tpu.memory_space<vmem>>, vector<2x256xf32>,
    %270 = vector.extract_strided_slice %2 {offsets = [0, 1792], sizes = [2, 256], strides = [1, 1]} : vector<2x4096xf32> to vector<2x256xf32>
    %271 = vector.broadcast %189 : vector<1x256xf32> to vector<2x256xf32>
    %272 = arith.mulf %270, %271 : vector<2x256xf32>
    %273 = vector.broadcast %192 : vector<1x256xf32> to vector<2x256xf32>
    %274 = arith.addf %272, %273 : vector<2x256xf32>
    %cst_66 = arith.constant 0.000000e+00 : f32
    %275 = vector.broadcast %cst_66 : f32 to vector<2x256xf32>
    %276 = arith.cmpf oge, %274, %275 : vector<2x256xf32>
    %cst_67 = arith.constant 2.000000e-01 : f32
    %277 = vector.broadcast %cst_67 : f32 to vector<2x256xf32>
    %278 = arith.mulf %277, %274 : vector<2x256xf32>
    %279 = arith.select %276, %274, %278 : vector<2x256xi1>, vector<2x256xf32>
    %c0_68 = arith.constant 0 : index
    %c1792 = arith.constant 1792 : index
    %280 = vector.load %arg5[%c0_68, %c1792] : memref<2x4096xf32, #tpu.memory_space<vmem>>, vector<2x256xf32>
    tpu.vector_store %arg5[%c0_68, %c1792], %279 {strides = array<i32>} : memref<2x4096xf32, #tpu.memory_space<vmem>>, vector<2x256xf32>,
    %281 = vector.extract_strided_slice %2 {offsets = [0, 2048], sizes = [2, 256], strides = [1, 1]} : vector<2x4096xf32> to vector<2x256xf32>
    %282 = vector.broadcast %189 : vector<1x256xf32> to vector<2x256xf32>
    %283 = arith.mulf %281, %282 : vector<2x256xf32>
    %284 = vector.broadcast %192 : vector<1x256xf32> to vector<2x256xf32>
    %285 = arith.addf %283, %284 : vector<2x256xf32>
    %cst_69 = arith.constant 0.000000e+00 : f32
    %286 = vector.broadcast %cst_69 : f32 to vector<2x256xf32>
    %287 = arith.cmpf oge, %285, %286 : vector<2x256xf32>
    %cst_70 = arith.constant 2.000000e-01 : f32
    %288 = vector.broadcast %cst_70 : f32 to vector<2x256xf32>
    %289 = arith.mulf %288, %285 : vector<2x256xf32>
    %290 = arith.select %287, %285, %289 : vector<2x256xi1>, vector<2x256xf32>
    %c0_71 = arith.constant 0 : index
    %c2048 = arith.constant 2048 : index
    %291 = vector.load %arg5[%c0_71, %c2048] : memref<2x4096xf32, #tpu.memory_space<vmem>>, vector<2x256xf32>
    tpu.vector_store %arg5[%c0_71, %c2048], %290 {strides = array<i32>} : memref<2x4096xf32, #tpu.memory_space<vmem>>, vector<2x256xf32>,
    %292 = vector.extract_strided_slice %2 {offsets = [0, 2304], sizes = [2, 256], strides = [1, 1]} : vector<2x4096xf32> to vector<2x256xf32>
    %293 = vector.broadcast %189 : vector<1x256xf32> to vector<2x256xf32>
    %294 = arith.mulf %292, %293 : vector<2x256xf32>
    %295 = vector.broadcast %192 : vector<1x256xf32> to vector<2x256xf32>
    %296 = arith.addf %294, %295 : vector<2x256xf32>
    %cst_72 = arith.constant 0.000000e+00 : f32
    %297 = vector.broadcast %cst_72 : f32 to vector<2x256xf32>
    %298 = arith.cmpf oge, %296, %297 : vector<2x256xf32>
    %cst_73 = arith.constant 2.000000e-01 : f32
    %299 = vector.broadcast %cst_73 : f32 to vector<2x256xf32>
    %300 = arith.mulf %299, %296 : vector<2x256xf32>
    %301 = arith.select %298, %296, %300 : vector<2x256xi1>, vector<2x256xf32>
    %c0_74 = arith.constant 0 : index
    %c2304 = arith.constant 2304 : index
    %302 = vector.load %arg5[%c0_74, %c2304] : memref<2x4096xf32, #tpu.memory_space<vmem>>, vector<2x256xf32>
    tpu.vector_store %arg5[%c0_74, %c2304], %301 {strides = array<i32>} : memref<2x4096xf32, #tpu.memory_space<vmem>>, vector<2x256xf32>,
    %303 = vector.extract_strided_slice %2 {offsets = [0, 2560], sizes = [2, 256], strides = [1, 1]} : vector<2x4096xf32> to vector<2x256xf32>
    %304 = vector.broadcast %189 : vector<1x256xf32> to vector<2x256xf32>
    %305 = arith.mulf %303, %304 : vector<2x256xf32>
    %306 = vector.broadcast %192 : vector<1x256xf32> to vector<2x256xf32>
    %307 = arith.addf %305, %306 : vector<2x256xf32>
    %cst_75 = arith.constant 0.000000e+00 : f32
    %308 = vector.broadcast %cst_75 : f32 to vector<2x256xf32>
    %309 = arith.cmpf oge, %307, %308 : vector<2x256xf32>
    %cst_76 = arith.constant 2.000000e-01 : f32
    %310 = vector.broadcast %cst_76 : f32 to vector<2x256xf32>
    %311 = arith.mulf %310, %307 : vector<2x256xf32>
    %312 = arith.select %309, %307, %311 : vector<2x256xi1>, vector<2x256xf32>
    %c0_77 = arith.constant 0 : index
    %c2560 = arith.constant 2560 : index
    %313 = vector.load %arg5[%c0_77, %c2560] : memref<2x4096xf32, #tpu.memory_space<vmem>>, vector<2x256xf32>
    tpu.vector_store %arg5[%c0_77, %c2560], %312 {strides = array<i32>} : memref<2x4096xf32, #tpu.memory_space<vmem>>, vector<2x256xf32>,
    %314 = vector.extract_strided_slice %2 {offsets = [0, 2816], sizes = [2, 256], strides = [1, 1]} : vector<2x4096xf32> to vector<2x256xf32>
    %315 = vector.broadcast %189 : vector<1x256xf32> to vector<2x256xf32>
    %316 = arith.mulf %314, %315 : vector<2x256xf32>
    %317 = vector.broadcast %192 : vector<1x256xf32> to vector<2x256xf32>
    %318 = arith.addf %316, %317 : vector<2x256xf32>
    %cst_78 = arith.constant 0.000000e+00 : f32
    %319 = vector.broadcast %cst_78 : f32 to vector<2x256xf32>
    %320 = arith.cmpf oge, %318, %319 : vector<2x256xf32>
    %cst_79 = arith.constant 2.000000e-01 : f32
    %321 = vector.broadcast %cst_79 : f32 to vector<2x256xf32>
    %322 = arith.mulf %321, %318 : vector<2x256xf32>
    %323 = arith.select %320, %318, %322 : vector<2x256xi1>, vector<2x256xf32>
    %c0_80 = arith.constant 0 : index
    %c2816 = arith.constant 2816 : index
    %324 = vector.load %arg5[%c0_80, %c2816] : memref<2x4096xf32, #tpu.memory_space<vmem>>, vector<2x256xf32>
    tpu.vector_store %arg5[%c0_80, %c2816], %323 {strides = array<i32>} : memref<2x4096xf32, #tpu.memory_space<vmem>>, vector<2x256xf32>,
    %325 = vector.extract_strided_slice %2 {offsets = [0, 3072], sizes = [2, 256], strides = [1, 1]} : vector<2x4096xf32> to vector<2x256xf32>
    %326 = vector.broadcast %189 : vector<1x256xf32> to vector<2x256xf32>
    %327 = arith.mulf %325, %326 : vector<2x256xf32>
    %328 = vector.broadcast %192 : vector<1x256xf32> to vector<2x256xf32>
    %329 = arith.addf %327, %328 : vector<2x256xf32>
    %cst_81 = arith.constant 0.000000e+00 : f32
    %330 = vector.broadcast %cst_81 : f32 to vector<2x256xf32>
    %331 = arith.cmpf oge, %329, %330 : vector<2x256xf32>
    %cst_82 = arith.constant 2.000000e-01 : f32
    %332 = vector.broadcast %cst_82 : f32 to vector<2x256xf32>
    %333 = arith.mulf %332, %329 : vector<2x256xf32>
    %334 = arith.select %331, %329, %333 : vector<2x256xi1>, vector<2x256xf32>
    %c0_83 = arith.constant 0 : index
    %c3072 = arith.constant 3072 : index
    %335 = vector.load %arg5[%c0_83, %c3072] : memref<2x4096xf32, #tpu.memory_space<vmem>>, vector<2x256xf32>
    tpu.vector_store %arg5[%c0_83, %c3072], %334 {strides = array<i32>} : memref<2x4096xf32, #tpu.memory_space<vmem>>, vector<2x256xf32>,
    %336 = vector.extract_strided_slice %2 {offsets = [0, 3328], sizes = [2, 256], strides = [1, 1]} : vector<2x4096xf32> to vector<2x256xf32>
    %337 = vector.broadcast %189 : vector<1x256xf32> to vector<2x256xf32>
    %338 = arith.mulf %336, %337 : vector<2x256xf32>
    %339 = vector.broadcast %192 : vector<1x256xf32> to vector<2x256xf32>
    %340 = arith.addf %338, %339 : vector<2x256xf32>
    %cst_84 = arith.constant 0.000000e+00 : f32
    %341 = vector.broadcast %cst_84 : f32 to vector<2x256xf32>
    %342 = arith.cmpf oge, %340, %341 : vector<2x256xf32>
    %cst_85 = arith.constant 2.000000e-01 : f32
    %343 = vector.broadcast %cst_85 : f32 to vector<2x256xf32>
    %344 = arith.mulf %343, %340 : vector<2x256xf32>
    %345 = arith.select %342, %340, %344 : vector<2x256xi1>, vector<2x256xf32>
    %c0_86 = arith.constant 0 : index
    %c3328 = arith.constant 3328 : index
    %346 = vector.load %arg5[%c0_86, %c3328] : memref<2x4096xf32, #tpu.memory_space<vmem>>, vector<2x256xf32>
    tpu.vector_store %arg5[%c0_86, %c3328], %345 {strides = array<i32>} : memref<2x4096xf32, #tpu.memory_space<vmem>>, vector<2x256xf32>,
    %347 = vector.extract_strided_slice %2 {offsets = [0, 3584], sizes = [2, 256], strides = [1, 1]} : vector<2x4096xf32> to vector<2x256xf32>
    %348 = vector.broadcast %189 : vector<1x256xf32> to vector<2x256xf32>
    %349 = arith.mulf %347, %348 : vector<2x256xf32>
    %350 = vector.broadcast %192 : vector<1x256xf32> to vector<2x256xf32>
    %351 = arith.addf %349, %350 : vector<2x256xf32>
    %cst_87 = arith.constant 0.000000e+00 : f32
    %352 = vector.broadcast %cst_87 : f32 to vector<2x256xf32>
    %353 = arith.cmpf oge, %351, %352 : vector<2x256xf32>
    %cst_88 = arith.constant 2.000000e-01 : f32
    %354 = vector.broadcast %cst_88 : f32 to vector<2x256xf32>
    %355 = arith.mulf %354, %351 : vector<2x256xf32>
    %356 = arith.select %353, %351, %355 : vector<2x256xi1>, vector<2x256xf32>
    %c0_89 = arith.constant 0 : index
    %c3584 = arith.constant 3584 : index
    %357 = vector.load %arg5[%c0_89, %c3584] : memref<2x4096xf32, #tpu.memory_space<vmem>>, vector<2x256xf32>
    tpu.vector_store %arg5[%c0_89, %c3584], %356 {strides = array<i32>} : memref<2x4096xf32, #tpu.memory_space<vmem>>, vector<2x256xf32>,
    %358 = vector.extract_strided_slice %2 {offsets = [0, 3840], sizes = [2, 256], strides = [1, 1]} : vector<2x4096xf32> to vector<2x256xf32>
    %359 = vector.broadcast %189 : vector<1x256xf32> to vector<2x256xf32>
    %360 = arith.mulf %358, %359 : vector<2x256xf32>
    %361 = vector.broadcast %192 : vector<1x256xf32> to vector<2x256xf32>
    %362 = arith.addf %360, %361 : vector<2x256xf32>
    %cst_90 = arith.constant 0.000000e+00 : f32
    %363 = vector.broadcast %cst_90 : f32 to vector<2x256xf32>
    %364 = arith.cmpf oge, %362, %363 : vector<2x256xf32>
    %cst_91 = arith.constant 2.000000e-01 : f32
    %365 = vector.broadcast %cst_91 : f32 to vector<2x256xf32>
    %366 = arith.mulf %365, %362 : vector<2x256xf32>
    %367 = arith.select %364, %362, %366 : vector<2x256xi1>, vector<2x256xf32>
    %c0_92 = arith.constant 0 : index
    %c3840 = arith.constant 3840 : index
    %368 = vector.load %arg5[%c0_92, %c3840] : memref<2x4096xf32, #tpu.memory_space<vmem>>, vector<2x256xf32>
    tpu.vector_store %arg5[%c0_92, %c3840], %367 {strides = array<i32>} : memref<2x4096xf32, #tpu.memory_space<vmem>>, vector<2x256xf32>,
    return
  }
  func.func @transform_0(%arg0: i32) -> (i32, i32) {
    %c0_i32 = arith.constant 0 : i32
    %c0_i32_0 = arith.constant 0 : i32
    %c0_i32_1 = arith.constant 0 : i32
    return %c0_i32, %c0_i32_0 : i32, i32
  }
  func.func @transform_1(%arg0: i32) -> (i32, i32) {
    %c0_i32 = arith.constant 0 : i32
    %c0_i32_0 = arith.constant 0 : i32
    %c0_i32_1 = arith.constant 0 : i32
    return %c0_i32, %c0_i32_0 : i32, i32
  }
  func.func @transform_2(%arg0: i32) -> (i32, i32) {
    %c0_i32 = arith.constant 0 : i32
    %c0_i32_0 = arith.constant 0 : i32
    %c0_i32_1 = arith.constant 0 : i32
    return %c0_i32, %c0_i32_0 : i32, i32
  }
  func.func @transform_3(%arg0: i32) -> (i32, i32) {
    %c0_i32 = arith.constant 0 : i32
    %c0_i32_0 = arith.constant 0 : i32
    %c0_i32_1 = arith.constant 0 : i32
    return %c0_i32, %c0_i32_0 : i32, i32
  }
  func.func @transform_4(%arg0: i32) -> (i32, i32) {
    %c0_i32 = arith.constant 0 : i32
    %c0_i32_0 = arith.constant 0 : i32
    %c0_i32_1 = arith.constant 0 : i32
    return %c0_i32, %c0_i32_0 : i32, i32
  }
}

module attributes {stable_mosaic.version = 11 : i64} {
  func.func @_conv_bn_act_kernel(%arg0: i32, %arg1: i32, %arg2: memref<1x1024x32xbf16, #tpu.memory_space<vmem>>, %arg3: memref<1x128x1024xbf16, #tpu.memory_space<vmem>>, %arg4: memref<128x1xf32, #tpu.memory_space<vmem>>, %arg5: memref<128x1xf32, #tpu.memory_space<vmem>>, %arg6: memref<4x128x32xf32, #tpu.memory_space<vmem>>, %arg7: memref<128x1xf32, #tpu.memory_space<vmem>>) attributes {dimension_semantics = [#tpu.dimension_semantics<arbitrary>, #tpu.dimension_semantics<arbitrary>], iteration_bounds = array<i64: 4, 1>, scalar_prefetch = 0 : i64, scratch_operands = 1 : i64, tpu.core_type = #tpu.core_type<tc>, window_params = [{transform_indices = @transform_0, window_bounds = array<i64: 1, 1024, 32>}, {transform_indices = @transform_1, window_bounds = array<i64: 1, 128, 1024>}, {pipeline_mode = #tpu.pipeline_mode<synchronous>, transform_indices = @transform_2, window_bounds = array<i64: 128, 1>}, {pipeline_mode = #tpu.pipeline_mode<synchronous>, transform_indices = @transform_3, window_bounds = array<i64: 128, 1>}, {pipeline_mode = #tpu.pipeline_mode<synchronous>, transform_indices = @transform_4, window_bounds = array<i64: 4, 128, 32>}]} {
    %c0_i32 = arith.constant 0 : i32
    %0 = arith.cmpi eq, %arg0, %c0_i32 : i32
    %c0_i32_0 = arith.constant 0 : i32
    %1 = arith.cmpi eq, %arg1, %c0_i32_0 : i32
    %2 = arith.andi %0, %1 : i1
    %3 = arith.extui %2 : i1 to i32
    %c0_i32_1 = arith.constant 0 : i32
    %4 = arith.cmpi ne, %3, %c0_i32_1 : i32
    scf.if %4 {
      %cst_16 = arith.constant 0.000000e+00 : f32
      %24 = vector.broadcast %cst_16 : f32 to vector<128x1xf32>
      %c0_17 = arith.constant 0 : index
      %c0_18 = arith.constant 0 : index
      %25 = vector.load %arg7[%c0_17, %c0_18] : memref<128x1xf32, #tpu.memory_space<vmem>>, vector<128x1xf32>
      tpu.vector_store %arg7[%c0_17, %c0_18], %24 {strides = array<i32>} : memref<128x1xf32, #tpu.memory_space<vmem>>, vector<128x1xf32>,
    } else {
    }
    %c0 = arith.constant 0 : index
    %c0_2 = arith.constant 0 : index
    %c0_3 = arith.constant 0 : index
    %5 = vector.load %arg3[%c0, %c0_2, %c0_3] : memref<1x128x1024xbf16, #tpu.memory_space<vmem>>, vector<1x128x1024xbf16>
    %6 = vector.shape_cast %5 : vector<1x128x1024xbf16> to vector<128x1024xbf16>
    %c0_4 = arith.constant 0 : index
    %c0_5 = arith.constant 0 : index
    %c0_6 = arith.constant 0 : index
    %7 = vector.load %arg2[%c0_4, %c0_5, %c0_6] : memref<1x1024x32xbf16, #tpu.memory_space<vmem>>, vector<1x1024x32xbf16>
    %8 = vector.shape_cast %7 : vector<1x1024x32xbf16> to vector<1024x32xbf16>
    %cst = arith.constant dense<0.000000e+00> : vector<128x32xf32>
    %9 = tpu.matmul %6, %8, %cst {dimension_numbers = #tpu.dot_dimension_numbers<[1], [0], [0], [1], [0, 0, 1, 1], [], []>} : vector<128x1024xbf16>, vector<1024x32xbf16>, vector<128x32xf32> -> vector<128x32xf32>
    %10 = arith.index_cast %arg0 : i32 to index
    %c0_7 = arith.constant 0 : index
    %c0_8 = arith.constant 0 : index
    %11 = vector.load %arg6[%10, %c0_7, %c0_8] : memref<4x128x32xf32, #tpu.memory_space<vmem>>, vector<1x128x32xf32>
    %12 = vector.shape_cast %11 : vector<1x128x32xf32> to vector<128x32xf32>
    %13 = vector.shape_cast %9 : vector<128x32xf32> to vector<1x128x32xf32>
    tpu.vector_store %arg6[%10, %c0_7, %c0_8], %13 {strides = array<i32>} : memref<4x128x32xf32, #tpu.memory_space<vmem>>, vector<1x128x32xf32>,
    %c0_9 = arith.constant 0 : index
    %c0_10 = arith.constant 0 : index
    %14 = vector.load %arg7[%c0_9, %c0_10] : memref<128x1xf32, #tpu.memory_space<vmem>>, vector<128x1xf32>
    %cst_11 = arith.constant dense<0.000000e+00> : vector<128xf32>
    %15 = vector.multi_reduction <add>, %9, %cst_11 [1] : vector<128x32xf32> to vector<128xf32>
    %16 = vector.shape_cast %15 : vector<128xf32> to vector<128x1xf32>
    %17 = arith.addf %14, %16 : vector<128x1xf32>
    %c0_12 = arith.constant 0 : index
    %c0_13 = arith.constant 0 : index
    %18 = vector.load %arg7[%c0_12, %c0_13] : memref<128x1xf32, #tpu.memory_space<vmem>>, vector<128x1xf32>
    tpu.vector_store %arg7[%c0_12, %c0_13], %17 {strides = array<i32>} : memref<128x1xf32, #tpu.memory_space<vmem>>, vector<128x1xf32>,
    %c3_i32 = arith.constant 3 : i32
    %19 = arith.cmpi eq, %arg0, %c3_i32 : i32
    %c0_i32_14 = arith.constant 0 : i32
    %20 = arith.cmpi eq, %arg1, %c0_i32_14 : i32
    %21 = arith.andi %19, %20 : i1
    %22 = arith.extui %21 : i1 to i32
    %c0_i32_15 = arith.constant 0 : i32
    %23 = arith.cmpi ne, %22, %c0_i32_15 : i32
    scf.if %23 {
      %c0_16 = arith.constant 0 : index
      %c0_17 = arith.constant 0 : index
      %24 = vector.load %arg7[%c0_16, %c0_17] : memref<128x1xf32, #tpu.memory_space<vmem>>, vector<128x1xf32>
      %cst_18 = arith.constant 7.812500e-03 : f32
      %25 = vector.broadcast %cst_18 : f32 to vector<128x1xf32>
      %26 = arith.mulf %24, %25 : vector<128x1xf32>
      %cst_19 = arith.constant 0.000000e+00 : f32
      %27 = vector.broadcast %cst_19 : f32 to vector<128x1xf32>
      %c0_20 = arith.constant 0 : index
      %c0_21 = arith.constant 0 : index
      %c0_22 = arith.constant 0 : index
      %28 = vector.load %arg6[%c0_20, %c0_21, %c0_22] : memref<4x128x32xf32, #tpu.memory_space<vmem>>, vector<1x128x32xf32>
      %29 = vector.shape_cast %28 : vector<1x128x32xf32> to vector<128x32xf32>
      %30 = vector.broadcast %26 : vector<128x1xf32> to vector<128x32xf32>
      %31 = arith.subf %29, %30 : vector<128x32xf32>
      %32 = arith.mulf %31, %31 : vector<128x32xf32>
      %cst_23 = arith.constant dense<0.000000e+00> : vector<128xf32>
      %33 = vector.multi_reduction <add>, %32, %cst_23 [1] : vector<128x32xf32> to vector<128xf32>
      %34 = vector.shape_cast %33 : vector<128xf32> to vector<128x1xf32>
      %35 = arith.addf %27, %34 : vector<128x1xf32>
      %c1 = arith.constant 1 : index
      %c0_24 = arith.constant 0 : index
      %c0_25 = arith.constant 0 : index
      %36 = vector.load %arg6[%c1, %c0_24, %c0_25] : memref<4x128x32xf32, #tpu.memory_space<vmem>>, vector<1x128x32xf32>
      %37 = vector.shape_cast %36 : vector<1x128x32xf32> to vector<128x32xf32>
      %38 = vector.broadcast %26 : vector<128x1xf32> to vector<128x32xf32>
      %39 = arith.subf %37, %38 : vector<128x32xf32>
      %40 = arith.mulf %39, %39 : vector<128x32xf32>
      %cst_26 = arith.constant dense<0.000000e+00> : vector<128xf32>
      %41 = vector.multi_reduction <add>, %40, %cst_26 [1] : vector<128x32xf32> to vector<128xf32>
      %42 = vector.shape_cast %41 : vector<128xf32> to vector<128x1xf32>
      %43 = arith.addf %35, %42 : vector<128x1xf32>
      %c2 = arith.constant 2 : index
      %c0_27 = arith.constant 0 : index
      %c0_28 = arith.constant 0 : index
      %44 = vector.load %arg6[%c2, %c0_27, %c0_28] : memref<4x128x32xf32, #tpu.memory_space<vmem>>, vector<1x128x32xf32>
      %45 = vector.shape_cast %44 : vector<1x128x32xf32> to vector<128x32xf32>
      %46 = vector.broadcast %26 : vector<128x1xf32> to vector<128x32xf32>
      %47 = arith.subf %45, %46 : vector<128x32xf32>
      %48 = arith.mulf %47, %47 : vector<128x32xf32>
      %cst_29 = arith.constant dense<0.000000e+00> : vector<128xf32>
      %49 = vector.multi_reduction <add>, %48, %cst_29 [1] : vector<128x32xf32> to vector<128xf32>
      %50 = vector.shape_cast %49 : vector<128xf32> to vector<128x1xf32>
      %51 = arith.addf %43, %50 : vector<128x1xf32>
      %c3 = arith.constant 3 : index
      %c0_30 = arith.constant 0 : index
      %c0_31 = arith.constant 0 : index
      %52 = vector.load %arg6[%c3, %c0_30, %c0_31] : memref<4x128x32xf32, #tpu.memory_space<vmem>>, vector<1x128x32xf32>
      %53 = vector.shape_cast %52 : vector<1x128x32xf32> to vector<128x32xf32>
      %54 = vector.broadcast %26 : vector<128x1xf32> to vector<128x32xf32>
      %55 = arith.subf %53, %54 : vector<128x32xf32>
      %56 = arith.mulf %55, %55 : vector<128x32xf32>
      %cst_32 = arith.constant dense<0.000000e+00> : vector<128xf32>
      %57 = vector.multi_reduction <add>, %56, %cst_32 [1] : vector<128x32xf32> to vector<128xf32>
      %58 = vector.shape_cast %57 : vector<128xf32> to vector<128x1xf32>
      %59 = arith.addf %51, %58 : vector<128x1xf32>
      %cst_33 = arith.constant 7.812500e-03 : f32
      %60 = vector.broadcast %cst_33 : f32 to vector<128x1xf32>
      %61 = arith.mulf %59, %60 : vector<128x1xf32>
      %c0_34 = arith.constant 0 : index
      %c0_35 = arith.constant 0 : index
      %62 = vector.load %arg4[%c0_34, %c0_35] : memref<128x1xf32, #tpu.memory_space<vmem>>, vector<128x1xf32>
      %cst_36 = arith.constant 9.99999974E-6 : f32
      %63 = vector.broadcast %cst_36 : f32 to vector<128x1xf32>
      %64 = arith.addf %61, %63 : vector<128x1xf32>
      %65 = math.rsqrt %64 : vector<128x1xf32>
      %66 = arith.mulf %62, %65 : vector<128x1xf32>
      %c0_37 = arith.constant 0 : index
      %c0_38 = arith.constant 0 : index
      %67 = vector.load %arg5[%c0_37, %c0_38] : memref<128x1xf32, #tpu.memory_space<vmem>>, vector<128x1xf32>
      %68 = arith.mulf %26, %66 : vector<128x1xf32>
      %69 = arith.subf %67, %68 : vector<128x1xf32>
      %c0_39 = arith.constant 0 : index
      %c0_40 = arith.constant 0 : index
      %c0_41 = arith.constant 0 : index
      %70 = vector.load %arg6[%c0_39, %c0_40, %c0_41] : memref<4x128x32xf32, #tpu.memory_space<vmem>>, vector<1x128x32xf32>
      %71 = vector.shape_cast %70 : vector<1x128x32xf32> to vector<128x32xf32>
      %72 = vector.broadcast %66 : vector<128x1xf32> to vector<128x32xf32>
      %73 = arith.mulf %71, %72 : vector<128x32xf32>
      %74 = vector.broadcast %69 : vector<128x1xf32> to vector<128x32xf32>
      %75 = arith.addf %73, %74 : vector<128x32xf32>
      %cst_42 = arith.constant 0.000000e+00 : f32
      %76 = vector.broadcast %cst_42 : f32 to vector<128x32xf32>
      %77 = arith.cmpf oge, %75, %76 : vector<128x32xf32>
      %cst_43 = arith.constant 2.000000e-01 : f32
      %78 = vector.broadcast %cst_43 : f32 to vector<128x32xf32>
      %79 = arith.mulf %78, %75 : vector<128x32xf32>
      %80 = arith.select %77, %75, %79 : vector<128x32xi1>, vector<128x32xf32>
      %c0_44 = arith.constant 0 : index
      %c0_45 = arith.constant 0 : index
      %c0_46 = arith.constant 0 : index
      %81 = vector.load %arg6[%c0_44, %c0_45, %c0_46] : memref<4x128x32xf32, #tpu.memory_space<vmem>>, vector<1x128x32xf32>
      %82 = vector.shape_cast %81 : vector<1x128x32xf32> to vector<128x32xf32>
      %83 = vector.shape_cast %80 : vector<128x32xf32> to vector<1x128x32xf32>
      tpu.vector_store %arg6[%c0_44, %c0_45, %c0_46], %83 {strides = array<i32>} : memref<4x128x32xf32, #tpu.memory_space<vmem>>, vector<1x128x32xf32>,
      %c1_47 = arith.constant 1 : index
      %c0_48 = arith.constant 0 : index
      %c0_49 = arith.constant 0 : index
      %84 = vector.load %arg6[%c1_47, %c0_48, %c0_49] : memref<4x128x32xf32, #tpu.memory_space<vmem>>, vector<1x128x32xf32>
      %85 = vector.shape_cast %84 : vector<1x128x32xf32> to vector<128x32xf32>
      %86 = vector.broadcast %66 : vector<128x1xf32> to vector<128x32xf32>
      %87 = arith.mulf %85, %86 : vector<128x32xf32>
      %88 = vector.broadcast %69 : vector<128x1xf32> to vector<128x32xf32>
      %89 = arith.addf %87, %88 : vector<128x32xf32>
      %cst_50 = arith.constant 0.000000e+00 : f32
      %90 = vector.broadcast %cst_50 : f32 to vector<128x32xf32>
      %91 = arith.cmpf oge, %89, %90 : vector<128x32xf32>
      %cst_51 = arith.constant 2.000000e-01 : f32
      %92 = vector.broadcast %cst_51 : f32 to vector<128x32xf32>
      %93 = arith.mulf %92, %89 : vector<128x32xf32>
      %94 = arith.select %91, %89, %93 : vector<128x32xi1>, vector<128x32xf32>
      %c1_52 = arith.constant 1 : index
      %c0_53 = arith.constant 0 : index
      %c0_54 = arith.constant 0 : index
      %95 = vector.load %arg6[%c1_52, %c0_53, %c0_54] : memref<4x128x32xf32, #tpu.memory_space<vmem>>, vector<1x128x32xf32>
      %96 = vector.shape_cast %95 : vector<1x128x32xf32> to vector<128x32xf32>
      %97 = vector.shape_cast %94 : vector<128x32xf32> to vector<1x128x32xf32>
      tpu.vector_store %arg6[%c1_52, %c0_53, %c0_54], %97 {strides = array<i32>} : memref<4x128x32xf32, #tpu.memory_space<vmem>>, vector<1x128x32xf32>,
      %c2_55 = arith.constant 2 : index
      %c0_56 = arith.constant 0 : index
      %c0_57 = arith.constant 0 : index
      %98 = vector.load %arg6[%c2_55, %c0_56, %c0_57] : memref<4x128x32xf32, #tpu.memory_space<vmem>>, vector<1x128x32xf32>
      %99 = vector.shape_cast %98 : vector<1x128x32xf32> to vector<128x32xf32>
      %100 = vector.broadcast %66 : vector<128x1xf32> to vector<128x32xf32>
      %101 = arith.mulf %99, %100 : vector<128x32xf32>
      %102 = vector.broadcast %69 : vector<128x1xf32> to vector<128x32xf32>
      %103 = arith.addf %101, %102 : vector<128x32xf32>
      %cst_58 = arith.constant 0.000000e+00 : f32
      %104 = vector.broadcast %cst_58 : f32 to vector<128x32xf32>
      %105 = arith.cmpf oge, %103, %104 : vector<128x32xf32>
      %cst_59 = arith.constant 2.000000e-01 : f32
      %106 = vector.broadcast %cst_59 : f32 to vector<128x32xf32>
      %107 = arith.mulf %106, %103 : vector<128x32xf32>
      %108 = arith.select %105, %103, %107 : vector<128x32xi1>, vector<128x32xf32>
      %c2_60 = arith.constant 2 : index
      %c0_61 = arith.constant 0 : index
      %c0_62 = arith.constant 0 : index
      %109 = vector.load %arg6[%c2_60, %c0_61, %c0_62] : memref<4x128x32xf32, #tpu.memory_space<vmem>>, vector<1x128x32xf32>
      %110 = vector.shape_cast %109 : vector<1x128x32xf32> to vector<128x32xf32>
      %111 = vector.shape_cast %108 : vector<128x32xf32> to vector<1x128x32xf32>
      tpu.vector_store %arg6[%c2_60, %c0_61, %c0_62], %111 {strides = array<i32>} : memref<4x128x32xf32, #tpu.memory_space<vmem>>, vector<1x128x32xf32>,
      %c3_63 = arith.constant 3 : index
      %c0_64 = arith.constant 0 : index
      %c0_65 = arith.constant 0 : index
      %112 = vector.load %arg6[%c3_63, %c0_64, %c0_65] : memref<4x128x32xf32, #tpu.memory_space<vmem>>, vector<1x128x32xf32>
      %113 = vector.shape_cast %112 : vector<1x128x32xf32> to vector<128x32xf32>
      %114 = vector.broadcast %66 : vector<128x1xf32> to vector<128x32xf32>
      %115 = arith.mulf %113, %114 : vector<128x32xf32>
      %116 = vector.broadcast %69 : vector<128x1xf32> to vector<128x32xf32>
      %117 = arith.addf %115, %116 : vector<128x32xf32>
      %cst_66 = arith.constant 0.000000e+00 : f32
      %118 = vector.broadcast %cst_66 : f32 to vector<128x32xf32>
      %119 = arith.cmpf oge, %117, %118 : vector<128x32xf32>
      %cst_67 = arith.constant 2.000000e-01 : f32
      %120 = vector.broadcast %cst_67 : f32 to vector<128x32xf32>
      %121 = arith.mulf %120, %117 : vector<128x32xf32>
      %122 = arith.select %119, %117, %121 : vector<128x32xi1>, vector<128x32xf32>
      %c3_68 = arith.constant 3 : index
      %c0_69 = arith.constant 0 : index
      %c0_70 = arith.constant 0 : index
      %123 = vector.load %arg6[%c3_68, %c0_69, %c0_70] : memref<4x128x32xf32, #tpu.memory_space<vmem>>, vector<1x128x32xf32>
      %124 = vector.shape_cast %123 : vector<1x128x32xf32> to vector<128x32xf32>
      %125 = vector.shape_cast %122 : vector<128x32xf32> to vector<1x128x32xf32>
      tpu.vector_store %arg6[%c3_68, %c0_69, %c0_70], %125 {strides = array<i32>} : memref<4x128x32xf32, #tpu.memory_space<vmem>>, vector<1x128x32xf32>,
    } else {
    }
    return
  }
  func.func @transform_0(%arg0: i32, %arg1: i32) -> (i32, i32, i32) {
    %c0_i32 = arith.constant 0 : i32
    %c0_i32_0 = arith.constant 0 : i32
    return %arg0, %c0_i32, %arg1 : i32, i32, i32
  }
  func.func @transform_1(%arg0: i32, %arg1: i32) -> (i32, i32, i32) {
    %c0_i32 = arith.constant 0 : i32
    %c0_i32_0 = arith.constant 0 : i32
    %c0_i32_1 = arith.constant 0 : i32
    return %arg0, %c0_i32, %c0_i32_0 : i32, i32, i32
  }
  func.func @transform_2(%arg0: i32, %arg1: i32) -> (i32, i32) {
    %c0_i32 = arith.constant 0 : i32
    %c0_i32_0 = arith.constant 0 : i32
    %c0_i32_1 = arith.constant 0 : i32
    return %c0_i32, %c0_i32_0 : i32, i32
  }
  func.func @transform_3(%arg0: i32, %arg1: i32) -> (i32, i32) {
    %c0_i32 = arith.constant 0 : i32
    %c0_i32_0 = arith.constant 0 : i32
    %c0_i32_1 = arith.constant 0 : i32
    return %c0_i32, %c0_i32_0 : i32, i32
  }
  func.func @transform_4(%arg0: i32, %arg1: i32) -> (i32, i32, i32) {
    %c0_i32 = arith.constant 0 : i32
    %c0_i32_0 = arith.constant 0 : i32
    %c0_i32_1 = arith.constant 0 : i32
    %c0_i32_2 = arith.constant 0 : i32
    return %c0_i32, %c0_i32_0, %c0_i32_1 : i32, i32, i32
  }
}

module attributes {stable_mosaic.version = 11 : i64} {
  func.func @_conv_bn_act_kernel(%arg0: i32, %arg1: i32, %arg2: memref<1x512x128xbf16, #tpu.memory_space<vmem>>, %arg3: memref<1x64x512xbf16, #tpu.memory_space<vmem>>, %arg4: memref<64x1xf32, #tpu.memory_space<vmem>>, %arg5: memref<64x1xf32, #tpu.memory_space<vmem>>, %arg6: memref<4x64x128xf32, #tpu.memory_space<vmem>>, %arg7: memref<64x1xf32, #tpu.memory_space<vmem>>) attributes {dimension_semantics = [#tpu.dimension_semantics<arbitrary>, #tpu.dimension_semantics<arbitrary>], iteration_bounds = array<i64: 4, 1>, scalar_prefetch = 0 : i64, scratch_operands = 1 : i64, tpu.core_type = #tpu.core_type<tc>, window_params = [{transform_indices = @transform_0, window_bounds = array<i64: 1, 512, 128>}, {transform_indices = @transform_1, window_bounds = array<i64: 1, 64, 512>}, {pipeline_mode = #tpu.pipeline_mode<synchronous>, transform_indices = @transform_2, window_bounds = array<i64: 64, 1>}, {pipeline_mode = #tpu.pipeline_mode<synchronous>, transform_indices = @transform_3, window_bounds = array<i64: 64, 1>}, {pipeline_mode = #tpu.pipeline_mode<synchronous>, transform_indices = @transform_4, window_bounds = array<i64: 4, 64, 128>}]} {
    %c0_i32 = arith.constant 0 : i32
    %0 = arith.cmpi eq, %arg0, %c0_i32 : i32
    %c0_i32_0 = arith.constant 0 : i32
    %1 = arith.cmpi eq, %arg1, %c0_i32_0 : i32
    %2 = arith.andi %0, %1 : i1
    %3 = arith.extui %2 : i1 to i32
    %c0_i32_1 = arith.constant 0 : i32
    %4 = arith.cmpi ne, %3, %c0_i32_1 : i32
    scf.if %4 {
      %cst_16 = arith.constant 0.000000e+00 : f32
      %24 = vector.broadcast %cst_16 : f32 to vector<64x1xf32>
      %c0_17 = arith.constant 0 : index
      %c0_18 = arith.constant 0 : index
      %25 = vector.load %arg7[%c0_17, %c0_18] : memref<64x1xf32, #tpu.memory_space<vmem>>, vector<64x1xf32>
      tpu.vector_store %arg7[%c0_17, %c0_18], %24 {strides = array<i32>} : memref<64x1xf32, #tpu.memory_space<vmem>>, vector<64x1xf32>,
    } else {
    }
    %c0 = arith.constant 0 : index
    %c0_2 = arith.constant 0 : index
    %c0_3 = arith.constant 0 : index
    %5 = vector.load %arg3[%c0, %c0_2, %c0_3] : memref<1x64x512xbf16, #tpu.memory_space<vmem>>, vector<1x64x512xbf16>
    %6 = vector.shape_cast %5 : vector<1x64x512xbf16> to vector<64x512xbf16>
    %c0_4 = arith.constant 0 : index
    %c0_5 = arith.constant 0 : index
    %c0_6 = arith.constant 0 : index
    %7 = vector.load %arg2[%c0_4, %c0_5, %c0_6] : memref<1x512x128xbf16, #tpu.memory_space<vmem>>, vector<1x512x128xbf16>
    %8 = vector.shape_cast %7 : vector<1x512x128xbf16> to vector<512x128xbf16>
    %cst = arith.constant dense<0.000000e+00> : vector<64x128xf32>
    %9 = tpu.matmul %6, %8, %cst {dimension_numbers = #tpu.dot_dimension_numbers<[1], [0], [0], [1], [0, 0, 1, 1], [], []>} : vector<64x512xbf16>, vector<512x128xbf16>, vector<64x128xf32> -> vector<64x128xf32>
    %10 = arith.index_cast %arg0 : i32 to index
    %c0_7 = arith.constant 0 : index
    %c0_8 = arith.constant 0 : index
    %11 = vector.load %arg6[%10, %c0_7, %c0_8] : memref<4x64x128xf32, #tpu.memory_space<vmem>>, vector<1x64x128xf32>
    %12 = vector.shape_cast %11 : vector<1x64x128xf32> to vector<64x128xf32>
    %13 = vector.shape_cast %9 : vector<64x128xf32> to vector<1x64x128xf32>
    tpu.vector_store %arg6[%10, %c0_7, %c0_8], %13 {strides = array<i32>} : memref<4x64x128xf32, #tpu.memory_space<vmem>>, vector<1x64x128xf32>,
    %c0_9 = arith.constant 0 : index
    %c0_10 = arith.constant 0 : index
    %14 = vector.load %arg7[%c0_9, %c0_10] : memref<64x1xf32, #tpu.memory_space<vmem>>, vector<64x1xf32>
    %cst_11 = arith.constant dense<0.000000e+00> : vector<64xf32>
    %15 = vector.multi_reduction <add>, %9, %cst_11 [1] : vector<64x128xf32> to vector<64xf32>
    %16 = vector.shape_cast %15 : vector<64xf32> to vector<64x1xf32>
    %17 = arith.addf %14, %16 : vector<64x1xf32>
    %c0_12 = arith.constant 0 : index
    %c0_13 = arith.constant 0 : index
    %18 = vector.load %arg7[%c0_12, %c0_13] : memref<64x1xf32, #tpu.memory_space<vmem>>, vector<64x1xf32>
    tpu.vector_store %arg7[%c0_12, %c0_13], %17 {strides = array<i32>} : memref<64x1xf32, #tpu.memory_space<vmem>>, vector<64x1xf32>,
    %c3_i32 = arith.constant 3 : i32
    %19 = arith.cmpi eq, %arg0, %c3_i32 : i32
    %c0_i32_14 = arith.constant 0 : i32
    %20 = arith.cmpi eq, %arg1, %c0_i32_14 : i32
    %21 = arith.andi %19, %20 : i1
    %22 = arith.extui %21 : i1 to i32
    %c0_i32_15 = arith.constant 0 : i32
    %23 = arith.cmpi ne, %22, %c0_i32_15 : i32
    scf.if %23 {
      %c0_16 = arith.constant 0 : index
      %c0_17 = arith.constant 0 : index
      %24 = vector.load %arg7[%c0_16, %c0_17] : memref<64x1xf32, #tpu.memory_space<vmem>>, vector<64x1xf32>
      %cst_18 = arith.constant 0.001953125 : f32
      %25 = vector.broadcast %cst_18 : f32 to vector<64x1xf32>
      %26 = arith.mulf %24, %25 : vector<64x1xf32>
      %cst_19 = arith.constant 0.000000e+00 : f32
      %27 = vector.broadcast %cst_19 : f32 to vector<64x1xf32>
      %c0_20 = arith.constant 0 : index
      %c0_21 = arith.constant 0 : index
      %c0_22 = arith.constant 0 : index
      %28 = vector.load %arg6[%c0_20, %c0_21, %c0_22] : memref<4x64x128xf32, #tpu.memory_space<vmem>>, vector<1x64x128xf32>
      %29 = vector.shape_cast %28 : vector<1x64x128xf32> to vector<64x128xf32>
      %30 = vector.broadcast %26 : vector<64x1xf32> to vector<64x128xf32>
      %31 = arith.subf %29, %30 : vector<64x128xf32>
      %32 = arith.mulf %31, %31 : vector<64x128xf32>
      %cst_23 = arith.constant dense<0.000000e+00> : vector<64xf32>
      %33 = vector.multi_reduction <add>, %32, %cst_23 [1] : vector<64x128xf32> to vector<64xf32>
      %34 = vector.shape_cast %33 : vector<64xf32> to vector<64x1xf32>
      %35 = arith.addf %27, %34 : vector<64x1xf32>
      %c1 = arith.constant 1 : index
      %c0_24 = arith.constant 0 : index
      %c0_25 = arith.constant 0 : index
      %36 = vector.load %arg6[%c1, %c0_24, %c0_25] : memref<4x64x128xf32, #tpu.memory_space<vmem>>, vector<1x64x128xf32>
      %37 = vector.shape_cast %36 : vector<1x64x128xf32> to vector<64x128xf32>
      %38 = vector.broadcast %26 : vector<64x1xf32> to vector<64x128xf32>
      %39 = arith.subf %37, %38 : vector<64x128xf32>
      %40 = arith.mulf %39, %39 : vector<64x128xf32>
      %cst_26 = arith.constant dense<0.000000e+00> : vector<64xf32>
      %41 = vector.multi_reduction <add>, %40, %cst_26 [1] : vector<64x128xf32> to vector<64xf32>
      %42 = vector.shape_cast %41 : vector<64xf32> to vector<64x1xf32>
      %43 = arith.addf %35, %42 : vector<64x1xf32>
      %c2 = arith.constant 2 : index
      %c0_27 = arith.constant 0 : index
      %c0_28 = arith.constant 0 : index
      %44 = vector.load %arg6[%c2, %c0_27, %c0_28] : memref<4x64x128xf32, #tpu.memory_space<vmem>>, vector<1x64x128xf32>
      %45 = vector.shape_cast %44 : vector<1x64x128xf32> to vector<64x128xf32>
      %46 = vector.broadcast %26 : vector<64x1xf32> to vector<64x128xf32>
      %47 = arith.subf %45, %46 : vector<64x128xf32>
      %48 = arith.mulf %47, %47 : vector<64x128xf32>
      %cst_29 = arith.constant dense<0.000000e+00> : vector<64xf32>
      %49 = vector.multi_reduction <add>, %48, %cst_29 [1] : vector<64x128xf32> to vector<64xf32>
      %50 = vector.shape_cast %49 : vector<64xf32> to vector<64x1xf32>
      %51 = arith.addf %43, %50 : vector<64x1xf32>
      %c3 = arith.constant 3 : index
      %c0_30 = arith.constant 0 : index
      %c0_31 = arith.constant 0 : index
      %52 = vector.load %arg6[%c3, %c0_30, %c0_31] : memref<4x64x128xf32, #tpu.memory_space<vmem>>, vector<1x64x128xf32>
      %53 = vector.shape_cast %52 : vector<1x64x128xf32> to vector<64x128xf32>
      %54 = vector.broadcast %26 : vector<64x1xf32> to vector<64x128xf32>
      %55 = arith.subf %53, %54 : vector<64x128xf32>
      %56 = arith.mulf %55, %55 : vector<64x128xf32>
      %cst_32 = arith.constant dense<0.000000e+00> : vector<64xf32>
      %57 = vector.multi_reduction <add>, %56, %cst_32 [1] : vector<64x128xf32> to vector<64xf32>
      %58 = vector.shape_cast %57 : vector<64xf32> to vector<64x1xf32>
      %59 = arith.addf %51, %58 : vector<64x1xf32>
      %cst_33 = arith.constant 0.001953125 : f32
      %60 = vector.broadcast %cst_33 : f32 to vector<64x1xf32>
      %61 = arith.mulf %59, %60 : vector<64x1xf32>
      %c0_34 = arith.constant 0 : index
      %c0_35 = arith.constant 0 : index
      %62 = vector.load %arg4[%c0_34, %c0_35] : memref<64x1xf32, #tpu.memory_space<vmem>>, vector<64x1xf32>
      %cst_36 = arith.constant 9.99999974E-6 : f32
      %63 = vector.broadcast %cst_36 : f32 to vector<64x1xf32>
      %64 = arith.addf %61, %63 : vector<64x1xf32>
      %65 = math.rsqrt %64 : vector<64x1xf32>
      %66 = arith.mulf %62, %65 : vector<64x1xf32>
      %c0_37 = arith.constant 0 : index
      %c0_38 = arith.constant 0 : index
      %67 = vector.load %arg5[%c0_37, %c0_38] : memref<64x1xf32, #tpu.memory_space<vmem>>, vector<64x1xf32>
      %68 = arith.mulf %26, %66 : vector<64x1xf32>
      %69 = arith.subf %67, %68 : vector<64x1xf32>
      %c0_39 = arith.constant 0 : index
      %c0_40 = arith.constant 0 : index
      %c0_41 = arith.constant 0 : index
      %70 = vector.load %arg6[%c0_39, %c0_40, %c0_41] : memref<4x64x128xf32, #tpu.memory_space<vmem>>, vector<1x64x128xf32>
      %71 = vector.shape_cast %70 : vector<1x64x128xf32> to vector<64x128xf32>
      %72 = vector.broadcast %66 : vector<64x1xf32> to vector<64x128xf32>
      %73 = arith.mulf %71, %72 : vector<64x128xf32>
      %74 = vector.broadcast %69 : vector<64x1xf32> to vector<64x128xf32>
      %75 = arith.addf %73, %74 : vector<64x128xf32>
      %cst_42 = arith.constant 0.000000e+00 : f32
      %76 = vector.broadcast %cst_42 : f32 to vector<64x128xf32>
      %77 = arith.cmpf oge, %75, %76 : vector<64x128xf32>
      %cst_43 = arith.constant 2.000000e-01 : f32
      %78 = vector.broadcast %cst_43 : f32 to vector<64x128xf32>
      %79 = arith.mulf %78, %75 : vector<64x128xf32>
      %80 = arith.select %77, %75, %79 : vector<64x128xi1>, vector<64x128xf32>
      %c0_44 = arith.constant 0 : index
      %c0_45 = arith.constant 0 : index
      %c0_46 = arith.constant 0 : index
      %81 = vector.load %arg6[%c0_44, %c0_45, %c0_46] : memref<4x64x128xf32, #tpu.memory_space<vmem>>, vector<1x64x128xf32>
      %82 = vector.shape_cast %81 : vector<1x64x128xf32> to vector<64x128xf32>
      %83 = vector.shape_cast %80 : vector<64x128xf32> to vector<1x64x128xf32>
      tpu.vector_store %arg6[%c0_44, %c0_45, %c0_46], %83 {strides = array<i32>} : memref<4x64x128xf32, #tpu.memory_space<vmem>>, vector<1x64x128xf32>,
      %c1_47 = arith.constant 1 : index
      %c0_48 = arith.constant 0 : index
      %c0_49 = arith.constant 0 : index
      %84 = vector.load %arg6[%c1_47, %c0_48, %c0_49] : memref<4x64x128xf32, #tpu.memory_space<vmem>>, vector<1x64x128xf32>
      %85 = vector.shape_cast %84 : vector<1x64x128xf32> to vector<64x128xf32>
      %86 = vector.broadcast %66 : vector<64x1xf32> to vector<64x128xf32>
      %87 = arith.mulf %85, %86 : vector<64x128xf32>
      %88 = vector.broadcast %69 : vector<64x1xf32> to vector<64x128xf32>
      %89 = arith.addf %87, %88 : vector<64x128xf32>
      %cst_50 = arith.constant 0.000000e+00 : f32
      %90 = vector.broadcast %cst_50 : f32 to vector<64x128xf32>
      %91 = arith.cmpf oge, %89, %90 : vector<64x128xf32>
      %cst_51 = arith.constant 2.000000e-01 : f32
      %92 = vector.broadcast %cst_51 : f32 to vector<64x128xf32>
      %93 = arith.mulf %92, %89 : vector<64x128xf32>
      %94 = arith.select %91, %89, %93 : vector<64x128xi1>, vector<64x128xf32>
      %c1_52 = arith.constant 1 : index
      %c0_53 = arith.constant 0 : index
      %c0_54 = arith.constant 0 : index
      %95 = vector.load %arg6[%c1_52, %c0_53, %c0_54] : memref<4x64x128xf32, #tpu.memory_space<vmem>>, vector<1x64x128xf32>
      %96 = vector.shape_cast %95 : vector<1x64x128xf32> to vector<64x128xf32>
      %97 = vector.shape_cast %94 : vector<64x128xf32> to vector<1x64x128xf32>
      tpu.vector_store %arg6[%c1_52, %c0_53, %c0_54], %97 {strides = array<i32>} : memref<4x64x128xf32, #tpu.memory_space<vmem>>, vector<1x64x128xf32>,
      %c2_55 = arith.constant 2 : index
      %c0_56 = arith.constant 0 : index
      %c0_57 = arith.constant 0 : index
      %98 = vector.load %arg6[%c2_55, %c0_56, %c0_57] : memref<4x64x128xf32, #tpu.memory_space<vmem>>, vector<1x64x128xf32>
      %99 = vector.shape_cast %98 : vector<1x64x128xf32> to vector<64x128xf32>
      %100 = vector.broadcast %66 : vector<64x1xf32> to vector<64x128xf32>
      %101 = arith.mulf %99, %100 : vector<64x128xf32>
      %102 = vector.broadcast %69 : vector<64x1xf32> to vector<64x128xf32>
      %103 = arith.addf %101, %102 : vector<64x128xf32>
      %cst_58 = arith.constant 0.000000e+00 : f32
      %104 = vector.broadcast %cst_58 : f32 to vector<64x128xf32>
      %105 = arith.cmpf oge, %103, %104 : vector<64x128xf32>
      %cst_59 = arith.constant 2.000000e-01 : f32
      %106 = vector.broadcast %cst_59 : f32 to vector<64x128xf32>
      %107 = arith.mulf %106, %103 : vector<64x128xf32>
      %108 = arith.select %105, %103, %107 : vector<64x128xi1>, vector<64x128xf32>
      %c2_60 = arith.constant 2 : index
      %c0_61 = arith.constant 0 : index
      %c0_62 = arith.constant 0 : index
      %109 = vector.load %arg6[%c2_60, %c0_61, %c0_62] : memref<4x64x128xf32, #tpu.memory_space<vmem>>, vector<1x64x128xf32>
      %110 = vector.shape_cast %109 : vector<1x64x128xf32> to vector<64x128xf32>
      %111 = vector.shape_cast %108 : vector<64x128xf32> to vector<1x64x128xf32>
      tpu.vector_store %arg6[%c2_60, %c0_61, %c0_62], %111 {strides = array<i32>} : memref<4x64x128xf32, #tpu.memory_space<vmem>>, vector<1x64x128xf32>,
      %c3_63 = arith.constant 3 : index
      %c0_64 = arith.constant 0 : index
      %c0_65 = arith.constant 0 : index
      %112 = vector.load %arg6[%c3_63, %c0_64, %c0_65] : memref<4x64x128xf32, #tpu.memory_space<vmem>>, vector<1x64x128xf32>
      %113 = vector.shape_cast %112 : vector<1x64x128xf32> to vector<64x128xf32>
      %114 = vector.broadcast %66 : vector<64x1xf32> to vector<64x128xf32>
      %115 = arith.mulf %113, %114 : vector<64x128xf32>
      %116 = vector.broadcast %69 : vector<64x1xf32> to vector<64x128xf32>
      %117 = arith.addf %115, %116 : vector<64x128xf32>
      %cst_66 = arith.constant 0.000000e+00 : f32
      %118 = vector.broadcast %cst_66 : f32 to vector<64x128xf32>
      %119 = arith.cmpf oge, %117, %118 : vector<64x128xf32>
      %cst_67 = arith.constant 2.000000e-01 : f32
      %120 = vector.broadcast %cst_67 : f32 to vector<64x128xf32>
      %121 = arith.mulf %120, %117 : vector<64x128xf32>
      %122 = arith.select %119, %117, %121 : vector<64x128xi1>, vector<64x128xf32>
      %c3_68 = arith.constant 3 : index
      %c0_69 = arith.constant 0 : index
      %c0_70 = arith.constant 0 : index
      %123 = vector.load %arg6[%c3_68, %c0_69, %c0_70] : memref<4x64x128xf32, #tpu.memory_space<vmem>>, vector<1x64x128xf32>
      %124 = vector.shape_cast %123 : vector<1x64x128xf32> to vector<64x128xf32>
      %125 = vector.shape_cast %122 : vector<64x128xf32> to vector<1x64x128xf32>
      tpu.vector_store %arg6[%c3_68, %c0_69, %c0_70], %125 {strides = array<i32>} : memref<4x64x128xf32, #tpu.memory_space<vmem>>, vector<1x64x128xf32>,
    } else {
    }
    return
  }
  func.func @transform_0(%arg0: i32, %arg1: i32) -> (i32, i32, i32) {
    %c0_i32 = arith.constant 0 : i32
    %c0_i32_0 = arith.constant 0 : i32
    return %arg0, %c0_i32, %arg1 : i32, i32, i32
  }
  func.func @transform_1(%arg0: i32, %arg1: i32) -> (i32, i32, i32) {
    %c0_i32 = arith.constant 0 : i32
    %c0_i32_0 = arith.constant 0 : i32
    %c0_i32_1 = arith.constant 0 : i32
    return %arg0, %c0_i32, %c0_i32_0 : i32, i32, i32
  }
  func.func @transform_2(%arg0: i32, %arg1: i32) -> (i32, i32) {
    %c0_i32 = arith.constant 0 : i32
    %c0_i32_0 = arith.constant 0 : i32
    %c0_i32_1 = arith.constant 0 : i32
    return %c0_i32, %c0_i32_0 : i32, i32
  }
  func.func @transform_3(%arg0: i32, %arg1: i32) -> (i32, i32) {
    %c0_i32 = arith.constant 0 : i32
    %c0_i32_0 = arith.constant 0 : i32
    %c0_i32_1 = arith.constant 0 : i32
    return %c0_i32, %c0_i32_0 : i32, i32
  }
  func.func @transform_4(%arg0: i32, %arg1: i32) -> (i32, i32, i32) {
    %c0_i32 = arith.constant 0 : i32
    %c0_i32_0 = arith.constant 0 : i32
    %c0_i32_1 = arith.constant 0 : i32
    %c0_i32_2 = arith.constant 0 : i32
    return %c0_i32, %c0_i32_0, %c0_i32_1 : i32, i32, i32
  }
}

module attributes {stable_mosaic.version = 11 : i64} {
  func.func @_conv_bn_act_kernel(%arg0: i32, %arg1: i32, %arg2: memref<1x256x512xbf16, #tpu.memory_space<vmem>>, %arg3: memref<1x32x256xbf16, #tpu.memory_space<vmem>>, %arg4: memref<32x1xf32, #tpu.memory_space<vmem>>, %arg5: memref<32x1xf32, #tpu.memory_space<vmem>>, %arg6: memref<4x32x512xf32, #tpu.memory_space<vmem>>, %arg7: memref<32x1xf32, #tpu.memory_space<vmem>>) attributes {dimension_semantics = [#tpu.dimension_semantics<arbitrary>, #tpu.dimension_semantics<arbitrary>], iteration_bounds = array<i64: 4, 1>, scalar_prefetch = 0 : i64, scratch_operands = 1 : i64, tpu.core_type = #tpu.core_type<tc>, window_params = [{transform_indices = @transform_0, window_bounds = array<i64: 1, 256, 512>}, {transform_indices = @transform_1, window_bounds = array<i64: 1, 32, 256>}, {pipeline_mode = #tpu.pipeline_mode<synchronous>, transform_indices = @transform_2, window_bounds = array<i64: 32, 1>}, {pipeline_mode = #tpu.pipeline_mode<synchronous>, transform_indices = @transform_3, window_bounds = array<i64: 32, 1>}, {pipeline_mode = #tpu.pipeline_mode<synchronous>, transform_indices = @transform_4, window_bounds = array<i64: 4, 32, 512>}]} {
    %c0_i32 = arith.constant 0 : i32
    %0 = arith.cmpi eq, %arg0, %c0_i32 : i32
    %c0_i32_0 = arith.constant 0 : i32
    %1 = arith.cmpi eq, %arg1, %c0_i32_0 : i32
    %2 = arith.andi %0, %1 : i1
    %3 = arith.extui %2 : i1 to i32
    %c0_i32_1 = arith.constant 0 : i32
    %4 = arith.cmpi ne, %3, %c0_i32_1 : i32
    scf.if %4 {
      %cst_16 = arith.constant 0.000000e+00 : f32
      %24 = vector.broadcast %cst_16 : f32 to vector<32x1xf32>
      %c0_17 = arith.constant 0 : index
      %c0_18 = arith.constant 0 : index
      %25 = vector.load %arg7[%c0_17, %c0_18] : memref<32x1xf32, #tpu.memory_space<vmem>>, vector<32x1xf32>
      tpu.vector_store %arg7[%c0_17, %c0_18], %24 {strides = array<i32>} : memref<32x1xf32, #tpu.memory_space<vmem>>, vector<32x1xf32>,
    } else {
    }
    %c0 = arith.constant 0 : index
    %c0_2 = arith.constant 0 : index
    %c0_3 = arith.constant 0 : index
    %5 = vector.load %arg3[%c0, %c0_2, %c0_3] : memref<1x32x256xbf16, #tpu.memory_space<vmem>>, vector<1x32x256xbf16>
    %6 = vector.shape_cast %5 : vector<1x32x256xbf16> to vector<32x256xbf16>
    %c0_4 = arith.constant 0 : index
    %c0_5 = arith.constant 0 : index
    %c0_6 = arith.constant 0 : index
    %7 = vector.load %arg2[%c0_4, %c0_5, %c0_6] : memref<1x256x512xbf16, #tpu.memory_space<vmem>>, vector<1x256x512xbf16>
    %8 = vector.shape_cast %7 : vector<1x256x512xbf16> to vector<256x512xbf16>
    %cst = arith.constant dense<0.000000e+00> : vector<32x512xf32>
    %9 = tpu.matmul %6, %8, %cst {dimension_numbers = #tpu.dot_dimension_numbers<[1], [0], [0], [1], [0, 0, 1, 1], [], []>} : vector<32x256xbf16>, vector<256x512xbf16>, vector<32x512xf32> -> vector<32x512xf32>
    %10 = arith.index_cast %arg0 : i32 to index
    %c0_7 = arith.constant 0 : index
    %c0_8 = arith.constant 0 : index
    %11 = vector.load %arg6[%10, %c0_7, %c0_8] : memref<4x32x512xf32, #tpu.memory_space<vmem>>, vector<1x32x512xf32>
    %12 = vector.shape_cast %11 : vector<1x32x512xf32> to vector<32x512xf32>
    %13 = vector.shape_cast %9 : vector<32x512xf32> to vector<1x32x512xf32>
    tpu.vector_store %arg6[%10, %c0_7, %c0_8], %13 {strides = array<i32>} : memref<4x32x512xf32, #tpu.memory_space<vmem>>, vector<1x32x512xf32>,
    %c0_9 = arith.constant 0 : index
    %c0_10 = arith.constant 0 : index
    %14 = vector.load %arg7[%c0_9, %c0_10] : memref<32x1xf32, #tpu.memory_space<vmem>>, vector<32x1xf32>
    %cst_11 = arith.constant dense<0.000000e+00> : vector<32xf32>
    %15 = vector.multi_reduction <add>, %9, %cst_11 [1] : vector<32x512xf32> to vector<32xf32>
    %16 = vector.shape_cast %15 : vector<32xf32> to vector<32x1xf32>
    %17 = arith.addf %14, %16 : vector<32x1xf32>
    %c0_12 = arith.constant 0 : index
    %c0_13 = arith.constant 0 : index
    %18 = vector.load %arg7[%c0_12, %c0_13] : memref<32x1xf32, #tpu.memory_space<vmem>>, vector<32x1xf32>
    tpu.vector_store %arg7[%c0_12, %c0_13], %17 {strides = array<i32>} : memref<32x1xf32, #tpu.memory_space<vmem>>, vector<32x1xf32>,
    %c3_i32 = arith.constant 3 : i32
    %19 = arith.cmpi eq, %arg0, %c3_i32 : i32
    %c0_i32_14 = arith.constant 0 : i32
    %20 = arith.cmpi eq, %arg1, %c0_i32_14 : i32
    %21 = arith.andi %19, %20 : i1
    %22 = arith.extui %21 : i1 to i32
    %c0_i32_15 = arith.constant 0 : i32
    %23 = arith.cmpi ne, %22, %c0_i32_15 : i32
    scf.if %23 {
      %c0_16 = arith.constant 0 : index
      %c0_17 = arith.constant 0 : index
      %24 = vector.load %arg7[%c0_16, %c0_17] : memref<32x1xf32, #tpu.memory_space<vmem>>, vector<32x1xf32>
      %cst_18 = arith.constant 4.8828125E-4 : f32
      %25 = vector.broadcast %cst_18 : f32 to vector<32x1xf32>
      %26 = arith.mulf %24, %25 : vector<32x1xf32>
      %cst_19 = arith.constant 0.000000e+00 : f32
      %27 = vector.broadcast %cst_19 : f32 to vector<32x1xf32>
      %c0_20 = arith.constant 0 : index
      %c0_21 = arith.constant 0 : index
      %c0_22 = arith.constant 0 : index
      %28 = vector.load %arg6[%c0_20, %c0_21, %c0_22] : memref<4x32x512xf32, #tpu.memory_space<vmem>>, vector<1x32x512xf32>
      %29 = vector.shape_cast %28 : vector<1x32x512xf32> to vector<32x512xf32>
      %30 = vector.broadcast %26 : vector<32x1xf32> to vector<32x512xf32>
      %31 = arith.subf %29, %30 : vector<32x512xf32>
      %32 = arith.mulf %31, %31 : vector<32x512xf32>
      %cst_23 = arith.constant dense<0.000000e+00> : vector<32xf32>
      %33 = vector.multi_reduction <add>, %32, %cst_23 [1] : vector<32x512xf32> to vector<32xf32>
      %34 = vector.shape_cast %33 : vector<32xf32> to vector<32x1xf32>
      %35 = arith.addf %27, %34 : vector<32x1xf32>
      %c1 = arith.constant 1 : index
      %c0_24 = arith.constant 0 : index
      %c0_25 = arith.constant 0 : index
      %36 = vector.load %arg6[%c1, %c0_24, %c0_25] : memref<4x32x512xf32, #tpu.memory_space<vmem>>, vector<1x32x512xf32>
      %37 = vector.shape_cast %36 : vector<1x32x512xf32> to vector<32x512xf32>
      %38 = vector.broadcast %26 : vector<32x1xf32> to vector<32x512xf32>
      %39 = arith.subf %37, %38 : vector<32x512xf32>
      %40 = arith.mulf %39, %39 : vector<32x512xf32>
      %cst_26 = arith.constant dense<0.000000e+00> : vector<32xf32>
      %41 = vector.multi_reduction <add>, %40, %cst_26 [1] : vector<32x512xf32> to vector<32xf32>
      %42 = vector.shape_cast %41 : vector<32xf32> to vector<32x1xf32>
      %43 = arith.addf %35, %42 : vector<32x1xf32>
      %c2 = arith.constant 2 : index
      %c0_27 = arith.constant 0 : index
      %c0_28 = arith.constant 0 : index
      %44 = vector.load %arg6[%c2, %c0_27, %c0_28] : memref<4x32x512xf32, #tpu.memory_space<vmem>>, vector<1x32x512xf32>
      %45 = vector.shape_cast %44 : vector<1x32x512xf32> to vector<32x512xf32>
      %46 = vector.broadcast %26 : vector<32x1xf32> to vector<32x512xf32>
      %47 = arith.subf %45, %46 : vector<32x512xf32>
      %48 = arith.mulf %47, %47 : vector<32x512xf32>
      %cst_29 = arith.constant dense<0.000000e+00> : vector<32xf32>
      %49 = vector.multi_reduction <add>, %48, %cst_29 [1] : vector<32x512xf32> to vector<32xf32>
      %50 = vector.shape_cast %49 : vector<32xf32> to vector<32x1xf32>
      %51 = arith.addf %43, %50 : vector<32x1xf32>
      %c3 = arith.constant 3 : index
      %c0_30 = arith.constant 0 : index
      %c0_31 = arith.constant 0 : index
      %52 = vector.load %arg6[%c3, %c0_30, %c0_31] : memref<4x32x512xf32, #tpu.memory_space<vmem>>, vector<1x32x512xf32>
      %53 = vector.shape_cast %52 : vector<1x32x512xf32> to vector<32x512xf32>
      %54 = vector.broadcast %26 : vector<32x1xf32> to vector<32x512xf32>
      %55 = arith.subf %53, %54 : vector<32x512xf32>
      %56 = arith.mulf %55, %55 : vector<32x512xf32>
      %cst_32 = arith.constant dense<0.000000e+00> : vector<32xf32>
      %57 = vector.multi_reduction <add>, %56, %cst_32 [1] : vector<32x512xf32> to vector<32xf32>
      %58 = vector.shape_cast %57 : vector<32xf32> to vector<32x1xf32>
      %59 = arith.addf %51, %58 : vector<32x1xf32>
      %cst_33 = arith.constant 4.8828125E-4 : f32
      %60 = vector.broadcast %cst_33 : f32 to vector<32x1xf32>
      %61 = arith.mulf %59, %60 : vector<32x1xf32>
      %c0_34 = arith.constant 0 : index
      %c0_35 = arith.constant 0 : index
      %62 = vector.load %arg4[%c0_34, %c0_35] : memref<32x1xf32, #tpu.memory_space<vmem>>, vector<32x1xf32>
      %cst_36 = arith.constant 9.99999974E-6 : f32
      %63 = vector.broadcast %cst_36 : f32 to vector<32x1xf32>
      %64 = arith.addf %61, %63 : vector<32x1xf32>
      %65 = math.rsqrt %64 : vector<32x1xf32>
      %66 = arith.mulf %62, %65 : vector<32x1xf32>
      %c0_37 = arith.constant 0 : index
      %c0_38 = arith.constant 0 : index
      %67 = vector.load %arg5[%c0_37, %c0_38] : memref<32x1xf32, #tpu.memory_space<vmem>>, vector<32x1xf32>
      %68 = arith.mulf %26, %66 : vector<32x1xf32>
      %69 = arith.subf %67, %68 : vector<32x1xf32>
      %c0_39 = arith.constant 0 : index
      %c0_40 = arith.constant 0 : index
      %c0_41 = arith.constant 0 : index
      %70 = vector.load %arg6[%c0_39, %c0_40, %c0_41] : memref<4x32x512xf32, #tpu.memory_space<vmem>>, vector<1x32x512xf32>
      %71 = vector.shape_cast %70 : vector<1x32x512xf32> to vector<32x512xf32>
      %72 = vector.broadcast %66 : vector<32x1xf32> to vector<32x512xf32>
      %73 = arith.mulf %71, %72 : vector<32x512xf32>
      %74 = vector.broadcast %69 : vector<32x1xf32> to vector<32x512xf32>
      %75 = arith.addf %73, %74 : vector<32x512xf32>
      %cst_42 = arith.constant 0.000000e+00 : f32
      %76 = vector.broadcast %cst_42 : f32 to vector<32x512xf32>
      %77 = arith.cmpf oge, %75, %76 : vector<32x512xf32>
      %cst_43 = arith.constant 2.000000e-01 : f32
      %78 = vector.broadcast %cst_43 : f32 to vector<32x512xf32>
      %79 = arith.mulf %78, %75 : vector<32x512xf32>
      %80 = arith.select %77, %75, %79 : vector<32x512xi1>, vector<32x512xf32>
      %c0_44 = arith.constant 0 : index
      %c0_45 = arith.constant 0 : index
      %c0_46 = arith.constant 0 : index
      %81 = vector.load %arg6[%c0_44, %c0_45, %c0_46] : memref<4x32x512xf32, #tpu.memory_space<vmem>>, vector<1x32x512xf32>
      %82 = vector.shape_cast %81 : vector<1x32x512xf32> to vector<32x512xf32>
      %83 = vector.shape_cast %80 : vector<32x512xf32> to vector<1x32x512xf32>
      tpu.vector_store %arg6[%c0_44, %c0_45, %c0_46], %83 {strides = array<i32>} : memref<4x32x512xf32, #tpu.memory_space<vmem>>, vector<1x32x512xf32>,
      %c1_47 = arith.constant 1 : index
      %c0_48 = arith.constant 0 : index
      %c0_49 = arith.constant 0 : index
      %84 = vector.load %arg6[%c1_47, %c0_48, %c0_49] : memref<4x32x512xf32, #tpu.memory_space<vmem>>, vector<1x32x512xf32>
      %85 = vector.shape_cast %84 : vector<1x32x512xf32> to vector<32x512xf32>
      %86 = vector.broadcast %66 : vector<32x1xf32> to vector<32x512xf32>
      %87 = arith.mulf %85, %86 : vector<32x512xf32>
      %88 = vector.broadcast %69 : vector<32x1xf32> to vector<32x512xf32>
      %89 = arith.addf %87, %88 : vector<32x512xf32>
      %cst_50 = arith.constant 0.000000e+00 : f32
      %90 = vector.broadcast %cst_50 : f32 to vector<32x512xf32>
      %91 = arith.cmpf oge, %89, %90 : vector<32x512xf32>
      %cst_51 = arith.constant 2.000000e-01 : f32
      %92 = vector.broadcast %cst_51 : f32 to vector<32x512xf32>
      %93 = arith.mulf %92, %89 : vector<32x512xf32>
      %94 = arith.select %91, %89, %93 : vector<32x512xi1>, vector<32x512xf32>
      %c1_52 = arith.constant 1 : index
      %c0_53 = arith.constant 0 : index
      %c0_54 = arith.constant 0 : index
      %95 = vector.load %arg6[%c1_52, %c0_53, %c0_54] : memref<4x32x512xf32, #tpu.memory_space<vmem>>, vector<1x32x512xf32>
      %96 = vector.shape_cast %95 : vector<1x32x512xf32> to vector<32x512xf32>
      %97 = vector.shape_cast %94 : vector<32x512xf32> to vector<1x32x512xf32>
      tpu.vector_store %arg6[%c1_52, %c0_53, %c0_54], %97 {strides = array<i32>} : memref<4x32x512xf32, #tpu.memory_space<vmem>>, vector<1x32x512xf32>,
      %c2_55 = arith.constant 2 : index
      %c0_56 = arith.constant 0 : index
      %c0_57 = arith.constant 0 : index
      %98 = vector.load %arg6[%c2_55, %c0_56, %c0_57] : memref<4x32x512xf32, #tpu.memory_space<vmem>>, vector<1x32x512xf32>
      %99 = vector.shape_cast %98 : vector<1x32x512xf32> to vector<32x512xf32>
      %100 = vector.broadcast %66 : vector<32x1xf32> to vector<32x512xf32>
      %101 = arith.mulf %99, %100 : vector<32x512xf32>
      %102 = vector.broadcast %69 : vector<32x1xf32> to vector<32x512xf32>
      %103 = arith.addf %101, %102 : vector<32x512xf32>
      %cst_58 = arith.constant 0.000000e+00 : f32
      %104 = vector.broadcast %cst_58 : f32 to vector<32x512xf32>
      %105 = arith.cmpf oge, %103, %104 : vector<32x512xf32>
      %cst_59 = arith.constant 2.000000e-01 : f32
      %106 = vector.broadcast %cst_59 : f32 to vector<32x512xf32>
      %107 = arith.mulf %106, %103 : vector<32x512xf32>
      %108 = arith.select %105, %103, %107 : vector<32x512xi1>, vector<32x512xf32>
      %c2_60 = arith.constant 2 : index
      %c0_61 = arith.constant 0 : index
      %c0_62 = arith.constant 0 : index
      %109 = vector.load %arg6[%c2_60, %c0_61, %c0_62] : memref<4x32x512xf32, #tpu.memory_space<vmem>>, vector<1x32x512xf32>
      %110 = vector.shape_cast %109 : vector<1x32x512xf32> to vector<32x512xf32>
      %111 = vector.shape_cast %108 : vector<32x512xf32> to vector<1x32x512xf32>
      tpu.vector_store %arg6[%c2_60, %c0_61, %c0_62], %111 {strides = array<i32>} : memref<4x32x512xf32, #tpu.memory_space<vmem>>, vector<1x32x512xf32>,
      %c3_63 = arith.constant 3 : index
      %c0_64 = arith.constant 0 : index
      %c0_65 = arith.constant 0 : index
      %112 = vector.load %arg6[%c3_63, %c0_64, %c0_65] : memref<4x32x512xf32, #tpu.memory_space<vmem>>, vector<1x32x512xf32>
      %113 = vector.shape_cast %112 : vector<1x32x512xf32> to vector<32x512xf32>
      %114 = vector.broadcast %66 : vector<32x1xf32> to vector<32x512xf32>
      %115 = arith.mulf %113, %114 : vector<32x512xf32>
      %116 = vector.broadcast %69 : vector<32x1xf32> to vector<32x512xf32>
      %117 = arith.addf %115, %116 : vector<32x512xf32>
      %cst_66 = arith.constant 0.000000e+00 : f32
      %118 = vector.broadcast %cst_66 : f32 to vector<32x512xf32>
      %119 = arith.cmpf oge, %117, %118 : vector<32x512xf32>
      %cst_67 = arith.constant 2.000000e-01 : f32
      %120 = vector.broadcast %cst_67 : f32 to vector<32x512xf32>
      %121 = arith.mulf %120, %117 : vector<32x512xf32>
      %122 = arith.select %119, %117, %121 : vector<32x512xi1>, vector<32x512xf32>
      %c3_68 = arith.constant 3 : index
      %c0_69 = arith.constant 0 : index
      %c0_70 = arith.constant 0 : index
      %123 = vector.load %arg6[%c3_68, %c0_69, %c0_70] : memref<4x32x512xf32, #tpu.memory_space<vmem>>, vector<1x32x512xf32>
      %124 = vector.shape_cast %123 : vector<1x32x512xf32> to vector<32x512xf32>
      %125 = vector.shape_cast %122 : vector<32x512xf32> to vector<1x32x512xf32>
      tpu.vector_store %arg6[%c3_68, %c0_69, %c0_70], %125 {strides = array<i32>} : memref<4x32x512xf32, #tpu.memory_space<vmem>>, vector<1x32x512xf32>,
    } else {
    }
    return
  }
  func.func @transform_0(%arg0: i32, %arg1: i32) -> (i32, i32, i32) {
    %c0_i32 = arith.constant 0 : i32
    %c0_i32_0 = arith.constant 0 : i32
    return %arg0, %c0_i32, %arg1 : i32, i32, i32
  }
  func.func @transform_1(%arg0: i32, %arg1: i32) -> (i32, i32, i32) {
    %c0_i32 = arith.constant 0 : i32
    %c0_i32_0 = arith.constant 0 : i32
    %c0_i32_1 = arith.constant 0 : i32
    return %arg0, %c0_i32, %c0_i32_0 : i32, i32, i32
  }
  func.func @transform_2(%arg0: i32, %arg1: i32) -> (i32, i32) {
    %c0_i32 = arith.constant 0 : i32
    %c0_i32_0 = arith.constant 0 : i32
    %c0_i32_1 = arith.constant 0 : i32
    return %c0_i32, %c0_i32_0 : i32, i32
  }
  func.func @transform_3(%arg0: i32, %arg1: i32) -> (i32, i32) {
    %c0_i32 = arith.constant 0 : i32
    %c0_i32_0 = arith.constant 0 : i32
    %c0_i32_1 = arith.constant 0 : i32
    return %c0_i32, %c0_i32_0 : i32, i32
  }
  func.func @transform_4(%arg0: i32, %arg1: i32) -> (i32, i32, i32) {
    %c0_i32 = arith.constant 0 : i32
    %c0_i32_0 = arith.constant 0 : i32
    %c0_i32_1 = arith.constant 0 : i32
    %c0_i32_2 = arith.constant 0 : i32
    return %c0_i32, %c0_i32_0, %c0_i32_1 : i32, i32, i32
  }
}

module attributes {stable_mosaic.version = 11 : i64} {
  func.func @_final_tanh_kernel(%arg0: i32, %arg1: i32, %arg2: memref<1x128x2048xbf16, #tpu.memory_space<vmem>>, %arg3: memref<1x3x128xbf16, #tpu.memory_space<vmem>>, %arg4: memref<3x1xf32, #tpu.memory_space<vmem>>, %arg5: memref<1x3x2048xf32, #tpu.memory_space<vmem>>) attributes {dimension_semantics = [#tpu.dimension_semantics<parallel>, #tpu.dimension_semantics<parallel>], iteration_bounds = array<i64: 4, 1>, scalar_prefetch = 0 : i64, scratch_operands = 0 : i64, tpu.core_type = #tpu.core_type<tc>, window_params = [{transform_indices = @transform_0, window_bounds = array<i64: 1, 128, 2048>}, {transform_indices = @transform_1, window_bounds = array<i64: 1, 3, 128>}, {pipeline_mode = #tpu.pipeline_mode<synchronous>, transform_indices = @transform_2, window_bounds = array<i64: 3, 1>}, {transform_indices = @transform_3, window_bounds = array<i64: 1, 3, 2048>}]} {
    %c0 = arith.constant 0 : index
    %c0_0 = arith.constant 0 : index
    %c0_1 = arith.constant 0 : index
    %0 = vector.load %arg3[%c0, %c0_0, %c0_1] : memref<1x3x128xbf16, #tpu.memory_space<vmem>>, vector<1x3x128xbf16>
    %1 = vector.shape_cast %0 : vector<1x3x128xbf16> to vector<3x128xbf16>
    %c0_2 = arith.constant 0 : index
    %c0_3 = arith.constant 0 : index
    %c0_4 = arith.constant 0 : index
    %2 = vector.load %arg2[%c0_2, %c0_3, %c0_4] : memref<1x128x2048xbf16, #tpu.memory_space<vmem>>, vector<1x128x2048xbf16>
    %3 = vector.shape_cast %2 : vector<1x128x2048xbf16> to vector<128x2048xbf16>
    %cst = arith.constant dense<0.000000e+00> : vector<3x2048xf32>
    %4 = tpu.matmul %1, %3, %cst {dimension_numbers = #tpu.dot_dimension_numbers<[1], [0], [0], [1], [0, 0, 1, 1], [], []>} : vector<3x128xbf16>, vector<128x2048xbf16>, vector<3x2048xf32> -> vector<3x2048xf32>
    %c0_5 = arith.constant 0 : index
    %c0_6 = arith.constant 0 : index
    %5 = vector.load %arg4[%c0_5, %c0_6] : memref<3x1xf32, #tpu.memory_space<vmem>>, vector<3x1xf32>
    %6 = vector.broadcast %5 : vector<3x1xf32> to vector<3x2048xf32>
    %7 = arith.addf %4, %6 : vector<3x2048xf32>
    %8 = math.tanh %7 : vector<3x2048xf32>
    %c0_7 = arith.constant 0 : index
    %c0_8 = arith.constant 0 : index
    %c0_9 = arith.constant 0 : index
    %9 = vector.load %arg5[%c0_7, %c0_8, %c0_9] : memref<1x3x2048xf32, #tpu.memory_space<vmem>>, vector<1x3x2048xf32>
    %10 = vector.shape_cast %9 : vector<1x3x2048xf32> to vector<3x2048xf32>
    %11 = vector.shape_cast %8 : vector<3x2048xf32> to vector<1x3x2048xf32>
    tpu.vector_store %arg5[%c0_7, %c0_8, %c0_9], %11 {strides = array<i32>} : memref<1x3x2048xf32, #tpu.memory_space<vmem>>, vector<1x3x2048xf32>,
    return
  }
  func.func @transform_0(%arg0: i32, %arg1: i32) -> (i32, i32, i32) {
    %c0_i32 = arith.constant 0 : i32
    %c0_i32_0 = arith.constant 0 : i32
    return %arg0, %c0_i32, %arg1 : i32, i32, i32
  }
  func.func @transform_1(%arg0: i32, %arg1: i32) -> (i32, i32, i32) {
    %c0_i32 = arith.constant 0 : i32
    %c0_i32_0 = arith.constant 0 : i32
    %c0_i32_1 = arith.constant 0 : i32
    return %arg0, %c0_i32, %c0_i32_0 : i32, i32, i32
  }
  func.func @transform_2(%arg0: i32, %arg1: i32) -> (i32, i32) {
    %c0_i32 = arith.constant 0 : i32
    %c0_i32_0 = arith.constant 0 : i32
    %c0_i32_1 = arith.constant 0 : i32
    return %c0_i32, %c0_i32_0 : i32, i32
  }
  func.func @transform_3(%arg0: i32, %arg1: i32) -> (i32, i32, i32) {
    %c0_i32 = arith.constant 0 : i32
    %c0_i32_0 = arith.constant 0 : i32
    return %arg0, %c0_i32, %arg1 : i32, i32, i32
  }
}

</mosaic_0001>

<bundles_post_ra>
// kernel: generator_forward.5
= control target key start
LH: loop header
LB: loop body
LE: loop exit
PB: predicated region body
PF: predicated region fallthrough
CT: control target
= control target key end

     0   :  { %9 = vsyncpa [#allocation3], 0  ;;  %s2651_s0 = inlined_call_operand.vmem [shape: bf16[2,16], index: 0, kind: input, shape index: {}]   ;;  %s2652_s1 = inlined_call_operand.vmem [shape: bf16[16,4096], index: 1, kind: input, shape index: {}]   ;;  %s2653_s2 = inlined_call_operand.hbm [shape: f32[1,256], index: 2, kind: input, shape index: {}]   ;;  %s2654_s3 = inlined_call_operand.hbm [shape: f32[1,256], index: 3, kind: input, shape index: {}]   ;;  %s2655_s4 = inlined_call_operand.vmem [shape: f32[2,4096], index: 4, kind: output, shape index: {}]  }
   0x1   :  { %10 = vsyncpa [#allocation5], 0  ;;  %s2022_s15 = smov [#allocation2]   ;;  %s2023_s17 = smov [#allocation4]  }
   0x2   :  { %s21_s16 = sshll.u32 %s2022_s15, 4  ;;  %s31_s18 = sshll.u32 %s2023_s17, 4  ;;  %s22_s16 = int_to_ptr.vmem [resolvable:$true] %s21_s16  ;;  %s32_s18 = int_to_ptr.vmem [resolvable:$true] %s31_s18 }
   0x3   :  { %s1974_s21 = scalar_lea.hbm %s2653_s2, 32 }
   0x4   :  { %p1975_p0 = scmp.ne.s32.totalorder %s2653_s2, %s1974_s21  ;;  %p1978_p1 = scmp.lt.u32.totalorder %s1974_s21, %s2653_s2 }
   0x6   :  { %p1980_p2 = pnand %p1978_p1, %p1975_p0 }
   0x8   :  { %1983 = shalt.err (!%p1980_p2)
}
   0x9   :  { %s1984_s26 = scalar_lea.vmem %s22_s16, 32  ;;  %p1989_p4 = scmp.lt.s32.totalorder %s22_s16, %s22_s16 }
   0xa   :  { %p1985_p3 = scmp.ne.s32.totalorder %s22_s16, %s1984_s26  ;;  %p1990_p5 = scmp.lt.s32.totalorder %s1984_s26, %s1984_s26 }
   0xc   :  { %p1991_p6 = por %p1990_p5, %p1989_p4 }
   0xe   :  { %p1992_p7 = pnand %p1991_p6, %p1985_p3 }
  0x10   :  { %1995 = shalt.err (!%p1992_p7)
}
  0x11   :  { %24 = dma.hbm_to_vmem [thread:$0]  %s2653_s2, 32, %s22_s16, [#allocation3]  }
  0x12   :  { %s1996_s5 = scalar_lea.hbm %s2654_s3, 32 }
  0x13   :  { %p1997_p8 = scmp.ne.s32.totalorder %s2654_s3, %s1996_s5  ;;  %p2000_p9 = scmp.lt.u32.totalorder %s1996_s5, %s2654_s3 }
  0x15   :  { %p2002_p10 = pnand %p2000_p9, %p1997_p8 }
  0x17   :  { %2005 = shalt.err (!%p2002_p10)
}
  0x18   :  { %s2006_s10 = scalar_lea.vmem %s32_s18, 32  ;;  %p2011_p12 = scmp.lt.s32.totalorder %s32_s18, %s32_s18 }
  0x19   :  { %p2007_p11 = scmp.ne.s32.totalorder %s32_s18, %s2006_s10  ;;  %p2012_p13 = scmp.lt.s32.totalorder %s2006_s10, %s2006_s10 }
  0x1b   :  { %p2013_p0 = por %p2012_p13, %p2011_p12 }
  0x1d   :  { %p2014_p1 = pnand %p2013_p0, %p2007_p11 }
  0x1f   :  { %2017 = shalt.err (!%p2014_p1)
}
  0x20   :  { %34 = dma.hbm_to_vmem [thread:$0]  %s2654_s3, 32, %s32_s18, [#allocation5]  }
  0x21   :  { %2018 = dma.done.wait [#allocation3], 32  }
  0x22   :  { %2019 = vsyncadd [#allocation3], 4294967264 }
  0x23   :  { %2020 = dma.done.wait [#allocation5], 32  }
  0x24   :  { %2021 = vsyncadd [#allocation5], 4294967264  ;;  %v2024_v0 = vmov 0   ;;  %v43_v1 = vld [vmem:[%s2652_s1] sm:$0xff]  ;;  %v44_v3 = vld [vmem:[%s2652_s1 + $0x8] sm:$0xff]  ;;  %vm235_vm0 = vcmask 130048  }
  0x25   :  { %271 = vmatprep.mubr.bf16.mxu0 %v2024_v0  ;;  %312 = vmatprep.mubr.bf16.mxu1 %v2024_v0  ;;  %v59_v2 = vld [vmem:[%s2652_s1 + $0x80] sm:$0xff]  ;;  %v60_v5 = vld [vmem:[%s2652_s1 + $0x88] sm:$0xff]  ;;  %v45_v7 = vld [vmem:[%s2652_s1 + $0x10] sm:$0xff]  ;;  %vm895_vm1 = vcmask 1041408  }
  0x26   :  { %v1903_v4 = vcombine.high %v43_v1, %v59_v2  ;;  %v1902_v6 = vcombine.low %v43_v1, %v59_v2  ;;  %v1905_v8 = vcombine.high %v44_v3, %v60_v5  ;;  %v1904_v9 = vcombine.low %v44_v3, %v60_v5  ;;  %v61_v10 = vld [vmem:[%s2652_s1 + $0x90] sm:$0xff]  ;;  %v46_v11 = vld [vmem:[%s2652_s1 + $0x18] sm:$0xff]  ;;  %v47_v15 = vld [vmem:[%s2652_s1 + $0x20] sm:$0xff] }
  0x27   :  { %v62_v12 = vld [vmem:[%s2652_s1 + $0x98] sm:$0xff]  ;;  %v1907_v13 = vcombine.high %v45_v7, %v61_v10  ;;  %v63_v16 = vld [vmem:[%s2652_s1 + $0xa0] sm:$0xff]  ;;  %v1906_v18 = vcombine.low %v45_v7, %v61_v10  ;;  %v48_v19 = vld [vmem:[%s2652_s1 + $0x28] sm:$0xff] }
  0x28   :  { %239 = vmatprep.subr.bf16.mxu0 %v1903_v4  ;;  %v1909_v14 = vcombine.high %v46_v11, %v62_v12  ;;  %280 = vmatprep.subr.bf16.mxu1 %v1905_v8  ;;  %v2110_v17 = vld [vmem:[%s2651_s0] sm:$0x1]  ;;  %v64_v20 = vld [vmem:[%s2652_s1 + $0xa8] sm:$0xff]  ;;  %v1908_v21 = vcombine.low %v46_v11, %v62_v12  ;;  %v1911_v22 = vcombine.high %v47_v15, %v63_v16  ;;  %v49_v24 = vld [vmem:[%s2652_s1 + $0x30] sm:$0xff] }
  0x29   :  { %240 = vmatpush1.bf16.msra.mxu0 %v1902_v6  ;;  %281 = vmatpush1.bf16.msra.mxu1 %v1904_v9  ;;  %v1913_v23 = vcombine.high %v48_v19, %v64_v20  ;;  %v65_v25 = vld [vmem:[%s2652_s1 + $0xb0] sm:$0xff]  ;;  %v1910_v26 = vcombine.low %v47_v15, %v63_v16  ;;  %v50_v27 = vld [vmem:[%s2652_s1 + $0x38] sm:$0xff]  ;;  %v1912_v29 = vcombine.low %v48_v19, %v64_v20  ;;  %v51_v32 = vld [vmem:[%s2652_s1 + $0x40] sm:$0xff] }
  0x2a   :  { %321 = vmatprep.subr.bf16.mxu0 %v1907_v13  ;;  %362 = vmatprep.subr.bf16.mxu1 %v1909_v14  ;;  %v66_v28 = vld [vmem:[%s2652_s1 + $0xb8] sm:$0xff]  ;;  %v1915_v30 = vcombine.high %v49_v24, %v65_v25  ;;  %v67_v33 = vld [vmem:[%s2652_s1 + $0xc0] sm:$0xff]  ;;  %v1914_v34 = vcombine.low %v49_v24, %v65_v25  ;;  %v52_v35 = vld [vmem:[%s2652_s1 + $0x48] sm:$0xff] }
  0x2b   :  { %v1917_v31 = vcombine.high %v50_v27, %v66_v28  ;;  %v68_v36 = vld [vmem:[%s2652_s1 + $0xc8] sm:$0xff]  ;;  %v1916_v37 = vcombine.low %v50_v27, %v66_v28  ;;  %v1919_v38 = vcombine.high %v51_v32, %v67_v33  ;;  %v53_v40 = vld [vmem:[%s2652_s1 + $0x50] sm:$0xff]  ;;  %v1918_v42 = vcombine.low %v51_v32, %v67_v33  ;;  %v54_v43 = vld [vmem:[%s2652_s1 + $0x58] sm:$0xff] }
  0x2c   :  { %1934 = vmatmul.mubr.msk.bf16.vlgmr.msra.gmra.mrb[0].mxu0 %vm235_vm0, %v2110_v17  ;;  %1935 = vmatmul.mubr.msk.bf16.vlgmr.msra.gmra.mrb[0].mxu1 %vm235_vm0, %v2110_v17  ;;  %v1921_v39 = vcombine.high %v52_v35, %v68_v36  ;;  %v69_v41 = vld [vmem:[%s2652_s1 + $0xd0] sm:$0xff]  ;;  %v70_v44 = vld [vmem:[%s2652_s1 + $0xd8] sm:$0xff]  ;;  %v1920_v45 = vcombine.low %v52_v35, %v68_v36  ;;  %v55_v48 = vld [vmem:[%s2652_s1 + $0x60] sm:$0xff] }
  0x2d   :  { %322 = vmatpush1.bf16.msra.mxu0 %v1906_v18  ;;  %363 = vmatpush1.bf16.msra.mxu1 %v1908_v21  ;;  %v1923_v46 = vcombine.high %v53_v40, %v69_v41  ;;  %v1925_v47 = vcombine.high %v54_v43, %v70_v44  ;;  %v71_v49 = vld [vmem:[%s2652_s1 + $0xe0] sm:$0xff]  ;;  %v1922_v50 = vcombine.low %v53_v40, %v69_v41  ;;  %v56_v51 = vld [vmem:[%s2652_s1 + $0x68] sm:$0xff]  ;;  %v57_v56 = vld [vmem:[%s2652_s1 + $0x70] sm:$0xff] }
  0x2e   :  { %353 = vmatprep.mubr.bf16.mxu0 %v2024_v0  ;;  %394 = vmatprep.mubr.bf16.mxu1 %v2024_v0  ;;  %v72_v52 = vld [vmem:[%s2652_s1 + $0xe8] sm:$0xff]  ;;  %v1924_v53 = vcombine.low %v54_v43, %v70_v44  ;;  %v1927_v54 = vcombine.high %v55_v48, %v71_v49  ;;  %v73_v57 = vld [vmem:[%s2652_s1 + $0xf0] sm:$0xff]  ;;  %v1926_v58 = vcombine.low %v55_v48, %v71_v49  ;;  %v58_v59 = vld [vmem:[%s2652_s1 + $0x78] sm:$0xff] }
  0x2f   :  { %403 = vmatprep.subr.bf16.mxu0 %v1911_v22  ;;  %444 = vmatprep.subr.bf16.mxu1 %v1913_v23  ;;  %v1929_v55 = vcombine.high %v56_v51, %v72_v52  ;;  %v74_v60 = vld [vmem:[%s2652_s1 + $0xf8] sm:$0xff]  ;;  %v1928_v61 = vcombine.low %v56_v51, %v72_v52  ;;  %v1931_v62 = vcombine.high %v57_v56, %v73_v57 }
  0x30   :  { %v1933_v63 = vcombine.high %v58_v59, %v74_v60  ;;  %v1930_v1 = vcombine.low %v57_v56, %v73_v57  ;;  %v1932_v2 = vcombine.low %v58_v59, %v74_v60 }
  0x34   :  { %1936 = vmatmul.mubr.msk.bf16.vlgmr.msra.gmra.mrb[4].mxu0 %vm235_vm0, %v2110_v17  ;;  %1937 = vmatmul.mubr.msk.bf16.vlgmr.msra.gmra.mrb[4].mxu1 %vm235_vm0, %v2110_v17 }
  0x35   :  { %404 = vmatpush1.bf16.msra.mxu0 %v1910_v26  ;;  %445 = vmatpush1.bf16.msra.mxu1 %v1912_v29 }
  0x36   :  { %435 = vmatprep.mubr.bf16.mxu0 %v2024_v0  ;;  %476 = vmatprep.mubr.bf16.mxu1 %v2024_v0 }
  0x37   :  { %485 = vmatprep.subr.bf16.mxu0 %v1915_v30  ;;  %526 = vmatprep.subr.bf16.mxu1 %v1917_v31 }
  0x3c   :  { %1938 = vmatmul.mubr.msk.bf16.vlgmr.msra.gmra.mrb[8].mxu0 %vm235_vm0, %v2110_v17  ;;  %1939 = vmatmul.mubr.msk.bf16.vlgmr.msra.gmra.mrb[8].mxu1 %vm235_vm0, %v2110_v17 }
  0x3d   :  { %486 = vmatpush1.bf16.msra.mxu0 %v1914_v34  ;;  %527 = vmatpush1.bf16.msra.mxu1 %v1916_v37 }
  0x3e   :  { %517 = vmatprep.mubr.bf16.mxu0 %v2024_v0  ;;  %558 = vmatprep.mubr.bf16.mxu1 %v2024_v0 }
  0x3f   :  { %567 = vmatprep.subr.bf16.mxu0 %v1919_v38  ;;  %608 = vmatprep.subr.bf16.mxu1 %v1921_v39 }
  0x44   :  { %1940 = vmatmul.mubr.msk.bf16.vlgmr.msra.gmra.mrb[12].mxu0 %vm235_vm0, %v2110_v17  ;;  %1941 = vmatmul.mubr.msk.bf16.vlgmr.msra.gmra.mrb[12].mxu1 %vm235_vm0, %v2110_v17 }
  0x45   :  { %568 = vmatpush1.bf16.msra.mxu0 %v1918_v42  ;;  %609 = vmatpush1.bf16.msra.mxu1 %v1920_v45 }
  0x46   :  { %599 = vmatprep.mubr.bf16.mxu0 %v2024_v0  ;;  %640 = vmatprep.mubr.bf16.mxu1 %v2024_v0 }
  0x47   :  { %649 = vmatprep.subr.bf16.mxu0 %v1923_v46  ;;  %690 = vmatprep.subr.bf16.mxu1 %v1925_v47 }
  0x4c   :  { %1942 = vmatmul.mubr.msk.bf16.vlgmr.msra.gmra.mrb[16].mxu0 %vm235_vm0, %v2110_v17  ;;  %1943 = vmatmul.mubr.msk.bf16.vlgmr.msra.gmra.mrb[16].mxu1 %vm235_vm0, %v2110_v17 }
  0x4d   :  { %650 = vmatpush1.bf16.msra.mxu0 %v1922_v50  ;;  %691 = vmatpush1.bf16.msra.mxu1 %v1924_v53 }
  0x4e   :  { %681 = vmatprep.mubr.bf16.mxu0 %v2024_v0  ;;  %722 = vmatprep.mubr.bf16.mxu1 %v2024_v0 }
  0x4f   :  { %731 = vmatprep.subr.bf16.mxu0 %v1927_v54  ;;  %772 = vmatprep.subr.bf16.mxu1 %v1929_v55 }
  0x54   :  { %1944 = vmatmul.mubr.msk.bf16.vlgmr.msra.gmra.mrb[20].mxu0 %vm235_vm0, %v2110_v17  ;;  %1945 = vmatmul.mubr.msk.bf16.vlgmr.msra.gmra.mrb[20].mxu1 %vm235_vm0, %v2110_v17 }
  0x55   :  { %732 = vmatpush1.bf16.msra.mxu0 %v1926_v58  ;;  %773 = vmatpush1.bf16.msra.mxu1 %v1928_v61 }
  0x56   :  { %763 = vmatprep.mubr.bf16.mxu0 %v2024_v0  ;;  %804 = vmatprep.mubr.bf16.mxu1 %v2024_v0 }
  0x57   :  { %813 = vmatprep.subr.bf16.mxu0 %v1931_v62  ;;  %854 = vmatprep.subr.bf16.mxu1 %v1933_v63 }
  0x5c   :  { %1946 = vmatmul.mubr.msk.bf16.vlgmr.msra.gmra.mrb[24].mxu0 %vm235_vm0, %v2110_v17  ;;  %1947 = vmatmul.mubr.msk.bf16.vlgmr.msra.gmra.mrb[24].mxu1 %vm235_vm0, %v2110_v17 }
  0x5d   :  { %814 = vmatpush1.bf16.msra.mxu0 %v1930_v1  ;;  %855 = vmatpush1.bf16.msra.mxu1 %v1932_v2 }
  0x5e   :  { %845 = vmatprep.mubr.bf16.mxu0 %v2024_v0  ;;  %886 = vmatprep.mubr.bf16.mxu1 %v2024_v0 }
  0x64   :  { %1948 = vmatmul.mubr.msk.bf16.vlgmr.msra.gmra.mrb[28].mxu0 %vm235_vm0, %v2110_v17  ;;  %1949 = vmatmul.mubr.msk.bf16.vlgmr.msra.gmra.mrb[28].mxu1 %vm235_vm0, %v2110_v17 }
  0xff   :  { %v2224_v3 = vpop.f32.mrb[0].mxu0  ;;  %v2228_v5 = vpop.f32.mrb[0].mxu1 }
 0x100   :  { %v896_v4 = vsel %vm895_vm1, %v2224_v3, 0.0  ;;  %v2230_v6 = vpop.f32.mrb[1].mxu0  ;;  %v912_v0 = vsel %vm895_vm1, %v2228_v5, 0.0  ;;  %v2236_v9 = vpop.f32.mrb[1].mxu1 }
 0x101   :  { %v897_v7 = vrot.slane %v896_v4, 4  ;;  %v903_v8 = vsel %vm895_vm1, %v2230_v6, 0.0  ;;  %v277_v10 = vpop.f32.mrb[2].mxu0  ;;  %v913_v11 = vrot.slane %v912_v0, 4  ;;  %v919_v13 = vsel %vm895_vm1, %v2236_v9, 0.0  ;;  %v318_v14 = vpop.f32.mrb[2].mxu1 }
 0x102   :  { %v904_v12 = vrot.slane %v903_v8, 4  ;;  %v278_v15 = vpop.f32.mrb[3].mxu0  ;;  %v920_v17 = vrot.slane %v919_v13, 4  ;;  %v319_v18 = vpop.f32.mrb[3].mxu1 }
 0x103   :  { %v898_v16 = vadd.f32 %v897_v7, %v896_v4  ;;  %v914_v19 = vadd.f32 %v913_v11, %v912_v0 }
 0x104   :  { %v905_v20 = vadd.f32 %v904_v12, %v903_v8  ;;  %v921_v22 = vadd.f32 %v920_v17, %v919_v13 }
 0x105   :  { %v899_v21 = vrot.slane %v898_v16, 2  ;;  %v915_v23 = vrot.slane %v914_v19, 2 }
 0x106   :  { %v906_v24 = vrot.slane %v905_v20, 2  ;;  %v922_v26 = vrot.slane %v921_v22, 2 }
 0x107   :  { %v900_v25 = vadd.f32 %v899_v21, %v898_v16  ;;  %v2240_v27 = vpop.f32.mrb[4].mxu0  ;;  %v916_v28 = vadd.f32 %v915_v23, %v914_v19  ;;  %v2244_v31 = vpop.f32.mrb[4].mxu1 }
 0x108   :  { %2664 = vst [vmem:[#allocation8_spill] sm:$0xff] %v2240_v27  ;;  %v907_v29 = vadd.f32 %v906_v24, %v905_v20  ;;  %v928_v30 = vsel %vm895_vm1, %v2240_v27, 0.0  ;;  %2665 = vst [vmem:[#allocation9_spill] sm:$0xff] %v2244_v31  ;;  %v2246_v32 = vpop.f32.mrb[5].mxu0  ;;  %v923_v34 = vadd.f32 %v922_v26, %v921_v22  ;;  %v944_v36 = vsel %vm895_vm1, %v2244_v31, 0.0  ;;  %v2250_v37 = vpop.f32.mrb[5].mxu1 }
 0x109   :  { %v901_v33 = vrot.slane %v900_v25, 1  ;;  %v929_v35 = vrot.slane %v928_v30, 4  ;;  %v359_v38 = vpop.f32.mrb[6].mxu0  ;;  %v917_v39 = vrot.slane %v916_v28, 1  ;;  %v945_v41 = vrot.slane %v944_v36, 4  ;;  %v400_v43 = vpop.f32.mrb[6].mxu1 }
 0x10a   :  { %v908_v40 = vrot.slane %v907_v29, 1  ;;  %v935_v42 = vsel %vm895_vm1, %v2246_v32, 0.0  ;;  %v360_v44 = vpop.f32.mrb[7].mxu0  ;;  %v924_v46 = vrot.slane %v923_v34, 1  ;;  %v401_v49 = vpop.f32.mrb[7].mxu1  ;;  %v951_v53 = vsel %vm895_vm1, %v2250_v37, 0.0 }
 0x10b   :  { %v902_v45 = vadd.f32 %v901_v33, %v900_v25  ;;  %v930_v47 = vadd.f32 %v929_v35, %v928_v30  ;;  %v936_v48 = vrot.slane %v935_v42, 4  ;;  %v918_v50 = vadd.f32 %v917_v39, %v916_v28 }
 0x10c   :  { %v909_v51 = vadd.f32 %v908_v40, %v907_v29  ;;  %v946_v52 = vadd.f32 %v945_v41, %v944_v36  ;;  %v925_v54 = vadd.f32 %v924_v46, %v923_v34  ;;  %v952_v57 = vrot.slane %v951_v53, 4 }
 0x10d   :  { %v931_v55 = vrot.slane %v930_v47, 2  ;;  %v937_v56 = vadd.f32 %v936_v48, %v935_v42  ;;  %v926_v58 = vadd.f32 %v918_v50, %v902_v45 }
 0x10e   :  { %v947_v59 = vrot.slane %v946_v52, 2  ;;  %v927_v60 = vadd.f32 %v925_v54, %v909_v51  ;;  %v953_v63 = vadd.f32 %v952_v57, %v951_v53 }
 0x10f   :  { %v932_v61 = vadd.f32 %v931_v55, %v930_v47  ;;  %v938_v62 = vrot.slane %v937_v56, 2  ;;  %v2256_v1 = vpop.f32.mrb[8].mxu0  ;;  %v2260_v7 = vpop.f32.mrb[8].mxu1 }
 0x110   :  { %2666 = vst [vmem:[#allocation10_spill] sm:$0xff] %v2256_v1  ;;  %v948_v2 = vadd.f32 %v947_v59, %v946_v52  ;;  %v960_v4 = vsel %vm895_vm1, %v2256_v1, 0.0  ;;  %2667 = vst [vmem:[#allocation11_spill] sm:$0xff] %v2260_v7  ;;  %v2262_v0 = vpop.f32.mrb[9].mxu0  ;;  %v954_v11 = vrot.slane %v953_v63, 2  ;;  %v2264_v13 = vpop.f32.mrb[9].mxu1 }
 0x111   :  { %v933_v8 = vrot.slane %v932_v61, 1  ;;  %v939_v10 = vadd.f32 %v938_v62, %v937_v56  ;;  %v961_v12 = vrot.slane %v960_v4, 4  ;;  %v441_v14 = vpop.f32.mrb[10].mxu0  ;;  %v976_v16 = vsel %vm895_vm1, %v2260_v7, 0.0  ;;  %v482_v19 = vpop.f32.mrb[10].mxu1 }
 0x112   :  { %v949_v15 = vrot.slane %v948_v2, 1  ;;  %v967_v17 = vsel %vm895_vm1, %v2262_v0, 0.0  ;;  %v983_v18 = vsel %vm895_vm1, %v2264_v13, 0.0  ;;  %v442_v20 = vpop.f32.mrb[11].mxu0  ;;  %v955_v23 = vadd.f32 %v954_v11, %v953_v63  ;;  %v483_v25 = vpop.f32.mrb[11].mxu1 }
 0x113   :  { %v934_v21 = vadd.f32 %v933_v8, %v932_v61  ;;  %v940_v22 = vrot.slane %v939_v10, 1  ;;  %v962_v24 = vadd.f32 %v961_v12, %v960_v4  ;;  %v977_v28 = vrot.slane %v976_v16, 4 }
 0x114   :  { %v950_v26 = vadd.f32 %v949_v15, %v948_v2  ;;  %v968_v29 = vrot.slane %v967_v17, 4  ;;  %v984_v30 = vrot.slane %v983_v18, 4  ;;  %v956_v35 = vrot.slane %v955_v23, 1 }
 0x115   :  { %v942_v33 = vadd.f32 %v934_v21, %v926_v58  ;;  %v941_v34 = vadd.f32 %v940_v22, %v939_v10  ;;  %v963_v36 = vrot.slane %v962_v24, 2  ;;  %v978_v38 = vadd.f32 %v977_v28, %v976_v16 }
 0x116   :  { %v969_v39 = vadd.f32 %v968_v29, %v967_v17  ;;  %v985_v40 = vadd.f32 %v984_v30, %v983_v18  ;;  %v957_v43 = vadd.f32 %v956_v35, %v955_v23 }
 0x117   :  { %v958_v41 = vadd.f32 %v950_v26, %v942_v33  ;;  %v943_v42 = vadd.f32 %v941_v34, %v927_v60  ;;  %v964_v44 = vadd.f32 %v963_v36, %v962_v24  ;;  %v2272_v45 = vpop.f32.mrb[12].mxu0  ;;  %v979_v46 = vrot.slane %v978_v38, 2  ;;  %v2276_v50 = vpop.f32.mrb[12].mxu1 }
 0x118   :  { %2668 = vst [vmem:[#allocation12_spill] sm:$0xff] %v2272_v45  ;;  %v970_v47 = vrot.slane %v969_v39, 2  ;;  %v986_v48 = vrot.slane %v985_v40, 2  ;;  %v992_v49 = vsel %vm895_vm1, %v2272_v45, 0.0  ;;  %2669 = vst [vmem:[#allocation13_spill] sm:$0xff] %v2276_v50  ;;  %v2278_v51 = vpop.f32.mrb[13].mxu0 }
 0x119   :  { %v959_v52 = vadd.f32 %v957_v43, %v943_v42  ;;  %v965_v53 = vrot.slane %v964_v44, 1  ;;  %v993_v54 = vrot.slane %v992_v49, 4  ;;  %v1008_v55 = vsel %vm895_vm1, %v2276_v50, 0.0  ;;  %v2282_v56 = vpop.f32.mrb[13].mxu1  ;;  %v523_v57 = vpop.f32.mrb[14].mxu0 }
 0x11a   :  { %v980_v58 = vadd.f32 %v979_v46, %v978_v38  ;;  %v971_v59 = vadd.f32 %v970_v47, %v969_v39  ;;  %v987_v60 = vadd.f32 %v986_v48, %v985_v40  ;;  %v1009_v61 = vrot.slane %v1008_v55, 4  ;;  %v564_v62 = vpop.f32.mrb[14].mxu1  ;;  %v524_v63 = vpop.f32.mrb[15].mxu0 }
 0x11b   :  { %v966_v2 = vadd.f32 %v965_v53, %v964_v44  ;;  %v994_v4 = vadd.f32 %v993_v54, %v992_v49  ;;  %v999_v8 = vsel %vm895_vm1, %v2278_v51, 0.0  ;;  %v1015_v10 = vsel %vm895_vm1, %v2282_v56, 0.0  ;;  %v565_v11 = vpop.f32.mrb[15].mxu1 }
 0x11c   :  { %v981_v12 = vrot.slane %v980_v58, 1  ;;  %v972_v14 = vrot.slane %v971_v59, 1  ;;  %v988_v15 = vrot.slane %v987_v60, 1  ;;  %v1010_v16 = vadd.f32 %v1009_v61, %v1008_v55 }
 0x11d   :  { %v974_v17 = vadd.f32 %v966_v2, %v958_v41  ;;  %v995_v18 = vrot.slane %v994_v4, 2  ;;  %v1000_v19 = vrot.slane %v999_v8, 4  ;;  %v1016_v20 = vrot.slane %v1015_v10, 4 }
 0x11e   :  { %v982_v21 = vadd.f32 %v981_v12, %v980_v58  ;;  %v973_v22 = vadd.f32 %v972_v14, %v971_v59  ;;  %v1011_v23 = vrot.slane %v1010_v16, 2  ;;  %v989_v24 = vadd.f32 %v988_v15, %v987_v60 }
 0x11f   :  { %v996_v25 = vadd.f32 %v995_v18, %v994_v4  ;;  %v1001_v26 = vadd.f32 %v1000_v19, %v999_v8  ;;  %v1017_v28 = vadd.f32 %v1016_v20, %v1015_v10  ;;  %v2288_v29 = vpop.f32.mrb[16].mxu0  ;;  %v2292_v36 = vpop.f32.mrb[16].mxu1 }
 0x120   :  { %v990_v30 = vadd.f32 %v982_v21, %v974_v17  ;;  %v975_v33 = vadd.f32 %v973_v22, %v959_v52  ;;  %v1012_v34 = vadd.f32 %v1011_v23, %v1010_v16  ;;  %v1024_v35 = vsel %vm895_vm1, %v2288_v29, 0.0  ;;  %v2294_v38 = vpop.f32.mrb[17].mxu0  ;;  %v2296_v43 = vpop.f32.mrb[17].mxu1 }
 0x121   :  { %v997_v39 = vrot.slane %v996_v25, 1  ;;  %v1002_v40 = vrot.slane %v1001_v26, 2  ;;  %v1018_v41 = vrot.slane %v1017_v28, 2  ;;  %v1025_v42 = vrot.slane %v1024_v35, 4  ;;  %v605_v44 = vpop.f32.mrb[18].mxu0  ;;  %v646_v52 = vpop.f32.mrb[18].mxu1 }
 0x122   :  { %v991_v46 = vadd.f32 %v989_v24, %v975_v33  ;;  %v1013_v47 = vrot.slane %v1012_v34, 1  ;;  %v1040_v48 = vsel %vm895_vm1, %v2292_v36, 0.0  ;;  %v1031_v49 = vsel %vm895_vm1, %v2294_v38, 0.0  ;;  %v606_v53 = vpop.f32.mrb[19].mxu0  ;;  %v647_v59 = vpop.f32.mrb[19].mxu1 }
 0x123   :  { %v998_v54 = vadd.f32 %v997_v39, %v996_v25  ;;  %v1003_v55 = vadd.f32 %v1002_v40, %v1001_v26  ;;  %v1019_v57 = vadd.f32 %v1018_v41, %v1017_v28  ;;  %v1026_v58 = vadd.f32 %v1025_v42, %v1024_v35 }
 0x124   :  { %v1014_v60 = vadd.f32 %v1013_v47, %v1012_v34  ;;  %v1041_v61 = vrot.slane %v1040_v48, 4  ;;  %v1032_v62 = vrot.slane %v1031_v49, 4  ;;  %v1047_v63 = vsel %vm895_vm1, %v2296_v43, 0.0 }
 0x125   :  { %v1006_v2 = vadd.f32 %v998_v54, %v990_v30  ;;  %v1004_v4 = vrot.slane %v1003_v55, 1  ;;  %v1020_v8 = vrot.slane %v1019_v57, 1  ;;  %v1027_v10 = vrot.slane %v1026_v58, 2 }
 0x126   :  { %v1042_v11 = vadd.f32 %v1041_v61, %v1040_v48  ;;  %v1033_v12 = vadd.f32 %v1032_v62, %v1031_v49  ;;  %v1048_v14 = vrot.slane %v1047_v63, 4 }
 0x127   :  { %v1022_v15 = vadd.f32 %v1014_v60, %v1006_v2  ;;  %v1005_v16 = vadd.f32 %v1004_v4, %v1003_v55  ;;  %v1021_v17 = vadd.f32 %v1020_v8, %v1019_v57  ;;  %v1028_v18 = vadd.f32 %v1027_v10, %v1026_v58  ;;  %v2304_v19 = vpop.f32.mrb[20].mxu0  ;;  %v2308_v24 = vpop.f32.mrb[20].mxu1 }
 0x128   :  { %v1043_v20 = vrot.slane %v1042_v11, 2  ;;  %v1034_v21 = vrot.slane %v1033_v12, 2  ;;  %v1049_v22 = vadd.f32 %v1048_v14, %v1047_v63  ;;  %v1056_v23 = vsel %vm895_vm1, %v2304_v19, 0.0  ;;  %v2310_v25 = vpop.f32.mrb[21].mxu0  ;;  %v2314_v34 = vpop.f32.mrb[21].mxu1 }
 0x129   :  { %v1007_v26 = vadd.f32 %v1005_v16, %v991_v46  ;;  %v1029_v28 = vrot.slane %v1028_v18, 1  ;;  %v1057_v30 = vrot.slane %v1056_v23, 4  ;;  %v1072_v33 = vsel %vm895_vm1, %v2308_v24, 0.0  ;;  %v687_v35 = vpop.f32.mrb[22].mxu0  ;;  %v728_v44 = vpop.f32.mrb[22].mxu1 }
 0x12a   :  { %v1044_v39 = vadd.f32 %v1043_v20, %v1042_v11  ;;  %v1035_v40 = vadd.f32 %v1034_v21, %v1033_v12  ;;  %v1050_v41 = vrot.slane %v1049_v22, 2  ;;  %v1073_v42 = vrot.slane %v1072_v33, 4  ;;  %v688_v47 = vpop.f32.mrb[23].mxu0  ;;  %v729_v53 = vpop.f32.mrb[23].mxu1 }
 0x12b   :  { %v1023_v48 = vadd.f32 %v1021_v17, %v1007_v26  ;;  %v1030_v49 = vadd.f32 %v1029_v28, %v1028_v18  ;;  %v1058_v52 = vadd.f32 %v1057_v30, %v1056_v23  ;;  %v1063_v46 = vsel %vm895_vm1, %v2310_v25, 0.0 }
 0x12c   :  { %v1045_v54 = vrot.slane %v1044_v39, 1  ;;  %v1036_v55 = vrot.slane %v1035_v40, 1  ;;  %v1051_v57 = vadd.f32 %v1050_v41, %v1049_v22  ;;  %v1074_v58 = vadd.f32 %v1073_v42, %v1072_v33 }
 0x12d   :  { %v1038_v59 = vadd.f32 %v1030_v49, %v1022_v15  ;;  %v1059_v60 = vrot.slane %v1058_v52, 2  ;;  %v1064_v61 = vrot.slane %v1063_v46, 4  ;;  %v1079_v62 = vsel %vm895_vm1, %v2314_v34, 0.0 }
 0x12e   :  { %v1046_v63 = vadd.f32 %v1045_v54, %v1044_v39  ;;  %v1037_v2 = vadd.f32 %v1036_v55, %v1035_v40  ;;  %v1052_v4 = vrot.slane %v1051_v57, 1  ;;  %v1075_v8 = vrot.slane %v1074_v58, 2 }
 0x12f   :  { %v1060_v10 = vadd.f32 %v1059_v60, %v1058_v52  ;;  %v1065_v11 = vadd.f32 %v1064_v61, %v1063_v46  ;;  %v1080_v12 = vrot.slane %v1079_v62, 4  ;;  %v2320_v14 = vpop.f32.mrb[24].mxu0  ;;  %v2322_v21 = vpop.f32.mrb[24].mxu1 }
 0x130   :  { %v1054_v16 = vadd.f32 %v1046_v63, %v1038_v59  ;;  %v1039_v17 = vadd.f32 %v1037_v2, %v1023_v48  ;;  %v1053_v18 = vadd.f32 %v1052_v4, %v1051_v57  ;;  %v1076_v20 = vadd.f32 %v1075_v8, %v1074_v58  ;;  %v2324_v15 = vpop.f32.mrb[25].mxu0  ;;  %v2328_v30 = vpop.f32.mrb[25].mxu1 }
 0x131   :  { %v1061_v22 = vrot.slane %v1060_v10, 1  ;;  %v1066_v23 = vrot.slane %v1065_v11, 2  ;;  %v1081_v26 = vadd.f32 %v1080_v12, %v1079_v62  ;;  %v1088_v28 = vsel %vm895_vm1, %v2320_v14, 0.0  ;;  %v769_v33 = vpop.f32.mrb[26].mxu0  ;;  %v810_v42 = vpop.f32.mrb[26].mxu1 }
 0x132   :  { %v1055_v35 = vadd.f32 %v1053_v18, %v1039_v17  ;;  %v1077_v39 = vrot.slane %v1076_v20, 1  ;;  %v1089_v40 = vrot.slane %v1088_v28, 4  ;;  %v1104_v41 = vsel %vm895_vm1, %v2322_v21, 0.0  ;;  %v770_v44 = vpop.f32.mrb[27].mxu0  ;;  %v811_v46 = vpop.f32.mrb[27].mxu1 }
 0x133   :  { %v1062_v47 = vadd.f32 %v1061_v22, %v1060_v10  ;;  %v1067_v48 = vadd.f32 %v1066_v23, %v1065_v11  ;;  %v1082_v49 = vrot.slane %v1081_v26, 2  ;;  %v1105_v52 = vrot.slane %v1104_v41, 4 }
 0x134   :  { %v1078_v53 = vadd.f32 %v1077_v39, %v1076_v20  ;;  %v1090_v54 = vadd.f32 %v1089_v40, %v1088_v28  ;;  %v1095_v55 = vsel %vm895_vm1, %v2324_v15, 0.0  ;;  %v1111_v57 = vsel %vm895_vm1, %v2328_v30, 0.0 }
 0x135   :  { %v1070_v58 = vadd.f32 %v1062_v47, %v1054_v16  ;;  %v1068_v59 = vrot.slane %v1067_v48, 1  ;;  %v1083_v60 = vadd.f32 %v1082_v49, %v1081_v26  ;;  %v1106_v61 = vadd.f32 %v1105_v52, %v1104_v41 }
 0x136   :  { %v1091_v62 = vrot.slane %v1090_v54, 2  ;;  %v1096_v63 = vrot.slane %v1095_v55, 4  ;;  %v1112_v2 = vrot.slane %v1111_v57, 4 }
 0x137   :  { %v1086_v4 = vadd.f32 %v1078_v53, %v1070_v58  ;;  %v1069_v8 = vadd.f32 %v1068_v59, %v1067_v48  ;;  %v1084_v10 = vrot.slane %v1083_v60, 1  ;;  %v1107_v11 = vrot.slane %v1106_v61, 2  ;;  %v2336_v12 = vpop.f32.mrb[28].mxu0  ;;  %v2340_v23 = vpop.f32.mrb[28].mxu1 }
 0x138   :  { %v1092_v17 = vadd.f32 %v1091_v62, %v1090_v54  ;;  %v1097_v18 = vadd.f32 %v1096_v63, %v1095_v55  ;;  %v1113_v20 = vadd.f32 %v1112_v2, %v1111_v57  ;;  %v1120_v22 = vsel %vm895_vm1, %v2336_v12, 0.0  ;;  %v2342_v16 = vpop.f32.mrb[29].mxu0  ;;  %v2344_v40 = vpop.f32.mrb[29].mxu1 }
 0x139   :  { %v1071_v26 = vadd.f32 %v1069_v8, %v1055_v35  ;;  %v1085_v28 = vadd.f32 %v1084_v10, %v1083_v60  ;;  %v1108_v33 = vadd.f32 %v1107_v11, %v1106_v61  ;;  %v1121_v39 = vrot.slane %v1120_v22, 4  ;;  %2670 = vst [vmem:[#allocation14_spill] sm:$0xff] %v2344_v40  ;;  %v851_v41 = vpop.f32.mrb[30].mxu0  ;;  %v892_v49 = vpop.f32.mrb[30].mxu1 }
 0x13a   :  { %v1093_v42 = vrot.slane %v1092_v17, 1  ;;  %v1098_v44 = vrot.slane %v1097_v18, 2  ;;  %v1114_v47 = vrot.slane %v1113_v20, 2  ;;  %v1136_v48 = vsel %vm895_vm1, %v2340_v23, 0.0  ;;  %v852_v52 = vpop.f32.mrb[31].mxu0  ;;  %v893_v57 = vpop.f32.mrb[31].mxu1 }
 0x13b   :  { %v1087_v46 = vadd.f32 %v1085_v28, %v1071_v26  ;;  %v1109_v53 = vrot.slane %v1108_v33, 1  ;;  %v1122_v54 = vadd.f32 %v1121_v39, %v1120_v22  ;;  %v1137_v55 = vrot.slane %v1136_v48, 4 }
 0x13c   :  { %v1094_v35 = vadd.f32 %v1093_v42, %v1092_v17  ;;  %v1099_v58 = vadd.f32 %v1098_v44, %v1097_v18  ;;  %v1115_v59 = vadd.f32 %v1114_v47, %v1113_v20  ;;  %v1127_v60 = vsel %vm895_vm1, %v2342_v16, 0.0 }
 0x13d   :  { %v1110_v61 = vadd.f32 %v1109_v53, %v1108_v33  ;;  %v1123_v62 = vrot.slane %v1122_v54, 2  ;;  %v1138_v63 = vadd.f32 %v1137_v55, %v1136_v48  ;;  %v1128_v2 = vrot.slane %v1127_v60, 4 }
 0x13e   :  { %v1102_v8 = vadd.f32 %v1094_v35, %v1086_v4  ;;  %v1100_v10 = vrot.slane %v1099_v58, 1  ;;  %v1116_v11 = vrot.slane %v1115_v59, 1  ;;  %v1143_v26 = vsel %vm895_vm1, %v2344_v40, 0.0 }
 0x13f   :  { %v1124_v28 = vadd.f32 %v1123_v62, %v1122_v54  ;;  %v1139_v22 = vrot.slane %v1138_v63, 2  ;;  %v1129_v39 = vadd.f32 %v1128_v2, %v1127_v60  ;;  %v1144_v41 = vrot.slane %v1143_v26, 4 }
 0x140   :  { %v1118_v17 = vadd.f32 %v1110_v61, %v1102_v8  ;;  %v1101_v18 = vadd.f32 %v1100_v10, %v1099_v58  ;;  %v1117_v49 = vadd.f32 %v1116_v11, %v1115_v59 }
 0x141   :  { %v1125_v20 = vrot.slane %v1124_v28, 1  ;;  %v1140_v42 = vadd.f32 %v1139_v22, %v1138_v63  ;;  %v1130_v44 = vrot.slane %v1129_v39, 2  ;;  %v1145_v47 = vadd.f32 %v1144_v41, %v1143_v26 }
 0x142   :  { %v1103_v33 = vadd.f32 %v1101_v18, %v1087_v46 }
 0x143   :  { %v1126_v48 = vadd.f32 %v1125_v20, %v1124_v28  ;;  %v1141_v52 = vrot.slane %v1140_v42, 1  ;;  %v1131_v4 = vadd.f32 %v1130_v44, %v1129_v39  ;;  %v1146_v53 = vrot.slane %v1145_v47, 2 }
 0x144   :  { %v1119_v55 = vadd.f32 %v1117_v49, %v1103_v33 }
 0x145   :  { %v1134_v57 = vadd.f32 %v1126_v48, %v1118_v17  ;;  %v1142_v35 = vadd.f32 %v1141_v52, %v1140_v42  ;;  %v1132_v40 = vrot.slane %v1131_v4, 1  ;;  %v2352_v54 = vadd.f32 %v1146_v53, %v1145_v47 }
 0x147   :  { %v1150_v60 = vadd.f32 %v1142_v35, %v1134_v57  ;;  %v1133_v62 = vadd.f32 %v1132_v40, %v1131_v4 }
 0x149   :  { %v2354_v61 = vmul.f32 0.03125, %v1150_v60  ;;  %v2356_v58 = vadd.f32 %v1133_v62, %v1119_v55 }
 0x14b   :  { %v1154_v46 = vsub.f32 %v2224_v3, %v2354_v61  ;;  %v1174_v59 = vsub.f32 %v2228_v5, %v2354_v61  ;;  %v1194_v2 = vsub.f32 %v2240_v27, %v2354_v61  ;;  %v1214_v8 = vsub.f32 %v2244_v31, %v2354_v61 }
 0x14c   :  { %v1234_v40 = vsub.f32 %v2256_v1, %v2354_v61  ;;  %v1254_v10 = vsub.f32 %v2260_v7, %v2354_v61  ;;  %v1274_v11 = vsub.f32 %v2272_v45, %v2354_v61  ;;  %v1294_v26 = vsub.f32 %v2276_v50, %v2354_v61 }
 0x14d   :  { %v1156_v28 = vmul.f32 %v1154_v46, %v1154_v46  ;;  %v1176_v22 = vmul.f32 %v1174_v59, %v1174_v59  ;;  %v1196_v39 = vmul.f32 %v1194_v2, %v1194_v2  ;;  %v1216_v41 = vmul.f32 %v1214_v8, %v1214_v8 }
 0x14e   :  { %v1236_v17 = vmul.f32 %v1234_v40, %v1234_v40  ;;  %v1256_v18 = vmul.f32 %v1254_v10, %v1254_v10  ;;  %v1276_v20 = vmul.f32 %v1274_v11, %v1274_v11  ;;  %v1296_v42 = vmul.f32 %v1294_v26, %v1294_v26 }
 0x14f   :  { %v1158_v44 = vsel %vm895_vm1, %v1156_v28, 0.0  ;;  %v1178_v47 = vsel %vm895_vm1, %v1176_v22, 0.0  ;;  %v1198_v33 = vsel %vm895_vm1, %v1196_v39, 0.0  ;;  %v1218_v49 = vsel %vm895_vm1, %v1216_v41, 0.0 }
 0x150   :  { %v1159_v48 = vrot.slane %v1158_v44, 4  ;;  %v1179_v52 = vrot.slane %v1178_v47, 4  ;;  %v1199_v4 = vrot.slane %v1198_v33, 4  ;;  %v1219_v53 = vrot.slane %v1218_v49, 4 }
 0x151   :  { %v1238_v55 = vsel %vm895_vm1, %v1236_v17, 0.0  ;;  %v1258_v57 = vsel %vm895_vm1, %v1256_v18, 0.0  ;;  %v1278_v35 = vsel %vm895_vm1, %v1276_v20, 0.0  ;;  %v1298_v60 = vsel %vm895_vm1, %v1296_v42, 0.0 }
 0x152   :  { %v1160_v62 = vadd.f32 %v1159_v48, %v1158_v44  ;;  %v1180_v46 = vadd.f32 %v1179_v52, %v1178_v47  ;;  %v1200_v59 = vadd.f32 %v1199_v4, %v1198_v33  ;;  %v1220_v2 = vadd.f32 %v1219_v53, %v1218_v49 }
 0x153   :  { %v1239_v8 = vrot.slane %v1238_v55, 4  ;;  %v1259_v40 = vrot.slane %v1258_v57, 4  ;;  %v1279_v10 = vrot.slane %v1278_v35, 4  ;;  %v1299_v11 = vrot.slane %v1298_v60, 4 }
 0x154   :  { %v1161_v26 = vrot.slane %v1160_v62, 2  ;;  %v1181_v28 = vrot.slane %v1180_v46, 2  ;;  %v1201_v22 = vrot.slane %v1200_v59, 2  ;;  %v1221_v39 = vrot.slane %v1220_v2, 2 }
 0x155   :  { %v1240_v41 = vadd.f32 %v1239_v8, %v1238_v55  ;;  %v1260_v17 = vadd.f32 %v1259_v40, %v1258_v57  ;;  %v1280_v63 = vadd.f32 %v1279_v10, %v1278_v35  ;;  %v1300_v18 = vadd.f32 %v1299_v11, %v1298_v60 }
 0x156   :  { %v1162_v50 = vadd.f32 %v1161_v26, %v1160_v62  ;;  %v1182_v20 = vadd.f32 %v1181_v28, %v1180_v46  ;;  %v1202_v45 = vadd.f32 %v1201_v22, %v1200_v59  ;;  %v1222_v42 = vadd.f32 %v1221_v39, %v1220_v2 }
 0x157   :  { %v1241_v44 = vrot.slane %v1240_v41, 2  ;;  %v1261_v47 = vrot.slane %v1260_v17, 2  ;;  %v1281_v33 = vrot.slane %v1280_v63, 2  ;;  %v1301_v49 = vrot.slane %v1300_v18, 2 }
 0x158   :  { %v1163_v48 = vrot.slane %v1162_v50, 1  ;;  %v1183_v52 = vrot.slane %v1182_v20, 1  ;;  %v1203_v4 = vrot.slane %v1202_v45, 1  ;;  %v1223_v53 = vrot.slane %v1222_v42, 1 }
 0x159   :  { %v1242_v7 = vadd.f32 %v1241_v44, %v1240_v41  ;;  %v1262_v1 = vadd.f32 %v1261_v47, %v1260_v17  ;;  %v1282_v31 = vadd.f32 %v1281_v33, %v1280_v63  ;;  %v1302_v27 = vadd.f32 %v1301_v49, %v1300_v18 }
 0x15a   :  { %v1164_v55 = vadd.f32 %v1163_v48, %v1162_v50  ;;  %v1184_v57 = vadd.f32 %v1183_v52, %v1182_v20  ;;  %v1204_v35 = vadd.f32 %v1203_v4, %v1202_v45  ;;  %v1224_v60 = vadd.f32 %v1223_v53, %v1222_v42 }
 0x15b   :  { %v1243_v62 = vrot.slane %v1242_v7, 1  ;;  %v1263_v46 = vrot.slane %v1262_v1, 1  ;;  %v1283_v59 = vrot.slane %v1282_v31, 1  ;;  %v1303_v2 = vrot.slane %v1302_v27, 1 }
 0x15c   :  { %v1192_v8 = vadd.f32 %v1184_v57, %v1164_v55  ;;  %v1314_v40 = vsub.f32 %v2288_v29, %v2354_v61  ;;  %v1334_v10 = vsub.f32 %v2292_v36, %v2354_v61  ;;  %v1354_v11 = vsub.f32 %v2304_v19, %v2354_v61 }
 0x15d   :  { %v1244_v63 = vadd.f32 %v1243_v62, %v1242_v7  ;;  %v1264_v26 = vadd.f32 %v1263_v46, %v1262_v1  ;;  %v1284_v50 = vadd.f32 %v1283_v59, %v1282_v31  ;;  %v1304_v28 = vadd.f32 %v1303_v2, %v1302_v27 }
 0x15e   :  { %v1212_v45 = vadd.f32 %v1204_v35, %v1192_v8  ;;  %v1316_v22 = vmul.f32 %v1314_v40, %v1314_v40  ;;  %v1336_v39 = vmul.f32 %v1334_v10, %v1334_v10  ;;  %v1356_v41 = vmul.f32 %v1354_v11, %v1354_v11 }
 0x15f   :  { %v1374_v17 = vsub.f32 %v2308_v24, %v2354_v61  ;;  %v1394_v18 = vsub.f32 %v2320_v14, %v2354_v61  ;;  %v1414_v20 = vsub.f32 %v2322_v21, %v2354_v61  ;;  %v1434_v42 = vsub.f32 %v2336_v12, %v2354_v61 }
 0x160   :  { %v1232_v7 = vadd.f32 %v1224_v60, %v1212_v45  ;;  %v1318_v31 = vsel %vm895_vm1, %v1316_v22, 0.0  ;;  %v1338_v27 = vsel %vm895_vm1, %v1336_v39, 0.0  ;;  %v1358_v1 = vsel %vm895_vm1, %v1356_v41, 0.0 }
 0x161   :  { %v1319_v44 = vrot.slane %v1318_v31, 4  ;;  %v1339_v47 = vrot.slane %v1338_v27, 4  ;;  %v1359_v33 = vrot.slane %v1358_v1, 4  ;;  %v1376_v49 = vmul.f32 %v1374_v17, %v1374_v17 }
 0x162   :  { %v1252_v48 = vadd.f32 %v1244_v63, %v1232_v7  ;;  %v1396_v52 = vmul.f32 %v1394_v18, %v1394_v18  ;;  %v1416_v4 = vmul.f32 %v1414_v20, %v1414_v20  ;;  %v1436_v53 = vmul.f32 %v1434_v42, %v1434_v42 }
 0x163   :  { %v1320_v55 = vadd.f32 %v1319_v44, %v1318_v31  ;;  %v1340_v57 = vadd.f32 %v1339_v47, %v1338_v27  ;;  %v1360_v35 = vadd.f32 %v1359_v33, %v1358_v1  ;;  %v1378_v62 = vsel %vm895_vm1, %v1376_v49, 0.0 }
 0x164   :  { %v1272_v60 = vadd.f32 %v1264_v26, %v1252_v48  ;;  %v1379_v46 = vrot.slane %v1378_v62, 4  ;;  %v1398_v59 = vsel %vm895_vm1, %v1396_v52, 0.0  ;;  %v1418_v2 = vsel %vm895_vm1, %v1416_v4, 0.0 }
 0x165   :  { %v1321_v8 = vrot.slane %v1320_v55, 2  ;;  %v1341_v40 = vrot.slane %v1340_v57, 2  ;;  %v1361_v10 = vrot.slane %v1360_v35, 2  ;;  %v1399_v11 = vrot.slane %v1398_v59, 4 }
 0x166   :  { %v1292_v45 = vadd.f32 %v1284_v50, %v1272_v60  ;;  %v1380_v63 = vadd.f32 %v1379_v46, %v1378_v62  ;;  %v1419_v22 = vrot.slane %v1418_v2, 4  ;;  %v1438_v39 = vsel %vm895_vm1, %v1436_v53, 0.0 }
 0x167   :  { %v1322_v41 = vadd.f32 %v1321_v8, %v1320_v55  ;;  %v1342_v17 = vadd.f32 %v1341_v40, %v1340_v57  ;;  %v1362_v18 = vadd.f32 %v1361_v10, %v1360_v35  ;;  %v1400_v20 = vadd.f32 %v1399_v11, %v1398_v59 }
 0x168   :  { %v1312_v42 = vadd.f32 %v1304_v28, %v1292_v45  ;;  %v1381_v26 = vrot.slane %v1380_v63, 2  ;;  %v1420_v7 = vadd.f32 %v1419_v22, %v1418_v2  ;;  %v1439_v31 = vrot.slane %v1438_v39, 4 }
 0x169   :  { %v1323_v27 = vrot.slane %v1322_v41, 1  ;;  %v1343_v1 = vrot.slane %v1342_v17, 1  ;;  %v1401_v44 = vrot.slane %v1400_v20, 2  ;;  %v1454_v50 = vsub.f32 %v2340_v23, %v2354_v61 }
 0x16a   :  { %v1382_v47 = vadd.f32 %v1381_v26, %v1380_v63  ;;  %v1421_v33 = vrot.slane %v1420_v7, 2  ;;  %v1440_v49 = vadd.f32 %v1439_v31, %v1438_v39  ;;  %v1363_v52 = vrot.slane %v1362_v18, 1 }
 0x16b   :  { %v1324_v48 = vadd.f32 %v1323_v27, %v1322_v41  ;;  %v1402_v4 = vadd.f32 %v1401_v44, %v1400_v20  ;;  %v2671_v53 = vrot.slane %v2352_v54, 1  ;;  %v1456_v62 = vmul.f32 %v1454_v50, %v1454_v50 }
 0x16c   :  { %v1383_v28 = vrot.slane %v1382_v47, 1  ;;  %v1422_v57 = vadd.f32 %v1421_v33, %v1420_v7  ;;  %v1441_v35 = vrot.slane %v1440_v49, 2  ;;  %v1344_v46 = vadd.f32 %v1343_v1, %v1342_v17 }
 0x16d   :  { %v1149_v55 = vadd.f32 %v2671_v53, %v2352_v54  ;;  %v1332_v60 = vadd.f32 %v1324_v48, %v1312_v42  ;;  %v1403_v59 = vrot.slane %v1402_v4, 1  ;;  %v1458_v10 = vsel %vm895_vm1, %v1456_v62, 0.0 }
 0x16e   :  { %v1423_v8 = vrot.slane %v1422_v57, 1  ;;  %v1442_v40 = vadd.f32 %v1441_v35, %v1440_v49  ;;  %v1364_v45 = vadd.f32 %v1363_v52, %v1362_v18  ;;  %v1459_v63 = vrot.slane %v1458_v10, 4 }
 0x16f   :  { %v1151_v2 = vadd.f32 %v1149_v55, %v2356_v58  ;;  %v1352_v11 = vadd.f32 %v1344_v46, %v1332_v60  ;;  %v1384_v39 = vadd.f32 %v1383_v28, %v1382_v47  ;;  %v1404_v54 = vadd.f32 %v1403_v59, %v1402_v4 }
 0x170   :  { %v1424_v41 = vadd.f32 %v1423_v8, %v1422_v57  ;;  %v1443_v20 = vrot.slane %v1442_v40, 1  ;;  %v1460_v7 = vadd.f32 %v1459_v63, %v1458_v10 }
 0x171   :  { %v2411_v22 = vmul.f32 0.03125, %v1151_v2  ;;  %v1372_v26 = vadd.f32 %v1364_v45, %v1352_v11 }
 0x172   :  { %v1444_v42 = vadd.f32 %v1443_v20, %v1442_v40  ;;  %v1461_v44 = vrot.slane %v1460_v7, 2 }
 0x173   :  { %v1155_v17 = vsub.f32 %v2230_v6, %v2411_v22  ;;  %v1175_v58 = vsub.f32 %v2236_v9, %v2411_v22  ;;  %v1195_v31 = vsub.f32 %v2246_v32, %v2411_v22  ;;  %v1215_v18 = vsub.f32 %v2250_v37, %v2411_v22 }
 0x174   :  { %v1235_v27 = vsub.f32 %v2262_v0, %v2411_v22  ;;  %v1392_v1 = vadd.f32 %v1384_v39, %v1372_v26  ;;  %v1255_v52 = vsub.f32 %v2264_v13, %v2411_v22  ;;  %v1462_v53 = vadd.f32 %v1461_v44, %v1460_v7 }
 0x175   :  { %v1157_v47 = vmul.f32 %v1155_v17, %v1155_v17  ;;  %v1177_v33 = vmul.f32 %v1175_v58, %v1175_v58  ;;  %v1197_v49 = vmul.f32 %v1195_v31, %v1195_v31  ;;  %v1217_v50 = vmul.f32 %v1215_v18, %v1215_v18 }
 0x176   :  { %v1237_v48 = vmul.f32 %v1235_v27, %v1235_v27  ;;  %v1412_v4 = vadd.f32 %v1404_v54, %v1392_v1  ;;  %v1463_v59 = vrot.slane %v1462_v53, 1  ;;  %v1257_v45 = vmul.f32 %v1255_v52, %v1255_v52 }
 0x177   :  { %v1165_v55 = vsel %vm895_vm1, %v1157_v47, 0.0  ;;  %v1185_v28 = vsel %vm895_vm1, %v1177_v33, 0.0  ;;  %v1205_v62 = vsel %vm895_vm1, %v1197_v49, 0.0  ;;  %v1225_v60 = vsel %vm895_vm1, %v1217_v50, 0.0 }
 0x178   :  { %v1166_v57 = vrot.slane %v1165_v55, 4  ;;  %v1186_v35 = vrot.slane %v1185_v28, 4  ;;  %v1432_v46 = vadd.f32 %v1424_v41, %v1412_v4  ;;  %v1206_v2 = vrot.slane %v1205_v62, 4 }
 0x179   :  { %v1226_v8 = vrot.slane %v1225_v60, 4  ;;  %v1245_v11 = vsel %vm895_vm1, %v1237_v48, 0.0  ;;  %v1464_v39 = vadd.f32 %v1463_v59, %v1462_v53  ;;  %v1265_v58 = vsel %vm895_vm1, %v1257_v45, 0.0 }
 0x17a   :  { %v1167_v40 = vadd.f32 %v1166_v57, %v1165_v55  ;;  %v1187_v10 = vadd.f32 %v1186_v35, %v1185_v28  ;;  %v1452_v63 = vadd.f32 %v1444_v42, %v1432_v46  ;;  %v1207_v54 = vadd.f32 %v1206_v2, %v1205_v62 }
 0x17b   :  { %v1227_v20 = vadd.f32 %v1226_v8, %v1225_v60  ;;  %v1246_v17 = vrot.slane %v1245_v11, 4  ;;  %v1266_v27 = vrot.slane %v1265_v58, 4  ;;  %v1275_v33 = vsub.f32 %v2278_v51, %v2411_v22 }
 0x17c   :  { %v1168_v26 = vrot.slane %v1167_v40, 2  ;;  %v1188_v7 = vrot.slane %v1187_v10, 2  ;;  %v2431_v31 = vadd.f32 %v1464_v39, %v1452_v63  ;;  %v1208_v41 = vrot.slane %v1207_v54, 2 }
 0x17d   :  { %v1228_v18 = vrot.slane %v1227_v20, 2  ;;  %v1247_v47 = vadd.f32 %v1246_v17, %v1245_v11  ;;  %v1267_v50 = vadd.f32 %v1266_v27, %v1265_v58  ;;  %v1277_v53 = vmul.f32 %v1275_v33, %v1275_v33 }
 0x17e   :  { %v1169_v1 = vadd.f32 %v1168_v26, %v1167_v40  ;;  %v1189_v44 = vadd.f32 %v1188_v7, %v1187_v10  ;;  %v1209_v42 = vadd.f32 %v1208_v41, %v1207_v54  ;;  %v1295_v45 = vsub.f32 %v2282_v56, %v2411_v22 }
 0x17f   :  { %v1229_v49 = vadd.f32 %v1228_v18, %v1227_v20  ;;  %v1248_v4 = vrot.slane %v1247_v47, 2  ;;  %v1268_v57 = vrot.slane %v1267_v50, 2  ;;  %v1285_v46 = vsel %vm895_vm1, %v1277_v53, 0.0 }
 0x180   :  { %v1170_v48 = vrot.slane %v1169_v1, 1  ;;  %v1190_v52 = vrot.slane %v1189_v44, 1  ;;  %v1210_v55 = vrot.slane %v1209_v42, 1  ;;  %v1286_v11 = vrot.slane %v1285_v46, 4 }
 0x181   :  { %v1230_v28 = vrot.slane %v1229_v49, 1  ;;  %v1249_v60 = vadd.f32 %v1248_v4, %v1247_v47  ;;  %v1269_v8 = vadd.f32 %v1268_v57, %v1267_v50  ;;  %v1315_v39 = vsub.f32 %v2294_v38, %v2411_v22 }
 0x182   :  { %v1171_v35 = vadd.f32 %v1170_v48, %v1169_v1  ;;  %v1191_v62 = vadd.f32 %v1190_v52, %v1189_v44  ;;  %v1211_v59 = vadd.f32 %v1210_v55, %v1209_v42  ;;  %v1335_v54 = vsub.f32 %v2296_v43, %v2411_v22 }
 0x183   :  { %v1231_v2 = vadd.f32 %v1230_v28, %v1229_v49  ;;  %v1250_v10 = vrot.slane %v1249_v60, 1  ;;  %v1270_v63 = vrot.slane %v1269_v8, 1  ;;  %v1355_v20 = vsub.f32 %v2310_v25, %v2411_v22 }
 0x184   :  { %v1193_v40 = vadd.f32 %v1191_v62, %v1171_v35  ;;  %v1287_v17 = vadd.f32 %v1286_v11, %v1285_v46  ;;  %v1297_v58 = vmul.f32 %v1295_v45, %v1295_v45  ;;  %v1317_v18 = vmul.f32 %v1315_v39, %v1315_v39 }
 0x185   :  { %v1251_v7 = vadd.f32 %v1250_v10, %v1249_v60  ;;  %v1271_v41 = vadd.f32 %v1270_v63, %v1269_v8  ;;  %v1337_v27 = vmul.f32 %v1335_v54, %v1335_v54  ;;  %v1357_v1 = vmul.f32 %v1355_v20, %v1355_v20 }
 0x186   :  { %v1213_v26 = vadd.f32 %v1211_v59, %v1193_v40  ;;  %v1288_v47 = vrot.slane %v1287_v17, 2  ;;  %v1305_v33 = vsel %vm895_vm1, %v1297_v58, 0.0  ;;  %v1375_v42 = vsub.f32 %v2314_v34, %v2411_v22 }
 0x187   :  { %v1306_v49 = vrot.slane %v1305_v33, 4  ;;  %v1325_v50 = vsel %vm895_vm1, %v1317_v18, 0.0  ;;  %v1345_v48 = vsel %vm895_vm1, %v1337_v27, 0.0  ;;  %v1365_v52 = vsel %vm895_vm1, %v1357_v1, 0.0 }
 0x188   :  { %v1233_v44 = vadd.f32 %v1231_v2, %v1213_v26  ;;  %v1289_v53 = vadd.f32 %v1288_v47, %v1287_v17  ;;  %v1326_v55 = vrot.slane %v1325_v50, 4  ;;  %v1346_v28 = vrot.slane %v1345_v48, 4 }
 0x189   :  { %v1307_v57 = vadd.f32 %v1306_v49, %v1305_v33  ;;  %v1366_v35 = vrot.slane %v1365_v52, 4  ;;  %v1377_v62 = vmul.f32 %v1375_v42, %v1375_v42  ;;  %v1395_v60 = vsub.f32 %v2324_v15, %v2411_v22 }
 0x18a   :  { %v1253_v4 = vadd.f32 %v1251_v7, %v1233_v44  ;;  %v1290_v59 = vrot.slane %v1289_v53, 1  ;;  %v1327_v2 = vadd.f32 %v1326_v55, %v1325_v50  ;;  %v1347_v8 = vadd.f32 %v1346_v28, %v1345_v48 }
 0x18b   :  { %v1308_v40 = vrot.slane %v1307_v57, 2  ;;  %v1367_v10 = vadd.f32 %v1366_v35, %v1365_v52  ;;  %v1385_v11 = vsel %vm895_vm1, %v1377_v62, 0.0  ;;  %v1397_v45 = vmul.f32 %v1395_v60, %v1395_v60 }
 0x18c   :  { %v1273_v46 = vadd.f32 %v1271_v41, %v1253_v4  ;;  %v1291_v63 = vadd.f32 %v1290_v59, %v1289_v53  ;;  %v1328_v39 = vrot.slane %v1327_v2, 2  ;;  %v1348_v54 = vrot.slane %v1347_v8, 2 }
 0x18d   :  { %v1386_v20 = vrot.slane %v1385_v11, 4  ;;  %v1309_v26 = vadd.f32 %v1308_v40, %v1307_v57  ;;  %v1368_v7 = vrot.slane %v1367_v10, 2  ;;  %v1405_v17 = vsel %vm895_vm1, %v1397_v45, 0.0  ;;  %v2672_v40 = vld [vmem:[#allocation14_spill] sm:$0xff] }
 0x18e   :  { %v1415_v58 = vsub.f32 %v2328_v30, %v2411_v22  ;;  %v1293_v41 = vadd.f32 %v1291_v63, %v1273_v46  ;;  %v1329_v18 = vadd.f32 %v1328_v39, %v1327_v2  ;;  %v1349_v27 = vadd.f32 %v1348_v54, %v1347_v8 }
 0x18f   :  { %v1387_v1 = vadd.f32 %v1386_v20, %v1385_v11  ;;  %v1310_v44 = vrot.slane %v1309_v26, 1  ;;  %v1369_v47 = vadd.f32 %v1368_v7, %v1367_v10  ;;  %v1406_v33 = vrot.slane %v1405_v17, 4 }
 0x190   :  { %v1417_v42 = vmul.f32 %v1415_v58, %v1415_v58  ;;  %v1330_v49 = vrot.slane %v1329_v18, 1  ;;  %v1350_v50 = vrot.slane %v1349_v27, 1  ;;  %v1435_v52 = vsub.f32 %v2342_v16, %v2411_v22 }
 0x191   :  { %v1388_v48 = vrot.slane %v1387_v1, 2  ;;  %v1311_v4 = vadd.f32 %v1310_v44, %v1309_v26  ;;  %v1407_v53 = vadd.f32 %v1406_v33, %v1405_v17  ;;  %v1370_v28 = vrot.slane %v1369_v47, 1 }
 0x192   :  { %v1425_v55 = vsel %vm895_vm1, %v1417_v42, 0.0  ;;  %v1331_v60 = vadd.f32 %v1330_v49, %v1329_v18  ;;  %v1437_v59 = vmul.f32 %v1435_v52, %v1435_v52  ;;  %v1351_v2 = vadd.f32 %v1350_v50, %v1349_v27 }
 0x193   :  { %v1389_v57 = vadd.f32 %v1388_v48, %v1387_v1  ;;  %v1426_v35 = vrot.slane %v1425_v55, 4  ;;  %v1313_v62 = vadd.f32 %v1311_v4, %v1293_v41  ;;  %v1408_v46 = vrot.slane %v1407_v53, 2 }
 0x194   :  { %v1455_v10 = vsub.f32 %v2672_v40, %v2411_v22  ;;  %v1445_v39 = vsel %vm895_vm1, %v1437_v59, 0.0  ;;  %v1371_v17 = vadd.f32 %v1370_v28, %v1369_v47 }
 0x195   :  { %v1427_v8 = vadd.f32 %v1426_v35, %v1425_v55  ;;  %v1333_v11 = vadd.f32 %v1331_v60, %v1313_v62  ;;  %v1390_v45 = vrot.slane %v1389_v57, 1  ;;  %v1409_v63 = vadd.f32 %v1408_v46, %v1407_v53 }
 0x196   :  { %v1446_v20 = vrot.slane %v1445_v39, 4  ;;  %v1457_v26 = vmul.f32 %v1455_v10, %v1455_v10  ;;  %v1474_v46 = vmul.f32 0.03125, %v2431_v31  ;;  %v1476_v31 = vld [vmem:[#allocation2] sm:$0x3] }
 0x197   :  { %v1428_v54 = vrot.slane %v1427_v8, 2  ;;  %v1353_v7 = vadd.f32 %v1351_v2, %v1333_v11  ;;  %v1410_v58 = vrot.slane %v1409_v63, 1  ;;  %v1391_v44 = vadd.f32 %v1390_v45, %v1389_v57 }
 0x198   :  { %v1447_v18 = vadd.f32 %v1446_v20, %v1445_v39  ;;  %v1465_v1 = vsel %vm895_vm1, %v1457_v26, 0.0  ;;  %v1477_v57 = vadd.f32 1e-05, %v1474_v46 }
 0x199   :  { %v1429_v41 = vadd.f32 %v1428_v54, %v1427_v8  ;;  %v1373_v27 = vadd.f32 %v1371_v17, %v1353_v7  ;;  %v1466_v33 = vrot.slane %v1465_v1, 4  ;;  %v1411_v48 = vadd.f32 %v1410_v58, %v1409_v63 }
 0x19a   :  { %v1448_v49 = vrot.slane %v1447_v18, 2  ;;  %1970 = vrsqrt.f32 %v1477_v57  ;;  %v2025_v63 = vmov 1966171168   ;;  %v1487_v54 = vlaneseq }
 0x19b   :  { %v1430_v42 = vrot.slane %v1429_v41, 1  ;;  %v1393_v50 = vadd.f32 %v1391_v44, %v1373_v27  ;;  %v1467_v52 = vadd.f32 %v1466_v33, %v1465_v1  ;;  %v1485_v39 = vunpack.c.l.s4 %v2025_v63 }
 0x19c   :  { %v1449_v4 = vadd.f32 %v1448_v49, %v1447_v18  ;;  %v1488_v26 = vshrl.u32 %v1487_v54, 7 }
 0x19d   :  { %v1413_v53 = vadd.f32 %v1411_v48, %v1393_v50  ;;  %v1431_v55 = vadd.f32 %v1430_v42, %v1429_v41  ;;  %v1468_v35 = vrot.slane %v1467_v52, 2  ;;  %v1486_v20 = vunpack.c.0.s8 %v1485_v39 }
 0x19e   :  { %v1450_v62 = vrot.slane %v1449_v4, 1  ;;  %v1504_v27 = vsub.s32 0, %v1488_v26  ;;  %v1508_v44 = vsub.s32 1, %v1488_v26 }
 0x19f   :  { %v1433_v60 = vadd.f32 %v1431_v55, %v1413_v53  ;;  %v1469_v47 = vadd.f32 %v1468_v35, %v1467_v52  ;;  %v1489_v17 = vsub.s32 %v1486_v20, %v1488_v26  ;;  %v2673_v35 = vld [vmem:[#allocation8_spill] sm:$0xff] }
 0x1a0   :  { %v1451_v28 = vadd.f32 %v1450_v62, %v1449_v4 }
 0x1a1   :  { %v1470_v59 = vrot.slane %v1469_v47, 1 }
 0x1a2   :  { %v1453_v2 = vadd.f32 %v1451_v28, %v1433_v60  ;;  %v2674_v28 = vld [vmem:[#allocation9_spill] sm:$0xff] }
 0x1a3   :  { %v1471_v8 = vadd.f32 %v1470_v59, %v1469_v47 }
 0x1a4   :  { %v1971_v7 = vpop.eup %1970 }
 0x1a5   :  { %v1473_v10 = vadd.f32 %v1471_v8, %v1453_v2 }
 0x1a7   :  { %v1475_v11 = vmul.f32 0.03125, %v1473_v10  ;;  %v2678_v10 = vld [vmem:[#allocation13_spill] sm:$0xff] }
 0x1a9   :  { %v1478_v45 = vadd.f32 1e-05, %v1475_v11 }
 0x1ab   :  { %1972 = vrsqrt.f32 %v1478_v45 }
 0x1b5   :  { %v1973_v58 = vpop.eup %1972 }
 0x1b6   :  { %v1483_v41 = vcombine.low %v1971_v7, %v1973_v58 }
 0x1b8   :  { %v1490_v18 = vrot.slane %v1483_v41, %v1489_v17 }
 0x1ba   :  { %v1497_v1 = vrot.slane %v1490_v18, %v1489_v17 }
 0x1bc   :  { %v1499_v33 = vmul.f32 %v1497_v1, %v1476_v31 }
 0x1be   :  { %v1505_v42 = vrot.slane %v1499_v33, %v1504_v27  ;;  %v1509_v49 = vrot.slane %v1499_v33, %v1508_v44 }
 0x1c0   :  { %v1512_v50 = vmul.f32 %v1505_v42, %v2354_v61  ;;  %v1513_v48 = vmul.f32 %v1509_v49, %v2411_v22  ;;  %v1533_v52 = vmul.f32 %v1505_v42, %v2224_v3  ;;  %v1534_v4 = vmul.f32 %v1509_v49, %v2230_v6  ;;  %v2675_v61 = vld [vmem:[#allocation10_spill] sm:$0xff]  ;;  %v2676_v3 = vld [vmem:[#allocation11_spill] sm:$0xff] }
 0x1c1   :  { %v1566_v53 = vmul.f32 %v1505_v42, %v2228_v5  ;;  %v1567_v55 = vmul.f32 %v1509_v49, %v2236_v9  ;;  %v1588_v62 = vmul.f32 %v1505_v42, %v2673_v35  ;;  %v1589_v60 = vmul.f32 %v1509_v49, %v2246_v32  ;;  %v2677_v9 = vld [vmem:[#allocation12_spill] sm:$0xff] }
 0x1c2   :  { %v1516_v47 = vcombine.low %v1512_v50, %v1513_v48  ;;  %v1610_v46 = vmul.f32 %v1505_v42, %v2674_v28  ;;  %v1611_v59 = vmul.f32 %v1509_v49, %v2250_v37  ;;  %v1632_v2 = vmul.f32 %v1505_v42, %v2675_v61 }
 0x1c3   :  { %v2476_v22 = vmul.f32 %v1509_v49, %v2262_v0  ;;  %v2479_v6 = vmul.f32 %v1505_v42, %v2676_v3  ;;  %v2482_v5 = vmul.f32 %v1509_v49, %v2264_v13  ;;  %v2485_v8 = vmul.f32 %v1505_v42, %v2677_v9  ;;  %v1500_v0 = vld [vmem:[#allocation4] sm:$0x3] }
 0x1c4   :  { %v1523_v32 = vrot.slane %v1516_v47, %v1489_v17  ;;  %v2488_v57 = vmul.f32 %v1509_v49, %v2278_v51  ;;  %v2491_v37 = vmul.f32 %v1505_v42, %v2678_v10  ;;  %v2494_v11 = vmul.f32 %v1509_v49, %v2282_v56 }
 0x1c5   :  { %v2497_v45 = vmul.f32 %v1505_v42, %v2288_v29  ;;  %v2500_v13 = vmul.f32 %v1509_v49, %v2294_v38  ;;  %v2503_v63 = vmul.f32 %v1505_v42, %v2292_v36  ;;  %v2506_v39 = vmul.f32 %v1509_v49, %v2296_v43 }
 0x1c6   :  { %v1530_v51 = vrot.slane %v1523_v32, %v1489_v17  ;;  %v2509_v54 = vmul.f32 %v1505_v42, %v2304_v19  ;;  %v2512_v56 = vmul.f32 %v1509_v49, %v2310_v25  ;;  %v2515_v20 = vmul.f32 %v1505_v42, %v2308_v24 }
 0x1c7   :  { %v2518_v29 = vmul.f32 %v1509_v49, %v2314_v34  ;;  %v2521_v38 = vmul.f32 %v1505_v42, %v2320_v14  ;;  %v2524_v36 = vmul.f32 %v1509_v49, %v2324_v15  ;;  %v2527_v43 = vmul.f32 %v1505_v42, %v2322_v21 }
 0x1c8   :  { %v1532_v19 = vsub.f32 %v1500_v0, %v1530_v51  ;;  %v2530_v26 = vmul.f32 %v1509_v49, %v2328_v30  ;;  %v2533_v25 = vmul.f32 %v1505_v42, %v2336_v12  ;;  %v2536_v24 = vmul.f32 %v1509_v49, %v2342_v16 }
 0x1c9   :  { %v2539_v34 = vmul.f32 %v1505_v42, %v2340_v23  ;;  %v2542_v14 = vmul.f32 %v1509_v49, %v2672_v40 }
 0x1ca   :  { %v2544_v15 = vrot.slane %v1532_v19, %v1504_v27  ;;  %v2546_v21 = vrot.slane %v1532_v19, %v1508_v44 }
 0x1cc   :  { %v1546_v7 = vadd.f32 %v2544_v15, %v1533_v52  ;;  %v1547_v30 = vadd.f32 %v2546_v21, %v1534_v4  ;;  %v1568_v12 = vadd.f32 %v1566_v53, %v2544_v15  ;;  %v1569_v17 = vadd.f32 %v1567_v55, %v2546_v21 }
 0x1cd   :  { %v1590_v16 = vadd.f32 %v1588_v62, %v2544_v15  ;;  %v1591_v23 = vadd.f32 %v1589_v60, %v2546_v21  ;;  %v1612_v58 = vadd.f32 %v1610_v46, %v2544_v15  ;;  %v1613_v40 = vadd.f32 %v1611_v59, %v2546_v21 }
 0x1ce   :  { %vm1548_vm2 = vcmp.ge.f32.partialorder %v1546_v7, 0.0  ;;  %vm1549_vm3 = vcmp.ge.f32.partialorder %v1547_v30, 0.0  ;;  %v1550_v41 = vmul.f32 0.2, %v1546_v7  ;;  %v1551_v18 = vmul.f32 0.2, %v1547_v30 }
 0x1cf   :  { %vm1570_vm4 = vcmp.ge.f32.partialorder %v1568_v12, 0.0  ;;  %vm1571_vm5 = vcmp.ge.f32.partialorder %v1569_v17, 0.0  ;;  %v1572_v31 = vmul.f32 0.2, %v1568_v12  ;;  %v1573_v1 = vmul.f32 0.2, %v1569_v17 }
 0x1d0   :  { %v1552_v27 = vsel %vm1548_vm2, %v1546_v7, %v1550_v41  ;;  %v1553_v44 = vsel %vm1549_vm3, %v1547_v30, %v1551_v18  ;;  %vm1592_vm6 = vcmp.ge.f32.partialorder %v1590_v16, 0.0  ;;  %vm1593_vm7 = vcmp.ge.f32.partialorder %v1591_v23, 0.0 }
 0x1d1   :  { %v1556_v33 = vcombine.low %v1552_v27, %v1553_v44  ;;  %v1574_v42 = vsel %vm1570_vm4, %v1568_v12, %v1572_v31  ;;  %v1575_v49 = vsel %vm1571_vm5, %v1569_v17, %v1573_v1  ;;  %v1594_v50 = vmul.f32 0.2, %v1590_v16 }
 0x1d2   :  { %v1578_v48 = vcombine.low %v1574_v42, %v1575_v49  ;;  %v1595_v52 = vmul.f32 0.2, %v1591_v23  ;;  %vm1614_vm8 = vcmp.ge.f32.partialorder %v1612_v58, 0.0  ;;  %vm1615_vm9 = vcmp.ge.f32.partialorder %v1613_v40, 0.0 }
 0x1d3   :  { %1950 = vst.sshfl [vmem:[%s2655_s4] sm:$0x33 pattern:$0x76325410] %v1556_v33  ;;  %v1596_v4 = vsel %vm1592_vm6, %v1590_v16, %v1594_v50  ;;  %v1616_v53 = vmul.f32 0.2, %v1612_v58  ;;  %v1634_v35 = vadd.f32 %v1632_v2, %v2544_v15  ;;  %v1635_v60 = vadd.f32 %v2476_v22, %v2546_v21 }
 0x1d4   :  { %v1617_v55 = vmul.f32 0.2, %v1613_v40  ;;  %1951 = vst.sshfl [vmem:[%s2655_s4 + $0x4] sm:$0x33 pattern:$0x76325410] %v1578_v48  ;;  %v1597_v62 = vsel %vm1593_vm7, %v1591_v23, %v1595_v52  ;;  %v1656_v47 = vadd.f32 %v2479_v6, %v2544_v15  ;;  %v1657_v28 = vadd.f32 %v2482_v5, %v2546_v21 }
 0x1d5   :  { %v1600_v46 = vcombine.low %v1596_v4, %v1597_v62  ;;  %v1618_v59 = vsel %vm1614_vm8, %v1612_v58, %v1616_v53  ;;  %vm1636_vm10 = vcmp.ge.f32.partialorder %v1634_v35, 0.0  ;;  %vm1637_vm11 = vcmp.ge.f32.partialorder %v1635_v60, 0.0 }
 0x1d6   :  { %v1619_v61 = vsel %vm1615_vm9, %v1613_v40, %v1617_v55  ;;  %v1638_v2 = vmul.f32 0.2, %v1634_v35  ;;  %v1639_v9 = vmul.f32 0.2, %v1635_v60  ;;  %vm1658_vm12 = vcmp.ge.f32.partialorder %v1656_v47, 0.0 }
 0x1d7   :  { %v1622_v3 = vcombine.low %v1618_v59, %v1619_v61  ;;  %1952 = vst.sshfl [vmem:[%s2655_s4 + $0x8] sm:$0x33 pattern:$0x76325410] %v1600_v46  ;;  %vm1659_vm13 = vcmp.ge.f32.partialorder %v1657_v28, 0.0  ;;  %v1678_v10 = vadd.f32 %v2485_v8, %v2544_v15  ;;  %v1679_v0 = vadd.f32 %v2488_v57, %v2546_v21 }
 0x1d8   :  { %v1660_v22 = vmul.f32 0.2, %v1656_v47  ;;  %v1661_v32 = vmul.f32 0.2, %v1657_v28  ;;  %v1640_v6 = vsel %vm1636_vm10, %v1634_v35, %v1638_v2  ;;  %v1641_v5 = vsel %vm1637_vm11, %v1635_v60, %v1639_v9 }
 0x1d9   :  { %1953 = vst.sshfl [vmem:[%s2655_s4 + $0xc] sm:$0x33 pattern:$0x76325410] %v1622_v3  ;;  %v1644_v51 = vcombine.low %v1640_v6, %v1641_v5  ;;  %v1700_v30 = vadd.f32 %v2491_v37, %v2544_v15  ;;  %vm1680_vm14 = vcmp.ge.f32.partialorder %v1678_v10, 0.0  ;;  %vm1681_vm15 = vcmp.ge.f32.partialorder %v1679_v0, 0.0 }
 0x1da   :  { %v1662_v19 = vsel %vm1658_vm12, %v1656_v47, %v1660_v22  ;;  %v1663_v7 = vsel %vm1659_vm13, %v1657_v28, %v1661_v32  ;;  %v1682_v17 = vmul.f32 0.2, %v1678_v10  ;;  %v1683_v16 = vmul.f32 0.2, %v1679_v0 }
 0x1db   :  { %v1666_v12 = vcombine.low %v1662_v19, %v1663_v7  ;;  %1954 = vst.sshfl [vmem:[%s2655_s4 + $0x10] sm:$0x33 pattern:$0x76325410] %v1644_v51  ;;  %v1701_v8 = vadd.f32 %v2494_v11, %v2546_v21  ;;  %vm1702_vm0 = vcmp.ge.f32.partialorder %v1700_v30, 0.0  ;;  %v1722_v37 = vadd.f32 %v2497_v45, %v2544_v15 }
 0x1dc   :  { %v1704_v57 = vmul.f32 0.2, %v1700_v30  ;;  %v1684_v23 = vsel %vm1680_vm14, %v1678_v10, %v1682_v17  ;;  %v1723_v58 = vadd.f32 %v2500_v13, %v2546_v21  ;;  %v1744_v40 = vadd.f32 %v2503_v63, %v2544_v15 }
 0x1dd   :  { %1955 = vst.sshfl [vmem:[%s2655_s4 + $0x14] sm:$0x33 pattern:$0x76325410] %v1666_v12  ;;  %v1685_v41 = vsel %vm1681_vm15, %v1679_v0, %v1683_v16  ;;  %vm1703_vm1 = vcmp.ge.f32.partialorder %v1701_v8, 0.0  ;;  %vm1724_vm2 = vcmp.ge.f32.partialorder %v1722_v37, 0.0  ;;  %v1745_v33 = vadd.f32 %v2506_v39, %v2546_v21 }
 0x1de   :  { %v1705_v18 = vmul.f32 0.2, %v1701_v8  ;;  %v1706_v11 = vsel %vm1702_vm0, %v1700_v30, %v1704_v57  ;;  %v1688_v31 = vcombine.low %v1684_v23, %v1685_v41  ;;  %vm1725_vm3 = vcmp.ge.f32.partialorder %v1723_v58, 0.0 }
 0x1df   :  { %v1726_v1 = vmul.f32 0.2, %v1722_v37  ;;  %v1727_v44 = vmul.f32 0.2, %v1723_v58  ;;  %vm1746_vm4 = vcmp.ge.f32.partialorder %v1744_v40, 0.0  ;;  %v1766_v42 = vadd.f32 %v2509_v54, %v2544_v15 }
 0x1e0   :  { %v1707_v27 = vsel %vm1703_vm1, %v1701_v8, %v1705_v18  ;;  %1956 = vst.sshfl [vmem:[%s2655_s4 + $0x18] sm:$0x33 pattern:$0x76325410] %v1688_v31  ;;  %v1748_v63 = vmul.f32 0.2, %v1744_v40  ;;  %v1767_v48 = vadd.f32 %v2512_v56, %v2546_v21  ;;  %v1788_v54 = vadd.f32 %v2515_v20, %v2544_v15 }
 0x1e1   :  { %v1710_v45 = vcombine.low %v1706_v11, %v1707_v27  ;;  %v1728_v13 = vsel %vm1724_vm2, %v1722_v37, %v1726_v1  ;;  %v1729_v49 = vsel %vm1725_vm3, %v1723_v58, %v1727_v44  ;;  %vm1747_vm5 = vcmp.ge.f32.partialorder %v1745_v33, 0.0 }
 0x1e2   :  { %v1749_v50 = vmul.f32 0.2, %v1745_v33  ;;  %v1732_v39 = vcombine.low %v1728_v13, %v1729_v49  ;;  %v1750_v52 = vsel %vm1746_vm4, %v1744_v40, %v1748_v63  ;;  %vm1768_vm6 = vcmp.ge.f32.partialorder %v1766_v42, 0.0 }
 0x1e3   :  { %1957 = vst.sshfl [vmem:[%s2655_s4 + $0x1c] sm:$0x33 pattern:$0x76325410] %v1710_v45  ;;  %v1770_v4 = vmul.f32 0.2, %v1766_v42  ;;  %v1789_v62 = vadd.f32 %v2518_v29, %v2546_v21  ;;  %v1810_v60 = vadd.f32 %v2521_v38, %v2544_v15  ;;  %v1811_v46 = vadd.f32 %v2524_v36, %v2546_v21 }
 0x1e4   :  { %v1751_v53 = vsel %vm1747_vm5, %v1745_v33, %v1749_v50  ;;  %vm1769_vm7 = vcmp.ge.f32.partialorder %v1767_v48, 0.0  ;;  %v1771_v55 = vmul.f32 0.2, %v1767_v48  ;;  %vm1790_vm8 = vcmp.ge.f32.partialorder %v1788_v54, 0.0 }
 0x1e5   :  { %1958 = vst.sshfl [vmem:[%s2655_s4 + $0x20] sm:$0x33 pattern:$0x76325410] %v1732_v39  ;;  %v1754_v35 = vcombine.low %v1750_v52, %v1751_v53  ;;  %v1772_v56 = vsel %vm1768_vm6, %v1766_v42, %v1770_v4  ;;  %v1792_v28 = vmul.f32 0.2, %v1788_v54  ;;  %v1832_v36 = vadd.f32 %v2527_v43, %v2544_v15 }
 0x1e6   :  { %v1773_v47 = vsel %vm1769_vm7, %v1767_v48, %v1771_v55  ;;  %vm1791_vm9 = vcmp.ge.f32.partialorder %v1789_v62, 0.0  ;;  %v1793_v59 = vmul.f32 0.2, %v1789_v62  ;;  %vm1812_vm10 = vcmp.ge.f32.partialorder %v1810_v60, 0.0 }
 0x1e7   :  { %1959 = vst.sshfl [vmem:[%s2655_s4 + $0x24] sm:$0x33 pattern:$0x76325410] %v1754_v35  ;;  %v1776_v20 = vcombine.low %v1772_v56, %v1773_v47  ;;  %v1794_v61 = vsel %vm1790_vm8, %v1788_v54, %v1792_v28  ;;  %vm1813_vm11 = vcmp.ge.f32.partialorder %v1811_v46, 0.0  ;;  %v1833_v2 = vadd.f32 %v2530_v26, %v2546_v21 }
 0x1e8   :  { %v1814_v29 = vmul.f32 0.2, %v1810_v60  ;;  %v1815_v3 = vmul.f32 0.2, %v1811_v46  ;;  %v1795_v38 = vsel %vm1791_vm9, %v1789_v62, %v1793_v59  ;;  %v1854_v9 = vadd.f32 %v2533_v25, %v2544_v15 }
 0x1e9   :  { %1960 = vst.sshfl [vmem:[%s2655_s4 + $0x28] sm:$0x33 pattern:$0x76325410] %v1776_v20  ;;  %v1798_v22 = vcombine.low %v1794_v61, %v1795_v38  ;;  %v1855_v5 = vadd.f32 %v2536_v24, %v2546_v21  ;;  %vm1834_vm12 = vcmp.ge.f32.partialorder %v1832_v36, 0.0  ;;  %vm1835_vm13 = vcmp.ge.f32.partialorder %v1833_v2, 0.0 }
 0x1ea   :  { %v1816_v32 = vsel %vm1812_vm10, %v1810_v60, %v1814_v29  ;;  %v1817_v6 = vsel %vm1813_vm11, %v1811_v46, %v1815_v3  ;;  %v1836_v0 = vmul.f32 0.2, %v1832_v36  ;;  %v1837_v43 = vmul.f32 0.2, %v1833_v2 }
 0x1eb   :  { %v1820_v10 = vcombine.low %v1816_v32, %v1817_v6  ;;  %1961 = vst.sshfl [vmem:[%s2655_s4 + $0x2c] sm:$0x33 pattern:$0x76325410] %v1798_v22  ;;  %vm1856_vm14 = vcmp.ge.f32.partialorder %v1854_v9, 0.0  ;;  %vm1857_vm15 = vcmp.ge.f32.partialorder %v1855_v5, 0.0  ;;  %v1876_v24 = vadd.f32 %v2539_v34, %v2544_v15 }
 0x1ec   :  { %v1858_v26 = vmul.f32 0.2, %v1854_v9  ;;  %v1838_v25 = vsel %vm1834_vm12, %v1832_v36, %v1836_v0  ;;  %v1859_v51 = vmul.f32 0.2, %v1855_v5  ;;  %v1877_v19 = vadd.f32 %v2542_v14, %v2546_v21 }
 0x1ed   :  { %1962 = vst.sshfl [vmem:[%s2655_s4 + $0x30] sm:$0x33 pattern:$0x76325410] %v1820_v10  ;;  %v1839_v7 = vsel %vm1835_vm13, %v1833_v2, %v1837_v43  ;;  %vm1878_vm0 = vcmp.ge.f32.partialorder %v1876_v24, 0.0 }
 0x1ee   :  { %v1860_v30 = vsel %vm1856_vm14, %v1854_v9, %v1858_v26  ;;  %v1842_v12 = vcombine.low %v1838_v25, %v1839_v7  ;;  %v1861_v17 = vsel %vm1857_vm15, %v1855_v5, %v1859_v51  ;;  %vm1879_vm1 = vcmp.ge.f32.partialorder %v1877_v19, 0.0 }
 0x1ef   :  { %v1864_v16 = vcombine.low %v1860_v30, %v1861_v17  ;;  %v1880_v8 = vmul.f32 0.2, %v1876_v24  ;;  %v1881_v57 = vmul.f32 0.2, %v1877_v19 }
 0x1f0   :  { %1963 = vst.sshfl [vmem:[%s2655_s4 + $0x34] sm:$0x33 pattern:$0x76325410] %v1842_v12 }
 0x1f1   :  { %1964 = vst.sshfl [vmem:[%s2655_s4 + $0x38] sm:$0x33 pattern:$0x76325410] %v1864_v16  ;;  %v1882_v34 = vsel %vm1878_vm0, %v1876_v24, %v1880_v8  ;;  %v1883_v15 = vsel %vm1879_vm1, %v1877_v19, %v1881_v57 }
 0x1f2   :  { %v1886_v14 = vcombine.low %v1882_v34, %v1883_v15 }
 0x1f4   :  { %1965 = vst.sshfl [vmem:[%s2655_s4 + $0x3c] sm:$0x33 pattern:$0x76325410] %v1886_v14 }
 0x1f5   :  { %1900 = vsyncpa [#allocation3], 1 }
 0x1f6   :  { %1901 = vsyncpa [#allocation5], 1 }

// kernel: generator_forward.6
= control target key start
LH: loop header
LB: loop body
LE: loop exit
PB: predicated region body
PF: predicated region fallthrough
CT: control target
= control target key end

     0   :  { %s3732_s15 = smov 0   ;;  %s3734_s16 = smov 0   ;;  %s5322_s0 = inlined_call_operand.vmem [shape: bf16[4,1024,32], index: 0, kind: input, shape index: {}]   ;;  %s5323_s1 = inlined_call_operand.vmem [shape: bf16[4,128,1024], index: 1, kind: input, shape index: {}]   ;;  %s5324_s2 = inlined_call_operand.vmem [shape: f32[128,1], index: 2, kind: input, shape index: {}]   ;;  %s5325_s3 = inlined_call_operand.vmem [shape: f32[128,1], index: 3, kind: input, shape index: {}]   ;;  %s5326_s4 = inlined_call_operand.vmem [shape: f32[4,128,32], index: 4, kind: output, shape index: {}]  }
   0x1   :  { %s3736_s17 = smov 0  }
   0x2 LB: > { %s26_s18 = sadd.s32 1, %s3699_s16  ;;  %p2997_p0 = scmp.ge.s32.totalorder %s3703_s17, 1  ;;  %s3703_s17 = sphi %s3736_s17, %s14_s17   ;;  %s3699_s16 = sphi %s3734_s16, %s5488_s16   ;;  %s3695_s15 = sphi %s3732_s15, %s5487_s15  }
   0x3   : > { %p28_p1 = scmp.ge.s32.totalorder %s26_s18, 4  ;;  %p184_p2 = scmp.lt.s32.totalorder %s3703_s17, 5 }
   0x5   : > { %s5490_s18 = smov (%p28_p1, %s26_s18), 0  ;;  %p185_p3 = pnand %p2997_p0, %p184_p2 }
   0x6   : > { %p213_p4 = scmp.lt.s32.totalorder (!%p185_p3), %s3695_s15, 3  ;;  %p227_p5 = scmp.eq.s32.totalorder (!%p185_p3), %s3695_s15, 0 }
   0x7   : > { %188 = sbr.rel (%p185_p3) target bundleno = 1167 (0x48f), region = 36 }
   0xe   : > { %s214_s19 = scalar_select %p213_p4, %s3695_s15, 3 }
   0xf   : > { %232 = sbr.rel (!%p227_p5) target bundleno = 24 (0x18), region = 40  ;;  %vm233_vm0 = vcmask (%p227_p5), 7168   ;;  %v3705_v0 = vmov (%p227_p5), 0.0  }
  0x10   : > { %s3279_s20 = sshll.u32 %s214_s19, 9  ;;  %234 = vst.msk [vmem:[#allocation2] sm:$0xff] (%p227_p5), %vm233_vm0, %v3705_v0  ;;  %235 = vst.msk [vmem:[#allocation2 + $0x8] sm:$0xff] (%p227_p5), %vm233_vm0, %v3705_v0 }
  0x11   : > { %s3758_s23 = scalar_lea.vmem %s5322_s0, %s3279_s20  ;;  %s3763_s26 = scalar_lea.vmem %s5323_s1, %s3279_s20  ;;  %236 = vst.msk [vmem:[#allocation2 + $0x10] sm:$0xff] (%p227_p5), %vm233_vm0, %v3705_v0  ;;  %237 = vst.msk [vmem:[#allocation2 + $0x18] sm:$0xff] (%p227_p5), %vm233_vm0, %v3705_v0 }
  0x12   : > { %238 = vst.msk [vmem:[#allocation2 + $0x20] sm:$0xff] (%p227_p5), %vm233_vm0, %v3705_v0  ;;  %239 = vst.msk [vmem:[#allocation2 + $0x28] sm:$0xff] (%p227_p5), %vm233_vm0, %v3705_v0 }
  0x13   : > { %240 = vst.msk [vmem:[#allocation2 + $0x30] sm:$0xff] (%p227_p5), %vm233_vm0, %v3705_v0  ;;  %241 = vst.msk [vmem:[#allocation2 + $0x38] sm:$0xff] (%p227_p5), %vm233_vm0, %v3705_v0 }
  0x14   : > { %242 = vst.msk [vmem:[#allocation2 + $0x40] sm:$0xff] (%p227_p5), %vm233_vm0, %v3705_v0  ;;  %243 = vst.msk [vmem:[#allocation2 + $0x48] sm:$0xff] (%p227_p5), %vm233_vm0, %v3705_v0 }
  0x15   : > { %244 = vst.msk [vmem:[#allocation2 + $0x50] sm:$0xff] (%p227_p5), %vm233_vm0, %v3705_v0  ;;  %245 = vst.msk [vmem:[#allocation2 + $0x58] sm:$0xff] (%p227_p5), %vm233_vm0, %v3705_v0 }
  0x16   : > { %246 = vst.msk [vmem:[#allocation2 + $0x60] sm:$0xff] %vm233_vm0, %v3705_v0  ;;  %247 = vst.msk [vmem:[#allocation2 + $0x68] sm:$0xff] %vm233_vm0, %v3705_v0 }
  0x17   : > { %248 = vst.msk [vmem:[#allocation2 + $0x70] sm:$0xff] %vm233_vm0, %v3705_v0  ;;  %249 = vst.msk [vmem:[#allocation2 + $0x78] sm:$0xff] %vm233_vm0, %v3705_v0 }
  0x18 PF: > { %v3565_v1 = vld [vmem:[%s3758_s23 + $0x40] sm:$0xff]   ;;  %v3569_v5 = vld [vmem:[%s3758_s23 + $0x48] sm:$0xff]   ;;  %v3573_v9 = vld [vmem:[%s3758_s23 + $0x50] sm:$0xff]   ;;  %s3131_s27 = sshll.u32 %s3695_s15, 7  ;;  %vm1536_vm1 = vcmask 261120   ;;  %p1650_p6 = scmp.eq.s32.totalorder %s3695_s15, 3 }
  0x19   : > { %v3566_v2 = vld [vmem:[%s3758_s23 + $0xc0] sm:$0xff]   ;;  %3283 = vmatprep.subr.bf16.mxu0 %v3565_v1  ;;  %v3570_v6 = vld [vmem:[%s3758_s23 + $0xc8] sm:$0xff]   ;;  %v3574_v10 = vld [vmem:[%s3758_s23 + $0xd0] sm:$0xff]   ;;  %s3946_s30 = scalar_lea.vmem %s5326_s4, %s3131_s27  ;;  %vm1633_vm2 = vcmask 7168  }
  0x1a   : > { %v3567_v3 = vld [vmem:[%s3758_s23] sm:$0xff]   ;;  %3347 = vmatprep.subr.bf16.mxu1 %v3566_v2  ;;  %v3571_v7 = vld [vmem:[%s3758_s23 + $0x8] sm:$0xff]   ;;  %v3575_v11 = vld [vmem:[%s3758_s23 + $0x10] sm:$0xff]  }
  0x1b   : > { %v3568_v4 = vld [vmem:[%s3758_s23 + $0x80] sm:$0xff]   ;;  %3284 = vmatpush3.bf16.msra.mxu0 %v3567_v3  ;;  %v3572_v8 = vld [vmem:[%s3758_s23 + $0x88] sm:$0xff]   ;;  %v3576_v12 = vld [vmem:[%s3758_s23 + $0x90] sm:$0xff]  }
  0x1c   : > { %3348 = vmatpush3.bf16.msra.mxu1 %v3568_v4  ;;  %3285 = vmatprep.subr.bf16.mxu0 %v3569_v5  ;;  %v3577_v13 = vld [vmem:[%s3758_s23 + $0x58] sm:$0xff]   ;;  %v3581_v17 = vld [vmem:[%s3758_s23 + $0x60] sm:$0xff]   ;;  %v3585_v21 = vld [vmem:[%s3758_s23 + $0x68] sm:$0xff]  }
  0x1d   : > { %3349 = vmatprep.subr.bf16.mxu1 %v3570_v6  ;;  %v3578_v14 = vld [vmem:[%s3758_s23 + $0xd8] sm:$0xff]   ;;  %v3582_v18 = vld [vmem:[%s3758_s23 + $0xe0] sm:$0xff]   ;;  %v3586_v22 = vld [vmem:[%s3758_s23 + $0xe8] sm:$0xff]  }
  0x1e   : > { %v3579_v15 = vld [vmem:[%s3758_s23 + $0x18] sm:$0xff]   ;;  %v3583_v19 = vld [vmem:[%s3758_s23 + $0x20] sm:$0xff]   ;;  %v3587_v23 = vld [vmem:[%s3758_s23 + $0x28] sm:$0xff]  }
  0x1f   : > { %3286 = vmatpush3.bf16.msra.mxu0 %v3571_v7  ;;  %v3580_v16 = vld [vmem:[%s3758_s23 + $0x98] sm:$0xff]   ;;  %v3584_v20 = vld [vmem:[%s3758_s23 + $0xa0] sm:$0xff]   ;;  %v3588_v24 = vld [vmem:[%s3758_s23 + $0xa8] sm:$0xff]  }
  0x20   : > { %3350 = vmatpush3.bf16.msra.mxu1 %v3572_v8  ;;  %3287 = vmatprep.subr.bf16.mxu0 %v3573_v9  ;;  %v3589_v25 = vld [vmem:[%s3758_s23 + $0x70] sm:$0xff]   ;;  %v3593_v29 = vld [vmem:[%s3758_s23 + $0x78] sm:$0xff]   ;;  %v250_v33 = vld [vmem:[%s3763_s26] sm:$0xff] }
  0x21   : > { %3351 = vmatprep.subr.bf16.mxu1 %v3574_v10  ;;  %v3590_v26 = vld [vmem:[%s3758_s23 + $0xf0] sm:$0xff]   ;;  %v3594_v30 = vld [vmem:[%s3758_s23 + $0xf8] sm:$0xff]   ;;  %v254_v34 = vld [vmem:[%s3763_s26 + $0x20] sm:$0xff] }
  0x22   : > { %v3591_v27 = vld [vmem:[%s3758_s23 + $0x30] sm:$0xff]   ;;  %v3595_v31 = vld [vmem:[%s3758_s23 + $0x38] sm:$0xff]   ;;  %v251_v35 = vld [vmem:[%s3763_s26 + $0x8] sm:$0xff]  ;;  %v3003_v36 = vcombine.low %v250_v33, %v254_v34  ;;  %v3004_v37 = vcombine.high %v250_v33, %v254_v34 }
  0x23   : > { %3288 = vmatpush3.bf16.msra.mxu0 %v3575_v11  ;;  %v3592_v28 = vld [vmem:[%s3758_s23 + $0xb0] sm:$0xff]   ;;  %v3596_v32 = vld [vmem:[%s3758_s23 + $0xb8] sm:$0xff]   ;;  %v255_v38 = vld [vmem:[%s3763_s26 + $0x28] sm:$0xff] }
  0x24   : > { %3352 = vmatpush3.bf16.msra.mxu1 %v3576_v12  ;;  %3289 = vmatprep.subr.bf16.mxu0 %v3577_v13  ;;  %v3005_v39 = vcombine.low %v251_v35, %v255_v38  ;;  %v3006_v40 = vcombine.high %v251_v35, %v255_v38  ;;  %v3597_v41 = vld [vmem:[%s3758_s23 + $0x140] sm:$0xff]   ;;  %v259_v48 = vld [vmem:[%s3763_s26 + $0x48] sm:$0xff]  ;;  %v3605_v63 = vld [vmem:[%s3758_s23 + $0x150] sm:$0xff]  }
  0x25   : > { %3353 = vmatprep.subr.bf16.mxu1 %v3578_v14  ;;  %1178 = vmatprep.mubr.bf16.mxu0 %v3004_v37  ;;  %v3598_v42 = vld [vmem:[%s3758_s23 + $0x100] sm:$0xff]   ;;  %v263_v49 = vld [vmem:[%s3763_s26 + $0x68] sm:$0xff]  ;;  %v3606_v0 = vld [vmem:[%s3758_s23 + $0x110] sm:$0xff]  }
  0x26   : > { %1275 = vmatprep.mubr.bf16.mxu1 %v3006_v40  ;;  %v3599_v43 = vld [vmem:[%s3758_s23 + $0x1c0] sm:$0xff]   ;;  %v3014_v50 = vcombine.high %v259_v48, %v263_v49  ;;  %v3601_v51 = vld [vmem:[%s3758_s23 + $0x148] sm:$0xff]   ;;  %v3013_v54 = vcombine.low %v259_v48, %v263_v49  ;;  %v3607_v1 = vld [vmem:[%s3758_s23 + $0x1d0] sm:$0xff]  }
  0x27   : > { %3290 = vmatpush3.bf16.msra.mxu0 %v3579_v15  ;;  %v3600_v44 = vld [vmem:[%s3758_s23 + $0x180] sm:$0xff]   ;;  %v3602_v53 = vld [vmem:[%s3758_s23 + $0x108] sm:$0xff]   ;;  %v3608_v2 = vld [vmem:[%s3758_s23 + $0x190] sm:$0xff]  }
  0x28   : > { %3354 = vmatpush3.bf16.msra.mxu1 %v3580_v16  ;;  %3291 = vmatprep.subr.bf16.mxu0 %v3581_v17  ;;  %v258_v45 = vld [vmem:[%s3763_s26 + $0x40] sm:$0xff]  ;;  %v3603_v55 = vld [vmem:[%s3758_s23 + $0x1c8] sm:$0xff]   ;;  %v3609_v11 = vld [vmem:[%s3758_s23 + $0x158] sm:$0xff]  }
  0x29   : > { %3355 = vmatprep.subr.bf16.mxu1 %v3582_v18  ;;  %v262_v46 = vld [vmem:[%s3763_s26 + $0x60] sm:$0xff]  ;;  %v3604_v56 = vld [vmem:[%s3758_s23 + $0x188] sm:$0xff]   ;;  %v3610_v12 = vld [vmem:[%s3758_s23 + $0x118] sm:$0xff]  }
  0x2a   : > { %v3012_v47 = vcombine.high %v258_v45, %v262_v46  ;;  %v3011_v52 = vcombine.low %v258_v45, %v262_v46  ;;  %v266_v57 = vld [vmem:[%s3763_s26 + $0x80] sm:$0xff]  ;;  %v267_v59 = vld [vmem:[%s3763_s26 + $0x88] sm:$0xff]  ;;  %v3611_v13 = vld [vmem:[%s3758_s23 + $0x1d8] sm:$0xff]  }
  0x2b   : > { %3292 = vmatpush3.bf16.msra.mxu0 %v3583_v19  ;;  %v270_v58 = vld [vmem:[%s3763_s26 + $0xa0] sm:$0xff]  ;;  %v271_v60 = vld [vmem:[%s3763_s26 + $0xa8] sm:$0xff]  ;;  %v3612_v14 = vld [vmem:[%s3758_s23 + $0x198] sm:$0xff]  }
  0x2c   : > { %3356 = vmatpush3.bf16.msra.mxu1 %v3584_v20  ;;  %3293 = vmatprep.subr.bf16.mxu0 %v3585_v21  ;;  %v3020_v61 = vcombine.high %v266_v57, %v270_v58  ;;  %v3022_v62 = vcombine.high %v267_v59, %v271_v60  ;;  %v3019_v3 = vcombine.low %v266_v57, %v270_v58  ;;  %v274_v4 = vld [vmem:[%s3763_s26 + $0xc0] sm:$0xff]  ;;  %v275_v6 = vld [vmem:[%s3763_s26 + $0xc8] sm:$0xff]  ;;  %v3622_v40 = vld [vmem:[%s3758_s23 + $0x130] sm:$0xff]  }
  0x2d   : > { %3357 = vmatprep.subr.bf16.mxu1 %v3586_v22  ;;  %v278_v5 = vld [vmem:[%s3763_s26 + $0xe0] sm:$0xff]  ;;  %v3021_v7 = vcombine.low %v267_v59, %v271_v60  ;;  %v279_v9 = vld [vmem:[%s3763_s26 + $0xe8] sm:$0xff]  ;;  %v3626_v49 = vld [vmem:[%s3758_s23 + $0x138] sm:$0xff]  }
  0x2e   : > { %v3028_v8 = vcombine.high %v274_v4, %v278_v5  ;;  %v3030_v10 = vcombine.high %v275_v6, %v279_v9  ;;  %v282_v15 = vld [vmem:[%s3763_s26 + $0x100] sm:$0xff]  ;;  %v283_v17 = vld [vmem:[%s3763_s26 + $0x108] sm:$0xff]  ;;  %v3027_v20 = vcombine.low %v274_v4, %v278_v5  ;;  %v3029_v22 = vcombine.low %v275_v6, %v279_v9  ;;  %v261_v9 = vld [vmem:[%s3763_s26 + $0x58] sm:$0xff] }
  0x2f   : > { %3294 = vmatpush3.bf16.msra.mxu0 %v3587_v23  ;;  %v286_v16 = vld [vmem:[%s3763_s26 + $0x120] sm:$0xff]  ;;  %v287_v18 = vld [vmem:[%s3763_s26 + $0x128] sm:$0xff] }
  0x30   : > { %3358 = vmatpush3.bf16.msra.mxu1 %v3588_v24  ;;  %3295 = vmatprep.subr.bf16.mxu0 %v3589_v25  ;;  %v3613_v19 = vld [vmem:[%s3758_s23 + $0x160] sm:$0xff]   ;;  %v3036_v23 = vcombine.high %v282_v15, %v286_v16  ;;  %v3038_v25 = vcombine.high %v283_v17, %v287_v18  ;;  %v3619_v33 = vld [vmem:[%s3758_s23 + $0x1e8] sm:$0xff]   ;;  %v3035_v35 = vcombine.low %v282_v15, %v286_v16  ;;  %v268_v15 = vld [vmem:[%s3763_s26 + $0x90] sm:$0xff] }
  0x31   : > { %3359 = vmatprep.subr.bf16.mxu1 %v3590_v26  ;;  %v3614_v21 = vld [vmem:[%s3758_s23 + $0x120] sm:$0xff]   ;;  %v3620_v34 = vld [vmem:[%s3758_s23 + $0x1a8] sm:$0xff]   ;;  %v272_v16 = vld [vmem:[%s3763_s26 + $0xb0] sm:$0xff] }
  0x32   : > { %v3615_v24 = vld [vmem:[%s3758_s23 + $0x1e0] sm:$0xff]   ;;  %v299_v45 = vld [vmem:[%s3763_s26 + $0x188] sm:$0xff] }
  0x33   : > { %3296 = vmatpush3.bf16.msra.mxu0 %v3591_v27  ;;  %v3616_v26 = vld [vmem:[%s3758_s23 + $0x1a0] sm:$0xff]   ;;  %v303_v46 = vld [vmem:[%s3763_s26 + $0x1a8] sm:$0xff] }
  0x34   : > { %3360 = vmatpush3.bf16.msra.mxu1 %v3592_v28  ;;  %3297 = vmatprep.subr.bf16.mxu0 %v3593_v29  ;;  %v290_v27 = vld [vmem:[%s3763_s26 + $0x140] sm:$0xff]  ;;  %v3617_v29 = vld [vmem:[%s3758_s23 + $0x168] sm:$0xff]   ;;  %v3053_v60 = vcombine.low %v299_v45, %v303_v46 }
  0x35   : > { %3361 = vmatprep.subr.bf16.mxu1 %v3594_v30  ;;  %v294_v28 = vld [vmem:[%s3763_s26 + $0x160] sm:$0xff]  ;;  %v291_v30 = vld [vmem:[%s3763_s26 + $0x148] sm:$0xff] }
  0x36   : > { %v3044_v37 = vcombine.high %v290_v27, %v294_v28  ;;  %v3043_v48 = vcombine.low %v290_v27, %v294_v28  ;;  %v307_v57 = vld [vmem:[%s3763_s26 + $0x1c8] sm:$0xff]  ;;  %v3023_v27 = vcombine.low %v268_v15, %v272_v16 }
  0x37   : > { %3298 = vmatpush3.bf16.msra.mxu0 %v3595_v31  ;;  %v295_v31 = vld [vmem:[%s3763_s26 + $0x168] sm:$0xff] }
  0x38   : > { %3362 = vmatpush3.bf16.msra.mxu1 %v3596_v32  ;;  %3411 = vmatprep.subr.bf16.mxu0 %v3597_v41  ;;  %v3618_v32 = vld [vmem:[%s3758_s23 + $0x128] sm:$0xff]   ;;  %v3046_v38 = vcombine.high %v291_v30, %v295_v31  ;;  %v3623_v41 = vld [vmem:[%s3758_s23 + $0x1f0] sm:$0xff]  }
  0x39   : > { %3475 = vmatprep.subr.bf16.mxu1 %v3599_v43  ;;  %v302_v43 = vld [vmem:[%s3763_s26 + $0x1a0] sm:$0xff]  ;;  %v311_v58 = vld [vmem:[%s3763_s26 + $0x1e8] sm:$0xff] }
  0x3a   : > { %1179 = vmatmul.mubr.bf16.vlgmr.msra.gmra.mrb[0].mxu0 %v3003_v36  ;;  %v3037_v36 = vcombine.low %v283_v17, %v287_v18  ;;  %v3061_v4 = vcombine.low %v307_v57, %v311_v58  ;;  %v269_v17 = vld [vmem:[%s3763_s26 + $0x98] sm:$0xff] }
  0x3b   : > { %1276 = vmatmul.mubr.bf16.vlgmr.msra.gmra.mrb[0].mxu1 %v3005_v39  ;;  %3412 = vmatpush3.bf16.msra.mxu0 %v3598_v42  ;;  %v3621_v39 = vld [vmem:[%s3758_s23 + $0x170] sm:$0xff]   ;;  %v298_v42 = vld [vmem:[%s3763_s26 + $0x180] sm:$0xff]  ;;  %v273_v18 = vld [vmem:[%s3763_s26 + $0xb8] sm:$0xff] }
  0x3c   : > { %3476 = vmatpush3.bf16.msra.mxu1 %v3600_v44  ;;  %1186 = vmatprep.mubr.bf16.mxu0 %v3012_v47  ;;  %v3624_v44 = vld [vmem:[%s3758_s23 + $0x1b0] sm:$0xff]   ;;  %v3625_v47 = vld [vmem:[%s3758_s23 + $0x178] sm:$0xff]   ;;  %v3051_v59 = vcombine.low %v298_v42, %v302_v43  ;;  %v3025_v28 = vcombine.low %v269_v17, %v273_v18 }
  0x3d   : > { %1283 = vmatprep.mubr.bf16.mxu1 %v3014_v50  ;;  %3413 = vmatprep.subr.bf16.mxu0 %v3601_v51  ;;  %v3045_v50 = vcombine.low %v291_v30, %v295_v31  ;;  %v3052_v51 = vcombine.high %v298_v42, %v302_v43  ;;  %v284_v31 = vld [vmem:[%s3763_s26 + $0x110] sm:$0xff]  ;;  %v297_v42 = vld [vmem:[%s3763_s26 + $0x178] sm:$0xff] }
  0x3e   : > { %3477 = vmatprep.subr.bf16.mxu1 %v3603_v55  ;;  %v306_v55 = vld [vmem:[%s3763_s26 + $0x1c0] sm:$0xff] }
  0x3f   : > { %3414 = vmatpush3.bf16.msra.mxu0 %v3602_v53  ;;  %v3054_v53 = vcombine.high %v299_v45, %v303_v46 }
  0x40   : > { %3478 = vmatpush3.bf16.msra.mxu1 %v3604_v56  ;;  %3415 = vmatprep.subr.bf16.mxu0 %v3605_v63  ;;  %v310_v56 = vld [vmem:[%s3763_s26 + $0x1e0] sm:$0xff]  ;;  %v252_v63 = vld [vmem:[%s3763_s26 + $0x10] sm:$0xff] }
  0x41   : > { %3479 = vmatprep.subr.bf16.mxu1 %v3607_v1  ;;  %v253_v1 = vld [vmem:[%s3763_s26 + $0x18] sm:$0xff] }
  0x42   : > { %1187 = vmatmul.mubr.bf16.gmra.mrb[4].mxu0 %v3011_v52  ;;  %v3627_v52 = vld [vmem:[%s3758_s23 + $0x1f8] sm:$0xff]  }
  0x43   : > { %1284 = vmatmul.mubr.bf16.gmra.mrb[4].mxu1 %v3013_v54  ;;  %1194 = vmatprep.mubr.bf16.mxu0 %v3020_v61  ;;  %v3628_v54 = vld [vmem:[%s3758_s23 + $0x1b8] sm:$0xff]   ;;  %v3060_v61 = vcombine.high %v306_v55, %v310_v56 }
  0x44   : > { %1291 = vmatprep.mubr.bf16.mxu1 %v3022_v62  ;;  %3416 = vmatpush3.bf16.msra.mxu0 %v3606_v0  ;;  %v3062_v62 = vcombine.high %v307_v57, %v311_v58  ;;  %v256_v0 = vld [vmem:[%s3763_s26 + $0x30] sm:$0xff]  ;;  %v309_v57 = vld [vmem:[%s3763_s26 + $0x1d8] sm:$0xff] }
  0x45   : > { %3480 = vmatpush3.bf16.msra.mxu1 %v3608_v2  ;;  %3417 = vmatprep.subr.bf16.mxu0 %v3609_v11  ;;  %v257_v2 = vld [vmem:[%s3763_s26 + $0x38] sm:$0xff]  ;;  %v3008_v5 = vcombine.high %v252_v63, %v256_v0  ;;  %v3007_v11 = vcombine.low %v252_v63, %v256_v0 }
  0x46   : > { %3481 = vmatprep.subr.bf16.mxu1 %v3611_v13  ;;  %v3010_v6 = vcombine.high %v253_v1, %v257_v2  ;;  %v313_v58 = vld [vmem:[%s3763_s26 + $0x1f8] sm:$0xff] }
  0x47   : > { %v3065_v0 = vcombine.low %v309_v57, %v313_v58 }
  0x48   : > { %3418 = vmatpush3.bf16.msra.mxu0 %v3610_v12  ;;  %v3009_v12 = vcombine.low %v253_v1, %v257_v2 }
  0x49   : > { %3482 = vmatpush3.bf16.msra.mxu1 %v3612_v14  ;;  %3419 = vmatprep.subr.bf16.mxu0 %v3613_v19 }
  0x4a   : > { %1195 = vmatmul.mubr.bf16.gmra.mrb[8].mxu0 %v3019_v3  ;;  %3483 = vmatprep.subr.bf16.mxu1 %v3615_v24  ;;  %v3059_v3 = vcombine.low %v306_v55, %v310_v56  ;;  %v280_v24 = vld [vmem:[%s3763_s26 + $0xf0] sm:$0xff] }
  0x4b   : > { %1292 = vmatmul.mubr.bf16.gmra.mrb[8].mxu1 %v3021_v7  ;;  %1202 = vmatprep.mubr.bf16.mxu0 %v3028_v8  ;;  %v260_v7 = vld [vmem:[%s3763_s26 + $0x50] sm:$0xff] }
  0x4c   : > { %1299 = vmatprep.mubr.bf16.mxu1 %v3030_v10  ;;  %3420 = vmatpush3.bf16.msra.mxu0 %v3614_v21  ;;  %v264_v8 = vld [vmem:[%s3763_s26 + $0x70] sm:$0xff]  ;;  %v265_v10 = vld [vmem:[%s3763_s26 + $0x78] sm:$0xff]  ;;  %v3024_v21 = vcombine.high %v268_v15, %v272_v16 }
  0x4d   : > { %3484 = vmatpush3.bf16.msra.mxu1 %v3616_v26  ;;  %3421 = vmatprep.subr.bf16.mxu0 %v3617_v29  ;;  %v3016_v13 = vcombine.high %v260_v7, %v264_v8  ;;  %v3018_v14 = vcombine.high %v261_v9, %v265_v10  ;;  %v3015_v19 = vcombine.low %v260_v7, %v264_v8  ;;  %v281_v26 = vld [vmem:[%s3763_s26 + $0xf8] sm:$0xff]  ;;  %v308_v55 = vld [vmem:[%s3763_s26 + $0x1d0] sm:$0xff] }
  0x4e   : > { %3485 = vmatprep.subr.bf16.mxu1 %v3619_v33  ;;  %v285_v33 = vld [vmem:[%s3763_s26 + $0x118] sm:$0xff]  ;;  %v312_v56 = vld [vmem:[%s3763_s26 + $0x1f0] sm:$0xff] }
  0x4f   : > { %v3063_v63 = vcombine.low %v308_v55, %v312_v56 }
  0x50   : > { %3422 = vmatpush3.bf16.msra.mxu0 %v3618_v32  ;;  %v288_v32 = vld [vmem:[%s3763_s26 + $0x130] sm:$0xff] }
  0x51   : > { %3486 = vmatpush3.bf16.msra.mxu1 %v3620_v34  ;;  %3423 = vmatprep.subr.bf16.mxu0 %v3621_v39  ;;  %v289_v34 = vld [vmem:[%s3763_s26 + $0x138] sm:$0xff]  ;;  %v292_v39 = vld [vmem:[%s3763_s26 + $0x150] sm:$0xff]  ;;  %v3039_v43 = vcombine.low %v284_v31, %v288_v32 }
  0x52   : > { %1203 = vmatmul.mubr.bf16.gmra.mrb[12].mxu0 %v3027_v20  ;;  %3487 = vmatprep.subr.bf16.mxu1 %v3623_v41  ;;  %v3017_v20 = vcombine.low %v261_v9, %v265_v10  ;;  %v293_v41 = vld [vmem:[%s3763_s26 + $0x158] sm:$0xff] }
  0x53   : > { %1300 = vmatmul.mubr.bf16.gmra.mrb[12].mxu1 %v3029_v22  ;;  %1210 = vmatprep.mubr.bf16.mxu0 %v3036_v23  ;;  %v3026_v22 = vcombine.high %v269_v17, %v273_v18  ;;  %v276_v23 = vld [vmem:[%s3763_s26 + $0xd0] sm:$0xff]  ;;  %v3050_v46 = vcombine.high %v293_v41, %v297_v42 }
  0x54   : > { %1307 = vmatprep.mubr.bf16.mxu1 %v3038_v25  ;;  %3424 = vmatpush3.bf16.msra.mxu0 %v3622_v40  ;;  %v277_v25 = vld [vmem:[%s3763_s26 + $0xd8] sm:$0xff]  ;;  %v3032_v29 = vcombine.high %v276_v23, %v280_v24  ;;  %v296_v40 = vld [vmem:[%s3763_s26 + $0x170] sm:$0xff] }
  0x55   : > { %3488 = vmatpush3.bf16.msra.mxu1 %v3624_v44  ;;  %3425 = vmatprep.subr.bf16.mxu0 %v3625_v47  ;;  %v3034_v30 = vcombine.high %v277_v25, %v281_v26  ;;  %v3041_v44 = vcombine.low %v285_v33, %v289_v34  ;;  %v3048_v45 = vcombine.high %v292_v39, %v296_v40  ;;  %v300_v47 = vld [vmem:[%s3763_s26 + $0x190] sm:$0xff] }
  0x56   : > { %3489 = vmatprep.subr.bf16.mxu1 %v3627_v52  ;;  %v3049_v52 = vcombine.low %v293_v41, %v297_v42 }
  0x58   : > { %3426 = vmatpush3.bf16.msra.mxu0 %v3626_v49  ;;  %v301_v49 = vld [vmem:[%s3763_s26 + $0x198] sm:$0xff] }
  0x59   : > { %3490 = vmatpush3.bf16.msra.mxu1 %v3628_v54 }
  0x5a   : > { %1211 = vmatmul.mubr.bf16.gmra.mrb[16].mxu0 %v3035_v35  ;;  %v3031_v35 = vcombine.low %v276_v23, %v280_v24 }
  0x5b   : > { %1308 = vmatmul.mubr.bf16.gmra.mrb[16].mxu1 %v3037_v36  ;;  %1218 = vmatprep.mubr.bf16.mxu0 %v3044_v37  ;;  %v3033_v36 = vcombine.low %v277_v25, %v281_v26  ;;  %v3040_v37 = vcombine.high %v284_v31, %v288_v32 }
  0x5c   : > { %1315 = vmatprep.mubr.bf16.mxu1 %v3046_v38  ;;  %v3042_v38 = vcombine.high %v285_v33, %v289_v34 }
  0x62   : > { %1219 = vmatmul.mubr.bf16.gmra.mrb[20].mxu0 %v3043_v48  ;;  %v304_v48 = vld [vmem:[%s3763_s26 + $0x1b0] sm:$0xff] }
  0x63   : > { %1316 = vmatmul.mubr.bf16.gmra.mrb[20].mxu1 %v3045_v50  ;;  %1226 = vmatprep.mubr.bf16.mxu0 %v3052_v51  ;;  %v305_v50 = vld [vmem:[%s3763_s26 + $0x1b8] sm:$0xff]  ;;  %v3047_v51 = vcombine.low %v292_v39, %v296_v40 }
  0x64   : > { %1323 = vmatprep.mubr.bf16.mxu1 %v3054_v53  ;;  %v3056_v53 = vcombine.high %v300_v47, %v304_v48  ;;  %v3058_v54 = vcombine.high %v301_v49, %v305_v50 }
  0x6a   : > { %1227 = vmatmul.mubr.bf16.gmra.mrb[24].mxu0 %v3051_v59  ;;  %v3055_v59 = vcombine.low %v300_v47, %v304_v48 }
  0x6b   : > { %1324 = vmatmul.mubr.bf16.gmra.mrb[24].mxu1 %v3053_v60  ;;  %1234 = vmatprep.mubr.bf16.mxu0 %v3060_v61  ;;  %v3057_v60 = vcombine.low %v301_v49, %v305_v50  ;;  %v3064_v61 = vcombine.high %v308_v55, %v312_v56 }
  0x6c   : > { %1331 = vmatprep.mubr.bf16.mxu1 %v3062_v62  ;;  %v3066_v62 = vcombine.high %v309_v57, %v313_v58 }
  0x72   : > { %1235 = vmatmul.mubr.bf16.gmra.mrb[28].mxu0 %v3059_v3 }
  0x73   : > { %1332 = vmatmul.mubr.bf16.gmra.mrb[28].mxu1 %v3061_v4  ;;  %1372 = vmatprep.mubr.bf16.mxu0 %v3008_v5 }
  0x74   : > { %1469 = vmatprep.mubr.bf16.mxu1 %v3010_v6 }
  0x7a   : > { %1373 = vmatmul.mubr.bf16.vlgmr.msra.gmra.mrb[32].mxu0 %v3007_v11 }
  0x7b   : > { %1470 = vmatmul.mubr.bf16.vlgmr.msra.gmra.mrb[32].mxu1 %v3009_v12  ;;  %1380 = vmatprep.mubr.bf16.mxu0 %v3016_v13 }
  0x7c   : > { %1477 = vmatprep.mubr.bf16.mxu1 %v3018_v14 }
  0x82   : > { %1381 = vmatmul.mubr.bf16.gmra.mrb[36].mxu0 %v3015_v19 }
  0x83   : > { %1478 = vmatmul.mubr.bf16.gmra.mrb[36].mxu1 %v3017_v20  ;;  %1388 = vmatprep.mubr.bf16.mxu0 %v3024_v21 }
  0x84   : > { %1485 = vmatprep.mubr.bf16.mxu1 %v3026_v22 }
  0x8a   : > { %1389 = vmatmul.mubr.bf16.gmra.mrb[40].mxu0 %v3023_v27 }
  0x8b   : > { %1486 = vmatmul.mubr.bf16.gmra.mrb[40].mxu1 %v3025_v28  ;;  %1396 = vmatprep.mubr.bf16.mxu0 %v3032_v29 }
  0x8c   : > { %1493 = vmatprep.mubr.bf16.mxu1 %v3034_v30 }
  0x92   : > { %1397 = vmatmul.mubr.bf16.gmra.mrb[44].mxu0 %v3031_v35 }
  0x93   : > { %1494 = vmatmul.mubr.bf16.gmra.mrb[44].mxu1 %v3033_v36  ;;  %1404 = vmatprep.mubr.bf16.mxu0 %v3040_v37 }
  0x94   : > { %1501 = vmatprep.mubr.bf16.mxu1 %v3042_v38 }
  0x9a   : > { %1405 = vmatmul.mubr.bf16.gmra.mrb[48].mxu0 %v3039_v43 }
  0x9b   : > { %1502 = vmatmul.mubr.bf16.gmra.mrb[48].mxu1 %v3041_v44  ;;  %1412 = vmatprep.mubr.bf16.mxu0 %v3048_v45 }
  0x9c   : > { %1509 = vmatprep.mubr.bf16.mxu1 %v3050_v46 }
  0xa2   : > { %1413 = vmatmul.mubr.bf16.gmra.mrb[52].mxu0 %v3047_v51 }
  0xa3   : > { %1510 = vmatmul.mubr.bf16.gmra.mrb[52].mxu1 %v3049_v52  ;;  %1420 = vmatprep.mubr.bf16.mxu0 %v3056_v53 }
  0xa4   : > { %1517 = vmatprep.mubr.bf16.mxu1 %v3058_v54 }
  0xaa   : > { %1421 = vmatmul.mubr.bf16.gmra.mrb[56].mxu0 %v3055_v59 }
  0xab   : > { %1518 = vmatmul.mubr.bf16.gmra.mrb[56].mxu1 %v3057_v60  ;;  %1428 = vmatprep.mubr.bf16.mxu0 %v3064_v61 }
  0xac   : > { %1525 = vmatprep.mubr.bf16.mxu1 %v3066_v62 }
  0xb2   : > { %1429 = vmatmul.mubr.bf16.gmra.mrb[60].mxu0 %v3063_v63 }
  0xb3   : > { %1526 = vmatmul.mubr.bf16.gmra.mrb[60].mxu1 %v3065_v0 }
 0x10d   : > { %v3299_v1 = vpop.f32.mrb[0].mxu0 }
 0x10e   : > { %v3363_v2 = vpop.f32.mrb[0].mxu1  ;;  %v3300_v3 = vpop.f32.mrb[1].mxu0 }
 0x10f   : > { %v3301_v4 = vadd.f32 %v3300_v3, %v3299_v1  ;;  %v3364_v5 = vpop.f32.mrb[1].mxu1  ;;  %v3302_v6 = vpop.f32.mrb[2].mxu0 }
 0x110   : > { %v3365_v7 = vadd.f32 %v3364_v5, %v3363_v2  ;;  %v3366_v8 = vpop.f32.mrb[2].mxu1  ;;  %v3303_v9 = vpop.f32.mrb[3].mxu0 }
 0x111   : > { %v3304_v10 = vadd.f32 %v3303_v9, %v3302_v6  ;;  %v3367_v11 = vpop.f32.mrb[3].mxu1 }
 0x112   : > { %v3909_v12 = vadd.f32 %v3365_v7, %v3301_v4  ;;  %v3368_v13 = vadd.f32 %v3367_v11, %v3366_v8 }
 0x114   : > { %v3911_v14 = vadd.f32 %v3368_v13, %v3304_v10 }
 0x115   : > { %v3305_v15 = vpop.f32.mrb[4].mxu0 }
 0x116   : > { %v3369_v16 = vpop.f32.mrb[4].mxu1  ;;  %v3306_v17 = vpop.f32.mrb[5].mxu0 }
 0x117   : > { %v3307_v18 = vadd.f32 %v3306_v17, %v3305_v15  ;;  %v3370_v19 = vpop.f32.mrb[5].mxu1  ;;  %v3308_v20 = vpop.f32.mrb[6].mxu0 }
 0x118   : > { %v3371_v21 = vadd.f32 %v3370_v19, %v3369_v16  ;;  %v3372_v22 = vpop.f32.mrb[6].mxu1  ;;  %v3309_v23 = vpop.f32.mrb[7].mxu0 }
 0x119   : > { %v3310_v24 = vadd.f32 %v3309_v23, %v3308_v20  ;;  %v3373_v25 = vpop.f32.mrb[7].mxu1 }
 0x11a   : > { %v3913_v26 = vadd.f32 %v3371_v21, %v3307_v18  ;;  %v3374_v27 = vadd.f32 %v3373_v25, %v3372_v22 }
 0x11c   : > { %v3915_v28 = vadd.f32 %v3374_v27, %v3310_v24 }
 0x11d   : > { %v3311_v29 = vpop.f32.mrb[8].mxu0 }
 0x11e   : > { %v3375_v30 = vpop.f32.mrb[8].mxu1  ;;  %v3312_v31 = vpop.f32.mrb[9].mxu0 }
 0x11f   : > { %v3313_v32 = vadd.f32 %v3312_v31, %v3311_v29  ;;  %v3376_v33 = vpop.f32.mrb[9].mxu1  ;;  %v3314_v34 = vpop.f32.mrb[10].mxu0 }
 0x120   : > { %v3377_v35 = vadd.f32 %v3376_v33, %v3375_v30  ;;  %v3378_v36 = vpop.f32.mrb[10].mxu1  ;;  %v3315_v37 = vpop.f32.mrb[11].mxu0 }
 0x121   : > { %v3316_v38 = vadd.f32 %v3315_v37, %v3314_v34  ;;  %v3379_v39 = vpop.f32.mrb[11].mxu1 }
 0x122   : > { %v3917_v40 = vadd.f32 %v3377_v35, %v3313_v32  ;;  %v3380_v41 = vadd.f32 %v3379_v39, %v3378_v36 }
 0x124   : > { %v3919_v42 = vadd.f32 %v3380_v41, %v3316_v38 }
 0x125   : > { %v3317_v43 = vpop.f32.mrb[12].mxu0 }
 0x126   : > { %v3381_v44 = vpop.f32.mrb[12].mxu1  ;;  %v3318_v45 = vpop.f32.mrb[13].mxu0 }
 0x127   : > { %v3319_v46 = vadd.f32 %v3318_v45, %v3317_v43  ;;  %v3382_v47 = vpop.f32.mrb[13].mxu1  ;;  %v3320_v48 = vpop.f32.mrb[14].mxu0 }
 0x128   : > { %v3383_v49 = vadd.f32 %v3382_v47, %v3381_v44  ;;  %v3384_v50 = vpop.f32.mrb[14].mxu1  ;;  %v3321_v51 = vpop.f32.mrb[15].mxu0 }
 0x129   : > { %v3322_v52 = vadd.f32 %v3321_v51, %v3320_v48  ;;  %v3385_v53 = vpop.f32.mrb[15].mxu1 }
 0x12a   : > { %v3921_v54 = vadd.f32 %v3383_v49, %v3319_v46  ;;  %v3386_v55 = vadd.f32 %v3385_v53, %v3384_v50 }
 0x12c   : > { %v3923_v56 = vadd.f32 %v3386_v55, %v3322_v52 }
 0x12d   : > { %v3323_v57 = vpop.f32.mrb[16].mxu0 }
 0x12e   : > { %v3387_v58 = vpop.f32.mrb[16].mxu1  ;;  %v3324_v59 = vpop.f32.mrb[17].mxu0 }
 0x12f   : > { %v3325_v60 = vadd.f32 %v3324_v59, %v3323_v57  ;;  %v3388_v61 = vpop.f32.mrb[17].mxu1  ;;  %v3326_v62 = vpop.f32.mrb[18].mxu0 }
 0x130   : > { %v3389_v63 = vadd.f32 %v3388_v61, %v3387_v58  ;;  %v3390_v0 = vpop.f32.mrb[18].mxu1  ;;  %v3327_v1 = vpop.f32.mrb[19].mxu0 }
 0x131   : > { %v3328_v2 = vadd.f32 %v3327_v1, %v3326_v62  ;;  %v3391_v3 = vpop.f32.mrb[19].mxu1 }
 0x132   : > { %v3925_v4 = vadd.f32 %v3389_v63, %v3325_v60  ;;  %v3392_v5 = vadd.f32 %v3391_v3, %v3390_v0 }
 0x134   : > { %v3927_v6 = vadd.f32 %v3392_v5, %v3328_v2 }
 0x135   : > { %v3329_v7 = vpop.f32.mrb[20].mxu0 }
 0x136   : > { %v3393_v8 = vpop.f32.mrb[20].mxu1  ;;  %v3330_v9 = vpop.f32.mrb[21].mxu0 }
 0x137   : > { %v3331_v10 = vadd.f32 %v3330_v9, %v3329_v7  ;;  %v3394_v11 = vpop.f32.mrb[21].mxu1  ;;  %v3332_v13 = vpop.f32.mrb[22].mxu0 }
 0x138   : > { %v3395_v15 = vadd.f32 %v3394_v11, %v3393_v8  ;;  %v3396_v16 = vpop.f32.mrb[22].mxu1  ;;  %v3333_v17 = vpop.f32.mrb[23].mxu0 }
 0x139   : > { %v3334_v18 = vadd.f32 %v3333_v17, %v3332_v13  ;;  %v3397_v19 = vpop.f32.mrb[23].mxu1 }
 0x13a   : > { %v3929_v20 = vadd.f32 %v3395_v15, %v3331_v10  ;;  %v3398_v21 = vadd.f32 %v3397_v19, %v3396_v16 }
 0x13c   : > { %v3931_v22 = vadd.f32 %v3398_v21, %v3334_v18 }
 0x13d   : > { %v3335_v23 = vpop.f32.mrb[24].mxu0 }
 0x13e   : > { %v3399_v24 = vpop.f32.mrb[24].mxu1  ;;  %v3336_v25 = vpop.f32.mrb[25].mxu0 }
 0x13f   : > { %v3337_v27 = vadd.f32 %v3336_v25, %v3335_v23  ;;  %v3400_v29 = vpop.f32.mrb[25].mxu1  ;;  %v3338_v30 = vpop.f32.mrb[26].mxu0 }
 0x140   : > { %v3401_v31 = vadd.f32 %v3400_v29, %v3399_v24  ;;  %v3402_v32 = vpop.f32.mrb[26].mxu1  ;;  %v3339_v33 = vpop.f32.mrb[27].mxu0 }
 0x141   : > { %v3340_v34 = vadd.f32 %v3339_v33, %v3338_v30  ;;  %v3403_v35 = vpop.f32.mrb[27].mxu1 }
 0x142   : > { %v3933_v36 = vadd.f32 %v3401_v31, %v3337_v27  ;;  %v3404_v37 = vadd.f32 %v3403_v35, %v3402_v32 }
 0x144   : > { %v3935_v38 = vadd.f32 %v3404_v37, %v3340_v34 }
 0x145   : > { %v3341_v39 = vpop.f32.mrb[28].mxu0 }
 0x146   : > { %v3405_v41 = vpop.f32.mrb[28].mxu1  ;;  %v3342_v43 = vpop.f32.mrb[29].mxu0 }
 0x147   : > { %v3343_v44 = vadd.f32 %v3342_v43, %v3341_v39  ;;  %v3406_v45 = vpop.f32.mrb[29].mxu1  ;;  %v3344_v46 = vpop.f32.mrb[30].mxu0 }
 0x148   : > { %v3407_v47 = vadd.f32 %v3406_v45, %v3405_v41  ;;  %v3408_v48 = vpop.f32.mrb[30].mxu1  ;;  %v3345_v49 = vpop.f32.mrb[31].mxu0 }
 0x149   : > { %v3346_v50 = vadd.f32 %v3345_v49, %v3344_v46  ;;  %v3409_v51 = vpop.f32.mrb[31].mxu1 }
 0x14a   : > { %v3937_v52 = vadd.f32 %v3407_v47, %v3343_v44  ;;  %v3410_v53 = vadd.f32 %v3409_v51, %v3408_v48 }
 0x14c   : > { %v3939_v55 = vadd.f32 %v3410_v53, %v3346_v50 }
 0x14d   : > { %v3427_v57 = vpop.f32.mrb[32].mxu0 }
 0x14e   : > { %v3491_v58 = vpop.f32.mrb[32].mxu1  ;;  %v3428_v59 = vpop.f32.mrb[33].mxu0 }
 0x14f   : > { %v3429_v60 = vadd.f32 %v3428_v59, %v3427_v57  ;;  %v3492_v61 = vpop.f32.mrb[33].mxu1  ;;  %v3430_v62 = vpop.f32.mrb[34].mxu0 }
 0x150   : > { %v3493_v63 = vadd.f32 %v3492_v61, %v3491_v58  ;;  %v3494_v0 = vpop.f32.mrb[34].mxu1  ;;  %v3431_v1 = vpop.f32.mrb[35].mxu0 }
 0x151   : > { %v1375_v2 = vadd.f32 %v3429_v60, %v3909_v12  ;;  %v3432_v3 = vadd.f32 %v3431_v1, %v3430_v62  ;;  %v3495_v5 = vpop.f32.mrb[35].mxu1 }
 0x152   : > { %v3496_v7 = vadd.f32 %v3495_v5, %v3494_v0 }
 0x153   : > { %v1378_v8 = vadd.f32 %v3432_v3, %v3911_v14  ;;  %v1472_v9 = vadd.f32 %v3493_v63, %v1375_v2 }
 0x155   : > { %v3433_v10 = vpop.f32.mrb[36].mxu0  ;;  %v1569_v11 = vsel %vm1536_vm1, %v1472_v9, 0.0  ;;  %1537 = vst.msk [vmem:[%s3946_s30] sm:$0xff] %vm1536_vm1, %v1472_v9  ;;  %v1475_v12 = vadd.f32 %v3496_v7, %v1378_v8 }
 0x156   : > { %v3497_v13 = vpop.f32.mrb[36].mxu1  ;;  %v3434_v15 = vpop.f32.mrb[37].mxu0  ;;  %1570 = vadd.xlane.f32.xlu0 %v1569_v11 }
 0x157   : > { %v3435_v16 = vadd.f32 %v3434_v15, %v3433_v10  ;;  %v3498_v17 = vpop.f32.mrb[37].mxu1  ;;  %v3436_v18 = vpop.f32.mrb[38].mxu0  ;;  %1538 = vst.msk [vmem:[%s3946_s30 + $0x8] sm:$0xff] %vm1536_vm1, %v1475_v12  ;;  %v1572_v27 = vsel %vm1536_vm1, %v1475_v12, 0.0 }
 0x158   : > { %v3499_v19 = vadd.f32 %v3498_v17, %v3497_v13  ;;  %v3500_v21 = vpop.f32.mrb[38].mxu1  ;;  %v3437_v23 = vpop.f32.mrb[39].mxu0 }
 0x159   : > { %v1383_v14 = vadd.f32 %v3435_v16, %v3913_v26  ;;  %v3438_v24 = vadd.f32 %v3437_v23, %v3436_v18  ;;  %v3501_v25 = vpop.f32.mrb[39].mxu1 }
 0x15a   : > { %v3502_v29 = vadd.f32 %v3501_v25, %v3500_v21  ;;  %1573 = vadd.xlane.f32.xlu0 %v1572_v27 }
 0x15b   : > { %v1386_v30 = vadd.f32 %v3438_v24, %v3915_v28  ;;  %v1480_v31 = vadd.f32 %v3499_v19, %v1383_v14 }
 0x15d   : > { %v3439_v32 = vpop.f32.mrb[40].mxu0  ;;  %v1575_v33 = vsel %vm1536_vm1, %v1480_v31, 0.0  ;;  %1539 = vst.msk [vmem:[%s3946_s30 + $0x10] sm:$0xff] %vm1536_vm1, %v1480_v31  ;;  %v1483_v34 = vadd.f32 %v3502_v29, %v1386_v30 }
 0x15e   : > { %v3503_v35 = vpop.f32.mrb[40].mxu1  ;;  %v3440_v37 = vpop.f32.mrb[41].mxu0  ;;  %1576 = vadd.xlane.f32.xlu1 %v1575_v33 }
 0x15f   : > { %v3441_v26 = vadd.f32 %v3440_v37, %v3439_v32  ;;  %v3504_v39 = vpop.f32.mrb[41].mxu1  ;;  %v3442_v41 = vpop.f32.mrb[42].mxu0  ;;  %1540 = vst.msk [vmem:[%s3946_s30 + $0x18] sm:$0xff] %vm1536_vm1, %v1483_v34  ;;  %v1578_v48 = vsel %vm1536_vm1, %v1483_v34, 0.0 }
 0x160   : > { %v3505_v43 = vadd.f32 %v3504_v39, %v3503_v35  ;;  %v3506_v44 = vpop.f32.mrb[42].mxu1  ;;  %v3443_v45 = vpop.f32.mrb[43].mxu0 }
 0x161   : > { %v1391_v28 = vadd.f32 %v3441_v26, %v3917_v40  ;;  %v3444_v46 = vadd.f32 %v3443_v45, %v3442_v41  ;;  %v3507_v47 = vpop.f32.mrb[43].mxu1 }
 0x162   : > { %v3508_v49 = vadd.f32 %v3507_v47, %v3506_v44  ;;  %1579 = vadd.xlane.f32.xlu1 %v1578_v48 }
 0x163   : > { %v1394_v50 = vadd.f32 %v3444_v46, %v3919_v42  ;;  %v1488_v51 = vadd.f32 %v3505_v43, %v1391_v28 }
 0x165   : > { %v3445_v53 = vpop.f32.mrb[44].mxu0  ;;  %1541 = vst.msk [vmem:[%s3946_s30 + $0x20] sm:$0xff] %vm1536_vm1, %v1488_v51  ;;  %v1581_v57 = vsel %vm1536_vm1, %v1488_v51, 0.0  ;;  %v1491_v58 = vadd.f32 %v3508_v49, %v1394_v50 }
 0x166   : > { %v3509_v59 = vpop.f32.mrb[44].mxu1  ;;  %v3446_v60 = vpop.f32.mrb[45].mxu0  ;;  %1582 = vadd.xlane.f32.xlu0 %v1581_v57 }
 0x167   : > { %v3447_v40 = vadd.f32 %v3446_v60, %v3445_v53  ;;  %v3510_v61 = vpop.f32.mrb[45].mxu1  ;;  %v3448_v62 = vpop.f32.mrb[46].mxu0  ;;  %1542 = vst.msk [vmem:[%s3946_s30 + $0x28] sm:$0xff] %vm1536_vm1, %v1491_v58  ;;  %v1584_v63 = vsel %vm1536_vm1, %v1491_v58, 0.0 }
 0x168   : > { %v3511_v0 = vadd.f32 %v3510_v61, %v3509_v59  ;;  %v3512_v42 = vpop.f32.mrb[46].mxu1  ;;  %v3449_v1 = vpop.f32.mrb[47].mxu0  ;;  %1585 = vadd.xlane.f32.xlu1 %v1584_v63 }
 0x169   : > { %v1399_v2 = vadd.f32 %v3447_v40, %v3921_v54  ;;  %v3450_v3 = vadd.f32 %v3449_v1, %v3448_v62  ;;  %v3513_v5 = vpop.f32.mrb[47].mxu1 }
 0x16a   : > { %v3514_v7 = vadd.f32 %v3513_v5, %v3512_v42 }
 0x16b   : > { %v1402_v8 = vadd.f32 %v3450_v3, %v3923_v56  ;;  %v1496_v9 = vadd.f32 %v3511_v0, %v1399_v2 }
 0x16d   : > { %v3451_v10 = vpop.f32.mrb[48].mxu0  ;;  %1543 = vst.msk [vmem:[%s3946_s30 + $0x30] sm:$0xff] %vm1536_vm1, %v1496_v9  ;;  %v1587_v11 = vsel %vm1536_vm1, %v1496_v9, 0.0  ;;  %v1499_v12 = vadd.f32 %v3514_v7, %v1402_v8 }
 0x16e   : > { %v3515_v13 = vpop.f32.mrb[48].mxu1  ;;  %v3452_v15 = vpop.f32.mrb[49].mxu0  ;;  %1588 = vadd.xlane.f32.xlu0 %v1587_v11 }
 0x16f   : > { %v3453_v16 = vadd.f32 %v3452_v15, %v3451_v10  ;;  %v3516_v17 = vpop.f32.mrb[49].mxu1  ;;  %v3454_v54 = vpop.f32.mrb[50].mxu0  ;;  %1544 = vst.msk [vmem:[%s3946_s30 + $0x38] sm:$0xff] %vm1536_vm1, %v1499_v12  ;;  %v1590_v18 = vsel %vm1536_vm1, %v1499_v12, 0.0 }
 0x170   : > { %v3517_v19 = vadd.f32 %v3516_v17, %v3515_v13  ;;  %v3518_v56 = vpop.f32.mrb[50].mxu1  ;;  %v3455_v21 = vpop.f32.mrb[51].mxu0  ;;  %1591 = vadd.xlane.f32.xlu1 %v1590_v18 }
 0x171   : > { %v1407_v23 = vadd.f32 %v3453_v16, %v3925_v4  ;;  %v3456_v14 = vadd.f32 %v3455_v21, %v3454_v54  ;;  %v3519_v24 = vpop.f32.mrb[51].mxu1 }
 0x172   : > { %v3520_v25 = vadd.f32 %v3519_v24, %v3518_v56 }
 0x173   : > { %v1410_v27 = vadd.f32 %v3456_v14, %v3927_v6  ;;  %v1504_v29 = vadd.f32 %v3517_v19, %v1407_v23  ;;  %v1553_v14 = vld [vmem:[#allocation2] sm:$0xff] }
 0x175   : > { %v3457_v30 = vpop.f32.mrb[52].mxu0  ;;  %1545 = vst.msk [vmem:[%s3946_s30 + $0x40] sm:$0xff] %vm1536_vm1, %v1504_v29  ;;  %v1593_v31 = vsel %vm1536_vm1, %v1504_v29, 0.0  ;;  %v1507_v32 = vadd.f32 %v3520_v25, %v1410_v27  ;;  %v1554_v25 = vld [vmem:[#allocation2 + $0x8] sm:$0xff]  ;;  %v1555_v29 = vld [vmem:[#allocation2 + $0x10] sm:$0xff] }
 0x176   : > { %v3521_v33 = vpop.f32.mrb[52].mxu1  ;;  %v3458_v34 = vpop.f32.mrb[53].mxu0  ;;  %1594 = vadd.xlane.f32.xlu0 %v1593_v31 }
 0x177   : > { %v3459_v35 = vadd.f32 %v3458_v34, %v3457_v30  ;;  %v3522_v37 = vpop.f32.mrb[53].mxu1  ;;  %v3460_v4 = vpop.f32.mrb[54].mxu0  ;;  %1546 = vst.msk [vmem:[%s3946_s30 + $0x48] sm:$0xff] %vm1536_vm1, %v1507_v32  ;;  %v1596_v26 = vsel %vm1536_vm1, %v1507_v32, 0.0  ;;  %v1556_v32 = vld [vmem:[#allocation2 + $0x18] sm:$0xff] }
 0x178   : > { %v3523_v39 = vadd.f32 %v3522_v37, %v3521_v33  ;;  %v3524_v6 = vpop.f32.mrb[54].mxu1  ;;  %v3461_v41 = vpop.f32.mrb[55].mxu0  ;;  %1597 = vadd.xlane.f32.xlu1 %v1596_v26 }
 0x179   : > { %v1415_v43 = vadd.f32 %v3459_v35, %v3929_v20  ;;  %v3462_v44 = vadd.f32 %v3461_v41, %v3460_v4  ;;  %v3525_v45 = vpop.f32.mrb[55].mxu1  ;;  %v1557_v35 = vld [vmem:[#allocation2 + $0x20] sm:$0xff]  ;;  %v1558_v4 = vld [vmem:[#allocation2 + $0x28] sm:$0xff]  ;;  %v1559_v41 = vld [vmem:[#allocation2 + $0x30] sm:$0xff] }
 0x17a   : > { %v3526_v28 = vadd.f32 %v3525_v45, %v3524_v6 }
 0x17b   : > { %v1418_v46 = vadd.f32 %v3462_v44, %v3931_v22  ;;  %v1512_v47 = vadd.f32 %v3523_v39, %v1415_v43  ;;  %v1560_v44 = vld [vmem:[#allocation2 + $0x38] sm:$0xff] }
 0x17d   : > { %v3463_v48 = vpop.f32.mrb[56].mxu0  ;;  %1547 = vst.msk [vmem:[%s3946_s30 + $0x50] sm:$0xff] %vm1536_vm1, %v1512_v47  ;;  %v1599_v49 = vsel %vm1536_vm1, %v1512_v47, 0.0  ;;  %v1515_v50 = vadd.f32 %v3526_v28, %v1418_v46  ;;  %v1561_v47 = vld [vmem:[#allocation2 + $0x40] sm:$0xff] }
 0x17e   : > { %v3527_v51 = vpop.f32.mrb[56].mxu1  ;;  %v3464_v53 = vpop.f32.mrb[57].mxu0  ;;  %1600 = vadd.xlane.f32.xlu0 %v1599_v49  ;;  %v1562_v49 = vld [vmem:[#allocation2 + $0x48] sm:$0xff] }
 0x17f   : > { %v3465_v57 = vadd.f32 %v3464_v53, %v3463_v48  ;;  %v3528_v58 = vpop.f32.mrb[57].mxu1  ;;  %v3466_v20 = vpop.f32.mrb[58].mxu0  ;;  %1548 = vst.msk [vmem:[%s3946_s30 + $0x58] sm:$0xff] %vm1536_vm1, %v1515_v50  ;;  %v1602_v59 = vsel %vm1536_vm1, %v1515_v50, 0.0 }
 0x180   : > { %v3529_v60 = vadd.f32 %v3528_v58, %v3527_v51  ;;  %v3530_v22 = vpop.f32.mrb[58].mxu1  ;;  %v3467_v40 = vpop.f32.mrb[59].mxu0  ;;  %1603 = vadd.xlane.f32.xlu1 %v1602_v59 }
 0x181   : > { %v1423_v61 = vadd.f32 %v3465_v57, %v3933_v36  ;;  %v3468_v62 = vadd.f32 %v3467_v40, %v3466_v20  ;;  %v3531_v63 = vpop.f32.mrb[59].mxu1  ;;  %v1563_v57 = vld [vmem:[#allocation2 + $0x50] sm:$0xff]  ;;  %v1564_v20 = vld [vmem:[#allocation2 + $0x58] sm:$0xff]  ;;  %v1565_v40 = vld [vmem:[#allocation2 + $0x60] sm:$0xff] }
 0x182   : > { %v3532_v0 = vadd.f32 %v3531_v63, %v3530_v22 }
 0x183   : > { %v1426_v42 = vadd.f32 %v3468_v62, %v3935_v38  ;;  %v1520_v1 = vadd.f32 %v3529_v60, %v1423_v61  ;;  %v1566_v62 = vld [vmem:[#allocation2 + $0x68] sm:$0xff] }
 0x185   : > { %v3469_v2 = vpop.f32.mrb[60].mxu0  ;;  %1549 = vst.msk [vmem:[%s3946_s30 + $0x60] sm:$0xff] %vm1536_vm1, %v1520_v1  ;;  %v1605_v3 = vsel %vm1536_vm1, %v1520_v1, 0.0  ;;  %v1523_v5 = vadd.f32 %v3532_v0, %v1426_v42  ;;  %v1567_v1 = vld [vmem:[#allocation2 + $0x70] sm:$0xff] }
 0x186   : > { %v3533_v7 = vpop.f32.mrb[60].mxu1  ;;  %v3470_v8 = vpop.f32.mrb[61].mxu0  ;;  %1606 = vadd.xlane.f32.xlu0 %v1605_v3  ;;  %v1568_v3 = vld [vmem:[#allocation2 + $0x78] sm:$0xff] }
 0x187   : > { %v3471_v9 = vadd.f32 %v3470_v8, %v3469_v2  ;;  %v3534_v10 = vpop.f32.mrb[61].mxu1  ;;  %v3472_v36 = vpop.f32.mrb[62].mxu0  ;;  %1550 = vst.msk [vmem:[%s3946_s30 + $0x68] sm:$0xff] %vm1536_vm1, %v1523_v5  ;;  %v1608_v11 = vsel %vm1536_vm1, %v1523_v5, 0.0 }
 0x188   : > { %v3535_v38 = vadd.f32 %v3534_v10, %v3533_v7  ;;  %v3536_v12 = vpop.f32.mrb[62].mxu1  ;;  %v3473_v13 = vpop.f32.mrb[63].mxu0  ;;  %1609 = vadd.xlane.f32.xlu1 %v1608_v11 }
 0x189   : > { %v1431_v15 = vadd.f32 %v3471_v9, %v3937_v52  ;;  %v3474_v16 = vadd.f32 %v3473_v13, %v3472_v36  ;;  %v3537_v17 = vpop.f32.mrb[63].mxu1 }
 0x18a   : > { %v3538_v54 = vadd.f32 %v3537_v17, %v3536_v12 }
 0x18b   : > { %v1434_v18 = vadd.f32 %v3474_v16, %v3939_v55  ;;  %v1528_v19 = vadd.f32 %v3535_v38, %v1431_v15 }
 0x18d   : > { %1551 = vst.msk [vmem:[%s3946_s30 + $0x70] sm:$0xff] %vm1536_vm1, %v1528_v19  ;;  %v1611_v56 = vsel %vm1536_vm1, %v1528_v19, 0.0  ;;  %v1531_v21 = vadd.f32 %v3538_v54, %v1434_v18 }
 0x18e   : > { %1612 = vadd.xlane.f32.xlu0 %v1611_v56 }
 0x18f   : > { %1552 = vst.msk [vmem:[%s3946_s30 + $0x78] sm:$0xff] %vm1536_vm1, %v1531_v21  ;;  %v1614_v23 = vsel %vm1536_vm1, %v1531_v21, 0.0 }
 0x190   : > { %1615 = vadd.xlane.f32.xlu1 %v1614_v23 }
 0x1e3   : > { %v1571_v52 = vpop.xlane.xlu0 %1570 }
 0x1e4   : > { %v1617_v24 = vadd.f32 %v1571_v52, %v1553_v14 }
 0x1e6   : > { %1634 = vst.msk [vmem:[#allocation2] sm:$0xff] %vm1633_vm2, %v1617_v24 }
 0x1e7   : > { %v1574_v55 = vpop.xlane.xlu0 %1573 }
 0x1e8   : > { %v1618_v27 = vadd.f32 %v1574_v55, %v1554_v25 }
 0x1ea   : > { %1635 = vst.msk [vmem:[#allocation2 + $0x8] sm:$0xff] %vm1633_vm2, %v1618_v27 }
 0x1eb   : > { %v1577_v30 = vpop.xlane.xlu1 %1576 }
 0x1ec   : > { %v1619_v31 = vadd.f32 %v1577_v30, %v1555_v29 }
 0x1ee   : > { %1636 = vst.msk [vmem:[#allocation2 + $0x10] sm:$0xff] %vm1633_vm2, %v1619_v31 }
 0x1ef   : > { %v1580_v33 = vpop.xlane.xlu1 %1579 }
 0x1f0   : > { %v1620_v34 = vadd.f32 %v1580_v33, %v1556_v32 }
 0x1f2   : > { %1637 = vst.msk [vmem:[#allocation2 + $0x18] sm:$0xff] %vm1633_vm2, %v1620_v34 }
 0x1f3   : > { %v1583_v37 = vpop.xlane.xlu0 %1582 }
 0x1f4   : > { %v1621_v26 = vadd.f32 %v1583_v37, %v1557_v35 }
 0x1f5   : > { %v1586_v39 = vpop.xlane.xlu1 %1585 }
 0x1f6   : > { %1638 = vst.msk [vmem:[#allocation2 + $0x20] sm:$0xff] %vm1633_vm2, %v1621_v26  ;;  %v1622_v6 = vadd.f32 %v1586_v39, %v1558_v4 }
 0x1f8   : > { %1639 = vst.msk [vmem:[#allocation2 + $0x28] sm:$0xff] %vm1633_vm2, %v1622_v6 }
 0x1fb   : > { %v1589_v43 = vpop.xlane.xlu0 %1588 }
 0x1fc   : > { %v1623_v45 = vadd.f32 %v1589_v43, %v1559_v41 }
 0x1fd   : > { %v1592_v28 = vpop.xlane.xlu1 %1591 }
 0x1fe   : > { %1640 = vst.msk [vmem:[#allocation2 + $0x30] sm:$0xff] %vm1633_vm2, %v1623_v45  ;;  %v1624_v46 = vadd.f32 %v1592_v28, %v1560_v44 }
 0x200   : > { %1641 = vst.msk [vmem:[#allocation2 + $0x38] sm:$0xff] %vm1633_vm2, %v1624_v46 }
 0x203   : > { %v1595_v48 = vpop.xlane.xlu0 %1594 }
 0x204   : > { %v1625_v50 = vadd.f32 %v1595_v48, %v1561_v47 }
 0x205   : > { %v1598_v51 = vpop.xlane.xlu1 %1597 }
 0x206   : > { %1642 = vst.msk [vmem:[#allocation2 + $0x40] sm:$0xff] %vm1633_vm2, %v1625_v50  ;;  %v1626_v53 = vadd.f32 %v1598_v51, %v1562_v49 }
 0x208   : > { %1643 = vst.msk [vmem:[#allocation2 + $0x48] sm:$0xff] %vm1633_vm2, %v1626_v53 }
 0x20b   : > { %v1601_v58 = vpop.xlane.xlu0 %1600 }
 0x20c   : > { %v1627_v59 = vadd.f32 %v1601_v58, %v1563_v57 }
 0x20d   : > { %v1604_v60 = vpop.xlane.xlu1 %1603 }
 0x20e   : > { %1644 = vst.msk [vmem:[#allocation2 + $0x50] sm:$0xff] %vm1633_vm2, %v1627_v59  ;;  %v1628_v22 = vadd.f32 %v1604_v60, %v1564_v20 }
 0x210   : > { %1645 = vst.msk [vmem:[#allocation2 + $0x58] sm:$0xff] %vm1633_vm2, %v1628_v22 }
 0x213   : > { %v1607_v61 = vpop.xlane.xlu0 %1606 }
 0x214   : > { %v1629_v63 = vadd.f32 %v1607_v61, %v1565_v40 }
 0x215   : > { %v1610_v0 = vpop.xlane.xlu1 %1609 }
 0x216   : > { %1646 = vst.msk [vmem:[#allocation2 + $0x60] sm:$0xff] %vm1633_vm2, %v1629_v63  ;;  %v1630_v42 = vadd.f32 %v1610_v0, %v1566_v62 }
 0x218   : > { %1647 = vst.msk [vmem:[#allocation2 + $0x68] sm:$0xff] %vm1633_vm2, %v1630_v42 }
 0x21a   : > { %1654 = sbr.rel (!%p1650_p6) target bundleno = 1167 (0x48f), region = 44 }
 0x21b   : > { %v1613_v2 = vpop.xlane.xlu0 %1612 }
 0x21c   : > { %v1631_v5 = vadd.f32 %v1613_v2, %v1567_v1 }
 0x21d   : > { %v1616_v7 = vpop.xlane.xlu1 %1615 }
 0x21e   : > { %1648 = vst.msk [vmem:[#allocation2 + $0x70] sm:$0xff] %vm1633_vm2, %v1631_v5  ;;  %v1632_v8 = vadd.f32 %v1616_v7, %v1568_v3 }
 0x220   : > { %1649 = vst.msk [vmem:[#allocation2 + $0x78] sm:$0xff] %vm1633_vm2, %v1632_v8 }
 0x221   : > { %v1657_v9 = vld [vmem:[#allocation2 + $0x10] sm:$0xff]  ;;  %v1655_v10 = vld [vmem:[#allocation2] sm:$0xff]  ;;  %v1658_v36 = vld [vmem:[#allocation2 + $0x18] sm:$0xff]  ;;  %v3706_v11 = vmov 0  }
 0x222   : > { %3630 = vset.pattern.permute.xlu1 %v3706_v11  ;;  %3629 = vset.pattern.permute.xlu0 %v3706_v11  ;;  %v4030_v38 = vmul.f32 0.0078125, %v1657_v9  ;;  %v4032_v12 = vmul.f32 0.0078125, %v1655_v10  ;;  %v1656_v13 = vld [vmem:[#allocation2 + $0x8] sm:$0xff]  ;;  %v4036_v15 = vmul.f32 0.0078125, %v1658_v36  ;;  %v1659_v54 = vld [vmem:[#allocation2 + $0x20] sm:$0xff]  ;;  %v1662_v56 = vld [vmem:[#allocation2 + $0x38] sm:$0xff] }
 0x223   : > { %v4038_v16 = vmul.f32 0.0078125, %v1656_v13  ;;  %v1660_v17 = vld [vmem:[#allocation2 + $0x28] sm:$0xff]  ;;  %v4044_v19 = vmul.f32 0.0078125, %v1659_v54  ;;  %v1661_v21 = vld [vmem:[#allocation2 + $0x30] sm:$0xff]  ;;  %v4048_v23 = vmul.f32 0.0078125, %v1662_v56  ;;  %v1663_v24 = vld [vmem:[#allocation2 + $0x40] sm:$0xff] }
 0x224   : > { %5371 = vst [vmem:[#allocation3_spill] sm:$0xff] %v4030_v38  ;;  %5372 = vst [vmem:[#allocation4_spill] sm:$0xff] %v4032_v12  ;;  %1715 = vperm.xlu1 %3630, %v4030_v38   ;;  %1705 = vperm.xlu0 %3629, %v4032_v12   ;;  %v4042_v18 = vmul.f32 0.0078125, %v1660_v17  ;;  %v4050_v14 = vmul.f32 0.0078125, %v1661_v21  ;;  %v1664_v52 = vld [vmem:[#allocation2 + $0x48] sm:$0xff]  ;;  %v4056_v55 = vmul.f32 0.0078125, %v1663_v24 }
 0x225   : > { %5373 = vst [vmem:[#allocation5_spill] sm:$0xff] %v4036_v15  ;;  %5374 = vst [vmem:[#allocation6_spill] sm:$0xff] %v4038_v16  ;;  %v4054_v25 = vmul.f32 0.0078125, %v1664_v52  ;;  %v1666_v27 = vld [vmem:[#allocation2 + $0x58] sm:$0xff]  ;;  %v1665_v29 = vld [vmem:[#allocation2 + $0x50] sm:$0xff] }
 0x226   : > { %5375 = vst [vmem:[#allocation7_spill] sm:$0xff] %v4042_v18  ;;  %5376 = vst [vmem:[#allocation8_spill] sm:$0xff] %v4044_v19  ;;  %v4060_v30 = vmul.f32 0.0078125, %v1666_v27  ;;  %v4062_v31 = vmul.f32 0.0078125, %v1665_v29  ;;  %v1668_v32 = vld [vmem:[#allocation2 + $0x68] sm:$0xff]  ;;  %v1667_v33 = vld [vmem:[#allocation2 + $0x60] sm:$0xff] }
 0x227   : > { %5377 = vst [vmem:[#allocation9_spill] sm:$0xff] %v4048_v23  ;;  %5378 = vst [vmem:[#allocation10_spill] sm:$0xff] %v4050_v14  ;;  %v4066_v34 = vmul.f32 0.0078125, %v1668_v32  ;;  %v4068_v35 = vmul.f32 0.0078125, %v1667_v33  ;;  %v1670_v37 = vld [vmem:[#allocation2 + $0x78] sm:$0xff]  ;;  %v1669_v4 = vld [vmem:[#allocation2 + $0x70] sm:$0xff] }
 0x228   : > { %1720 = vperm.xlu1 %3630, %v4036_v15   ;;  %1710 = vperm.xlu0 %3629, %v4038_v16   ;;  %5379 = vst [vmem:[#allocation11_spill] sm:$0xff] %v4054_v25  ;;  %5380 = vst [vmem:[#allocation12_spill] sm:$0xff] %v4056_v55  ;;  %v4072_v26 = vmul.f32 0.0078125, %v1670_v37  ;;  %v4074_v39 = vmul.f32 0.0078125, %v1669_v4  ;;  %v1687_v6 = vld [vmem:[%s5326_s4] sm:$0xff]  ;;  %v1689_v41 = vld [vmem:[%s5326_s4 + $0x10] sm:$0xff] }
 0x229   : > { %5381 = vst [vmem:[#allocation13_spill] sm:$0xff] %v4060_v30  ;;  %5382 = vst [vmem:[#allocation14_spill] sm:$0xff] %v4062_v31  ;;  %v1688_v46 = vld [vmem:[%s5326_s4 + $0x8] sm:$0xff]  ;;  %v1690_v47 = vld [vmem:[%s5326_s4 + $0x18] sm:$0xff] }
 0x22a   : > { %5383 = vst [vmem:[#allocation15_spill] sm:$0xff] %v4066_v34  ;;  %5384 = vst [vmem:[#allocation16_spill] sm:$0xff] %v4068_v35  ;;  %v1691_v20 = vld [vmem:[%s5326_s4 + $0x20] sm:$0xff]  ;;  %v1692_v59 = vld [vmem:[%s5326_s4 + $0x28] sm:$0xff] }
 0x22b   : > { %5385 = vst [vmem:[#allocation17_spill] sm:$0xff] %v4072_v26  ;;  %5386 = vst [vmem:[#allocation18_spill] sm:$0xff] %v4074_v39  ;;  %v1693_v1 = vld [vmem:[%s5326_s4 + $0x30] sm:$0xff]  ;;  %v1694_v2 = vld [vmem:[%s5326_s4 + $0x38] sm:$0xff] }
 0x22c   : > { %1730 = vperm.xlu1 %3630, %v4042_v18   ;;  %1725 = vperm.xlu0 %3629, %v4044_v19   ;;  %v1695_v13 = vld [vmem:[%s5326_s4 + $0x40] sm:$0xff]  ;;  %v1696_v17 = vld [vmem:[%s5326_s4 + $0x48] sm:$0xff]  ;;  %v1697_v33 = vld [vmem:[%s5326_s4 + $0x50] sm:$0xff] }
 0x22d   : > { %v1698_v37 = vld [vmem:[%s5326_s4 + $0x58] sm:$0xff] }
 0x230   : > { %1740 = vperm.xlu1 %3630, %v4048_v23   ;;  %1735 = vperm.xlu0 %3629, %v4050_v14  }
 0x234   : > { %1750 = vperm.xlu1 %3630, %v4054_v25   ;;  %1745 = vperm.xlu0 %3629, %v4056_v55  }
 0x238   : > { %1760 = vperm.xlu1 %3630, %v4060_v30   ;;  %1755 = vperm.xlu0 %3629, %v4062_v31  }
 0x23c   : > { %1770 = vperm.xlu1 %3630, %v4066_v34   ;;  %1765 = vperm.xlu0 %3629, %v4068_v35  }
 0x240   : > { %1780 = vperm.xlu1 %3630, %v4072_v26   ;;  %1775 = vperm.xlu0 %3629, %v4074_v39  }
 0x2a3   : > { %v4084_v43 = vpop.permute.xlu1 %1715  ;;  %v4086_v44 = vpop.permute.xlu0 %1705 }
 0x2a4   : > { %v1783_v45 = vsub.f32 %v1687_v6, %v4086_v44  ;;  %v1785_v28 = vsub.f32 %v1689_v41, %v4084_v43 }
 0x2a6   : > { %v1799_v48 = vmul.f32 %v1783_v45, %v1783_v45  ;;  %v1801_v49 = vmul.f32 %v1785_v28, %v1785_v28 }
 0x2a7   : > { %v4096_v50 = vpop.permute.xlu1 %1720  ;;  %v4098_v51 = vpop.permute.xlu0 %1710 }
 0x2a8   : > { %v1815_v53 = vsel %vm1536_vm1, %v1799_v48, 0.0  ;;  %v1784_v57 = vsub.f32 %v1688_v46, %v4098_v51  ;;  %v1786_v58 = vsub.f32 %v1690_v47, %v4096_v50  ;;  %v1821_v60 = vsel %vm1536_vm1, %v1801_v49, 0.0  ;;  %v1699_v49 = vld [vmem:[%s5326_s4 + $0x60] sm:$0xff] }
 0x2a9   : > { %1816 = vadd.xlane.f32.xlu0 %v1815_v53  ;;  %v1700_v53 = vld [vmem:[%s5326_s4 + $0x68] sm:$0xff] }
 0x2aa   : > { %v1800_v22 = vmul.f32 %v1784_v57, %v1784_v57  ;;  %v1802_v62 = vmul.f32 %v1786_v58, %v1786_v58 }
 0x2ab   : > { %v4110_v40 = vpop.permute.xlu1 %1730  ;;  %v4112_v61 = vpop.permute.xlu0 %1725 }
 0x2ac   : > { %v1818_v63 = vsel %vm1536_vm1, %v1800_v22, 0.0  ;;  %v1787_v0 = vsub.f32 %v1691_v20, %v4112_v61  ;;  %v1788_v42 = vsub.f32 %v1692_v59, %v4110_v40  ;;  %v1824_v8 = vsel %vm1536_vm1, %v1802_v62, 0.0 }
 0x2ad   : > { %1822 = vadd.xlane.f32.xlu0 %v1821_v60  ;;  %1819 = vadd.xlane.f32.xlu1 %v1818_v63 }
 0x2ae   : > { %v1803_v3 = vmul.f32 %v1787_v0, %v1787_v0  ;;  %v1804_v10 = vmul.f32 %v1788_v42, %v1788_v42  ;;  %v3133_v0 = vld [vmem:[%s5326_s4 + $0x80] sm:$0xff]  ;;  %v1701_v42 = vld [vmem:[%s5326_s4 + $0x70] sm:$0xff] }
 0x2af   : > { %v4123_v5 = vpop.permute.xlu1 %1740  ;;  %v4125_v7 = vpop.permute.xlu0 %1735 }
 0x2b0   : > { %v1827_v9 = vsel %vm1536_vm1, %v1803_v3, 0.0  ;;  %v1789_v36 = vsub.f32 %v1693_v1, %v4125_v7  ;;  %v1790_v11 = vsub.f32 %v1694_v2, %v4123_v5  ;;  %v1830_v24 = vsel %vm1536_vm1, %v1804_v10, 0.0  ;;  %v1702_v1 = vld [vmem:[%s5326_s4 + $0x78] sm:$0xff] }
 0x2b1   : > { %1825 = vadd.xlane.f32.xlu0 %v1824_v8  ;;  %1828 = vadd.xlane.f32.xlu1 %v1827_v9  ;;  %v1896_v10 = vsub.f32 %v3133_v0, %v4086_v44 }
 0x2b2   : > { %v1805_v54 = vmul.f32 %v1789_v36, %v1789_v36  ;;  %v1806_v52 = vmul.f32 %v1790_v11, %v1790_v11 }
 0x2b3   : > { %v4137_v56 = vpop.permute.xlu1 %1750  ;;  %v4139_v21 = vpop.permute.xlu0 %1745 }
 0x2b4   : > { %v1833_v27 = vsel %vm1536_vm1, %v1805_v54, 0.0  ;;  %v1791_v29 = vsub.f32 %v1695_v13, %v4139_v21  ;;  %v1792_v32 = vsub.f32 %v1696_v17, %v4137_v56  ;;  %v1836_v45 = vsel %vm1536_vm1, %v1806_v52, 0.0  ;;  %v3135_v54 = vld [vmem:[%s5326_s4 + $0x90] sm:$0xff]  ;;  %v3134_v52 = vld [vmem:[%s5326_s4 + $0x88] sm:$0xff] }
 0x2b5   : > { %1831 = vadd.xlane.f32.xlu0 %v1830_v24  ;;  %1834 = vadd.xlane.f32.xlu1 %v1833_v27  ;;  %v1912_v27 = vmul.f32 %v1896_v10, %v1896_v10 }
 0x2b6   : > { %v1807_v4 = vmul.f32 %v1791_v29, %v1791_v29  ;;  %v1808_v46 = vmul.f32 %v1792_v32, %v1792_v32  ;;  %v1898_v29 = vsub.f32 %v3135_v54, %v4084_v43 }
 0x2b7   : > { %v4151_v6 = vpop.permute.xlu1 %1760  ;;  %v4153_v41 = vpop.permute.xlu0 %1755 }
 0x2b8   : > { %v1839_v28 = vsel %vm1536_vm1, %v1807_v4, 0.0  ;;  %v1793_v47 = vsub.f32 %v1697_v33, %v4153_v41  ;;  %v1794_v48 = vsub.f32 %v1698_v37, %v4151_v6  ;;  %v1842_v60 = vsel %vm1536_vm1, %v1808_v46, 0.0 }
 0x2b9   : > { %1837 = vadd.xlane.f32.xlu0 %v1836_v45  ;;  %1840 = vadd.xlane.f32.xlu1 %v1839_v28  ;;  %v1897_v4 = vsub.f32 %v3134_v52, %v4098_v51  ;;  %v3136_v45 = vld [vmem:[%s5326_s4 + $0x98] sm:$0xff]  ;;  %v3137_v28 = vld [vmem:[%s5326_s4 + $0xa0] sm:$0xff]  ;;  %v1914_v46 = vmul.f32 %v1898_v29, %v1898_v29  ;;  %v3142_v52 = vld [vmem:[%s5326_s4 + $0xc8] sm:$0xff] }
 0x2ba   : > { %v1809_v57 = vmul.f32 %v1793_v47, %v1793_v47  ;;  %v1810_v59 = vmul.f32 %v1794_v48, %v1794_v48  ;;  %v1899_v47 = vsub.f32 %v3136_v45, %v4096_v50  ;;  %v1905_v29 = vsub.f32 %v3142_v52, %v4137_v56  ;;  %v3144_v45 = vld [vmem:[%s5326_s4 + $0xd8] sm:$0xff]  ;;  %v4277_v52 = vld [vmem:[%s5326_s4 + $0x110] sm:$0xff] }
 0x2bb   : > { %v4165_v58 = vpop.permute.xlu1 %1770  ;;  %v4167_v20 = vpop.permute.xlu0 %1765  ;;  %v1934_v0 = vsel %vm1536_vm1, %v1914_v46, 0.0  ;;  %5388 = vst [vmem:[#allocation20_spill] sm:$0xff] %v4277_v52 }
 0x2bc   : > { %v1845_v22 = vsel %vm1536_vm1, %v1809_v57, 0.0  ;;  %v1795_v62 = vsub.f32 %v1699_v49, %v4167_v20  ;;  %v1796_v63 = vsub.f32 %v1700_v53, %v4165_v58  ;;  %v1848_v9 = vsel %vm1536_vm1, %v1810_v59, 0.0  ;;  %v3138_v59 = vld [vmem:[%s5326_s4 + $0xa8] sm:$0xff] }
 0x2bd   : > { %1843 = vadd.xlane.f32.xlu0 %v1842_v60  ;;  %1846 = vadd.xlane.f32.xlu1 %v1845_v22  ;;  %v1928_v49 = vsel %vm1536_vm1, %v1912_v27, 0.0  ;;  %v1913_v53 = vmul.f32 %v1897_v4, %v1897_v4  ;;  %v1900_v57 = vsub.f32 %v3137_v28, %v4112_v61  ;;  %v3139_v60 = vld [vmem:[%s5326_s4 + $0xb0] sm:$0xff]  ;;  %v1915_v22 = vmul.f32 %v1899_v47, %v1899_v47  ;;  %v3145_v28 = vld [vmem:[%s5326_s4 + $0xe0] sm:$0xff] }
 0x2be   : > { %v1811_v2 = vmul.f32 %v1795_v62, %v1795_v62  ;;  %v1812_v11 = vmul.f32 %v1796_v63, %v1796_v63  ;;  %v1901_v62 = vsub.f32 %v3138_v59, %v4110_v40  ;;  %v1921_v46 = vmul.f32 %v1905_v29, %v1905_v29  ;;  %v3146_v59 = vld [vmem:[%s5326_s4 + $0xe8] sm:$0xff] }
 0x2bf   : > { %v4182_v3 = vpop.permute.xlu1 %1780  ;;  %v4184_v8 = vpop.permute.xlu0 %1775  ;;  %v1931_v63 = vsel %vm1536_vm1, %v1913_v53, 0.0  ;;  %v1937_v10 = vsel %vm1536_vm1, %v1915_v22, 0.0  ;;  %v1907_v47 = vsub.f32 %v3144_v45, %v4151_v6  ;;  %v2011_v29 = vsub.f32 %v4277_v52, %v4084_v43  ;;  %v4293_v45 = vld [vmem:[%s5326_s4 + $0x118] sm:$0xff] }
 0x2c0   : > { %v1851_v36 = vsel %vm1536_vm1, %v1811_v2, 0.0  ;;  %v1797_v13 = vsub.f32 %v1701_v42, %v4184_v8  ;;  %v1798_v17 = vsub.f32 %v1702_v1, %v4182_v3  ;;  %v1854_v32 = vsel %vm1536_vm1, %v1812_v11, 0.0  ;;  %v3140_v2 = vld [vmem:[%s5326_s4 + $0xb8] sm:$0xff]  ;;  %5390 = vst [vmem:[#allocation22_spill] sm:$0xff] %v4293_v45 }
 0x2c1   : > { %1849 = vadd.xlane.f32.xlu0 %v1848_v9  ;;  %1852 = vadd.xlane.f32.xlu1 %v1851_v36  ;;  %v1916_v42 = vmul.f32 %v1900_v57, %v1900_v57  ;;  %v1902_v1 = vsub.f32 %v3139_v60, %v4125_v7  ;;  %v3141_v9 = vld [vmem:[%s5326_s4 + $0xc0] sm:$0xff]  ;;  %v1917_v36 = vmul.f32 %v1901_v62, %v1901_v62  ;;  %v3147_v60 = vld [vmem:[%s5326_s4 + $0xf0] sm:$0xff]  ;;  %v1955_v22 = vsel %vm1536_vm1, %v1921_v46, 0.0 }
 0x2c2   : > { %v1813_v24 = vmul.f32 %v1797_v13, %v1797_v13  ;;  %v1814_v37 = vmul.f32 %v1798_v17, %v1798_v17  ;;  %v1903_v17 = vsub.f32 %v3140_v2, %v4123_v5  ;;  %v1904_v54 = vsub.f32 %v3141_v9, %v4139_v21  ;;  %v4264_v2 = vld [vmem:[%s5326_s4 + $0x100] sm:$0xff]  ;;  %v3148_v9 = vld [vmem:[%s5326_s4 + $0xf8] sm:$0xff] }
 0x2c3   : > { %v1940_v11 = vsel %vm1536_vm1, %v1916_v42, 0.0  ;;  %v1918_v13 = vmul.f32 %v1902_v1, %v1902_v1  ;;  %v1943_v27 = vsel %vm1536_vm1, %v1917_v36, 0.0  ;;  %v1908_v57 = vsub.f32 %v3145_v28, %v4167_v20  ;;  %5387 = vst [vmem:[#allocation19_spill] sm:$0xff] %v4264_v2  ;;  %v4298_v28 = vld [vmem:[%s5326_s4 + $0x120] sm:$0xff] }
 0x2c4   : > { %v1857_v33 = vsel %vm1536_vm1, %v1813_v24, 0.0  ;;  %v1860_v48 = vsel %vm1536_vm1, %v1814_v37, 0.0  ;;  %v3143_v24 = vld [vmem:[%s5326_s4 + $0xd0] sm:$0xff]  ;;  %v1920_v37 = vmul.f32 %v1904_v54, %v1904_v54  ;;  %v1923_v62 = vmul.f32 %v1907_v47, %v1907_v47  ;;  %5391 = vst [vmem:[#allocation23_spill] sm:$0xff] %v4298_v28 }
 0x2c5   : > { %1855 = vadd.xlane.f32.xlu0 %v1854_v32  ;;  %1858 = vadd.xlane.f32.xlu1 %v1857_v33  ;;  %v1946_v32 = vsel %vm1536_vm1, %v1918_v13, 0.0  ;;  %v1919_v33 = vmul.f32 %v1903_v17, %v1903_v17  ;;  %v1906_v4 = vsub.f32 %v3143_v24, %v4153_v41  ;;  %v1909_v42 = vsub.f32 %v3146_v59, %v4165_v58  ;;  %v4282_v24 = vld [vmem:[%s5326_s4 + $0x108] sm:$0xff] }
 0x2c6   : > { %v1910_v1 = vsub.f32 %v3147_v60, %v4184_v8  ;;  %v2009_v36 = vsub.f32 %v4264_v2, %v4086_v44  ;;  %v1911_v54 = vsub.f32 %v3148_v9, %v4182_v3  ;;  %5389 = vst [vmem:[#allocation21_spill] sm:$0xff] %v4282_v24  ;;  %v2027_v46 = vmul.f32 %v2011_v29, %v2011_v29  ;;  %v4309_v59 = vld [vmem:[%s5326_s4 + $0x128] sm:$0xff]  ;;  %v4314_v60 = vld [vmem:[%s5326_s4 + $0x130] sm:$0xff]  ;;  %v4325_v9 = vld [vmem:[%s5326_s4 + $0x138] sm:$0xff] }
 0x2c7   : > { %v1922_v53 = vmul.f32 %v1906_v4, %v1906_v4  ;;  %v1925_v13 = vmul.f32 %v1909_v42, %v1909_v42  ;;  %v2010_v4 = vsub.f32 %v4282_v24, %v4098_v51  ;;  %v2012_v47 = vsub.f32 %v4293_v45, %v4096_v50  ;;  %5392 = vst [vmem:[#allocation24_spill] sm:$0xff] %v4309_v59  ;;  %v4341_v29 = vld [vmem:[%s5326_s4 + $0x148] sm:$0xff] }
 0x2c8   : > { %v1926_v17 = vmul.f32 %v1910_v1, %v1910_v1  ;;  %5393 = vst [vmem:[#allocation25_spill] sm:$0xff] %v4314_v60  ;;  %v2014_v42 = vsub.f32 %v4309_v59, %v4110_v40  ;;  %v2015_v1 = vsub.f32 %v4314_v60, %v4125_v7  ;;  %5394 = vst [vmem:[#allocation26_spill] sm:$0xff] %v4325_v9 }
 0x2c9   : > { %1861 = vadd.xlane.f32.xlu0 %v1860_v48  ;;  %1929 = vadd.xlane.f32.xlu1 %v1928_v49  ;;  %v1949_v48 = vsel %vm1536_vm1, %v1919_v33, 0.0  ;;  %v1952_v49 = vsel %vm1536_vm1, %v1920_v37, 0.0  ;;  %v1927_v37 = vmul.f32 %v1911_v54, %v1911_v54  ;;  %5396 = vst [vmem:[#allocation28_spill] sm:$0xff] %v4341_v29 }
 0x2ca   : > { %v1970_v33 = vsel %vm1536_vm1, %v1926_v17, 0.0  ;;  %v2030_v17 = vmul.f32 %v2014_v42, %v2014_v42  ;;  %v2031_v54 = vmul.f32 %v2015_v1, %v2015_v1  ;;  %v4373_v1 = vld [vmem:[%s5326_s4 + $0x168] sm:$0xff] }
 0x2cb   : > { %5400 = vst [vmem:[#allocation32_spill] sm:$0xff] %v4373_v1 }
 0x2cd   : > { %1932 = vadd.xlane.f32.xlu0 %v1931_v63  ;;  %1935 = vadd.xlane.f32.xlu1 %v1934_v0  ;;  %v1958_v63 = vsel %vm1536_vm1, %v1922_v53, 0.0  ;;  %v1924_v0 = vmul.f32 %v1908_v57, %v1908_v57  ;;  %v2026_v53 = vmul.f32 %v2010_v4, %v2010_v4  ;;  %v2013_v57 = vsub.f32 %v4298_v28, %v4112_v61 }
 0x2ce   : > { %v2056_v4 = vsel %vm1536_vm1, %v2030_v17, 0.0 }
 0x2d1   : > { %1938 = vadd.xlane.f32.xlu0 %v1937_v10  ;;  %1941 = vadd.xlane.f32.xlu1 %v1940_v11  ;;  %v1961_v10 = vsel %vm1536_vm1, %v1923_v62, 0.0  ;;  %v1964_v11 = vsel %vm1536_vm1, %v1924_v0, 0.0  ;;  %v2028_v62 = vmul.f32 %v2012_v47, %v2012_v47  ;;  %v2029_v0 = vmul.f32 %v2013_v57, %v2013_v57 }
 0x2d5   : > { %1944 = vadd.xlane.f32.xlu0 %v1943_v27  ;;  %1947 = vadd.xlane.f32.xlu1 %v1946_v32  ;;  %v2025_v27 = vmul.f32 %v2009_v36, %v2009_v36  ;;  %v1967_v32 = vsel %vm1536_vm1, %v1925_v13, 0.0  ;;  %v2050_v36 = vsel %vm1536_vm1, %v2028_v62, 0.0  ;;  %v2053_v13 = vsel %vm1536_vm1, %v2029_v0, 0.0 }
 0x2d9   : > { %1950 = vadd.xlane.f32.xlu0 %v1949_v48  ;;  %1953 = vadd.xlane.f32.xlu1 %v1952_v49  ;;  %v1973_v48 = vsel %vm1536_vm1, %v1927_v37, 0.0  ;;  %v2041_v49 = vsel %vm1536_vm1, %v2025_v27, 0.0  ;;  %v2018_v37 = vsub.f32 %v4341_v29, %v4137_v56 }
 0x2dd   : > { %1956 = vadd.xlane.f32.xlu0 %v1955_v22  ;;  %1959 = vadd.xlane.f32.xlu1 %v1958_v63  ;;  %v2047_v22 = vsel %vm1536_vm1, %v2027_v46, 0.0  ;;  %v2044_v63 = vsel %vm1536_vm1, %v2026_v53, 0.0  ;;  %v2059_v46 = vsel %vm1536_vm1, %v2031_v54, 0.0  ;;  %v4362_v53 = vld [vmem:[%s5326_s4 + $0x160] sm:$0xff] }
 0x2de   : > { %5399 = vst [vmem:[#allocation31_spill] sm:$0xff] %v4362_v53  ;;  %v2021_v42 = vsub.f32 %v4362_v53, %v4167_v20 }
 0x2e1   : > { %1962 = vadd.xlane.f32.xlu0 %v1961_v10  ;;  %1965 = vadd.xlane.f32.xlu1 %v1964_v11  ;;  %v4330_v10 = vld [vmem:[%s5326_s4 + $0x140] sm:$0xff]  ;;  %v2016_v11 = vsub.f32 %v4325_v9, %v4123_v5 }
 0x2e2   : > { %5395 = vst [vmem:[#allocation27_spill] sm:$0xff] %v4330_v10  ;;  %v2017_v27 = vsub.f32 %v4330_v10, %v4139_v21 }
 0x2e4   : > { %v2033_v47 = vmul.f32 %v2017_v27, %v2017_v27  ;;  %v2037_v27 = vmul.f32 %v2021_v42, %v2021_v42 }
 0x2e5   : > { %1968 = vadd.xlane.f32.xlu0 %v1967_v32  ;;  %1971 = vadd.xlane.f32.xlu1 %v1970_v33  ;;  %v4346_v32 = vld [vmem:[%s5326_s4 + $0x150] sm:$0xff]  ;;  %v2032_v33 = vmul.f32 %v2016_v11, %v2016_v11 }
 0x2e6   : > { %5397 = vst [vmem:[#allocation29_spill] sm:$0xff] %v4346_v32  ;;  %v2065_v62 = vsel %vm1536_vm1, %v2033_v47, 0.0 }
 0x2e7   : > { %v2062_v57 = vsel %vm1536_vm1, %v2032_v33, 0.0 }
 0x2e9   : > { %1974 = vadd.xlane.f32.xlu0 %v1973_v48  ;;  %2042 = vadd.xlane.f32.xlu1 %v2041_v49  ;;  %v2019_v48 = vsub.f32 %v4346_v32, %v4153_v41  ;;  %v4357_v49 = vld [vmem:[%s5326_s4 + $0x158] sm:$0xff] }
 0x2ea   : > { %5398 = vst [vmem:[#allocation30_spill] sm:$0xff] %v4357_v49  ;;  %v2020_v0 = vsub.f32 %v4357_v49, %v4151_v6 }
 0x2ec   : > { %v2036_v54 = vmul.f32 %v2020_v0, %v2020_v0  ;;  %v4404_v0 = vld [vmem:[%s5326_s4 + $0x188] sm:$0xff] }
 0x2ed   : > { %2045 = vadd.xlane.f32.xlu0 %v2044_v63  ;;  %2048 = vadd.xlane.f32.xlu1 %v2047_v22  ;;  %v2034_v22 = vmul.f32 %v2018_v37, %v2018_v37  ;;  %v2035_v63 = vmul.f32 %v2019_v48, %v2019_v48  ;;  %v4386_v37 = vld [vmem:[%s5326_s4 + $0x180] sm:$0xff]  ;;  %5403 = vst [vmem:[#allocation35_spill] sm:$0xff] %v4404_v0 }
 0x2ee   : > { %5401 = vst [vmem:[#allocation33_spill] sm:$0xff] %v4386_v37  ;;  %v2122_v47 = vsub.f32 %v4386_v37, %v4086_v44  ;;  %v2074_v48 = vsel %vm1536_vm1, %v2036_v54, 0.0  ;;  %v4415_v54 = vld [vmem:[%s5326_s4 + $0x198] sm:$0xff] }
 0x2ef   : > { %v2068_v11 = vsel %vm1536_vm1, %v2034_v22, 0.0  ;;  %v2071_v17 = vsel %vm1536_vm1, %v2035_v63, 0.0  ;;  %v4399_v63 = vld [vmem:[%s5326_s4 + $0x190] sm:$0xff]  ;;  %5404 = vst [vmem:[#allocation36_spill] sm:$0xff] %v4415_v54 }
 0x2f0   : > { %5402 = vst [vmem:[#allocation34_spill] sm:$0xff] %v4399_v63  ;;  %v2138_v44 = vmul.f32 %v2122_v47, %v2122_v47  ;;  %v2124_v42 = vsub.f32 %v4399_v63, %v4084_v43 }
 0x2f1   : > { %2051 = vadd.xlane.f32.xlu0 %v2050_v36  ;;  %2054 = vadd.xlane.f32.xlu1 %v2053_v13  ;;  %v3163_v36 = vld [vmem:[%s5326_s4 + $0x170] sm:$0xff]  ;;  %v2022_v13 = vsub.f32 %v4373_v1, %v4165_v58 }
 0x2f2   : > { %v2023_v33 = vsub.f32 %v3163_v36, %v4184_v8  ;;  %v2154_v43 = vsel %vm1536_vm1, %v2138_v44, 0.0 }
 0x2f4   : > { %v2039_v22 = vmul.f32 %v2023_v33, %v2023_v33  ;;  %v2140_v33 = vmul.f32 %v2124_v42, %v2124_v42 }
 0x2f5   : > { %2057 = vadd.xlane.f32.xlu0 %v2056_v4  ;;  %2060 = vadd.xlane.f32.xlu1 %v2059_v46  ;;  %v3164_v4 = vld [vmem:[%s5326_s4 + $0x178] sm:$0xff]  ;;  %v2038_v46 = vmul.f32 %v2022_v13, %v2022_v13 }
 0x2f7   : > { %v2080_v36 = vsel %vm1536_vm1, %v2038_v46, 0.0 }
 0x2f9   : > { %2063 = vadd.xlane.f32.xlu0 %v2062_v57  ;;  %2066 = vadd.xlane.f32.xlu1 %v2065_v62  ;;  %v2077_v57 = vsel %vm1536_vm1, %v2037_v27, 0.0  ;;  %v2024_v62 = vsub.f32 %v3164_v4, %v4182_v3  ;;  %v4420_v27 = vld [vmem:[%s5326_s4 + $0x1a0] sm:$0xff] }
 0x2fa   : > { %5405 = vst [vmem:[#allocation37_spill] sm:$0xff] %v4420_v27  ;;  %v2126_v47 = vsub.f32 %v4420_v27, %v4112_v61 }
 0x2fb   : > { %v2040_v13 = vmul.f32 %v2024_v62, %v2024_v62 }
 0x2fc   : > { %v2142_v44 = vmul.f32 %v2126_v47, %v2126_v47 }
 0x2fd   : > { %2069 = vadd.xlane.f32.xlu0 %v2068_v11  ;;  %2072 = vadd.xlane.f32.xlu1 %v2071_v17  ;;  %v2083_v11 = vsel %vm1536_vm1, %v2039_v22, 0.0  ;;  %v2123_v17 = vsub.f32 %v4404_v0, %v4098_v51  ;;  %v2086_v4 = vsel %vm1536_vm1, %v2040_v13, 0.0  ;;  %v2125_v51 = vsub.f32 %v4415_v54, %v4096_v50 }
 0x2fe   : > { %v2160_v22 = vsel %vm1536_vm1, %v2140_v33, 0.0 }
 0x2ff   : > { %v2139_v46 = vmul.f32 %v2123_v17, %v2123_v17  ;;  %v2141_v61 = vmul.f32 %v2125_v51, %v2125_v51 }
 0x301   : > { %2075 = vadd.xlane.f32.xlu0 %v2074_v48  ;;  %2078 = vadd.xlane.f32.xlu1 %v2077_v57  ;;  %v4431_v48 = vld [vmem:[%s5326_s4 + $0x1a8] sm:$0xff]  ;;  %v4436_v57 = vld [vmem:[%s5326_s4 + $0x1b0] sm:$0xff]  ;;  %v2157_v62 = vsel %vm1536_vm1, %v2139_v46, 0.0  ;;  %v2163_v17 = vsel %vm1536_vm1, %v2141_v61, 0.0  ;;  %v4484_v61 = vld [vmem:[%s5326_s4 + $0x1e0] sm:$0xff] }
 0x302   : > { %5406 = vst [vmem:[#allocation38_spill] sm:$0xff] %v4431_v48  ;;  %5407 = vst [vmem:[#allocation39_spill] sm:$0xff] %v4436_v57  ;;  %v2127_v50 = vsub.f32 %v4431_v48, %v4110_v40  ;;  %v2128_v42 = vsub.f32 %v4436_v57, %v4125_v7  ;;  %v2166_v7 = vsel %vm1536_vm1, %v2142_v44, 0.0  ;;  %v4468_v46 = vld [vmem:[%s5326_s4 + $0x1d0] sm:$0xff] }
 0x303   : > { %5411 = vst [vmem:[#allocation43_spill] sm:$0xff] %v4468_v46  ;;  %5413 = vst [vmem:[#allocation45_spill] sm:$0xff] %v4484_v61 }
 0x304   : > { %v2143_v40 = vmul.f32 %v2127_v50, %v2127_v50  ;;  %v2132_v50 = vsub.f32 %v4468_v46, %v4153_v41 }
 0x305   : > { %2081 = vadd.xlane.f32.xlu0 %v2080_v36  ;;  %2084 = vadd.xlane.f32.xlu1 %v2083_v11  ;;  %v4447_v36 = vld [vmem:[%s5326_s4 + $0x1b8] sm:$0xff]  ;;  %v4452_v11 = vld [vmem:[%s5326_s4 + $0x1c0] sm:$0xff] }
 0x306   : > { %5408 = vst [vmem:[#allocation40_spill] sm:$0xff] %v4447_v36  ;;  %5409 = vst [vmem:[#allocation41_spill] sm:$0xff] %v4452_v11  ;;  %v2129_v13 = vsub.f32 %v4447_v36, %v4123_v5  ;;  %v2130_v33 = vsub.f32 %v4452_v11, %v4139_v21  ;;  %v2169_v47 = vsel %vm1536_vm1, %v2143_v40, 0.0  ;;  %v2148_v40 = vmul.f32 %v2132_v50, %v2132_v50 }
 0x308   : > { %v2145_v5 = vmul.f32 %v2129_v13, %v2129_v13  ;;  %v2134_v13 = vsub.f32 %v4484_v61, %v4167_v20 }
 0x309   : > { %2087 = vadd.xlane.f32.xlu0 %v2086_v4  ;;  %2155 = vadd.xlane.f32.xlu1 %v2154_v43  ;;  %v2144_v43 = vmul.f32 %v2128_v42, %v2128_v42  ;;  %v4463_v4 = vld [vmem:[%s5326_s4 + $0x1c8] sm:$0xff] }
 0x30a   : > { %5410 = vst [vmem:[#allocation42_spill] sm:$0xff] %v4463_v4  ;;  %v2131_v51 = vsub.f32 %v4463_v4, %v4137_v56  ;;  %v2175_v56 = vsel %vm1536_vm1, %v2145_v5, 0.0  ;;  %v2150_v20 = vmul.f32 %v2134_v13, %v2134_v13 }
 0x30b   : > { %v2172_v21 = vsel %vm1536_vm1, %v2144_v43, 0.0 }
 0x30c   : > { %v2147_v44 = vmul.f32 %v2131_v51, %v2131_v51  ;;  %v2190_v50 = vsel %vm1536_vm1, %v2150_v20, 0.0 }
 0x30d   : > { %2158 = vadd.xlane.f32.xlu0 %v2157_v62  ;;  %2161 = vadd.xlane.f32.xlu1 %v2160_v22  ;;  %v2146_v22 = vmul.f32 %v2130_v33, %v2130_v33  ;;  %v4479_v62 = vld [vmem:[%s5326_s4 + $0x1d8] sm:$0xff] }
 0x30e   : > { %5412 = vst [vmem:[#allocation44_spill] sm:$0xff] %v4479_v62  ;;  %v2133_v41 = vsub.f32 %v4479_v62, %v4151_v6  ;;  %v2181_v43 = vsel %vm1536_vm1, %v2147_v44, 0.0  ;;  %v2184_v6 = vsel %vm1536_vm1, %v2148_v40, 0.0 }
 0x30f   : > { %v2178_v42 = vsel %vm1536_vm1, %v2146_v22, 0.0 }
 0x310   : > { %v2149_v5 = vmul.f32 %v2133_v41, %v2133_v41 }
 0x311   : > { %2164 = vadd.xlane.f32.xlu0 %v2163_v17  ;;  %2167 = vadd.xlane.f32.xlu1 %v2166_v7  ;;  %v4495_v17 = vld [vmem:[%s5326_s4 + $0x1e8] sm:$0xff]  ;;  %v3179_v7 = vld [vmem:[%s5326_s4 + $0x1f0] sm:$0xff] }
 0x312   : > { %5414 = vst [vmem:[#allocation46_spill] sm:$0xff] %v4495_v17  ;;  %v2135_v33 = vsub.f32 %v4495_v17, %v4165_v58  ;;  %v2136_v51 = vsub.f32 %v3179_v7, %v4184_v8  ;;  %v2187_v22 = vsel %vm1536_vm1, %v2149_v5, 0.0 }
 0x314   : > { %v2152_v58 = vmul.f32 %v2136_v51, %v2136_v51 }
 0x315   : > { %2170 = vadd.xlane.f32.xlu0 %v2169_v47  ;;  %2173 = vadd.xlane.f32.xlu1 %v2172_v21  ;;  %v3180_v47 = vld [vmem:[%s5326_s4 + $0x1f8] sm:$0xff] }
 0x316   : > { %v2137_v21 = vsub.f32 %v3180_v47, %v4182_v3  ;;  %v2196_v8 = vsel %vm1536_vm1, %v2152_v58, 0.0 }
 0x319   : > { %2176 = vadd.xlane.f32.xlu0 %v2175_v56  ;;  %2179 = vadd.xlane.f32.xlu1 %v2178_v42  ;;  %v2151_v56 = vmul.f32 %v2135_v33, %v2135_v33  ;;  %v2153_v42 = vmul.f32 %v2137_v21, %v2137_v21 }
 0x31b   : > { %v2193_v44 = vsel %vm1536_vm1, %v2151_v56, 0.0  ;;  %v2199_v40 = vsel %vm1536_vm1, %v2153_v42, 0.0 }
 0x31d   : > { %2182 = vadd.xlane.f32.xlu0 %v2181_v43  ;;  %2185 = vadd.xlane.f32.xlu1 %v2184_v6 }
 0x321   : > { %2188 = vadd.xlane.f32.xlu0 %v2187_v22  ;;  %2191 = vadd.xlane.f32.xlu1 %v2190_v50 }
 0x325   : > { %2194 = vadd.xlane.f32.xlu0 %v2193_v44  ;;  %2197 = vadd.xlane.f32.xlu1 %v2196_v8 }
 0x329   : > { %2200 = vadd.xlane.f32.xlu0 %v2199_v40 }
 0x336   : > { %v1817_v41 = vpop.xlane.xlu0 %1816 }
 0x33a   : > { %v1820_v3 = vpop.xlane.xlu1 %1819  ;;  %v1823_v13 = vpop.xlane.xlu0 %1822 }
 0x33e   : > { %v1829_v7 = vpop.xlane.xlu1 %1828  ;;  %v1826_v43 = vpop.xlane.xlu0 %1825 }
 0x342   : > { %v4514_v6 = vpop.xlane.xlu1 %1834  ;;  %v4516_v33 = vpop.xlane.xlu0 %1831 }
 0x346   : > { %v4518_v5 = vpop.xlane.xlu1 %1840  ;;  %v4520_v20 = vpop.xlane.xlu0 %1837 }
 0x34a   : > { %v4522_v51 = vpop.xlane.xlu1 %1846  ;;  %v4524_v47 = vpop.xlane.xlu0 %1843 }
 0x34e   : > { %v4526_v21 = vpop.xlane.xlu1 %1852  ;;  %v4528_v22 = vpop.xlane.xlu0 %1849 }
 0x352   : > { %v4530_v50 = vpop.xlane.xlu1 %1858  ;;  %v4532_v56 = vpop.xlane.xlu0 %1855 }
 0x356   : > { %v1930_v58 = vpop.xlane.xlu1 %1929  ;;  %v4534_v44 = vpop.xlane.xlu0 %1861 }
 0x357   : > { %5415 = vst [vmem:[#allocation47_spill] sm:$0xff] %v4534_v44  ;;  %v1976_v2 = vadd.f32 %v1930_v58, %v1817_v41 }
 0x35a   : > { %v1936_v8 = vpop.xlane.xlu1 %1935  ;;  %v1933_v42 = vpop.xlane.xlu0 %1932 }
 0x35b   : > { %v1978_v30 = vadd.f32 %v1936_v8, %v1823_v13  ;;  %v1977_v35 = vadd.f32 %v1933_v42, %v1820_v3 }
 0x35e   : > { %v1942_v40 = vpop.xlane.xlu1 %1941  ;;  %v1939_v17 = vpop.xlane.xlu0 %1938 }
 0x35f   : > { %v1980_v18 = vadd.f32 %v1942_v40, %v1829_v7  ;;  %v1979_v19 = vadd.f32 %v1939_v17, %v1826_v43 }
 0x362   : > { %v1948_v1 = vpop.xlane.xlu1 %1947  ;;  %v1945_v61 = vpop.xlane.xlu0 %1944 }
 0x363   : > { %v1982_v41 = vadd.f32 %v1948_v1, %v4514_v6  ;;  %v1981_v3 = vadd.f32 %v1945_v61, %v4516_v33 }
 0x366   : > { %v1954_v53 = vpop.xlane.xlu1 %1953  ;;  %v1951_v62 = vpop.xlane.xlu0 %1950 }
 0x36a   : > { %v4536_v49 = vpop.xlane.xlu1 %1959  ;;  %v4538_v46 = vpop.xlane.xlu0 %1956 }
 0x36e   : > { %v4540_v32 = vpop.xlane.xlu1 %1965  ;;  %v4542_v4 = vpop.xlane.xlu0 %1962 }
 0x372   : > { %v4544_v29 = vpop.xlane.xlu1 %1971  ;;  %v4546_v11 = vpop.xlane.xlu0 %1968 }
 0x376   : > { %v2043_v10 = vpop.xlane.xlu1 %2042  ;;  %v4548_v36 = vpop.xlane.xlu0 %1974 }
 0x377   : > { %5416 = vst [vmem:[#allocation48_spill] sm:$0xff] %v4548_v36  ;;  %v2089_v26 = vadd.f32 %v2043_v10, %v1976_v2 }
 0x37a   : > { %v2049_v9 = vpop.xlane.xlu1 %2048  ;;  %v2046_v57 = vpop.xlane.xlu0 %2045 }
 0x37b   : > { %v2091_v31 = vadd.f32 %v2049_v9, %v1978_v30  ;;  %v2090_v23 = vadd.f32 %v2046_v57, %v1977_v35 }
 0x37e   : > { %v2055_v60 = vpop.xlane.xlu1 %2054  ;;  %v2052_v48 = vpop.xlane.xlu0 %2051 }
 0x37f   : > { %v2093_v36 = vadd.f32 %v2055_v60, %v1980_v18  ;;  %v2092_v44 = vadd.f32 %v2052_v48, %v1979_v19  ;;  %v1984_v18 = vadd.f32 %v1954_v53, %v4518_v5  ;;  %v1986_v53 = vadd.f32 %v4536_v49, %v4522_v51 }
 0x380   : > { %v1988_v51 = vadd.f32 %v4540_v32, %v4526_v21 }
 0x382   : > { %v2061_v59 = vpop.xlane.xlu1 %2060  ;;  %v2058_v27 = vpop.xlane.xlu0 %2057 }
 0x383   : > { %v2095_v57 = vadd.f32 %v2061_v59, %v1982_v41  ;;  %v2094_v17 = vadd.f32 %v2058_v27, %v1981_v3  ;;  %v2234_v27 = vld [vmem:[%s5324_s2] sm:$0xff] }
 0x386   : > { %v2067_v28 = vpop.xlane.xlu1 %2066  ;;  %v2064_v54 = vpop.xlane.xlu0 %2063 }
 0x387   : > { %v2097_v60 = vadd.f32 %v2067_v28, %v1984_v18 }
 0x38a   : > { %v4550_v45 = vpop.xlane.xlu1 %2072  ;;  %v4552_v0 = vpop.xlane.xlu0 %2069 }
 0x38b   : > { %v2099_v6 = vadd.f32 %v4550_v45, %v1986_v53 }
 0x38e   : > { %v4554_v24 = vpop.xlane.xlu1 %2078  ;;  %v4556_v63 = vpop.xlane.xlu0 %2075 }
 0x38f   : > { %v2101_v32 = vadd.f32 %v4554_v24, %v1988_v51 }
 0x392   : > { %v4558_v52 = vpop.xlane.xlu1 %2084  ;;  %v4560_v37 = vpop.xlane.xlu0 %2081 }
 0x396   : > { %v2156_v34 = vpop.xlane.xlu1 %2155  ;;  %v4562_v39 = vpop.xlane.xlu0 %2087 }
 0x397   : > { %v2202_v25 = vadd.f32 %v2156_v34, %v2089_v26 }
 0x399   : > { %v2218_v55 = vmul.f32 0.0078125, %v2202_v25 }
 0x39a   : > { %v2162_v14 = vpop.xlane.xlu1 %2161  ;;  %v2159_v15 = vpop.xlane.xlu0 %2158 }
 0x39b   : > { %v2250_v16 = vadd.f32 1e-05, %v2218_v55  ;;  %v2204_v38 = vadd.f32 %v2162_v14, %v2091_v31  ;;  %v2203_v12 = vadd.f32 %v2159_v15, %v2090_v23 }
 0x39d   : > { %3631 = vrsqrt.f32 %v2250_v16  ;;  %v2220_v2 = vmul.f32 0.0078125, %v2204_v38  ;;  %v2219_v10 = vmul.f32 0.0078125, %v2203_v12  ;;  %v1983_v38 = vadd.f32 %v1951_v62, %v4520_v20 }
 0x39e   : > { %v2168_v34 = vpop.xlane.xlu1 %2167  ;;  %v2165_v30 = vpop.xlane.xlu0 %2164 }
 0x39f   : > { %v2252_v35 = vadd.f32 1e-05, %v2220_v2  ;;  %v2251_v25 = vadd.f32 1e-05, %v2219_v10  ;;  %v2206_v26 = vadd.f32 %v2168_v34, %v2093_v36  ;;  %v2205_v9 = vadd.f32 %v2165_v30, %v2092_v44  ;;  %v2238_v34 = vld [vmem:[%s5324_s2 + $0x20] sm:$0xff] }
 0x3a0   : > { %v2096_v1 = vadd.f32 %v2064_v54, %v1983_v38  ;;  %v1985_v36 = vadd.f32 %v4538_v46, %v4524_v47  ;;  %v2236_v46 = vld [vmem:[%s5324_s2 + $0x10] sm:$0xff]  ;;  %v1987_v47 = vadd.f32 %v4542_v4, %v4528_v22  ;;  %v1990_v30 = vadd.f32 %v4544_v29, %v4530_v50 }
 0x3a1   : > { %3633 = vrsqrt.f32 %v2252_v35  ;;  %v2222_v14 = vmul.f32 0.0078125, %v2206_v26  ;;  %v2221_v15 = vmul.f32 0.0078125, %v2205_v9  ;;  %v1989_v29 = vadd.f32 %v4546_v11, %v4532_v56  ;;  %v5417_v56 = vld [vmem:[#allocation47_spill] sm:$0xff] }
 0x3a2   : > { %3635 = vrsqrt.f32 %v2251_v25  ;;  %v2174_v12 = vpop.xlane.xlu1 %2173  ;;  %v2171_v16 = vpop.xlane.xlu0 %2170  ;;  %v2098_v5 = vadd.f32 %v4552_v0, %v1985_v36  ;;  %v2235_v0 = vld [vmem:[%s5324_s2 + $0x8] sm:$0xff]  ;;  %v2100_v21 = vadd.f32 %v4556_v63, %v1987_v47  ;;  %v2237_v63 = vld [vmem:[%s5324_s2 + $0x18] sm:$0xff]  ;;  %v2103_v50 = vadd.f32 %v4558_v52, %v1990_v30  ;;  %v2244_v47 = vld [vmem:[%s5324_s2 + $0x50] sm:$0xff] }
 0x3a3   : > { %v2254_v19 = vadd.f32 1e-05, %v2222_v14  ;;  %v2253_v23 = vadd.f32 1e-05, %v2221_v15  ;;  %v2208_v55 = vadd.f32 %v2174_v12, %v2095_v57  ;;  %v2207_v31 = vadd.f32 %v2171_v16, %v2094_v17  ;;  %v2240_v16 = vld [vmem:[%s5324_s2 + $0x30] sm:$0xff]  ;;  %v2239_v52 = vld [vmem:[%s5324_s2 + $0x28] sm:$0xff] }
 0x3a5   : > { %3637 = vrsqrt.f32 %v2254_v19  ;;  %v2224_v48 = vmul.f32 0.0078125, %v2208_v55  ;;  %v2223_v59 = vmul.f32 0.0078125, %v2207_v31  ;;  %v2102_v19 = vadd.f32 %v4560_v37, %v1989_v29  ;;  %v5418_v31 = vld [vmem:[#allocation48_spill] sm:$0xff]  ;;  %v5420_v29 = vld [vmem:[#allocation3_spill] sm:$0xff] }
 0x3a6   : > { %3639 = vrsqrt.f32 %v2253_v23  ;;  %v2180_v62 = vpop.xlane.xlu1 %2179  ;;  %v2177_v61 = vpop.xlane.xlu0 %2176 }
 0x3a7   : > { %v3632_v13 = vpop.eup %3631  ;;  %v2256_v7 = vadd.f32 1e-05, %v2224_v48  ;;  %v2255_v28 = vadd.f32 1e-05, %v2223_v59  ;;  %v2210_v54 = vadd.f32 %v2180_v62, %v2097_v60  ;;  %v2209_v43 = vadd.f32 %v2177_v61, %v2096_v1 }
 0x3a8   : > { %v4576_v33 = vmul.f32 %v3632_v13, %v2234_v27  ;;  %v1991_v60 = vadd.f32 %v5418_v31, %v5417_v56  ;;  %v2242_v13 = vld [vmem:[%s5324_s2 + $0x40] sm:$0xff]  ;;  %v2301_v31 = vld [vmem:[%s5325_s3 + $0x18] sm:$0xff] }
 0x3a9   : > { %3641 = vrsqrt.f32 %v2256_v7  ;;  %v2226_v20 = vmul.f32 0.0078125, %v2210_v54  ;;  %v2225_v49 = vmul.f32 0.0078125, %v2209_v43  ;;  %v2241_v54 = vld [vmem:[%s5324_s2 + $0x38] sm:$0xff] }
 0x3aa   : > { %3643 = vrsqrt.f32 %v2255_v28  ;;  %v2186_v58 = vpop.xlane.xlu1 %2185  ;;  %2348 = vperm.xlu1 %3630, %v4576_v33   ;;  %v2183_v45 = vpop.xlane.xlu0 %2182  ;;  %v2104_v36 = vadd.f32 %v4562_v39, %v1991_v60  ;;  %v5424_v60 = vld [vmem:[#allocation10_spill] sm:$0xff] }
 0x3ab   : > { %v3634_v44 = vpop.eup %3633  ;;  %v2258_v8 = vadd.f32 1e-05, %v2226_v20  ;;  %v2257_v42 = vadd.f32 1e-05, %v2225_v49  ;;  %v2212_v40 = vadd.f32 %v2186_v58, %v2099_v6  ;;  %v2211_v2 = vadd.f32 %v2183_v45, %v2098_v5  ;;  %v2243_v58 = vld [vmem:[%s5324_s2 + $0x48] sm:$0xff] }
 0x3ac   : > { %v3636_v10 = vpop.eup %3635  ;;  %v4592_v4 = vmul.f32 %v3634_v44, %v2236_v46 }
 0x3ad   : > { %3645 = vrsqrt.f32 %v2258_v8  ;;  %v2228_v22 = vmul.f32 0.0078125, %v2212_v40  ;;  %v2227_v41 = vmul.f32 0.0078125, %v2211_v2  ;;  %v4594_v3 = vmul.f32 %v3636_v10, %v2235_v0  ;;  %v2246_v40 = vld [vmem:[%s5324_s2 + $0x60] sm:$0xff]  ;;  %v2245_v2 = vld [vmem:[%s5324_s2 + $0x58] sm:$0xff] }
 0x3ae   : > { %3647 = vrsqrt.f32 %v2257_v42  ;;  %v2192_v35 = vpop.xlane.xlu1 %2191  ;;  %2358 = vperm.xlu1 %3630, %v4592_v4   ;;  %v2189_v24 = vpop.xlane.xlu0 %2188 }
 0x3af   : > { %v3638_v25 = vpop.eup %3637  ;;  %v2260_v26 = vadd.f32 1e-05, %v2228_v22  ;;  %v2259_v9 = vadd.f32 1e-05, %v2227_v41  ;;  %v2214_v57 = vadd.f32 %v2192_v35, %v2101_v32  ;;  %2353 = vperm.xlu0 %3629, %v4594_v3   ;;  %v2213_v17 = vadd.f32 %v2189_v24, %v2100_v21  ;;  %v2248_v41 = vld [vmem:[%s5324_s2 + $0x70] sm:$0xff] }
 0x3b0   : > { %v3640_v14 = vpop.eup %3639  ;;  %v4609_v15 = vmul.f32 %v3638_v25, %v2238_v34  ;;  %v2247_v34 = vld [vmem:[%s5324_s2 + $0x68] sm:$0xff] }
 0x3b1   : > { %3649 = vrsqrt.f32 %v2260_v26  ;;  %v2230_v18 = vmul.f32 0.0078125, %v2214_v57  ;;  %v2229_v38 = vmul.f32 0.0078125, %v2213_v17  ;;  %v4611_v12 = vmul.f32 %v3640_v14, %v2237_v63  ;;  %v5419_v25 = vld [vmem:[#allocation4_spill] sm:$0xff]  ;;  %v2298_v57 = vld [vmem:[%s5325_s3] sm:$0xff] }
 0x3b2   : > { %3651 = vrsqrt.f32 %v2259_v9  ;;  %v2198_v23 = vpop.xlane.xlu1 %2197  ;;  %v2195_v55 = vpop.xlane.xlu0 %2194  ;;  %v2314_v26 = vmul.f32 %v4576_v33, %v5419_v25  ;;  %v2249_v9 = vld [vmem:[%s5324_s2 + $0x78] sm:$0xff]  ;;  %v2300_v33 = vld [vmem:[%s5325_s3 + $0x10] sm:$0xff] }
 0x3b3   : > { %v3642_v11 = vpop.eup %3641  ;;  %v2262_v1 = vadd.f32 1e-05, %v2230_v18  ;;  %v2261_v48 = vadd.f32 1e-05, %v2229_v38  ;;  %v2216_v59 = vadd.f32 %v2198_v23, %v2103_v50  ;;  %2368 = vperm.xlu0 %3629, %v4609_v15   ;;  %2363 = vperm.xlu1 %3630, %v4611_v12   ;;  %v2215_v37 = vadd.f32 %v2195_v55, %v2102_v19  ;;  %v5421_v38 = vld [vmem:[#allocation6_spill] sm:$0xff]  ;;  %v2299_v19 = vld [vmem:[%s5325_s3 + $0x8] sm:$0xff] }
 0x3b4   : > { %v3644_v27 = vpop.eup %3643  ;;  %v4624_v53 = vmul.f32 %v3642_v11, %v2240_v16  ;;  %v2316_v50 = vmul.f32 %v4592_v4, %v5420_v29  ;;  %v2330_v18 = vsub.f32 %v2298_v57, %v2314_v26  ;;  %v2315_v16 = vmul.f32 %v4594_v3, %v5421_v38  ;;  %v5422_v23 = vld [vmem:[#allocation8_spill] sm:$0xff]  ;;  %v2302_v3 = vld [vmem:[%s5325_s3 + $0x20] sm:$0xff] }
 0x3b5   : > { %3653 = vrsqrt.f32 %v2262_v1  ;;  %v2232_v62 = vmul.f32 0.0078125, %v2216_v59  ;;  %v4627_v61 = vmul.f32 %v3644_v27, %v2239_v52  ;;  %v2231_v7 = vmul.f32 0.0078125, %v2215_v37  ;;  %v5423_v52 = vld [vmem:[#allocation5_spill] sm:$0xff]  ;;  %v2303_v37 = vld [vmem:[%s5325_s3 + $0x28] sm:$0xff] }
 0x3b6   : > { %3655 = vrsqrt.f32 %v2261_v48  ;;  %v2201_v28 = vpop.xlane.xlu0 %2200  ;;  %v2318_v55 = vmul.f32 %v4609_v15, %v5422_v23  ;;  %v2317_v4 = vmul.f32 %v4611_v12, %v5423_v52  ;;  %v2332_v11 = vsub.f32 %v2300_v33, %v2316_v50  ;;  %v5425_v48 = vld [vmem:[#allocation7_spill] sm:$0xff]  ;;  %v2304_v27 = vld [vmem:[%s5325_s3 + $0x30] sm:$0xff] }
 0x3b7   : > { %v3646_v43 = vpop.eup %3645  ;;  %v2264_v6 = vadd.f32 1e-05, %v2232_v62  ;;  %2378 = vperm.xlu0 %3629, %v4624_v53   ;;  %2373 = vperm.xlu1 %3630, %v4627_v61   ;;  %v2217_v39 = vadd.f32 %v2201_v28, %v2104_v36  ;;  %v2263_v20 = vadd.f32 1e-05, %v2231_v7  ;;  %v2331_v56 = vsub.f32 %v2299_v19, %v2315_v16  ;;  %v5426_v36 = vld [vmem:[#allocation12_spill] sm:$0xff]  ;;  %v3663_v23 = vld [vmem:[%s5326_s4] sm:$0xff] }
 0x3b8   : > { %v3648_v5 = vpop.eup %3647  ;;  %v2290_v49 = vmul.f32 %v3646_v43, %v2242_v13  ;;  %v2320_v1 = vmul.f32 %v4624_v53, %v5424_v60  ;;  %v2319_v15 = vmul.f32 %v4627_v61, %v5425_v48  ;;  %v2334_v59 = vsub.f32 %v2302_v3, %v2318_v55  ;;  %v5427_v13 = vld [vmem:[#allocation9_spill] sm:$0xff]  ;;  %v2306_v61 = vld [vmem:[%s5325_s3 + $0x40] sm:$0xff]  ;;  %v5428_v43 = vld [vmem:[#allocation14_spill] sm:$0xff] }
 0x3b9   : > { %3657 = vrsqrt.f32 %v2264_v6  ;;  %v2233_v46 = vmul.f32 0.0078125, %v2217_v39  ;;  %v2289_v51 = vmul.f32 %v3648_v5, %v2241_v54  ;;  %v2333_v12 = vsub.f32 %v2301_v31, %v2317_v4  ;;  %v2305_v54 = vld [vmem:[%s5325_s3 + $0x38] sm:$0xff]  ;;  %v5429_v39 = vld [vmem:[#allocation11_spill] sm:$0xff]  ;;  %v5436_v3 = vld [vmem:[#allocation33_spill] sm:$0xff] }
 0x3ba   : > { %3659 = vrsqrt.f32 %v2263_v20  ;;  %v2322_v62 = vmul.f32 %v2290_v49, %v5426_v36  ;;  %v2336_v53 = vsub.f32 %v2304_v27, %v2320_v1  ;;  %v2335_v28 = vsub.f32 %v2303_v37, %v2319_v15  ;;  %v3664_v52 = vld [vmem:[%s5326_s4 + $0x80] sm:$0xff]  ;;  %v3184_v60 = vld [vmem:[%s5326_s4 + $0x98] sm:$0xff]  ;;  %v3665_v1 = vld [vmem:[%s5326_s4 + $0x10] sm:$0xff] }
 0x3bb   : > { %v3650_v45 = vpop.eup %3649  ;;  %v2265_v0 = vadd.f32 1e-05, %v2233_v46  ;;  %2388 = vperm.xlu0 %3629, %v2290_v49   ;;  %2383 = vperm.xlu1 %3630, %v2289_v51   ;;  %v2321_v7 = vmul.f32 %v2289_v51, %v5427_v13  ;;  %v2308_v46 = vld [vmem:[%s5325_s3 + $0x50] sm:$0xff]  ;;  %v2307_v51 = vld [vmem:[%s5325_s3 + $0x48] sm:$0xff]  ;;  %v5438_v37 = vld [vmem:[#allocation34_spill] sm:$0xff] }
 0x3bc   : > { %v3652_v44 = vpop.eup %3651  ;;  %v2292_v8 = vmul.f32 %v3650_v45, %v2244_v47  ;;  %v2338_v20 = vsub.f32 %v2306_v61, %v2322_v62  ;;  %v5430_v47 = vld [vmem:[#allocation16_spill] sm:$0xff]  ;;  %v5431_v45 = vld [vmem:[#allocation13_spill] sm:$0xff]  ;;  %v3185_v62 = vld [vmem:[%s5326_s4 + $0xa0] sm:$0xff] }
 0x3bd   : > { %3661 = vrsqrt.f32 %v2265_v0  ;;  %v2291_v42 = vmul.f32 %v3652_v44, %v2243_v58  ;;  %v2337_v49 = vsub.f32 %v2305_v54, %v2321_v7  ;;  %v3666_v15 = vld [vmem:[%s5326_s4 + $0x90] sm:$0xff]  ;;  %v3667_v13 = vld [vmem:[%s5326_s4 + $0x8] sm:$0xff]  ;;  %v5440_v54 = vld [vmem:[#allocation35_spill] sm:$0xff] }
 0x3be   : > { %v2324_v6 = vmul.f32 %v2292_v8, %v5428_v43 }
 0x3bf   : > { %v3654_v10 = vpop.eup %3653  ;;  %2398 = vperm.xlu0 %3629, %v2292_v8   ;;  %2393 = vperm.xlu1 %3630, %v2291_v42   ;;  %v2323_v5 = vmul.f32 %v2291_v42, %v5429_v39  ;;  %v2310_v42 = vld [vmem:[%s5325_s3 + $0x60] sm:$0xff] }
 0x3c0   : > { %v3656_v32 = vpop.eup %3655  ;;  %v2294_v21 = vmul.f32 %v3654_v10, %v2246_v40  ;;  %v2340_v44 = vsub.f32 %v2308_v46, %v2324_v6  ;;  %v2309_v40 = vld [vmem:[%s5325_s3 + $0x58] sm:$0xff]  ;;  %v3186_v6 = vld [vmem:[%s5326_s4 + $0xa8] sm:$0xff] }
 0x3c1   : > { %v2293_v22 = vmul.f32 %v3656_v32, %v2245_v2  ;;  %v2339_v8 = vsub.f32 %v2307_v51, %v2323_v5  ;;  %v5432_v2 = vld [vmem:[#allocation18_spill] sm:$0xff]  ;;  %v5433_v32 = vld [vmem:[#allocation15_spill] sm:$0xff] }
 0x3c2   : > { %v2326_v58 = vmul.f32 %v2294_v21, %v5430_v47  ;;  %v5441_v51 = vld [vmem:[#allocation22_spill] sm:$0xff] }
 0x3c3   : > { %v3658_v30 = vpop.eup %3657  ;;  %2408 = vperm.xlu0 %3629, %v2294_v21   ;;  %2403 = vperm.xlu1 %3630, %v2293_v22   ;;  %v2325_v0 = vmul.f32 %v2293_v22, %v5431_v45  ;;  %v2312_v22 = vld [vmem:[%s5325_s3 + $0x70] sm:$0xff] }
 0x3c4   : > { %v3660_v35 = vpop.eup %3659  ;;  %v2296_v24 = vmul.f32 %v3658_v30, %v2248_v41  ;;  %v2311_v30 = vld [vmem:[%s5325_s3 + $0x68] sm:$0xff] }
 0x3c5   : > { %v2295_v63 = vmul.f32 %v3660_v35, %v2247_v34  ;;  %v2342_v34 = vsub.f32 %v2310_v42, %v2326_v58  ;;  %v2341_v21 = vsub.f32 %v2309_v40, %v2325_v0  ;;  %v5434_v35 = vld [vmem:[#allocation17_spill] sm:$0xff]  ;;  %v5442_v58 = vld [vmem:[#allocation36_spill] sm:$0xff]  ;;  %v5443_v40 = vld [vmem:[#allocation23_spill] sm:$0xff] }
 0x3c6   : > { %v2328_v10 = vmul.f32 %v2296_v24, %v5432_v2  ;;  %v3187_v0 = vld [vmem:[%s5326_s4 + $0xb0] sm:$0xff] }
 0x3c7   : > { %v3662_v17 = vpop.eup %3661  ;;  %2418 = vperm.xlu0 %3629, %v2296_v24   ;;  %2413 = vperm.xlu1 %3630, %v2295_v63   ;;  %v2327_v41 = vmul.f32 %v2295_v63, %v5433_v32  ;;  %v2313_v24 = vld [vmem:[%s5325_s3 + $0x78] sm:$0xff] }
 0x3c8   : > { %v2297_v14 = vmul.f32 %v3662_v17, %v2249_v9  ;;  %v2344_v26 = vsub.f32 %v2312_v22, %v2328_v10  ;;  %v5444_v10 = vld [vmem:[#allocation37_spill] sm:$0xff] }
 0x3c9   : > { %v2343_v9 = vsub.f32 %v2311_v30, %v2327_v41  ;;  %v3188_v41 = vld [vmem:[%s5326_s4 + $0xb8] sm:$0xff]  ;;  %v5445_v30 = vld [vmem:[#allocation24_spill] sm:$0xff] }
 0x3ca   : > { %v2329_v25 = vmul.f32 %v2297_v14, %v5434_v35 }
 0x3cb   : > { %2444 = vperm.xlu0 %3629, %v2330_v18   ;;  %2423 = vperm.xlu1 %3630, %v2297_v14   ;;  %v3182_v14 = vld [vmem:[%s5326_s4 + $0x88] sm:$0xff] }
 0x3cc   : > { %v2345_v63 = vsub.f32 %v2313_v24, %v2329_v25  ;;  %v5446_v25 = vld [vmem:[#allocation38_spill] sm:$0xff]  ;;  %v3671_v24 = vld [vmem:[%s5326_s4 + $0x30] sm:$0xff] }
 0x3cf   : > { %2454 = vperm.xlu0 %3629, %v2332_v11   ;;  %2449 = vperm.xlu1 %3630, %v2331_v56   ;;  %v5435_v11 = vld [vmem:[#allocation19_spill] sm:$0xff] }
 0x3d3   : > { %2464 = vperm.xlu0 %3629, %v2334_v59   ;;  %2459 = vperm.xlu1 %3630, %v2333_v12   ;;  %v5437_v12 = vld [vmem:[#allocation20_spill] sm:$0xff] }
 0x3d7   : > { %2474 = vperm.xlu0 %3629, %v2336_v53   ;;  %2469 = vperm.xlu1 %3630, %v2335_v28   ;;  %v5439_v28 = vld [vmem:[#allocation21_spill] sm:$0xff] }
 0x3db   : > { %2484 = vperm.xlu0 %3629, %v2338_v20   ;;  %2479 = vperm.xlu1 %3630, %v2337_v49   ;;  %v3668_v20 = vld [vmem:[%s5326_s4 + $0x18] sm:$0xff] }
 0x3df   : > { %2494 = vperm.xlu0 %3629, %v2340_v44   ;;  %2489 = vperm.xlu1 %3630, %v2339_v8   ;;  %v3669_v44 = vld [vmem:[%s5326_s4 + $0x20] sm:$0xff] }
 0x3e3   : > { %2504 = vperm.xlu0 %3629, %v2342_v34   ;;  %2499 = vperm.xlu1 %3630, %v2341_v21   ;;  %v3670_v34 = vld [vmem:[%s5326_s4 + $0x28] sm:$0xff] }
 0x3e7   : > { %2514 = vperm.xlu0 %3629, %v2344_v26   ;;  %2509 = vperm.xlu1 %3630, %v2343_v9   ;;  %v3189_v9 = vld [vmem:[%s5326_s4 + $0xc0] sm:$0xff] }
 0x3eb   : > { %2519 = vperm.xlu1 %3630, %v2345_v63  }
 0x429   : > { %v2349_v57 = vpop.permute.xlu1 %2348 }
 0x42a   : > { %v4735_v55 = vmul.f32 %v3663_v23, %v2349_v57  ;;  %v4740_v4 = vmul.f32 %v3664_v52, %v2349_v57  ;;  %v4743_v56 = vmul.f32 %v5435_v11, %v2349_v57  ;;  %v4746_v31 = vmul.f32 %v5436_v3, %v2349_v57  ;;  %v3672_v52 = vld [vmem:[%s5326_s4 + $0x38] sm:$0xff] }
 0x42d   : > { %v2359_v17 = vpop.permute.xlu1 %2358 }
 0x42e   : > { %v2354_v29 = vpop.permute.xlu0 %2353  ;;  %v4754_v48 = vmul.f32 %v3665_v1, %v2359_v17  ;;  %v4759_v59 = vmul.f32 %v3666_v15, %v2359_v17  ;;  %v4762_v27 = vmul.f32 %v5437_v12, %v2359_v17  ;;  %v4765_v36 = vmul.f32 %v5438_v37, %v2359_v17  ;;  %v5447_v17 = vld [vmem:[#allocation25_spill] sm:$0xff]  ;;  %v5450_v15 = vld [vmem:[#allocation40_spill] sm:$0xff]  ;;  %v3673_v37 = vld [vmem:[%s5326_s4 + $0x40] sm:$0xff] }
 0x42f   : > { %v4773_v7 = vmul.f32 %v3667_v13, %v2354_v29  ;;  %v4775_v53 = vmul.f32 %v3182_v14, %v2354_v29  ;;  %v4778_v61 = vmul.f32 %v5439_v28, %v2354_v29  ;;  %v4781_v43 = vmul.f32 %v5440_v54, %v2354_v29  ;;  %v3191_v12 = vld [vmem:[%s5326_s4 + $0xd0] sm:$0xff]  ;;  %v5451_v28 = vld [vmem:[#allocation27_spill] sm:$0xff] }
 0x432   : > { %v2364_v50 = vpop.permute.xlu1 %2363  ;;  %v2369_v18 = vpop.permute.xlu0 %2368 }
 0x433   : > { %v4789_v49 = vmul.f32 %v3668_v20, %v2364_v50  ;;  %v4791_v46 = vmul.f32 %v3184_v60, %v2364_v50  ;;  %v4794_v47 = vmul.f32 %v5441_v51, %v2364_v50  ;;  %v4797_v45 = vmul.f32 %v5442_v58, %v2364_v50  ;;  %v5448_v50 = vld [vmem:[#allocation39_spill] sm:$0xff]  ;;  %v5449_v60 = vld [vmem:[#allocation26_spill] sm:$0xff]  ;;  %v3674_v51 = vld [vmem:[%s5326_s4 + $0x48] sm:$0xff] }
 0x434   : > { %v4805_v8 = vmul.f32 %v3669_v44, %v2369_v18  ;;  %v4807_v42 = vmul.f32 %v3185_v62, %v2369_v18  ;;  %v4810_v2 = vmul.f32 %v5443_v40, %v2369_v18  ;;  %v4813_v32 = vmul.f32 %v5444_v10, %v2369_v18  ;;  %v5453_v44 = vld [vmem:[#allocation28_spill] sm:$0xff]  ;;  %v5454_v10 = vld [vmem:[#allocation42_spill] sm:$0xff] }
 0x436   : > { %v2374_v38 = vpop.permute.xlu1 %2373  ;;  %v2379_v16 = vpop.permute.xlu0 %2378 }
 0x437   : > { %v4821_v21 = vmul.f32 %v3670_v34, %v2374_v38  ;;  %v4823_v22 = vmul.f32 %v3186_v6, %v2374_v38  ;;  %v4826_v35 = vmul.f32 %v5445_v30, %v2374_v38  ;;  %v4829_v26 = vmul.f32 %v5446_v25, %v2374_v38  ;;  %v3190_v38 = vld [vmem:[%s5326_s4 + $0xc8] sm:$0xff]  ;;  %v5452_v6 = vld [vmem:[#allocation41_spill] sm:$0xff] }
 0x438   : > { %v4837_v63 = vmul.f32 %v3671_v24, %v2379_v16  ;;  %v4839_v57 = vmul.f32 %v3187_v0, %v2379_v16  ;;  %v4842_v29 = vmul.f32 %v5447_v17, %v2379_v16  ;;  %v4845_v18 = vmul.f32 %v5448_v50, %v2379_v16  ;;  %v3675_v34 = vld [vmem:[%s5326_s4 + $0x50] sm:$0xff]  ;;  %v5456_v17 = vld [vmem:[#allocation43_spill] sm:$0xff] }
 0x43a   : > { %v2384_v33 = vpop.permute.xlu1 %2383  ;;  %v2389_v19 = vpop.permute.xlu0 %2388 }
 0x43b   : > { %v4853_v11 = vmul.f32 %v3672_v52, %v2384_v33  ;;  %v4855_v3 = vmul.f32 %v3188_v41, %v2384_v33  ;;  %v4858_v1 = vmul.f32 %v5449_v60, %v2384_v33  ;;  %v4861_v16 = vmul.f32 %v5450_v15, %v2384_v33  ;;  %v3192_v33 = vld [vmem:[%s5326_s4 + $0xd8] sm:$0xff] }
 0x43c   : > { %v4869_v62 = vmul.f32 %v3673_v37, %v2389_v19  ;;  %v4871_v13 = vmul.f32 %v3189_v9, %v2389_v19  ;;  %v4874_v54 = vmul.f32 %v5451_v28, %v2389_v19  ;;  %v4877_v20 = vmul.f32 %v5452_v6, %v2389_v19  ;;  %v3193_v19 = vld [vmem:[%s5326_s4 + $0xe0] sm:$0xff]  ;;  %v5455_v9 = vld [vmem:[#allocation29_spill] sm:$0xff]  ;;  %v3676_v60 = vld [vmem:[%s5326_s4 + $0x58] sm:$0xff] }
 0x43d   : > { %v5459_v37 = vld [vmem:[#allocation30_spill] sm:$0xff]  ;;  %v5461_v6 = vld [vmem:[#allocation44_spill] sm:$0xff] }
 0x43e   : > { %v2394_v39 = vpop.permute.xlu1 %2393  ;;  %v2399_v5 = vpop.permute.xlu0 %2398 }
 0x43f   : > { %v4885_v58 = vmul.f32 %v3674_v51, %v2394_v39  ;;  %v4887_v0 = vmul.f32 %v3190_v38, %v2394_v39  ;;  %v4890_v40 = vmul.f32 %v5453_v44, %v2394_v39  ;;  %v4893_v41 = vmul.f32 %v5454_v10, %v2394_v39  ;;  %v3194_v39 = vld [vmem:[%s5326_s4 + $0xe8] sm:$0xff]  ;;  %v3195_v51 = vld [vmem:[%s5326_s4 + $0xf0] sm:$0xff] }
 0x440   : > { %v4901_v30 = vmul.f32 %v3675_v34, %v2399_v5  ;;  %v4903_v25 = vmul.f32 %v3191_v12, %v2399_v5  ;;  %v4906_v24 = vmul.f32 %v5455_v9, %v2399_v5  ;;  %v4909_v50 = vmul.f32 %v5456_v17, %v2399_v5  ;;  %v3227_v44 = vld [vmem:[%s5326_s4 + $0x170] sm:$0xff]  ;;  %v5464_v9 = vld [vmem:[#allocation31_spill] sm:$0xff] }
 0x441   : > { %v3259_v10 = vld [vmem:[%s5326_s4 + $0x1f0] sm:$0xff] }
 0x442   : > { %v2404_v14 = vpop.permute.xlu1 %2403  ;;  %v2409_v23 = vpop.permute.xlu0 %2408 }
 0x443   : > { %v4917_v15 = vmul.f32 %v3676_v60, %v2404_v14  ;;  %v4919_v12 = vmul.f32 %v3192_v33, %v2404_v14  ;;  %v4922_v28 = vmul.f32 %v5459_v37, %v2404_v14  ;;  %v4925_v5 = vmul.f32 %v5461_v6, %v2404_v14  ;;  %v3677_v33 = vld [vmem:[%s5326_s4 + $0x60] sm:$0xff]  ;;  %v5466_v60 = vld [vmem:[#allocation45_spill] sm:$0xff]  ;;  %v3678_v6 = vld [vmem:[%s5326_s4 + $0x68] sm:$0xff] }
 0x444   : > { %v4939_v34 = vmul.f32 %v3677_v33, %v2409_v23  ;;  %v4941_v14 = vmul.f32 %v3193_v19, %v2409_v23  ;;  %v4944_v17 = vmul.f32 %v5464_v9, %v2409_v23  ;;  %v4947_v37 = vmul.f32 %v5466_v60, %v2409_v23  ;;  %v5472_v33 = vld [vmem:[#allocation46_spill] sm:$0xff] }
 0x445   : > { %5457 = vst [vmem:[#allocation47_spill] sm:$0xff] %v4917_v15  ;;  %5458 = vst [vmem:[#allocation48_spill] sm:$0xff] %v4919_v12  ;;  %v5470_v12 = vld [vmem:[#allocation32_spill] sm:$0xff]  ;;  %v3196_v9 = vld [vmem:[%s5326_s4 + $0xf8] sm:$0xff] }
 0x446   : > { %v2414_v38 = vpop.permute.xlu1 %2413  ;;  %v2419_v52 = vpop.permute.xlu0 %2418  ;;  %5460 = vst [vmem:[#allocation4_spill] sm:$0xff] %v4922_v28  ;;  %5462 = vst [vmem:[#allocation3_spill] sm:$0xff] %v4925_v5  ;;  %v3228_v23 = vld [vmem:[%s5326_s4 + $0x178] sm:$0xff] }
 0x447   : > { %5463 = vst [vmem:[#allocation6_spill] sm:$0xff] %v4941_v14  ;;  %5465 = vst [vmem:[#allocation8_spill] sm:$0xff] %v4944_v17  ;;  %v4952_v5 = vmul.f32 %v3678_v6, %v2414_v38  ;;  %v4954_v28 = vmul.f32 %v3194_v39, %v2414_v38  ;;  %v4957_v15 = vmul.f32 %v5470_v12, %v2414_v38  ;;  %v3260_v60 = vld [vmem:[%s5326_s4 + $0x1f8] sm:$0xff]  ;;  %v3679_v12 = vld [vmem:[%s5326_s4 + $0x70] sm:$0xff] }
 0x448   : > { %5467 = vst [vmem:[#allocation5_spill] sm:$0xff] %v4947_v37  ;;  %v4960_v19 = vmul.f32 %v5472_v33, %v2414_v38  ;;  %v4974_v38 = vmul.f32 %v3679_v12, %v2419_v52  ;;  %v4976_v33 = vmul.f32 %v3195_v51, %v2419_v52  ;;  %v3680_v14 = vld [vmem:[%s5326_s4 + $0x78] sm:$0xff] }
 0x449   : > { %5468 = vst [vmem:[#allocation10_spill] sm:$0xff] %v4952_v5  ;;  %5469 = vst [vmem:[#allocation7_spill] sm:$0xff] %v4954_v28 }
 0x44a   : > { %5471 = vst [vmem:[#allocation12_spill] sm:$0xff] %v4957_v15  ;;  %5473 = vst [vmem:[#allocation9_spill] sm:$0xff] %v4960_v19  ;;  %v2424_v39 = vpop.permute.xlu1 %2423  ;;  %v2445_v6 = vpop.permute.xlu0 %2444  ;;  %v4978_v19 = vmul.f32 %v3227_v44, %v2419_v52  ;;  %v4980_v15 = vmul.f32 %v3259_v10, %v2419_v52 }
 0x44b   : > { %v2522_v28 = vadd.f32 %v2445_v6, %v4735_v55  ;;  %v2634_v5 = vadd.f32 %v4740_v4, %v2445_v6  ;;  %v2746_v37 = vadd.f32 %v4743_v56, %v2445_v6  ;;  %v2858_v17 = vadd.f32 %v4746_v31, %v2445_v6 }
 0x44c   : > { %5474 = vst [vmem:[#allocation14_spill] sm:$0xff] %v4980_v15  ;;  %v4989_v12 = vmul.f32 %v3680_v14, %v2424_v39  ;;  %v4991_v51 = vmul.f32 %v3196_v9, %v2424_v39  ;;  %v4993_v44 = vmul.f32 %v3228_v23, %v2424_v39  ;;  %v4995_v52 = vmul.f32 %v3260_v60, %v2424_v39 }
 0x44d   : > { %vm2538_vm3 = vcmp.ge.f32.partialorder %v2522_v28, 0.0  ;;  %v2554_v55 = vmul.f32 0.2, %v2522_v28  ;;  %vm2650_vm4 = vcmp.ge.f32.partialorder %v2634_v5, 0.0  ;;  %v2666_v4 = vmul.f32 0.2, %v2634_v5 }
 0x44e   : > { %vm2762_vm5 = vcmp.ge.f32.partialorder %v2746_v37, 0.0  ;;  %v2778_v56 = vmul.f32 0.2, %v2746_v37  ;;  %vm2874_vm6 = vcmp.ge.f32.partialorder %v2858_v17, 0.0  ;;  %v2890_v31 = vmul.f32 0.2, %v2858_v17  ;;  %v2450_v10 = vpop.permute.xlu1 %2449 }
 0x44f   : > { %v2570_v6 = vsel %vm2538_vm3, %v2522_v28, %v2554_v55  ;;  %v2682_v15 = vsel %vm2650_vm4, %v2634_v5, %v2666_v4  ;;  %v2523_v14 = vadd.f32 %v2450_v10, %v4773_v7  ;;  %v2635_v9 = vadd.f32 %v4775_v53, %v2450_v10  ;;  %v2455_v5 = vpop.permute.xlu0 %2454 }
 0x450   : > { %2586 = vst.msk [vmem:[%s5326_s4] sm:$0xff] %vm1536_vm1, %v2570_v6  ;;  %3197 = vst.msk [vmem:[%s5326_s4 + $0x80] sm:$0xff] %vm1536_vm1, %v2682_v15  ;;  %v2794_v23 = vsel %vm2762_vm5, %v2746_v37, %v2778_v56  ;;  %v2906_v60 = vsel %vm2874_vm6, %v2858_v17, %v2890_v31  ;;  %v2747_v39 = vadd.f32 %v4778_v61, %v2450_v10 }
 0x451   : > { %v2859_v28 = vadd.f32 %v4781_v43, %v2450_v10  ;;  %3229 = vst.msk [vmem:[%s5326_s4 + $0x100] sm:$0xff] %vm1536_vm1, %v2794_v23  ;;  %3261 = vst.msk [vmem:[%s5326_s4 + $0x180] sm:$0xff] %vm1536_vm1, %v2906_v60  ;;  %vm2539_vm7 = vcmp.ge.f32.partialorder %v2523_v14, 0.0  ;;  %v2555_v7 = vmul.f32 0.2, %v2523_v14  ;;  %vm2651_vm8 = vcmp.ge.f32.partialorder %v2635_v9, 0.0 }
 0x452   : > { %v2667_v53 = vmul.f32 0.2, %v2635_v9  ;;  %vm2763_vm9 = vcmp.ge.f32.partialorder %v2747_v39, 0.0  ;;  %v2779_v15 = vmul.f32 0.2, %v2747_v39  ;;  %v2524_v37 = vadd.f32 %v2455_v5, %v4754_v48  ;;  %v2460_v6 = vpop.permute.xlu1 %2459 }
 0x453   : > { %vm2875_vm10 = vcmp.ge.f32.partialorder %v2859_v28, 0.0  ;;  %v2891_v61 = vmul.f32 0.2, %v2859_v28  ;;  %v2571_v43 = vsel %vm2539_vm7, %v2523_v14, %v2555_v7  ;;  %v2636_v55 = vadd.f32 %v4759_v59, %v2455_v5 }
 0x454   : > { %v2683_v17 = vsel %vm2651_vm8, %v2635_v9, %v2667_v53  ;;  %2587 = vst.msk [vmem:[%s5326_s4 + $0x8] sm:$0xff] %vm1536_vm1, %v2571_v43  ;;  %v2795_v4 = vsel %vm2763_vm9, %v2747_v39, %v2779_v15  ;;  %v2748_v31 = vadd.f32 %v4762_v27, %v2455_v5  ;;  %v2860_v10 = vadd.f32 %v4765_v36, %v2455_v5  ;;  %v2465_v53 = vpop.permute.xlu0 %2464 }
 0x455   : > { %3198 = vst.msk [vmem:[%s5326_s4 + $0x88] sm:$0xff] %vm1536_vm1, %v2683_v17  ;;  %v2907_v56 = vsel %vm2875_vm10, %v2859_v28, %v2891_v61  ;;  %3230 = vst.msk [vmem:[%s5326_s4 + $0x108] sm:$0xff] %vm1536_vm1, %v2795_v4  ;;  %vm2540_vm11 = vcmp.ge.f32.partialorder %v2524_v37, 0.0  ;;  %v2556_v48 = vmul.f32 0.2, %v2524_v37  ;;  %vm2652_vm12 = vcmp.ge.f32.partialorder %v2636_v55, 0.0 }
 0x456   : > { %3262 = vst.msk [vmem:[%s5326_s4 + $0x188] sm:$0xff] %vm1536_vm1, %v2907_v56  ;;  %v2668_v59 = vmul.f32 0.2, %v2636_v55  ;;  %vm2764_vm13 = vcmp.ge.f32.partialorder %v2748_v31, 0.0  ;;  %v2780_v14 = vmul.f32 0.2, %v2748_v31  ;;  %v2525_v23 = vadd.f32 %v2460_v6, %v4789_v49 }
 0x457   : > { %vm2876_vm14 = vcmp.ge.f32.partialorder %v2860_v10, 0.0  ;;  %v2892_v27 = vmul.f32 0.2, %v2860_v10  ;;  %v2572_v36 = vsel %vm2540_vm11, %v2524_v37, %v2556_v48  ;;  %v2637_v60 = vadd.f32 %v4791_v46, %v2460_v6 }
 0x458   : > { %v2684_v9 = vsel %vm2652_vm12, %v2636_v55, %v2668_v59  ;;  %2588 = vst.msk [vmem:[%s5326_s4 + $0x10] sm:$0xff] %vm1536_vm1, %v2572_v36  ;;  %v2796_v39 = vsel %vm2764_vm13, %v2748_v31, %v2780_v14  ;;  %v2749_v5 = vadd.f32 %v4794_v47, %v2460_v6  ;;  %v2861_v7 = vadd.f32 %v4797_v45, %v2460_v6  ;;  %v2470_v31 = vpop.permute.xlu1 %2469 }
 0x459   : > { %3199 = vst.msk [vmem:[%s5326_s4 + $0x90] sm:$0xff] %vm1536_vm1, %v2684_v9  ;;  %v2908_v28 = vsel %vm2876_vm14, %v2860_v10, %v2892_v27  ;;  %3231 = vst.msk [vmem:[%s5326_s4 + $0x110] sm:$0xff] %vm1536_vm1, %v2796_v39  ;;  %vm2541_vm15 = vcmp.ge.f32.partialorder %v2525_v23, 0.0  ;;  %v2557_v49 = vmul.f32 0.2, %v2525_v23  ;;  %vm2653_vm0 = vcmp.ge.f32.partialorder %v2637_v60, 0.0 }
 0x45a   : > { %3263 = vst.msk [vmem:[%s5326_s4 + $0x190] sm:$0xff] %vm1536_vm1, %v2908_v28  ;;  %v2669_v46 = vmul.f32 0.2, %v2637_v60  ;;  %vm2765_vm2 = vcmp.ge.f32.partialorder %v2749_v5, 0.0  ;;  %v2781_v15 = vmul.f32 0.2, %v2749_v5  ;;  %v2526_v43 = vadd.f32 %v2465_v53, %v4805_v8 }
 0x45b   : > { %vm2877_vm3 = vcmp.ge.f32.partialorder %v2861_v7, 0.0  ;;  %v2893_v47 = vmul.f32 0.2, %v2861_v7  ;;  %v2573_v45 = vsel %vm2541_vm15, %v2525_v23, %v2557_v49  ;;  %v2638_v17 = vadd.f32 %v4807_v42, %v2465_v53  ;;  %v2475_v23 = vpop.permute.xlu0 %2474 }
 0x45c   : > { %v2685_v61 = vsel %vm2653_vm0, %v2637_v60, %v2669_v46  ;;  %2589 = vst.msk [vmem:[%s5326_s4 + $0x18] sm:$0xff] %vm1536_vm1, %v2573_v45  ;;  %v2797_v37 = vsel %vm2765_vm2, %v2749_v5, %v2781_v15  ;;  %v2750_v4 = vadd.f32 %v4810_v2, %v2465_v53  ;;  %v2862_v56 = vadd.f32 %v4813_v32, %v2465_v53  ;;  %v2480_v15 = vpop.permute.xlu1 %2479 }
 0x45d   : > { %3200 = vst.msk [vmem:[%s5326_s4 + $0x98] sm:$0xff] %vm1536_vm1, %v2685_v61  ;;  %v2909_v55 = vsel %vm2877_vm3, %v2861_v7, %v2893_v47  ;;  %3232 = vst.msk [vmem:[%s5326_s4 + $0x118] sm:$0xff] %vm1536_vm1, %v2797_v37  ;;  %vm2542_vm4 = vcmp.ge.f32.partialorder %v2526_v43, 0.0  ;;  %v2558_v8 = vmul.f32 0.2, %v2526_v43  ;;  %vm2654_vm5 = vcmp.ge.f32.partialorder %v2638_v17, 0.0 }
 0x45e   : > { %3264 = vst.msk [vmem:[%s5326_s4 + $0x198] sm:$0xff] %vm1536_vm1, %v2909_v55  ;;  %v2670_v42 = vmul.f32 0.2, %v2638_v17  ;;  %vm2766_vm6 = vcmp.ge.f32.partialorder %v2750_v4, 0.0  ;;  %v2782_v10 = vmul.f32 0.2, %v2750_v4  ;;  %v2527_v48 = vadd.f32 %v2470_v31, %v4821_v21 }
 0x45f   : > { %vm2878_vm7 = vcmp.ge.f32.partialorder %v2862_v56, 0.0  ;;  %v2894_v2 = vmul.f32 0.2, %v2862_v56  ;;  %v2574_v32 = vsel %vm2542_vm4, %v2526_v43, %v2558_v8  ;;  %v2639_v59 = vadd.f32 %v4823_v22, %v2470_v31 }
 0x460   : > { %v2686_v6 = vsel %vm2654_vm5, %v2638_v17, %v2670_v42  ;;  %2590 = vst.msk [vmem:[%s5326_s4 + $0x20] sm:$0xff] %vm1536_vm1, %v2574_v32  ;;  %v2798_v14 = vsel %vm2766_vm6, %v2750_v4, %v2782_v10  ;;  %v2751_v36 = vadd.f32 %v4826_v35, %v2470_v31  ;;  %v2863_v9 = vadd.f32 %v4829_v26, %v2470_v31 }
 0x461   : > { %3201 = vst.msk [vmem:[%s5326_s4 + $0xa0] sm:$0xff] %vm1536_vm1, %v2686_v6  ;;  %v2910_v27 = vsel %vm2878_vm7, %v2862_v56, %v2894_v2  ;;  %3233 = vst.msk [vmem:[%s5326_s4 + $0x120] sm:$0xff] %vm1536_vm1, %v2798_v14  ;;  %vm2543_vm8 = vcmp.ge.f32.partialorder %v2527_v48, 0.0  ;;  %v2559_v21 = vmul.f32 0.2, %v2527_v48  ;;  %vm2655_vm9 = vcmp.ge.f32.partialorder %v2639_v59, 0.0  ;;  %v2485_v56 = vpop.permute.xlu0 %2484 }
 0x462   : > { %3265 = vst.msk [vmem:[%s5326_s4 + $0x1a0] sm:$0xff] %vm1536_vm1, %v2910_v27  ;;  %v2671_v22 = vmul.f32 0.2, %v2639_v59  ;;  %vm2767_vm10 = vcmp.ge.f32.partialorder %v2751_v36, 0.0  ;;  %v2783_v60 = vmul.f32 0.2, %v2751_v36  ;;  %v2528_v28 = vadd.f32 %v2475_v23, %v4837_v63 }
 0x463   : > { %vm2879_vm11 = vcmp.ge.f32.partialorder %v2863_v9, 0.0  ;;  %v2895_v35 = vmul.f32 0.2, %v2863_v9  ;;  %v2575_v26 = vsel %vm2543_vm8, %v2527_v48, %v2559_v21  ;;  %v2640_v5 = vadd.f32 %v4839_v57, %v2475_v23 }
 0x464   : > { %v2687_v39 = vsel %vm2655_vm9, %v2639_v59, %v2671_v22  ;;  %2591 = vst.msk [vmem:[%s5326_s4 + $0x28] sm:$0xff] %vm1536_vm1, %v2575_v26  ;;  %v2799_v7 = vsel %vm2767_vm10, %v2751_v36, %v2783_v60  ;;  %v2752_v49 = vadd.f32 %v4842_v29, %v2475_v23  ;;  %v2864_v46 = vadd.f32 %v4845_v18, %v2475_v23  ;;  %v2490_v59 = vpop.permute.xlu1 %2489 }
 0x465   : > { %3202 = vst.msk [vmem:[%s5326_s4 + $0xa8] sm:$0xff] %vm1536_vm1, %v2687_v39  ;;  %v2911_v53 = vsel %vm2879_vm11, %v2863_v9, %v2895_v35  ;;  %3234 = vst.msk [vmem:[%s5326_s4 + $0x128] sm:$0xff] %vm1536_vm1, %v2799_v7  ;;  %vm2544_vm12 = vcmp.ge.f32.partialorder %v2528_v28, 0.0  ;;  %v2560_v63 = vmul.f32 0.2, %v2528_v28  ;;  %vm2656_vm13 = vcmp.ge.f32.partialorder %v2640_v5, 0.0  ;;  %v2495_v35 = vpop.permute.xlu0 %2494 }
 0x466   : > { %3266 = vst.msk [vmem:[%s5326_s4 + $0x1a8] sm:$0xff] %vm1536_vm1, %v2911_v53  ;;  %v2672_v57 = vmul.f32 0.2, %v2640_v5  ;;  %vm2768_vm14 = vcmp.ge.f32.partialorder %v2752_v49, 0.0  ;;  %v2784_v47 = vmul.f32 0.2, %v2752_v49  ;;  %v2529_v61 = vadd.f32 %v2480_v15, %v4853_v11 }
 0x467   : > { %vm2880_vm15 = vcmp.ge.f32.partialorder %v2864_v46, 0.0  ;;  %v2896_v29 = vmul.f32 0.2, %v2864_v46  ;;  %v2576_v18 = vsel %vm2544_vm12, %v2528_v28, %v2560_v63  ;;  %v2641_v43 = vadd.f32 %v4855_v3, %v2480_v15 }
 0x468   : > { %v2688_v45 = vsel %vm2656_vm13, %v2640_v5, %v2672_v57  ;;  %2592 = vst.msk [vmem:[%s5326_s4 + $0x30] sm:$0xff] %vm1536_vm1, %v2576_v18  ;;  %v2800_v17 = vsel %vm2768_vm14, %v2752_v49, %v2784_v47  ;;  %v2753_v55 = vadd.f32 %v4858_v1, %v2480_v15  ;;  %v2865_v4 = vadd.f32 %v4861_v16, %v2480_v15  ;;  %v2500_v15 = vpop.permute.xlu1 %2499  ;;  %v5475_v47 = vld [vmem:[#allocation47_spill] sm:$0xff]  ;;  %v5476_v18 = vld [vmem:[#allocation48_spill] sm:$0xff] }
 0x469   : > { %3203 = vst.msk [vmem:[%s5326_s4 + $0xb0] sm:$0xff] %vm1536_vm1, %v2688_v45  ;;  %v2912_v37 = vsel %vm2880_vm15, %v2864_v46, %v2896_v29  ;;  %3235 = vst.msk [vmem:[%s5326_s4 + $0x130] sm:$0xff] %vm1536_vm1, %v2800_v17  ;;  %vm2545_vm0 = vcmp.ge.f32.partialorder %v2529_v61, 0.0  ;;  %v2561_v11 = vmul.f32 0.2, %v2529_v61  ;;  %vm2657_vm2 = vcmp.ge.f32.partialorder %v2641_v43, 0.0 }
 0x46a   : > { %3267 = vst.msk [vmem:[%s5326_s4 + $0x1b0] sm:$0xff] %vm1536_vm1, %v2912_v37  ;;  %v2673_v3 = vmul.f32 0.2, %v2641_v43  ;;  %vm2769_vm3 = vcmp.ge.f32.partialorder %v2753_v55, 0.0  ;;  %v2785_v31 = vmul.f32 0.2, %v2753_v55  ;;  %v2530_v42 = vadd.f32 %v2485_v56, %v4869_v62 }
 0x46b   : > { %vm2881_vm4 = vcmp.ge.f32.partialorder %v2865_v4, 0.0  ;;  %v2897_v1 = vmul.f32 0.2, %v2865_v4  ;;  %v2577_v16 = vsel %vm2545_vm0, %v2529_v61, %v2561_v11  ;;  %v2642_v10 = vadd.f32 %v4871_v13, %v2485_v56  ;;  %v5477_v17 = vld [vmem:[#allocation4_spill] sm:$0xff] }
 0x46c   : > { %v2689_v8 = vsel %vm2657_vm2, %v2641_v43, %v2673_v3  ;;  %2593 = vst.msk [vmem:[%s5326_s4 + $0x38] sm:$0xff] %vm1536_vm1, %v2577_v16  ;;  %v2801_v2 = vsel %vm2769_vm3, %v2753_v55, %v2785_v31  ;;  %v2754_v6 = vadd.f32 %v4874_v54, %v2485_v56  ;;  %v2866_v48 = vadd.f32 %v4877_v20, %v2485_v56  ;;  %v5478_v55 = vld [vmem:[#allocation3_spill] sm:$0xff]  ;;  %v2505_v56 = vpop.permute.xlu0 %2504 }
 0x46d   : > { %3204 = vst.msk [vmem:[%s5326_s4 + $0xb8] sm:$0xff] %vm1536_vm1, %v2689_v8  ;;  %v2913_v32 = vsel %vm2881_vm4, %v2865_v4, %v2897_v1  ;;  %3236 = vst.msk [vmem:[%s5326_s4 + $0x138] sm:$0xff] %vm1536_vm1, %v2801_v2  ;;  %vm2546_vm5 = vcmp.ge.f32.partialorder %v2530_v42, 0.0  ;;  %v2562_v62 = vmul.f32 0.2, %v2530_v42  ;;  %vm2658_vm6 = vcmp.ge.f32.partialorder %v2642_v10, 0.0 }
 0x46e   : > { %3268 = vst.msk [vmem:[%s5326_s4 + $0x1b8] sm:$0xff] %vm1536_vm1, %v2913_v32  ;;  %v2674_v13 = vmul.f32 0.2, %v2642_v10  ;;  %vm2770_vm7 = vcmp.ge.f32.partialorder %v2754_v6, 0.0  ;;  %v2786_v14 = vmul.f32 0.2, %v2754_v6  ;;  %v2531_v36 = vadd.f32 %v2490_v59, %v4885_v58 }
 0x46f   : > { %vm2882_vm8 = vcmp.ge.f32.partialorder %v2866_v48, 0.0  ;;  %v2898_v54 = vmul.f32 0.2, %v2866_v48  ;;  %v2578_v20 = vsel %vm2546_vm5, %v2530_v42, %v2562_v62  ;;  %v2643_v9 = vadd.f32 %v4887_v0, %v2490_v59  ;;  %v5481_v62 = vld [vmem:[#allocation5_spill] sm:$0xff] }
 0x470   : > { %v2690_v27 = vsel %vm2658_vm6, %v2642_v10, %v2674_v13  ;;  %2594 = vst.msk [vmem:[%s5326_s4 + $0x40] sm:$0xff] %vm1536_vm1, %v2578_v20  ;;  %v2802_v23 = vsel %vm2770_vm7, %v2754_v6, %v2786_v14  ;;  %v2755_v22 = vadd.f32 %v4890_v40, %v2490_v59  ;;  %v2867_v60 = vadd.f32 %v4893_v41, %v2490_v59  ;;  %v5479_v10 = vld [vmem:[#allocation6_spill] sm:$0xff]  ;;  %v2510_v14 = vpop.permute.xlu1 %2509 }
 0x471   : > { %3205 = vst.msk [vmem:[%s5326_s4 + $0xc0] sm:$0xff] %vm1536_vm1, %v2690_v27  ;;  %v2914_v21 = vsel %vm2882_vm8, %v2866_v48, %v2898_v54  ;;  %3237 = vst.msk [vmem:[%s5326_s4 + $0x140] sm:$0xff] %vm1536_vm1, %v2802_v23  ;;  %vm2547_vm9 = vcmp.ge.f32.partialorder %v2531_v36, 0.0  ;;  %v2563_v58 = vmul.f32 0.2, %v2531_v36  ;;  %vm2659_vm10 = vcmp.ge.f32.partialorder %v2643_v9, 0.0 }
 0x472   : > { %3269 = vst.msk [vmem:[%s5326_s4 + $0x1c0] sm:$0xff] %vm1536_vm1, %v2914_v21  ;;  %v2675_v0 = vmul.f32 0.2, %v2643_v9  ;;  %vm2771_vm11 = vcmp.ge.f32.partialorder %v2755_v22, 0.0  ;;  %v2787_v26 = vmul.f32 0.2, %v2755_v22  ;;  %v2532_v28 = vadd.f32 %v2495_v35, %v4901_v30 }
 0x473   : > { %vm2883_vm12 = vcmp.ge.f32.partialorder %v2867_v60, 0.0  ;;  %v2899_v40 = vmul.f32 0.2, %v2867_v60  ;;  %v2579_v41 = vsel %vm2547_vm9, %v2531_v36, %v2563_v58  ;;  %v2644_v5 = vadd.f32 %v4903_v25, %v2495_v35  ;;  %v5480_v48 = vld [vmem:[#allocation8_spill] sm:$0xff]  ;;  %v5482_v23 = vld [vmem:[#allocation10_spill] sm:$0xff] }
 0x474   : > { %v2691_v39 = vsel %vm2659_vm10, %v2643_v9, %v2675_v0  ;;  %2595 = vst.msk [vmem:[%s5326_s4 + $0x48] sm:$0xff] %vm1536_vm1, %v2579_v41  ;;  %v2803_v7 = vsel %vm2771_vm11, %v2755_v22, %v2787_v26  ;;  %v2756_v49 = vadd.f32 %v4906_v24, %v2495_v35  ;;  %v2868_v46 = vadd.f32 %v4909_v50, %v2495_v35  ;;  %v5483_v22 = vld [vmem:[#allocation7_spill] sm:$0xff]  ;;  %v5484_v0 = vld [vmem:[#allocation12_spill] sm:$0xff] }
 0x475   : > { %3206 = vst.msk [vmem:[%s5326_s4 + $0xc8] sm:$0xff] %vm1536_vm1, %v2691_v39  ;;  %v2915_v53 = vsel %vm2883_vm12, %v2867_v60, %v2899_v40  ;;  %3238 = vst.msk [vmem:[%s5326_s4 + $0x148] sm:$0xff] %vm1536_vm1, %v2803_v7  ;;  %vm2548_vm13 = vcmp.ge.f32.partialorder %v2532_v28, 0.0  ;;  %v2564_v30 = vmul.f32 0.2, %v2532_v28  ;;  %vm2660_vm14 = vcmp.ge.f32.partialorder %v2644_v5, 0.0  ;;  %v2515_v39 = vpop.permute.xlu0 %2514 }
 0x476   : > { %3270 = vst.msk [vmem:[%s5326_s4 + $0x1c8] sm:$0xff] %vm1536_vm1, %v2915_v53  ;;  %v2676_v25 = vmul.f32 0.2, %v2644_v5  ;;  %vm2772_vm15 = vcmp.ge.f32.partialorder %v2756_v49, 0.0  ;;  %v2788_v63 = vmul.f32 0.2, %v2756_v49  ;;  %v2533_v29 = vadd.f32 %v2500_v15, %v5475_v47  ;;  %v2520_v47 = vpop.permute.xlu1 %2519 }
 0x477   : > { %vm2884_vm0 = vcmp.ge.f32.partialorder %v2868_v46, 0.0  ;;  %v2900_v24 = vmul.f32 0.2, %v2868_v46  ;;  %v2580_v50 = vsel %vm2548_vm13, %v2532_v28, %v2564_v30  ;;  %v2645_v45 = vadd.f32 %v5476_v18, %v2500_v15  ;;  %v5485_v40 = vld [vmem:[#allocation9_spill] sm:$0xff] }
 0x478   : > { %v2692_v57 = vsel %vm2660_vm14, %v2644_v5, %v2676_v25  ;;  %2596 = vst.msk [vmem:[%s5326_s4 + $0x50] sm:$0xff] %vm1536_vm1, %v2580_v50  ;;  %v2804_v61 = vsel %vm2772_vm15, %v2756_v49, %v2788_v63  ;;  %v2757_v37 = vadd.f32 %v5477_v17, %v2500_v15  ;;  %v2869_v4 = vadd.f32 %v5478_v55, %v2500_v15  ;;  %v5486_v50 = vld [vmem:[#allocation14_spill] sm:$0xff] }
 0x479   : > { %3207 = vst.msk [vmem:[%s5326_s4 + $0xd0] sm:$0xff] %vm1536_vm1, %v2692_v57  ;;  %v2916_v43 = vsel %vm2884_vm0, %v2868_v46, %v2900_v24  ;;  %3239 = vst.msk [vmem:[%s5326_s4 + $0x150] sm:$0xff] %vm1536_vm1, %v2804_v61  ;;  %vm2549_vm2 = vcmp.ge.f32.partialorder %v2533_v29, 0.0  ;;  %v2565_v11 = vmul.f32 0.2, %v2533_v29  ;;  %vm2661_vm3 = vcmp.ge.f32.partialorder %v2645_v45, 0.0 }
 0x47a   : > { %3271 = vst.msk [vmem:[%s5326_s4 + $0x1d0] sm:$0xff] %vm1536_vm1, %v2916_v43  ;;  %v2677_v3 = vmul.f32 0.2, %v2645_v45  ;;  %vm2773_vm4 = vcmp.ge.f32.partialorder %v2757_v37, 0.0  ;;  %v2789_v31 = vmul.f32 0.2, %v2757_v37  ;;  %v2534_v42 = vadd.f32 %v2505_v56, %v4939_v34 }
 0x47b   : > { %vm2885_vm5 = vcmp.ge.f32.partialorder %v2869_v4, 0.0  ;;  %v2901_v1 = vmul.f32 0.2, %v2869_v4  ;;  %v2581_v16 = vsel %vm2549_vm2, %v2533_v29, %v2565_v11  ;;  %v2646_v2 = vadd.f32 %v5479_v10, %v2505_v56 }
 0x47c   : > { %v2693_v8 = vsel %vm2661_vm3, %v2645_v45, %v2677_v3  ;;  %2597 = vst.msk [vmem:[%s5326_s4 + $0x58] sm:$0xff] %vm1536_vm1, %v2581_v16  ;;  %v2805_v32 = vsel %vm2773_vm4, %v2757_v37, %v2789_v31  ;;  %v2758_v59 = vadd.f32 %v5480_v48, %v2505_v56  ;;  %v2870_v13 = vadd.f32 %v5481_v62, %v2505_v56 }
 0x47d   : > { %3208 = vst.msk [vmem:[%s5326_s4 + $0xd8] sm:$0xff] %vm1536_vm1, %v2693_v8  ;;  %v2917_v6 = vsel %vm2885_vm5, %v2869_v4, %v2901_v1  ;;  %3240 = vst.msk [vmem:[%s5326_s4 + $0x158] sm:$0xff] %vm1536_vm1, %v2805_v32  ;;  %vm2550_vm6 = vcmp.ge.f32.partialorder %v2534_v42, 0.0  ;;  %v2566_v34 = vmul.f32 0.2, %v2534_v42  ;;  %vm2662_vm7 = vcmp.ge.f32.partialorder %v2646_v2, 0.0 }
 0x47e   : > { %3272 = vst.msk [vmem:[%s5326_s4 + $0x1d8] sm:$0xff] %vm1536_vm1, %v2917_v6  ;;  %v2678_v54 = vmul.f32 0.2, %v2646_v2  ;;  %vm2774_vm8 = vcmp.ge.f32.partialorder %v2758_v59, 0.0  ;;  %v2790_v20 = vmul.f32 0.2, %v2758_v59  ;;  %v2535_v21 = vadd.f32 %v2510_v14, %v5482_v23 }
 0x47f   : > { %vm2886_vm9 = vcmp.ge.f32.partialorder %v2870_v13, 0.0  ;;  %v2902_v27 = vmul.f32 0.2, %v2870_v13  ;;  %v2582_v36 = vsel %vm2550_vm6, %v2534_v42, %v2566_v34  ;;  %v2647_v60 = vadd.f32 %v5483_v22, %v2510_v14 }
 0x480   : > { %v2694_v9 = vsel %vm2662_vm7, %v2646_v2, %v2678_v54  ;;  %2598 = vst.msk [vmem:[%s5326_s4 + $0x60] sm:$0xff] %vm1536_vm1, %v2582_v36  ;;  %v2806_v35 = vsel %vm2774_vm8, %v2758_v59, %v2790_v20  ;;  %v2759_v26 = vadd.f32 %v5484_v0, %v2510_v14  ;;  %v2871_v41 = vadd.f32 %v5485_v40, %v2510_v14 }
 0x481   : > { %3209 = vst.msk [vmem:[%s5326_s4 + $0xe0] sm:$0xff] %vm1536_vm1, %v2694_v9  ;;  %v2918_v58 = vsel %vm2886_vm9, %v2870_v13, %v2902_v27  ;;  %3241 = vst.msk [vmem:[%s5326_s4 + $0x160] sm:$0xff] %vm1536_vm1, %v2806_v35  ;;  %vm2551_vm10 = vcmp.ge.f32.partialorder %v2535_v21, 0.0  ;;  %v2567_v28 = vmul.f32 0.2, %v2535_v21  ;;  %vm2663_vm11 = vcmp.ge.f32.partialorder %v2647_v60, 0.0 }
 0x482   : > { %3273 = vst.msk [vmem:[%s5326_s4 + $0x1e0] sm:$0xff] %vm1536_vm1, %v2918_v58  ;;  %v2679_v5 = vmul.f32 0.2, %v2647_v60  ;;  %vm2775_vm12 = vcmp.ge.f32.partialorder %v2759_v26, 0.0  ;;  %v2791_v7 = vmul.f32 0.2, %v2759_v26  ;;  %v2536_v15 = vadd.f32 %v2515_v39, %v4974_v38 }
 0x483   : > { %vm2887_vm13 = vcmp.ge.f32.partialorder %v2871_v41, 0.0  ;;  %v2903_v53 = vmul.f32 0.2, %v2871_v41  ;;  %v2583_v49 = vsel %vm2551_vm10, %v2535_v21, %v2567_v28  ;;  %v2648_v30 = vadd.f32 %v4976_v33, %v2515_v39 }
 0x484   : > { %v2695_v46 = vsel %vm2663_vm11, %v2647_v60, %v2679_v5  ;;  %2599 = vst.msk [vmem:[%s5326_s4 + $0x68] sm:$0xff] %vm1536_vm1, %v2583_v49  ;;  %v2807_v25 = vsel %vm2775_vm12, %v2759_v26, %v2791_v7  ;;  %v2760_v24 = vadd.f32 %v4978_v19, %v2515_v39  ;;  %v2872_v57 = vadd.f32 %v5486_v50, %v2515_v39 }
 0x485   : > { %3210 = vst.msk [vmem:[%s5326_s4 + $0xe8] sm:$0xff] %vm1536_vm1, %v2695_v46  ;;  %v2919_v63 = vsel %vm2887_vm13, %v2871_v41, %v2903_v53  ;;  %3242 = vst.msk [vmem:[%s5326_s4 + $0x168] sm:$0xff] %vm1536_vm1, %v2807_v25  ;;  %vm2552_vm14 = vcmp.ge.f32.partialorder %v2536_v15, 0.0  ;;  %v2568_v38 = vmul.f32 0.2, %v2536_v15  ;;  %vm2664_vm15 = vcmp.ge.f32.partialorder %v2648_v30, 0.0 }
 0x486   : > { %3274 = vst.msk [vmem:[%s5326_s4 + $0x1e8] sm:$0xff] %vm1536_vm1, %v2919_v63  ;;  %v2680_v33 = vmul.f32 0.2, %v2648_v30  ;;  %vm2776_vm0 = vcmp.ge.f32.partialorder %v2760_v24, 0.0  ;;  %v2792_v29 = vmul.f32 0.2, %v2760_v24  ;;  %v2537_v61 = vadd.f32 %v2520_v47, %v4989_v12 }
 0x487   : > { %vm2888_vm2 = vcmp.ge.f32.partialorder %v2872_v57, 0.0  ;;  %v2904_v19 = vmul.f32 0.2, %v2872_v57  ;;  %v2584_v18 = vsel %vm2552_vm14, %v2536_v15, %v2568_v38  ;;  %v2649_v43 = vadd.f32 %v4991_v51, %v2520_v47 }
 0x488   : > { %v2696_v45 = vsel %vm2664_vm15, %v2648_v30, %v2680_v33  ;;  %2600 = vst.msk [vmem:[%s5326_s4 + $0x70] sm:$0xff] %vm1536_vm1, %v2584_v18  ;;  %v2808_v17 = vsel %vm2776_vm0, %v2760_v24, %v2792_v29  ;;  %v2761_v55 = vadd.f32 %v4993_v44, %v2520_v47  ;;  %v2873_v4 = vadd.f32 %v4995_v52, %v2520_v47 }
 0x489   : > { %3211 = vst.msk [vmem:[%s5326_s4 + $0xf0] sm:$0xff] %vm1536_vm1, %v2696_v45  ;;  %v2920_v37 = vsel %vm2888_vm2, %v2872_v57, %v2904_v19  ;;  %3243 = vst.msk [vmem:[%s5326_s4 + $0x170] sm:$0xff] %vm1536_vm1, %v2808_v17  ;;  %vm2553_vm3 = vcmp.ge.f32.partialorder %v2537_v61, 0.0  ;;  %v2569_v12 = vmul.f32 0.2, %v2537_v61  ;;  %vm2665_vm4 = vcmp.ge.f32.partialorder %v2649_v43, 0.0 }
 0x48a   : > { %3275 = vst.msk [vmem:[%s5326_s4 + $0x1f0] sm:$0xff] %vm1536_vm1, %v2920_v37  ;;  %v2681_v51 = vmul.f32 0.2, %v2649_v43  ;;  %vm2777_vm5 = vcmp.ge.f32.partialorder %v2761_v55, 0.0  ;;  %v2793_v56 = vmul.f32 0.2, %v2761_v55 }
 0x48b   : > { %vm2889_vm6 = vcmp.ge.f32.partialorder %v2873_v4, 0.0  ;;  %v2905_v44 = vmul.f32 0.2, %v2873_v4  ;;  %v2585_v11 = vsel %vm2553_vm3, %v2537_v61, %v2569_v12 }
 0x48c   : > { %v2697_v52 = vsel %vm2665_vm4, %v2649_v43, %v2681_v51  ;;  %2601 = vst.msk [vmem:[%s5326_s4 + $0x78] sm:$0xff] %vm1536_vm1, %v2585_v11  ;;  %v2809_v3 = vsel %vm2777_vm5, %v2761_v55, %v2793_v56 }
 0x48d   : > { %3212 = vst.msk [vmem:[%s5326_s4 + $0xf8] sm:$0xff] %vm1536_vm1, %v2697_v52  ;;  %v2921_v31 = vsel %vm2889_vm6, %v2873_v4, %v2905_v44  ;;  %3244 = vst.msk [vmem:[%s5326_s4 + $0x178] sm:$0xff] %vm1536_vm1, %v2809_v3 }
 0x48e   : > { %3276 = vst.msk [vmem:[%s5326_s4 + $0x1f8] sm:$0xff] %vm1536_vm1, %v2921_v31 }
 0x48f PF: > { %s14_s17 = sadd.s32 1, %s3703_s17   ;;  %s5487_s15 = smov %s3699_s16 }
 0x490   : > { %p11_p7 = scmp.ge.s32.totalorder %s14_s17, 6   ;;  %s5488_s16 = smov %s5490_s18 }
 0x492   :  { %13 = sbr.rel (!%p11_p7) target bundleno = 2 (0x2), region = 77 }

// kernel: generator_forward.7
= control target key start
LH: loop header
LB: loop body
LE: loop exit
PB: predicated region body
PF: predicated region fallthrough
CT: control target
= control target key end

     0   :  { %s1815_s15 = smov 0   ;;  %s1817_s16 = smov 0   ;;  %s2450_s0 = inlined_call_operand.vmem [shape: bf16[4,512,128], index: 0, kind: input, shape index: {}]   ;;  %s2451_s1 = inlined_call_operand.vmem [shape: bf16[4,64,512], index: 1, kind: input, shape index: {}]   ;;  %s2452_s2 = inlined_call_operand.vmem [shape: f32[64,1], index: 2, kind: input, shape index: {}]   ;;  %s2453_s3 = inlined_call_operand.vmem [shape: f32[64,1], index: 3, kind: input, shape index: {}]   ;;  %s2454_s4 = inlined_call_operand.vmem [shape: f32[4,64,128], index: 4, kind: output, shape index: {}]  }
   0x1   :  { %s1819_s17 = smov 0  }
   0x2 LB: > { %s26_s18 = sadd.s32 1, %s1782_s16  ;;  %p1450_p0 = scmp.ge.s32.totalorder %s1786_s17, 1  ;;  %s1786_s17 = sphi %s1819_s17, %s14_s17   ;;  %s1782_s16 = sphi %s1817_s16, %s2510_s16   ;;  %s1778_s15 = sphi %s1815_s15, %s2509_s15  }
   0x3   : > { %p28_p1 = scmp.ge.s32.totalorder %s26_s18, 4  ;;  %p184_p2 = scmp.lt.s32.totalorder %s1786_s17, 5 }
   0x5   : > { %s2512_s18 = smov (%p28_p1, %s26_s18), 0  ;;  %p185_p3 = pnand %p1450_p0, %p184_p2 }
   0x6   : > { %p213_p4 = scmp.lt.s32.totalorder (!%p185_p3), %s1778_s15, 3  ;;  %p227_p5 = scmp.eq.s32.totalorder (!%p185_p3), %s1778_s15, 0 }
   0x7   : > { %188 = sbr.rel (%p185_p3) target bundleno = 970 (0x3ca), region = 36 }
   0xe   : > { %s214_s19 = scalar_select %p213_p4, %s1778_s15, 3 }
   0xf   : > { %232 = sbr.rel (!%p227_p5) target bundleno = 22 (0x16), region = 40  ;;  %vm233_vm0 = vcmask (%p227_p5), 7168   ;;  %v1788_v0 = vmov (%p227_p5), 0.0  }
  0x10   : > { %s1580_s20 = sshll.u32 %s214_s19, 8  ;;  %s1581_s21 = sshll.u32 %s214_s19, 7  ;;  %234 = vst.msk [vmem:[#allocation2] sm:$0xff] (%p227_p5), %vm233_vm0, %v1788_v0  ;;  %235 = vst.msk [vmem:[#allocation2 + $0x8] sm:$0xff] (%p227_p5), %vm233_vm0, %v1788_v0 }
  0x11   : > { %s1841_s24 = scalar_lea.vmem %s2450_s0, %s1580_s20  ;;  %s1846_s27 = scalar_lea.vmem %s2451_s1, %s1581_s21  ;;  %236 = vst.msk [vmem:[#allocation2 + $0x10] sm:$0xff] (%p227_p5), %vm233_vm0, %v1788_v0  ;;  %237 = vst.msk [vmem:[#allocation2 + $0x18] sm:$0xff] (%p227_p5), %vm233_vm0, %v1788_v0 }
  0x12   : > { %238 = vst.msk [vmem:[#allocation2 + $0x20] sm:$0xff] (%p227_p5), %vm233_vm0, %v1788_v0  ;;  %239 = vst.msk [vmem:[#allocation2 + $0x28] sm:$0xff] (%p227_p5), %vm233_vm0, %v1788_v0 }
  0x13   : > { %240 = vst.msk [vmem:[#allocation2 + $0x30] sm:$0xff] (%p227_p5), %vm233_vm0, %v1788_v0  ;;  %241 = vst.msk [vmem:[#allocation2 + $0x38] sm:$0xff] (%p227_p5), %vm233_vm0, %v1788_v0 }
  0x16 PF: > { %v1690_v1 = vld [vmem:[%s1841_s24 + $0x40] sm:$0xff]   ;;  %v1694_v5 = vld [vmem:[%s1841_s24 + $0x48] sm:$0xff]   ;;  %v1698_v9 = vld [vmem:[%s1841_s24 + $0x50] sm:$0xff]   ;;  %s1504_s28 = sshll.u32 %s1778_s15, 6  ;;  %p775_p6 = scmp.eq.s32.totalorder %s1778_s15, 3  ;;  %vm766_vm1 = vcmask 7168  }
  0x17   : > { %v1691_v2 = vld [vmem:[%s1841_s24 + $0xc0] sm:$0xff]   ;;  %1584 = vmatprep.subr.bf16.mxu0 %v1690_v1  ;;  %v1695_v6 = vld [vmem:[%s1841_s24 + $0xc8] sm:$0xff]   ;;  %v1699_v10 = vld [vmem:[%s1841_s24 + $0xd0] sm:$0xff]   ;;  %s1900_s5 = scalar_lea.vmem %s2454_s4, %s1504_s28 }
  0x18   : > { %v1692_v3 = vld [vmem:[%s1841_s24] sm:$0xff]   ;;  %1624 = vmatprep.subr.bf16.mxu1 %v1691_v2  ;;  %v1696_v7 = vld [vmem:[%s1841_s24 + $0x8] sm:$0xff]   ;;  %v1700_v11 = vld [vmem:[%s1841_s24 + $0x10] sm:$0xff]  }
  0x19   : > { %v1693_v4 = vld [vmem:[%s1841_s24 + $0x80] sm:$0xff]   ;;  %1585 = vmatpush3.bf16.msra.mxu0 %v1692_v3  ;;  %v1697_v8 = vld [vmem:[%s1841_s24 + $0x88] sm:$0xff]   ;;  %v1701_v12 = vld [vmem:[%s1841_s24 + $0x90] sm:$0xff]  }
  0x1a   : > { %1625 = vmatpush3.bf16.msra.mxu1 %v1693_v4  ;;  %1586 = vmatprep.subr.bf16.mxu0 %v1694_v5  ;;  %v1702_v13 = vld [vmem:[%s1841_s24 + $0x58] sm:$0xff]   ;;  %v1706_v17 = vld [vmem:[%s1841_s24 + $0x60] sm:$0xff]   ;;  %v1710_v21 = vld [vmem:[%s1841_s24 + $0x68] sm:$0xff]  }
  0x1b   : > { %1626 = vmatprep.subr.bf16.mxu1 %v1695_v6  ;;  %v1703_v14 = vld [vmem:[%s1841_s24 + $0xd8] sm:$0xff]   ;;  %v1707_v18 = vld [vmem:[%s1841_s24 + $0xe0] sm:$0xff]   ;;  %v1711_v22 = vld [vmem:[%s1841_s24 + $0xe8] sm:$0xff]  }
  0x1c   : > { %v1704_v15 = vld [vmem:[%s1841_s24 + $0x18] sm:$0xff]   ;;  %v1708_v19 = vld [vmem:[%s1841_s24 + $0x20] sm:$0xff]   ;;  %v1712_v23 = vld [vmem:[%s1841_s24 + $0x28] sm:$0xff]  }
  0x1d   : > { %1587 = vmatpush3.bf16.msra.mxu0 %v1696_v7  ;;  %v1705_v16 = vld [vmem:[%s1841_s24 + $0x98] sm:$0xff]   ;;  %v1709_v20 = vld [vmem:[%s1841_s24 + $0xa0] sm:$0xff]   ;;  %v1713_v24 = vld [vmem:[%s1841_s24 + $0xa8] sm:$0xff]  }
  0x1e   : > { %1627 = vmatpush3.bf16.msra.mxu1 %v1697_v8  ;;  %1588 = vmatprep.subr.bf16.mxu0 %v1698_v9  ;;  %v1714_v25 = vld [vmem:[%s1841_s24 + $0x70] sm:$0xff]   ;;  %v1718_v29 = vld [vmem:[%s1841_s24 + $0x78] sm:$0xff]  }
  0x1f   : > { %1628 = vmatprep.subr.bf16.mxu1 %v1699_v10  ;;  %v1715_v26 = vld [vmem:[%s1841_s24 + $0xf0] sm:$0xff]   ;;  %v1719_v30 = vld [vmem:[%s1841_s24 + $0xf8] sm:$0xff]  }
  0x20   : > { %v1716_v27 = vld [vmem:[%s1841_s24 + $0x30] sm:$0xff]   ;;  %v1720_v31 = vld [vmem:[%s1841_s24 + $0x38] sm:$0xff]  }
  0x21   : > { %1589 = vmatpush3.bf16.msra.mxu0 %v1700_v11  ;;  %v1717_v28 = vld [vmem:[%s1841_s24 + $0xb0] sm:$0xff]   ;;  %v1721_v32 = vld [vmem:[%s1841_s24 + $0xb8] sm:$0xff]  }
  0x22   : > { %1629 = vmatpush3.bf16.msra.mxu1 %v1701_v12  ;;  %1590 = vmatprep.subr.bf16.mxu0 %v1702_v13  ;;  %v1722_v33 = vld [vmem:[%s1846_s27] ss:$16 sps:$4 sm:$0xff]   ;;  %v1724_v34 = vld [vmem:[%s1846_s27 + $0x4] ss:$16 sps:$4 sm:$0xff]   ;;  %v1725_v35 = vld [vmem:[%s1846_s27 + $0x8] ss:$16 sps:$4 sm:$0xff]  }
  0x23   : > { %1630 = vmatprep.subr.bf16.mxu1 %v1703_v14  ;;  %v1727_v36 = vld [vmem:[%s1846_s27 + $0xc] ss:$16 sps:$4 sm:$0xff]   ;;  %626 = vmatprep.mubr.bf16.mxu0 %v1724_v34  ;;  %v1728_v37 = vld [vmem:[%s1846_s27 + $0x24] ss:$16 sps:$4 sm:$0xff]   ;;  %v1732_v39 = vld [vmem:[%s1846_s27 + $0x20] ss:$16 sps:$4 sm:$0xff]  }
  0x24   : > { %691 = vmatprep.mubr.bf16.mxu1 %v1727_v36  ;;  %v1730_v38 = vld [vmem:[%s1846_s27 + $0x2c] ss:$16 sps:$4 sm:$0xff]   ;;  %v1733_v40 = vld [vmem:[%s1846_s27 + $0x28] ss:$16 sps:$4 sm:$0xff]   ;;  %v1734_v41 = vld [vmem:[%s1846_s27 + $0x44] ss:$16 sps:$4 sm:$0xff]  }
  0x25   : > { %1591 = vmatpush3.bf16.msra.mxu0 %v1704_v15  ;;  %v1736_v42 = vld [vmem:[%s1846_s27 + $0x4c] ss:$16 sps:$4 sm:$0xff]   ;;  %v1738_v43 = vld [vmem:[%s1846_s27 + $0x40] ss:$16 sps:$4 sm:$0xff]   ;;  %v1739_v44 = vld [vmem:[%s1846_s27 + $0x48] ss:$16 sps:$4 sm:$0xff]  }
  0x26   : > { %1631 = vmatpush3.bf16.msra.mxu1 %v1705_v16  ;;  %1592 = vmatprep.subr.bf16.mxu0 %v1706_v17  ;;  %v1740_v45 = vld [vmem:[%s1846_s27 + $0x64] ss:$16 sps:$4 sm:$0xff]   ;;  %v1742_v46 = vld [vmem:[%s1846_s27 + $0x6c] ss:$16 sps:$4 sm:$0xff]   ;;  %v1744_v47 = vld [vmem:[%s1846_s27 + $0x60] ss:$16 sps:$4 sm:$0xff]  }
  0x27   : > { %1632 = vmatprep.subr.bf16.mxu1 %v1707_v18  ;;  %v1745_v48 = vld [vmem:[%s1846_s27 + $0x68] ss:$16 sps:$4 sm:$0xff]  }
  0x29   : > { %1593 = vmatpush3.bf16.msra.mxu0 %v1708_v19 }
  0x2a   : > { %1633 = vmatpush3.bf16.msra.mxu1 %v1709_v20  ;;  %1594 = vmatprep.subr.bf16.mxu0 %v1710_v21 }
  0x2b   : > { %1634 = vmatprep.subr.bf16.mxu1 %v1711_v22 }
  0x2d   : > { %1595 = vmatpush3.bf16.msra.mxu0 %v1712_v23 }
  0x2e   : > { %1635 = vmatpush3.bf16.msra.mxu1 %v1713_v24  ;;  %1596 = vmatprep.subr.bf16.mxu0 %v1714_v25 }
  0x2f   : > { %1636 = vmatprep.subr.bf16.mxu1 %v1715_v26 }
  0x31   : > { %1597 = vmatpush3.bf16.msra.mxu0 %v1716_v27 }
  0x32   : > { %1637 = vmatpush3.bf16.msra.mxu1 %v1717_v28  ;;  %1598 = vmatprep.subr.bf16.mxu0 %v1718_v29 }
  0x33   : > { %1638 = vmatprep.subr.bf16.mxu1 %v1719_v30 }
  0x35   : > { %1599 = vmatpush3.bf16.msra.mxu0 %v1720_v31 }
  0x36   : > { %1639 = vmatpush3.bf16.msra.mxu1 %v1721_v32 }
  0x38   : > { %627 = vmatmul.mubr.bf16.vlgmr.msra.gmra.mrb[0].mxu0 %v1722_v33 }
  0x39   : > { %692 = vmatmul.mubr.bf16.vlgmr.msra.gmra.mrb[0].mxu1 %v1725_v35  ;;  %634 = vmatprep.mubr.bf16.mxu0 %v1728_v37 }
  0x3a   : > { %699 = vmatprep.mubr.bf16.mxu1 %v1730_v38 }
  0x40   : > { %635 = vmatmul.mubr.bf16.gmra.mrb[4].mxu0 %v1732_v39 }
  0x41   : > { %700 = vmatmul.mubr.bf16.gmra.mrb[4].mxu1 %v1733_v40  ;;  %642 = vmatprep.mubr.bf16.mxu0 %v1734_v41  ;;  %v734_v41 = vld [vmem:[#allocation2] sm:$0xff] }
  0x42   : > { %707 = vmatprep.mubr.bf16.mxu1 %v1736_v42 }
  0x48   : > { %643 = vmatmul.mubr.bf16.gmra.mrb[8].mxu0 %v1738_v43 }
  0x49   : > { %708 = vmatmul.mubr.bf16.gmra.mrb[8].mxu1 %v1739_v44  ;;  %650 = vmatprep.mubr.bf16.mxu0 %v1740_v45  ;;  %v735_v44 = vld [vmem:[#allocation2 + $0x8] sm:$0xff] }
  0x4a   : > { %715 = vmatprep.mubr.bf16.mxu1 %v1742_v46 }
  0x50   : > { %651 = vmatmul.mubr.bf16.gmra.mrb[12].mxu0 %v1744_v47  ;;  %v736_v47 = vld [vmem:[#allocation2 + $0x10] sm:$0xff] }
  0x51   : > { %716 = vmatmul.mubr.bf16.gmra.mrb[12].mxu1 %v1745_v48 }
 0x10b   : > { %v1600_v49 = vpop.f32.mrb[0].mxu0 }
 0x10c   : > { %v1640_v50 = vpop.f32.mrb[0].mxu1  ;;  %v1601_v51 = vpop.f32.mrb[1].mxu0 }
 0x10d   : > { %v1602_v52 = vadd.f32 %v1601_v51, %v1600_v49  ;;  %v1641_v53 = vpop.f32.mrb[1].mxu1  ;;  %v1603_v54 = vpop.f32.mrb[2].mxu0 }
 0x10e   : > { %v1642_v55 = vadd.f32 %v1641_v53, %v1640_v50  ;;  %v1643_v56 = vpop.f32.mrb[2].mxu1  ;;  %v1604_v57 = vpop.f32.mrb[3].mxu0  ;;  %v737_v50 = vld [vmem:[#allocation2 + $0x18] sm:$0xff]  ;;  %v738_v53 = vld [vmem:[#allocation2 + $0x20] sm:$0xff] }
 0x10f   : > { %v1605_v58 = vadd.f32 %v1604_v57, %v1603_v54  ;;  %v1644_v59 = vpop.f32.mrb[3].mxu1 }
 0x110   : > { %v1645_v60 = vadd.f32 %v1644_v59, %v1643_v56  ;;  %v694_v61 = vadd.f32 %v1642_v55, %v1602_v52  ;;  %v739_v55 = vld [vmem:[#allocation2 + $0x28] sm:$0xff]  ;;  %v740_v59 = vld [vmem:[#allocation2 + $0x30] sm:$0xff] }
 0x112   : > { %742 = vadd.xlane.f32.xlu0 %v694_v61  ;;  %726 = vst [vmem:[%s1900_s5] sm:$0xff] %v694_v61  ;;  %v697_v62 = vadd.f32 %v1645_v60, %v1605_v58  ;;  %v741_v61 = vld [vmem:[#allocation2 + $0x38] sm:$0xff] }
 0x113   : > { %v1606_v63 = vpop.f32.mrb[4].mxu0 }
 0x114   : > { %v1646_v0 = vpop.f32.mrb[4].mxu1  ;;  %v1607_v1 = vpop.f32.mrb[5].mxu0  ;;  %727 = vst [vmem:[%s1900_s5 + $0x8] sm:$0xff] %v697_v62 }
 0x115   : > { %v1608_v2 = vadd.f32 %v1607_v1, %v1606_v63  ;;  %v1647_v3 = vpop.f32.mrb[5].mxu1  ;;  %v1609_v4 = vpop.f32.mrb[6].mxu0 }
 0x116   : > { %v1648_v5 = vadd.f32 %v1647_v3, %v1646_v0  ;;  %v1649_v6 = vpop.f32.mrb[6].mxu1  ;;  %744 = vadd.xlane.f32.xlu0 %v697_v62  ;;  %v1610_v7 = vpop.f32.mrb[7].mxu0 }
 0x117   : > { %v1611_v8 = vadd.f32 %v1610_v7, %v1609_v4  ;;  %v1650_v9 = vpop.f32.mrb[7].mxu1 }
 0x118   : > { %v1651_v10 = vadd.f32 %v1650_v9, %v1649_v6  ;;  %v702_v11 = vadd.f32 %v1648_v5, %v1608_v2 }
 0x11a   : > { %746 = vadd.xlane.f32.xlu1 %v702_v11  ;;  %728 = vst [vmem:[%s1900_s5 + $0x10] sm:$0xff] %v702_v11  ;;  %v705_v12 = vadd.f32 %v1651_v10, %v1611_v8 }
 0x11b   : > { %v1612_v13 = vpop.f32.mrb[8].mxu0 }
 0x11c   : > { %v1652_v14 = vpop.f32.mrb[8].mxu1  ;;  %v1613_v15 = vpop.f32.mrb[9].mxu0  ;;  %729 = vst [vmem:[%s1900_s5 + $0x18] sm:$0xff] %v705_v12 }
 0x11d   : > { %v1614_v16 = vadd.f32 %v1613_v15, %v1612_v13  ;;  %v1653_v17 = vpop.f32.mrb[9].mxu1  ;;  %v1615_v18 = vpop.f32.mrb[10].mxu0 }
 0x11e   : > { %v1654_v19 = vadd.f32 %v1653_v17, %v1652_v14  ;;  %v1655_v20 = vpop.f32.mrb[10].mxu1  ;;  %748 = vadd.xlane.f32.xlu1 %v705_v12  ;;  %v1616_v21 = vpop.f32.mrb[11].mxu0 }
 0x11f   : > { %v1617_v22 = vadd.f32 %v1616_v21, %v1615_v18  ;;  %v1656_v23 = vpop.f32.mrb[11].mxu1 }
 0x120   : > { %v1657_v24 = vadd.f32 %v1656_v23, %v1655_v20  ;;  %v710_v25 = vadd.f32 %v1654_v19, %v1614_v16 }
 0x122   : > { %730 = vst [vmem:[%s1900_s5 + $0x20] sm:$0xff] %v710_v25  ;;  %750 = vadd.xlane.f32.xlu0 %v710_v25  ;;  %v713_v26 = vadd.f32 %v1657_v24, %v1617_v22 }
 0x123   : > { %v1618_v27 = vpop.f32.mrb[12].mxu0 }
 0x124   : > { %v1658_v28 = vpop.f32.mrb[12].mxu1  ;;  %731 = vst [vmem:[%s1900_s5 + $0x28] sm:$0xff] %v713_v26  ;;  %752 = vadd.xlane.f32.xlu1 %v713_v26  ;;  %v1619_v29 = vpop.f32.mrb[13].mxu0 }
 0x125   : > { %v1620_v30 = vadd.f32 %v1619_v29, %v1618_v27  ;;  %v1659_v31 = vpop.f32.mrb[13].mxu1  ;;  %v1621_v32 = vpop.f32.mrb[14].mxu0 }
 0x126   : > { %v1660_v33 = vadd.f32 %v1659_v31, %v1658_v28  ;;  %v1661_v34 = vpop.f32.mrb[14].mxu1  ;;  %v1622_v35 = vpop.f32.mrb[15].mxu0 }
 0x127   : > { %v1623_v36 = vadd.f32 %v1622_v35, %v1621_v32  ;;  %v1662_v37 = vpop.f32.mrb[15].mxu1 }
 0x128   : > { %v1663_v38 = vadd.f32 %v1662_v37, %v1661_v34  ;;  %v718_v39 = vadd.f32 %v1660_v33, %v1620_v30 }
 0x12a   : > { %732 = vst [vmem:[%s1900_s5 + $0x30] sm:$0xff] %v718_v39  ;;  %754 = vadd.xlane.f32.xlu0 %v718_v39  ;;  %v721_v40 = vadd.f32 %v1663_v38, %v1623_v36 }
 0x12c   : > { %733 = vst [vmem:[%s1900_s5 + $0x38] sm:$0xff] %v721_v40  ;;  %756 = vadd.xlane.f32.xlu1 %v721_v40 }
 0x19f   : > { %v743_v42 = vpop.xlane.xlu0 %742 }
 0x1a0   : > { %v758_v43 = vadd.f32 %v743_v42, %v734_v41 }
 0x1a2   : > { %767 = vst.msk [vmem:[#allocation2] sm:$0xff] %vm766_vm1, %v758_v43 }
 0x1a3   : > { %v745_v45 = vpop.xlane.xlu0 %744 }
 0x1a4   : > { %v759_v46 = vadd.f32 %v745_v45, %v735_v44 }
 0x1a6   : > { %768 = vst.msk [vmem:[#allocation2 + $0x8] sm:$0xff] %vm766_vm1, %v759_v46 }
 0x1a7   : > { %v747_v48 = vpop.xlane.xlu1 %746 }
 0x1a8   : > { %v760_v49 = vadd.f32 %v747_v48, %v736_v47 }
 0x1aa   : > { %769 = vst.msk [vmem:[#allocation2 + $0x10] sm:$0xff] %vm766_vm1, %v760_v49 }
 0x1ab   : > { %v749_v51 = vpop.xlane.xlu1 %748 }
 0x1ac   : > { %v761_v52 = vadd.f32 %v749_v51, %v737_v50 }
 0x1ae   : > { %770 = vst.msk [vmem:[#allocation2 + $0x18] sm:$0xff] %vm766_vm1, %v761_v52 }
 0x1af   : > { %v751_v54 = vpop.xlane.xlu0 %750 }
 0x1b0   : > { %v762_v56 = vadd.f32 %v751_v54, %v738_v53 }
 0x1b1   : > { %v753_v57 = vpop.xlane.xlu1 %752 }
 0x1b2   : > { %771 = vst.msk [vmem:[#allocation2 + $0x20] sm:$0xff] %vm766_vm1, %v762_v56  ;;  %v763_v58 = vadd.f32 %v753_v57, %v739_v55 }
 0x1b4   : > { %772 = vst.msk [vmem:[#allocation2 + $0x28] sm:$0xff] %vm766_vm1, %v763_v58 }
 0x1b6   : > { %779 = sbr.rel (!%p775_p6) target bundleno = 970 (0x3ca), region = 44 }
 0x1b7   : > { %v755_v60 = vpop.xlane.xlu0 %754 }
 0x1b8   : > { %v764_v62 = vadd.f32 %v755_v60, %v740_v59 }
 0x1b9   : > { %v757_v63 = vpop.xlane.xlu1 %756 }
 0x1ba   : > { %773 = vst.msk [vmem:[#allocation2 + $0x30] sm:$0xff] %vm766_vm1, %v764_v62  ;;  %v765_v0 = vadd.f32 %v757_v63, %v741_v61 }
 0x1bc   : > { %774 = vst.msk [vmem:[#allocation2 + $0x38] sm:$0xff] %vm766_vm1, %v765_v0 }
 0x1bd   : > { %v782_v1 = vld [vmem:[#allocation2 + $0x10] sm:$0xff]  ;;  %v780_v2 = vld [vmem:[#allocation2] sm:$0xff]  ;;  %v783_v3 = vld [vmem:[#allocation2 + $0x18] sm:$0xff]  ;;  %v1789_v4 = vmov 0  }
 0x1be   : > { %1747 = vset.pattern.permute.xlu1 %v1789_v4  ;;  %1746 = vset.pattern.permute.xlu0 %v1789_v4  ;;  %v1921_v5 = vmul.f32 0.001953125, %v782_v1  ;;  %v1923_v6 = vmul.f32 0.001953125, %v780_v2  ;;  %v781_v7 = vld [vmem:[#allocation2 + $0x8] sm:$0xff]  ;;  %v1927_v8 = vmul.f32 0.001953125, %v783_v3  ;;  %v784_v11 = vld [vmem:[#allocation2 + $0x20] sm:$0xff]  ;;  %v1953_v19 = vld [vmem:[%s2454_s4 + $0x10] sm:$0xff] }
 0x1bf   : > { %v1929_v9 = vmul.f32 0.001953125, %v781_v7  ;;  %v785_v10 = vld [vmem:[#allocation2 + $0x28] sm:$0xff]  ;;  %v1935_v13 = vmul.f32 0.001953125, %v784_v11  ;;  %v1948_v18 = vld [vmem:[%s2454_s4] sm:$0xff]  ;;  %v1975_v28 = vld [vmem:[%s2454_s4 + $0x18] sm:$0xff] }
 0x1c0   : > { %816 = vperm.xlu1 %1747, %v1921_v5   ;;  %806 = vperm.xlu0 %1746, %v1923_v6   ;;  %v1933_v12 = vmul.f32 0.001953125, %v785_v10  ;;  %v1966_v24 = vld [vmem:[%s2454_s4 + $0x8] sm:$0xff]  ;;  %v1982_v31 = vld [vmem:[%s2454_s4 + $0x20] sm:$0xff]  ;;  %v2000_v38 = vld [vmem:[%s2454_s4 + $0x30] sm:$0xff] }
 0x1c1   : > { %v786_v15 = vld [vmem:[#allocation2 + $0x30] sm:$0xff]  ;;  %2473 = vst [vmem:[#allocation3_spill] sm:$0xff] %v1982_v31  ;;  %v1993_v36 = vld [vmem:[%s2454_s4 + $0x28] sm:$0xff]  ;;  %2475 = vst [vmem:[#allocation5_spill] sm:$0xff] %v2000_v38 }
 0x1c2   : > { %v1941_v17 = vmul.f32 0.001953125, %v786_v15  ;;  %2474 = vst [vmem:[#allocation4_spill] sm:$0xff] %v1993_v36  ;;  %v2011_v44 = vld [vmem:[%s2454_s4 + $0x38] sm:$0xff]  ;;  %v2016_v45 = vld [vmem:[%s2454_s4 + $0x40] sm:$0xff]  ;;  %v2027_v51 = vld [vmem:[%s2454_s4 + $0x48] sm:$0xff] }
 0x1c3   : > { %v787_v14 = vld [vmem:[#allocation2 + $0x38] sm:$0xff]  ;;  %2476 = vst [vmem:[#allocation6_spill] sm:$0xff] %v2011_v44  ;;  %v2032_v52 = vld [vmem:[%s2454_s4 + $0x50] sm:$0xff]  ;;  %v2046_v58 = vld [vmem:[%s2454_s4 + $0x60] sm:$0xff] }
 0x1c4   : > { %821 = vperm.xlu1 %1747, %v1927_v8   ;;  %811 = vperm.xlu0 %1746, %v1929_v9   ;;  %v1939_v16 = vmul.f32 0.001953125, %v787_v14  ;;  %v2041_v57 = vld [vmem:[%s2454_s4 + $0x58] sm:$0xff]  ;;  %2477 = vst [vmem:[#allocation7_spill] sm:$0xff] %v2046_v58  ;;  %v2055_v63 = vld [vmem:[%s2454_s4 + $0x68] sm:$0xff]  ;;  %v2060_v0 = vld [vmem:[%s2454_s4 + $0x70] sm:$0xff] }
 0x1c5   : > { %2478 = vst [vmem:[#allocation8_spill] sm:$0xff] %v2055_v63  ;;  %2479 = vst [vmem:[#allocation9_spill] sm:$0xff] %v2060_v0  ;;  %v2069_v7 = vld [vmem:[%s2454_s4 + $0x78] sm:$0xff]  ;;  %v2074_v10 = vld [vmem:[%s2454_s4 + $0x80] sm:$0xff] }
 0x1c6   : > { %2480 = vst [vmem:[#allocation10_spill] sm:$0xff] %v2069_v7 }
 0x1c8   : > { %831 = vperm.xlu1 %1747, %v1933_v12   ;;  %826 = vperm.xlu0 %1746, %v1935_v13  }
 0x1cc   : > { %841 = vperm.xlu1 %1747, %v1939_v16   ;;  %836 = vperm.xlu0 %1746, %v1941_v17  }
 0x23f   : > { %v1955_v20 = vpop.permute.xlu1 %816  ;;  %v1957_v21 = vpop.permute.xlu0 %806 }
 0x240   : > { %v844_v22 = vsub.f32 %v1948_v18, %v1957_v21  ;;  %v846_v23 = vsub.f32 %v1953_v19, %v1955_v20  ;;  %v893_v50 = vsub.f32 %v2016_v45, %v1957_v21  ;;  %v895_v56 = vsub.f32 %v2032_v52, %v1955_v20 }
 0x242   : > { %v852_v25 = vmul.f32 %v844_v22, %v844_v22  ;;  %v854_v29 = vmul.f32 %v846_v23, %v846_v23  ;;  %v901_v54 = vmul.f32 %v893_v50, %v893_v50  ;;  %v903_v60 = vmul.f32 %v895_v56, %v895_v56  ;;  %v2083_v23 = vld [vmem:[%s2454_s4 + $0x88] sm:$0xff]  ;;  %v2125_v56 = vld [vmem:[%s2454_s4 + $0xb8] sm:$0xff] }
 0x243   : > { %v1968_v26 = vpop.permute.xlu1 %821  ;;  %v1970_v27 = vpop.permute.xlu0 %811  ;;  %v942_v22 = vsub.f32 %v2074_v10, %v1957_v21  ;;  %2485 = vst [vmem:[#allocation15_spill] sm:$0xff] %v2125_v56 }
 0x244   : > { %860 = vadd.xlane.f32.xlu0 %v852_v25  ;;  %v845_v30 = vsub.f32 %v1966_v24, %v1970_v27  ;;  %v847_v33 = vsub.f32 %v1975_v28, %v1968_v26  ;;  %v894_v55 = vsub.f32 %v2027_v51, %v1970_v27  ;;  %v896_v61 = vsub.f32 %v2041_v57, %v1968_v26  ;;  %v2088_v25 = vld [vmem:[%s2454_s4 + $0x90] sm:$0xff] }
 0x246   : > { %v853_v32 = vmul.f32 %v845_v30, %v845_v30  ;;  %v855_v39 = vmul.f32 %v847_v33, %v847_v33  ;;  %v902_v59 = vmul.f32 %v894_v55, %v894_v55  ;;  %v904_v1 = vmul.f32 %v896_v61, %v896_v61 }
 0x247   : > { %v1986_v34 = vpop.permute.xlu1 %831  ;;  %v1988_v35 = vpop.permute.xlu0 %826  ;;  %v950_v30 = vmul.f32 %v942_v22, %v942_v22  ;;  %v944_v33 = vsub.f32 %v2088_v25, %v1955_v20  ;;  %v2158_v22 = vld [vmem:[%s2454_s4 + $0xe0] sm:$0xff] }
 0x248   : > { %864 = vadd.xlane.f32.xlu0 %v854_v29  ;;  %862 = vadd.xlane.f32.xlu1 %v853_v32  ;;  %v848_v37 = vsub.f32 %v1982_v31, %v1988_v35  ;;  %v849_v41 = vsub.f32 %v1993_v36, %v1986_v34  ;;  %v897_v62 = vsub.f32 %v2046_v58, %v1988_v35 }
 0x249   : > { %v898_v3 = vsub.f32 %v2055_v63, %v1986_v34  ;;  %v943_v32 = vsub.f32 %v2083_v23, %v1970_v27  ;;  %2487 = vst [vmem:[#allocation17_spill] sm:$0xff] %v2158_v22 }
 0x24a   : > { %v856_v40 = vmul.f32 %v848_v37, %v848_v37  ;;  %v857_v47 = vmul.f32 %v849_v41, %v849_v41  ;;  %v905_v2 = vmul.f32 %v897_v62, %v897_v62  ;;  %v2097_v37 = vld [vmem:[%s2454_s4 + $0x98] sm:$0xff]  ;;  %v952_v41 = vmul.f32 %v944_v33, %v944_v33  ;;  %v2172_v33 = vld [vmem:[%s2454_s4 + $0xf0] sm:$0xff] }
 0x24b   : > { %v2004_v42 = vpop.permute.xlu1 %841  ;;  %v2006_v43 = vpop.permute.xlu0 %836  ;;  %v906_v11 = vmul.f32 %v898_v3, %v898_v3  ;;  %2481 = vst [vmem:[#allocation11_spill] sm:$0xff] %v2097_v37  ;;  %v2144_v3 = vld [vmem:[%s2454_s4 + $0xd0] sm:$0xff]  ;;  %2489 = vst [vmem:[#allocation19_spill] sm:$0xff] %v2172_v33 }
 0x24c   : > { %866 = vadd.xlane.f32.xlu0 %v855_v39  ;;  %868 = vadd.xlane.f32.xlu1 %v856_v40  ;;  %v850_v46 = vsub.f32 %v2000_v38, %v2006_v43  ;;  %v851_v49 = vsub.f32 %v2011_v44, %v2004_v42  ;;  %v899_v4 = vsub.f32 %v2060_v0, %v2006_v43  ;;  %v2102_v39 = vld [vmem:[%s2454_s4 + $0xa0] sm:$0xff] }
 0x24d   : > { %v900_v15 = vsub.f32 %v2069_v7, %v2004_v42  ;;  %2482 = vst [vmem:[#allocation12_spill] sm:$0xff] %v2102_v39  ;;  %v951_v40 = vmul.f32 %v943_v32, %v943_v32  ;;  %v949_v62 = vsub.f32 %v2125_v56, %v2004_v42  ;;  %v2167_v32 = vld [vmem:[%s2454_s4 + $0xe8] sm:$0xff] }
 0x24e   : > { %v858_v48 = vmul.f32 %v850_v46, %v850_v46  ;;  %v859_v53 = vmul.f32 %v851_v49, %v851_v49  ;;  %v907_v14 = vmul.f32 %v899_v4, %v899_v4  ;;  %v945_v46 = vsub.f32 %v2097_v37, %v1968_v26  ;;  %v2116_v49 = vld [vmem:[%s2454_s4 + $0xb0] sm:$0xff]  ;;  %2488 = vst [vmem:[#allocation18_spill] sm:$0xff] %v2167_v32 }
 0x24f   : > { %v908_v29 = vmul.f32 %v900_v15, %v900_v15  ;;  %2484 = vst [vmem:[#allocation14_spill] sm:$0xff] %v2116_v49  ;;  %v948_v55 = vsub.f32 %v2116_v49, %v2006_v43  ;;  %v957_v4 = vmul.f32 %v949_v62, %v949_v62  ;;  %v2153_v15 = vld [vmem:[%s2454_s4 + $0xd8] sm:$0xff] }
 0x250   : > { %870 = vadd.xlane.f32.xlu0 %v857_v47  ;;  %872 = vadd.xlane.f32.xlu1 %v858_v48  ;;  %v946_v47 = vsub.f32 %v2102_v39, %v1988_v35  ;;  %v2111_v48 = vld [vmem:[%s2454_s4 + $0xa8] sm:$0xff]  ;;  %v953_v50 = vmul.f32 %v945_v46, %v945_v46  ;;  %2486 = vst [vmem:[#allocation16_spill] sm:$0xff] %v2153_v15  ;;  %v2181_v46 = vld [vmem:[%s2454_s4 + $0xf8] sm:$0xff] }
 0x251   : > { %2483 = vst [vmem:[#allocation13_spill] sm:$0xff] %v2111_v48  ;;  %v956_v61 = vmul.f32 %v948_v55, %v948_v55  ;;  %2490 = vst [vmem:[#allocation20_spill] sm:$0xff] %v2181_v46 }
 0x254   : > { %874 = vadd.xlane.f32.xlu0 %v859_v53  ;;  %909 = vadd.xlane.f32.xlu1 %v901_v54  ;;  %v954_v53 = vmul.f32 %v946_v47, %v946_v47  ;;  %v947_v54 = vsub.f32 %v2111_v48, %v1986_v34 }
 0x258   : > { %911 = vadd.xlane.f32.xlu0 %v902_v59  ;;  %913 = vadd.xlane.f32.xlu1 %v903_v60  ;;  %v2130_v59 = vld [vmem:[%s2454_s4 + $0xc0] sm:$0xff]  ;;  %v955_v60 = vmul.f32 %v947_v54, %v947_v54 }
 0x25c   : > { %915 = vadd.xlane.f32.xlu0 %v904_v1  ;;  %917 = vadd.xlane.f32.xlu1 %v905_v2  ;;  %v991_v1 = vsub.f32 %v2130_v59, %v1957_v21  ;;  %v2139_v2 = vld [vmem:[%s2454_s4 + $0xc8] sm:$0xff]  ;;  %v993_v21 = vsub.f32 %v2144_v3, %v1955_v20  ;;  %v995_v20 = vsub.f32 %v2158_v22, %v1988_v35 }
 0x25d   : > { %v997_v35 = vsub.f32 %v2172_v33, %v2006_v43 }
 0x260   : > { %919 = vadd.xlane.f32.xlu0 %v906_v11  ;;  %921 = vadd.xlane.f32.xlu1 %v907_v14  ;;  %v999_v11 = vmul.f32 %v991_v1, %v991_v1  ;;  %v992_v14 = vsub.f32 %v2139_v2, %v1970_v27  ;;  %v994_v27 = vsub.f32 %v2153_v15, %v1968_v26 }
 0x261   : > { %v996_v26 = vsub.f32 %v2167_v32, %v1986_v34 }
 0x263   : > { %v1004_v47 = vmul.f32 %v996_v26, %v996_v26 }
 0x264   : > { %923 = vadd.xlane.f32.xlu0 %v908_v29  ;;  %958 = vadd.xlane.f32.xlu1 %v950_v30  ;;  %v1000_v29 = vmul.f32 %v992_v14, %v992_v14  ;;  %v1001_v30 = vmul.f32 %v993_v21, %v993_v21 }
 0x268   : > { %960 = vadd.xlane.f32.xlu0 %v951_v40  ;;  %962 = vadd.xlane.f32.xlu1 %v952_v41  ;;  %v1002_v40 = vmul.f32 %v994_v27, %v994_v27  ;;  %v1003_v41 = vmul.f32 %v995_v20, %v995_v20 }
 0x26c   : > { %964 = vadd.xlane.f32.xlu0 %v953_v50  ;;  %966 = vadd.xlane.f32.xlu1 %v954_v53  ;;  %v1005_v50 = vmul.f32 %v997_v35, %v997_v35  ;;  %v998_v53 = vsub.f32 %v2181_v46, %v2004_v42 }
 0x26e   : > { %v1006_v54 = vmul.f32 %v998_v53, %v998_v53 }
 0x270   : > { %968 = vadd.xlane.f32.xlu0 %v955_v60  ;;  %970 = vadd.xlane.f32.xlu1 %v956_v61 }
 0x274   : > { %972 = vadd.xlane.f32.xlu0 %v957_v4  ;;  %1007 = vadd.xlane.f32.xlu1 %v999_v11 }
 0x278   : > { %1009 = vadd.xlane.f32.xlu0 %v1000_v29  ;;  %1011 = vadd.xlane.f32.xlu1 %v1001_v30 }
 0x27c   : > { %1013 = vadd.xlane.f32.xlu0 %v1002_v40  ;;  %1015 = vadd.xlane.f32.xlu1 %v1003_v41 }
 0x280   : > { %1017 = vadd.xlane.f32.xlu0 %v1004_v47  ;;  %1019 = vadd.xlane.f32.xlu1 %v1005_v50 }
 0x284   : > { %1021 = vadd.xlane.f32.xlu0 %v1006_v54 }
 0x2d1   : > { %v861_v34 = vpop.xlane.xlu0 %860 }
 0x2d5   : > { %v863_v55 = vpop.xlane.xlu1 %862  ;;  %v865_v60 = vpop.xlane.xlu0 %864 }
 0x2d9   : > { %v869_v43 = vpop.xlane.xlu1 %868  ;;  %v867_v61 = vpop.xlane.xlu0 %866 }
 0x2dd   : > { %v873_v62 = vpop.xlane.xlu1 %872  ;;  %v871_v1 = vpop.xlane.xlu0 %870 }
 0x2e1   : > { %v910_v4 = vpop.xlane.xlu1 %909  ;;  %v875_v11 = vpop.xlane.xlu0 %874 }
 0x2e2   : > { %v925_v54 = vadd.f32 %v910_v4, %v861_v34 }
 0x2e5   : > { %v914_v14 = vpop.xlane.xlu1 %913  ;;  %v912_v21 = vpop.xlane.xlu0 %911 }
 0x2e6   : > { %v927_v44 = vadd.f32 %v914_v14, %v865_v60  ;;  %v926_v33 = vadd.f32 %v912_v21, %v863_v55 }
 0x2e9   : > { %v918_v29 = vpop.xlane.xlu1 %917  ;;  %v916_v30 = vpop.xlane.xlu0 %915 }
 0x2ea   : > { %v929_v48 = vadd.f32 %v918_v29, %v869_v43  ;;  %v928_v22 = vadd.f32 %v916_v30, %v867_v61 }
 0x2ed   : > { %v922_v27 = vpop.xlane.xlu1 %921  ;;  %v920_v20 = vpop.xlane.xlu0 %919 }
 0x2f1   : > { %v959_v42 = vpop.xlane.xlu1 %958  ;;  %v924_v40 = vpop.xlane.xlu0 %923 }
 0x2f2   : > { %v974_v46 = vadd.f32 %v959_v42, %v925_v54  ;;  %v931_v42 = vadd.f32 %v922_v27, %v873_v62  ;;  %v930_v54 = vadd.f32 %v920_v20, %v871_v1  ;;  %v1040_v27 = vld [vmem:[%s2452_s2 + $0x8] sm:$0xff] }
 0x2f5   : > { %v963_v41 = vpop.xlane.xlu1 %962  ;;  %v961_v26 = vpop.xlane.xlu0 %960 }
 0x2f6   : > { %v976_v0 = vadd.f32 %v963_v41, %v927_v44  ;;  %v975_v38 = vadd.f32 %v961_v26, %v926_v33 }
 0x2f9   : > { %v967_v35 = vpop.xlane.xlu1 %966  ;;  %v965_v47 = vpop.xlane.xlu0 %964 }
 0x2fa   : > { %v978_v15 = vadd.f32 %v967_v35, %v929_v48  ;;  %v977_v37 = vadd.f32 %v965_v47, %v928_v22  ;;  %v1043_v47 = vld [vmem:[%s2452_s2 + $0x20] sm:$0xff] }
 0x2fd   : > { %v971_v50 = vpop.xlane.xlu1 %970  ;;  %v969_v53 = vpop.xlane.xlu0 %968 }
 0x2fe   : > { %v979_v43 = vadd.f32 %v969_v53, %v930_v54  ;;  %v1045_v54 = vld [vmem:[%s2452_s2 + $0x30] sm:$0xff] }
 0x301   : > { %v1008_v56 = vpop.xlane.xlu1 %1007  ;;  %v973_v7 = vpop.xlane.xlu0 %972 }
 0x302   : > { %v1023_v49 = vadd.f32 %v1008_v56, %v974_v46  ;;  %v980_v46 = vadd.f32 %v971_v50, %v931_v42  ;;  %v1042_v50 = vld [vmem:[%s2452_s2 + $0x18] sm:$0xff] }
 0x304   : > { %v1031_v32 = vmul.f32 0.001953125, %v1023_v49 }
 0x305   : > { %v1012_v63 = vpop.xlane.xlu1 %1011  ;;  %v1010_v36 = vpop.xlane.xlu0 %1009 }
 0x306   : > { %v1047_v39 = vadd.f32 1e-05, %v1031_v32  ;;  %v1025_v58 = vadd.f32 %v1012_v63, %v976_v0  ;;  %v1024_v31 = vadd.f32 %v1010_v36, %v975_v38  ;;  %v932_v63 = vadd.f32 %v924_v40, %v875_v11 }
 0x308   : > { %1748 = vrsqrt.f32 %v1047_v39  ;;  %v1033_v34 = vmul.f32 0.001953125, %v1025_v58  ;;  %v1032_v4 = vmul.f32 0.001953125, %v1024_v31  ;;  %v981_v48 = vadd.f32 %v973_v7, %v932_v63  ;;  %v1041_v7 = vld [vmem:[%s2452_s2 + $0x10] sm:$0xff] }
 0x309   : > { %v1016_v60 = vpop.xlane.xlu1 %1015  ;;  %v1014_v55 = vpop.xlane.xlu0 %1013 }
 0x30a   : > { %v1049_v56 = vadd.f32 1e-05, %v1033_v34  ;;  %v1048_v44 = vadd.f32 1e-05, %v1032_v4  ;;  %v1027_v33 = vadd.f32 %v1016_v60, %v978_v15  ;;  %v1026_v49 = vadd.f32 %v1014_v55, %v977_v37  ;;  %v1039_v37 = vld [vmem:[%s2452_s2] sm:$0xff]  ;;  %v1044_v60 = vld [vmem:[%s2452_s2 + $0x28] sm:$0xff] }
 0x30c   : > { %1750 = vrsqrt.f32 %v1049_v56  ;;  %v1035_v61 = vmul.f32 0.001953125, %v1027_v33  ;;  %v1034_v32 = vmul.f32 0.001953125, %v1026_v49 }
 0x30d   : > { %1752 = vrsqrt.f32 %v1048_v44  ;;  %v1020_v36 = vpop.xlane.xlu1 %1019  ;;  %v1018_v38 = vpop.xlane.xlu0 %1017 }
 0x30e   : > { %v1051_v0 = vadd.f32 1e-05, %v1035_v61  ;;  %v1050_v58 = vadd.f32 1e-05, %v1034_v32  ;;  %v1029_v31 = vadd.f32 %v1020_v36, %v980_v46  ;;  %v1028_v39 = vadd.f32 %v1018_v38, %v979_v43  ;;  %v1046_v46 = vld [vmem:[%s2452_s2 + $0x38] sm:$0xff]  ;;  %v1071_v43 = vld [vmem:[%s2453_s3] sm:$0xff] }
 0x310   : > { %1754 = vrsqrt.f32 %v1051_v0  ;;  %v1037_v22 = vmul.f32 0.001953125, %v1029_v31  ;;  %v1036_v62 = vmul.f32 0.001953125, %v1028_v39  ;;  %v1072_v0 = vld [vmem:[%s2453_s3 + $0x8] sm:$0xff] }
 0x311   : > { %1756 = vrsqrt.f32 %v1050_v58  ;;  %v1022_v15 = vpop.xlane.xlu0 %1021 }
 0x312   : > { %v1749_v1 = vpop.eup %1748  ;;  %v1053_v14 = vadd.f32 1e-05, %v1037_v22  ;;  %v1052_v11 = vadd.f32 1e-05, %v1036_v62  ;;  %v1030_v21 = vadd.f32 %v1022_v15, %v981_v48 }
 0x313   : > { %v1063_v29 = vmul.f32 %v1749_v1, %v1039_v37 }
 0x314   : > { %1758 = vrsqrt.f32 %v1053_v14  ;;  %v1038_v30 = vmul.f32 0.001953125, %v1030_v21 }
 0x315   : > { %1760 = vrsqrt.f32 %v1052_v11  ;;  %1097 = vperm.xlu1 %1747, %v1063_v29   ;;  %v1079_v49 = vmul.f32 %v1063_v29, %v1923_v6  ;;  %v1073_v6 = vld [vmem:[%s2453_s3 + $0x10] sm:$0xff] }
 0x316   : > { %v1751_v20 = vpop.eup %1750  ;;  %v1054_v40 = vadd.f32 1e-05, %v1038_v30 }
 0x317   : > { %v1753_v41 = vpop.eup %1752  ;;  %v1065_v26 = vmul.f32 %v1751_v20, %v1041_v7  ;;  %v1087_v63 = vsub.f32 %v1071_v43, %v1079_v49  ;;  %v2499_v49 = vld [vmem:[#allocation13_spill] sm:$0xff]  ;;  %v2500_v43 = vld [vmem:[#allocation18_spill] sm:$0xff] }
 0x318   : > { %1762 = vrsqrt.f32 %v1054_v40  ;;  %v1064_v35 = vmul.f32 %v1753_v41, %v1040_v27 }
 0x319   : > { %1107 = vperm.xlu1 %1747, %v1065_v26   ;;  %v1081_v36 = vmul.f32 %v1065_v26, %v1921_v5  ;;  %v1075_v5 = vld [vmem:[%s2453_s3 + $0x20] sm:$0xff] }
 0x31a   : > { %v1755_v53 = vpop.eup %1754  ;;  %1102 = vperm.xlu0 %1746, %v1064_v35   ;;  %v1080_v38 = vmul.f32 %v1064_v35, %v1929_v9  ;;  %v1074_v9 = vld [vmem:[%s2453_s3 + $0x18] sm:$0xff] }
 0x31b   : > { %v1757_v34 = vpop.eup %1756  ;;  %v1067_v4 = vmul.f32 %v1755_v53, %v1043_v47  ;;  %v1089_v58 = vsub.f32 %v1073_v6, %v1081_v36  ;;  %v2501_v36 = vld [vmem:[#allocation5_spill] sm:$0xff] }
 0x31c   : > { %v1066_v42 = vmul.f32 %v1757_v34, %v1042_v50  ;;  %v1088_v31 = vsub.f32 %v1072_v0, %v1080_v38  ;;  %v2502_v6 = vld [vmem:[#allocation9_spill] sm:$0xff] }
 0x31d   : > { %v1083_v39 = vmul.f32 %v1067_v4, %v1935_v13  ;;  %v1076_v13 = vld [vmem:[%s2453_s3 + $0x28] sm:$0xff] }
 0x31e   : > { %v1759_v55 = vpop.eup %1758  ;;  %1117 = vperm.xlu0 %1746, %v1067_v4   ;;  %1112 = vperm.xlu1 %1747, %v1066_v42   ;;  %v1082_v48 = vmul.f32 %v1066_v42, %v1927_v8  ;;  %v1077_v8 = vld [vmem:[%s2453_s3 + $0x30] sm:$0xff] }
 0x31f   : > { %v1761_v56 = vpop.eup %1760  ;;  %v1069_v44 = vmul.f32 %v1759_v55, %v1045_v54  ;;  %v1091_v22 = vsub.f32 %v1075_v5, %v1083_v39  ;;  %v2504_v39 = vld [vmem:[#allocation19_spill] sm:$0xff] }
 0x320   : > { %v1068_v33 = vmul.f32 %v1761_v56, %v1044_v60  ;;  %v1090_v62 = vsub.f32 %v1074_v9, %v1082_v48 }
 0x321   : > { %v1085_v37 = vmul.f32 %v1069_v44, %v1941_v17  ;;  %v1078_v17 = vld [vmem:[%s2453_s3 + $0x38] sm:$0xff] }
 0x322   : > { %v1763_v61 = vpop.eup %1762  ;;  %1127 = vperm.xlu0 %1746, %v1069_v44   ;;  %1122 = vperm.xlu1 %1747, %v1068_v33   ;;  %v1084_v15 = vmul.f32 %v1068_v33, %v1933_v12  ;;  %v2498_v44 = vld [vmem:[#allocation8_spill] sm:$0xff] }
 0x323   : > { %v1070_v32 = vmul.f32 %v1763_v61, %v1046_v46  ;;  %v1093_v1 = vsub.f32 %v1077_v8, %v1085_v37  ;;  %v2505_v37 = vld [vmem:[#allocation6_spill] sm:$0xff] }
 0x324   : > { %v1092_v14 = vsub.f32 %v1076_v13, %v1084_v15  ;;  %v2506_v8 = vld [vmem:[#allocation10_spill] sm:$0xff] }
 0x325   : > { %v1086_v11 = vmul.f32 %v1070_v32, %v1939_v16 }
 0x326   : > { %1145 = vperm.xlu0 %1746, %v1087_v63   ;;  %1132 = vperm.xlu1 %1747, %v1070_v32  }
 0x327   : > { %v1094_v12 = vsub.f32 %v1078_v17, %v1086_v11  ;;  %v2508_v11 = vld [vmem:[#allocation20_spill] sm:$0xff] }
 0x32a   : > { %1155 = vperm.xlu0 %1746, %v1089_v58   ;;  %1150 = vperm.xlu1 %1747, %v1088_v31   ;;  %v2503_v58 = vld [vmem:[#allocation14_spill] sm:$0xff] }
 0x32e   : > { %1165 = vperm.xlu0 %1746, %v1091_v22   ;;  %1160 = vperm.xlu1 %1747, %v1090_v62  }
 0x332   : > { %1175 = vperm.xlu0 %1746, %v1093_v1   ;;  %1170 = vperm.xlu1 %1747, %v1092_v14   ;;  %v2507_v1 = vld [vmem:[#allocation15_spill] sm:$0xff] }
 0x336   : > { %1180 = vperm.xlu1 %1747, %v1094_v12  }
 0x394   : > { %v1098_v21 = vpop.permute.xlu1 %1097 }
 0x395   : > { %v1135_v20 = vmul.f32 %v1098_v21, %v1948_v18  ;;  %v1231_v40 = vmul.f32 %v2016_v45, %v1098_v21  ;;  %v1287_v41 = vmul.f32 %v2074_v10, %v1098_v21  ;;  %v1343_v16 = vmul.f32 %v2130_v59, %v1098_v21 }
 0x398   : > { %v1108_v29 = vpop.permute.xlu1 %1107 }
 0x399   : > { %v1103_v30 = vpop.permute.xlu0 %1102  ;;  %v2246_v26 = vmul.f32 %v1108_v29, %v1953_v19  ;;  %v2249_v35 = vmul.f32 %v2032_v52, %v1108_v29  ;;  %v2252_v47 = vmul.f32 %v2088_v25, %v1108_v29  ;;  %v2255_v50 = vmul.f32 %v2144_v3, %v1108_v29  ;;  %v2491_v25 = vld [vmem:[#allocation11_spill] sm:$0xff]  ;;  %v2492_v3 = vld [vmem:[#allocation16_spill] sm:$0xff] }
 0x39a   : > { %v1136_v18 = vmul.f32 %v1103_v30, %v1966_v24  ;;  %v1232_v45 = vmul.f32 %v2027_v51, %v1103_v30  ;;  %v1288_v10 = vmul.f32 %v2083_v23, %v1103_v30  ;;  %v1344_v59 = vmul.f32 %v2139_v2, %v1103_v30  ;;  %v2493_v24 = vld [vmem:[#allocation3_spill] sm:$0xff]  ;;  %v2495_v2 = vld [vmem:[#allocation12_spill] sm:$0xff] }
 0x39b   : > { %v2494_v23 = vld [vmem:[#allocation7_spill] sm:$0xff] }
 0x39d   : > { %v1113_v7 = vpop.permute.xlu1 %1112  ;;  %v1118_v27 = vpop.permute.xlu0 %1117 }
 0x39e   : > { %v2262_v34 = vmul.f32 %v1113_v7, %v1975_v28  ;;  %v2265_v52 = vmul.f32 %v2041_v57, %v1113_v7  ;;  %v2268_v4 = vmul.f32 %v2491_v25, %v1113_v7  ;;  %v2271_v42 = vmul.f32 %v2492_v3, %v1113_v7  ;;  %v2496_v28 = vld [vmem:[#allocation17_spill] sm:$0xff]  ;;  %v2497_v57 = vld [vmem:[#allocation4_spill] sm:$0xff] }
 0x39f   : > { %v2274_v51 = vmul.f32 %v1118_v27, %v2493_v24  ;;  %v2277_v54 = vmul.f32 %v2494_v23, %v1118_v27  ;;  %v2280_v60 = vmul.f32 %v2495_v2, %v1118_v27  ;;  %v2283_v55 = vmul.f32 %v2496_v28, %v1118_v27 }
 0x3a1   : > { %v1123_v53 = vpop.permute.xlu1 %1122  ;;  %v1128_v19 = vpop.permute.xlu0 %1127 }
 0x3a2   : > { %v2286_v56 = vmul.f32 %v1123_v53, %v2497_v57  ;;  %v2289_v33 = vmul.f32 %v2498_v44, %v1123_v53  ;;  %v2292_v46 = vmul.f32 %v2499_v49, %v1123_v53  ;;  %v2295_v61 = vmul.f32 %v2500_v43, %v1123_v53 }
 0x3a3   : > { %v2298_v38 = vmul.f32 %v1128_v19, %v2501_v36  ;;  %v2301_v0 = vmul.f32 %v2502_v6, %v1128_v19  ;;  %v2304_v31 = vmul.f32 %v2503_v58, %v1128_v19  ;;  %v2307_v48 = vmul.f32 %v2504_v39, %v1128_v19 }
 0x3a5   : > { %v1133_v32 = vpop.permute.xlu1 %1132  ;;  %v1146_v63 = vpop.permute.xlu0 %1145 }
 0x3a6   : > { %v1183_v5 = vadd.f32 %v1146_v63, %v1135_v20  ;;  %v1239_v9 = vadd.f32 %v1231_v40, %v1146_v63  ;;  %v1295_v22 = vadd.f32 %v1287_v41, %v1146_v63  ;;  %v1351_v62 = vadd.f32 %v1343_v16, %v1146_v63 }
 0x3a7   : > { %v2310_v15 = vmul.f32 %v1133_v32, %v2505_v37  ;;  %v2313_v13 = vmul.f32 %v2506_v8, %v1133_v32  ;;  %v2316_v14 = vmul.f32 %v2507_v1, %v1133_v32  ;;  %v2319_v17 = vmul.f32 %v2508_v11, %v1133_v32 }
 0x3a8   : > { %vm1191_vm2 = vcmp.ge.f32.partialorder %v1183_v5, 0.0  ;;  %v1199_v12 = vmul.f32 0.2, %v1183_v5  ;;  %vm1247_vm3 = vcmp.ge.f32.partialorder %v1239_v9, 0.0  ;;  %v1255_v21 = vmul.f32 0.2, %v1239_v9 }
 0x3a9   : > { %vm1303_vm4 = vcmp.ge.f32.partialorder %v1295_v22, 0.0  ;;  %v1311_v29 = vmul.f32 0.2, %v1295_v22  ;;  %vm1359_vm5 = vcmp.ge.f32.partialorder %v1351_v62, 0.0  ;;  %v1367_v30 = vmul.f32 0.2, %v1351_v62  ;;  %v1151_v7 = vpop.permute.xlu1 %1150  ;;  %v1156_v3 = vpop.permute.xlu0 %1155 }
 0x3aa   : > { %v1207_v27 = vsel %vm1191_vm2, %v1183_v5, %v1199_v12  ;;  %v1263_v20 = vsel %vm1247_vm3, %v1239_v9, %v1255_v21  ;;  %v1184_v40 = vadd.f32 %v1151_v7, %v1136_v18  ;;  %v1240_v41 = vadd.f32 %v1232_v45, %v1151_v7 }
 0x3ab   : > { %1215 = vst [vmem:[%s2454_s4] sm:$0xff] %v1207_v27  ;;  %1538 = vst [vmem:[%s2454_s4 + $0x40] sm:$0xff] %v1263_v20  ;;  %v1319_v16 = vsel %vm1303_vm4, %v1295_v22, %v1311_v29  ;;  %v1375_v53 = vsel %vm1359_vm5, %v1351_v62, %v1367_v30  ;;  %v1296_v19 = vadd.f32 %v1288_v10, %v1151_v7 }
 0x3ac   : > { %v1352_v25 = vadd.f32 %v1344_v59, %v1151_v7  ;;  %1554 = vst [vmem:[%s2454_s4 + $0x80] sm:$0xff] %v1319_v16  ;;  %1570 = vst [vmem:[%s2454_s4 + $0xc0] sm:$0xff] %v1375_v53  ;;  %vm1192_vm6 = vcmp.ge.f32.partialorder %v1184_v40, 0.0  ;;  %v1200_v18 = vmul.f32 0.2, %v1184_v40  ;;  %vm1248_vm7 = vcmp.ge.f32.partialorder %v1240_v41, 0.0 }
 0x3ad   : > { %v1256_v45 = vmul.f32 0.2, %v1240_v41  ;;  %vm1304_vm8 = vcmp.ge.f32.partialorder %v1296_v19, 0.0  ;;  %v1312_v24 = vmul.f32 0.2, %v1296_v19  ;;  %v1185_v59 = vadd.f32 %v1156_v3, %v2246_v26  ;;  %v1161_v32 = vpop.permute.xlu1 %1160  ;;  %v1166_v62 = vpop.permute.xlu0 %1165 }
 0x3ae   : > { %vm1360_vm9 = vcmp.ge.f32.partialorder %v1352_v25, 0.0  ;;  %v1368_v23 = vmul.f32 0.2, %v1352_v25  ;;  %v1208_v2 = vsel %vm1192_vm6, %v1184_v40, %v1200_v18  ;;  %v1241_v28 = vadd.f32 %v2249_v35, %v1156_v3 }
 0x3af   : > { %v1264_v10 = vsel %vm1248_vm7, %v1240_v41, %v1256_v45  ;;  %1216 = vst [vmem:[%s2454_s4 + $0x8] sm:$0xff] %v1208_v2  ;;  %v1320_v57 = vsel %vm1304_vm8, %v1296_v19, %v1312_v24  ;;  %v1297_v49 = vadd.f32 %v2252_v47, %v1156_v3  ;;  %v1353_v43 = vadd.f32 %v2255_v50, %v1156_v3 }
 0x3b0   : > { %1539 = vst [vmem:[%s2454_s4 + $0x48] sm:$0xff] %v1264_v10  ;;  %v1376_v44 = vsel %vm1360_vm9, %v1352_v25, %v1368_v23  ;;  %1555 = vst [vmem:[%s2454_s4 + $0x88] sm:$0xff] %v1320_v57  ;;  %vm1193_vm10 = vcmp.ge.f32.partialorder %v1185_v59, 0.0  ;;  %v1201_v26 = vmul.f32 0.2, %v1185_v59  ;;  %vm1249_vm11 = vcmp.ge.f32.partialorder %v1241_v28, 0.0 }
 0x3b1   : > { %1571 = vst [vmem:[%s2454_s4 + $0xc8] sm:$0xff] %v1376_v44  ;;  %v1257_v35 = vmul.f32 0.2, %v1241_v28  ;;  %vm1305_vm12 = vcmp.ge.f32.partialorder %v1297_v49, 0.0  ;;  %v1313_v63 = vmul.f32 0.2, %v1297_v49  ;;  %v1186_v50 = vadd.f32 %v1161_v32, %v2262_v34  ;;  %v1171_v7 = vpop.permute.xlu1 %1170  ;;  %v1176_v3 = vpop.permute.xlu0 %1175 }
 0x3b2   : > { %vm1361_vm13 = vcmp.ge.f32.partialorder %v1353_v43, 0.0  ;;  %v1369_v36 = vmul.f32 0.2, %v1353_v43  ;;  %v1209_v47 = vsel %vm1193_vm10, %v1185_v59, %v1201_v26  ;;  %v1242_v58 = vadd.f32 %v2265_v52, %v1161_v32 }
 0x3b3   : > { %v1265_v6 = vsel %vm1249_vm11, %v1241_v28, %v1257_v35  ;;  %1217 = vst [vmem:[%s2454_s4 + $0x10] sm:$0xff] %v1209_v47  ;;  %v1321_v39 = vsel %vm1305_vm12, %v1297_v49, %v1313_v63  ;;  %v1298_v9 = vadd.f32 %v2268_v4, %v1161_v32  ;;  %v1354_v22 = vadd.f32 %v2271_v42, %v1161_v32 }
 0x3b4   : > { %1540 = vst [vmem:[%s2454_s4 + $0x50] sm:$0xff] %v1265_v6  ;;  %v1377_v5 = vsel %vm1361_vm13, %v1353_v43, %v1369_v36  ;;  %1556 = vst [vmem:[%s2454_s4 + $0x90] sm:$0xff] %v1321_v39  ;;  %vm1194_vm14 = vcmp.ge.f32.partialorder %v1186_v50, 0.0  ;;  %v1202_v34 = vmul.f32 0.2, %v1186_v50  ;;  %vm1250_vm15 = vcmp.ge.f32.partialorder %v1242_v58, 0.0 }
 0x3b5   : > { %1572 = vst [vmem:[%s2454_s4 + $0xd0] sm:$0xff] %v1377_v5  ;;  %v1258_v52 = vmul.f32 0.2, %v1242_v58  ;;  %vm1306_vm0 = vcmp.ge.f32.partialorder %v1298_v9, 0.0  ;;  %v1314_v37 = vmul.f32 0.2, %v1298_v9  ;;  %v1187_v42 = vadd.f32 %v1166_v62, %v2274_v51  ;;  %v1181_v57 = vpop.permute.xlu1 %1180 }
 0x3b6   : > { %vm1362_vm1 = vcmp.ge.f32.partialorder %v1354_v22, 0.0  ;;  %v1370_v8 = vmul.f32 0.2, %v1354_v22  ;;  %v1210_v4 = vsel %vm1194_vm14, %v1186_v50, %v1202_v34  ;;  %v1243_v11 = vadd.f32 %v2277_v54, %v1166_v62 }
 0x3b7   : > { %v1266_v1 = vsel %vm1250_vm15, %v1242_v58, %v1258_v52  ;;  %1218 = vst [vmem:[%s2454_s4 + $0x18] sm:$0xff] %v1210_v4  ;;  %v1322_v12 = vsel %vm1306_vm0, %v1298_v9, %v1314_v37  ;;  %v1299_v29 = vadd.f32 %v2280_v60, %v1166_v62  ;;  %v1355_v30 = vadd.f32 %v2283_v55, %v1166_v62 }
 0x3b8   : > { %1541 = vst [vmem:[%s2454_s4 + $0x58] sm:$0xff] %v1266_v1  ;;  %v1378_v21 = vsel %vm1362_vm1, %v1354_v22, %v1370_v8  ;;  %1557 = vst [vmem:[%s2454_s4 + $0x98] sm:$0xff] %v1322_v12  ;;  %vm1195_vm2 = vcmp.ge.f32.partialorder %v1187_v42, 0.0  ;;  %v1203_v51 = vmul.f32 0.2, %v1187_v42  ;;  %vm1251_vm3 = vcmp.ge.f32.partialorder %v1243_v11, 0.0 }
 0x3b9   : > { %1573 = vst [vmem:[%s2454_s4 + $0xd8] sm:$0xff] %v1378_v21  ;;  %v1259_v54 = vmul.f32 0.2, %v1243_v11  ;;  %vm1307_vm4 = vcmp.ge.f32.partialorder %v1299_v29, 0.0  ;;  %v1315_v27 = vmul.f32 0.2, %v1299_v29  ;;  %v1188_v55 = vadd.f32 %v1171_v7, %v2286_v56 }
 0x3ba   : > { %vm1363_vm5 = vcmp.ge.f32.partialorder %v1355_v30, 0.0  ;;  %v1371_v20 = vmul.f32 0.2, %v1355_v30  ;;  %v1211_v60 = vsel %vm1195_vm2, %v1187_v42, %v1203_v51  ;;  %v1244_v41 = vadd.f32 %v2289_v33, %v1171_v7 }
 0x3bb   : > { %v1267_v40 = vsel %vm1251_vm3, %v1243_v11, %v1259_v54  ;;  %1219 = vst [vmem:[%s2454_s4 + $0x20] sm:$0xff] %v1211_v60  ;;  %v1323_v16 = vsel %vm1307_vm4, %v1299_v29, %v1315_v27  ;;  %v1300_v19 = vadd.f32 %v2292_v46, %v1171_v7  ;;  %v1356_v25 = vadd.f32 %v2295_v61, %v1171_v7 }
 0x3bc   : > { %1542 = vst [vmem:[%s2454_s4 + $0x60] sm:$0xff] %v1267_v40  ;;  %v1379_v53 = vsel %vm1363_vm5, %v1355_v30, %v1371_v20  ;;  %1558 = vst [vmem:[%s2454_s4 + $0xa0] sm:$0xff] %v1323_v16  ;;  %vm1196_vm6 = vcmp.ge.f32.partialorder %v1188_v55, 0.0  ;;  %v1204_v56 = vmul.f32 0.2, %v1188_v55  ;;  %vm1252_vm7 = vcmp.ge.f32.partialorder %v1244_v41, 0.0 }
 0x3bd   : > { %1574 = vst [vmem:[%s2454_s4 + $0xe0] sm:$0xff] %v1379_v53  ;;  %v1260_v33 = vmul.f32 0.2, %v1244_v41  ;;  %vm1308_vm8 = vcmp.ge.f32.partialorder %v1300_v19, 0.0  ;;  %v1316_v18 = vmul.f32 0.2, %v1300_v19  ;;  %v1189_v61 = vadd.f32 %v1176_v3, %v2298_v38 }
 0x3be   : > { %vm1364_vm9 = vcmp.ge.f32.partialorder %v1356_v25, 0.0  ;;  %v1372_v45 = vmul.f32 0.2, %v1356_v25  ;;  %v1212_v46 = vsel %vm1196_vm6, %v1188_v55, %v1204_v56  ;;  %v1245_v23 = vadd.f32 %v2301_v0, %v1176_v3 }
 0x3bf   : > { %v1268_v24 = vsel %vm1252_vm7, %v1244_v41, %v1260_v33  ;;  %1220 = vst [vmem:[%s2454_s4 + $0x28] sm:$0xff] %v1212_v46  ;;  %v1324_v2 = vsel %vm1308_vm8, %v1300_v19, %v1316_v18  ;;  %v1301_v59 = vadd.f32 %v2304_v31, %v1176_v3  ;;  %v1357_v28 = vadd.f32 %v2307_v48, %v1176_v3 }
 0x3c0   : > { %1543 = vst [vmem:[%s2454_s4 + $0x68] sm:$0xff] %v1268_v24  ;;  %v1380_v10 = vsel %vm1364_vm9, %v1356_v25, %v1372_v45  ;;  %1559 = vst [vmem:[%s2454_s4 + $0xa8] sm:$0xff] %v1324_v2  ;;  %vm1197_vm10 = vcmp.ge.f32.partialorder %v1189_v61, 0.0  ;;  %v1205_v38 = vmul.f32 0.2, %v1189_v61  ;;  %vm1253_vm11 = vcmp.ge.f32.partialorder %v1245_v23, 0.0 }
 0x3c1   : > { %1575 = vst [vmem:[%s2454_s4 + $0xe8] sm:$0xff] %v1380_v10  ;;  %v1261_v0 = vmul.f32 0.2, %v1245_v23  ;;  %vm1309_vm12 = vcmp.ge.f32.partialorder %v1301_v59, 0.0  ;;  %v1317_v44 = vmul.f32 0.2, %v1301_v59  ;;  %v1190_v48 = vadd.f32 %v1181_v57, %v2310_v15 }
 0x3c2   : > { %vm1365_vm13 = vcmp.ge.f32.partialorder %v1357_v28, 0.0  ;;  %v1373_v49 = vmul.f32 0.2, %v1357_v28  ;;  %v1213_v31 = vsel %vm1197_vm10, %v1189_v61, %v1205_v38  ;;  %v1246_v32 = vadd.f32 %v2313_v13, %v1181_v57 }
 0x3c3   : > { %v1269_v43 = vsel %vm1253_vm11, %v1245_v23, %v1261_v0  ;;  %1221 = vst [vmem:[%s2454_s4 + $0x30] sm:$0xff] %v1213_v31  ;;  %v1325_v26 = vsel %vm1309_vm12, %v1301_v59, %v1317_v44  ;;  %v1302_v63 = vadd.f32 %v2316_v14, %v1181_v57  ;;  %v1358_v36 = vadd.f32 %v2319_v17, %v1181_v57 }
 0x3c4   : > { %1544 = vst [vmem:[%s2454_s4 + $0x70] sm:$0xff] %v1269_v43  ;;  %v1381_v35 = vsel %vm1365_vm13, %v1357_v28, %v1373_v49  ;;  %1560 = vst [vmem:[%s2454_s4 + $0xb0] sm:$0xff] %v1325_v26  ;;  %vm1198_vm14 = vcmp.ge.f32.partialorder %v1190_v48, 0.0  ;;  %v1206_v15 = vmul.f32 0.2, %v1190_v48  ;;  %vm1254_vm15 = vcmp.ge.f32.partialorder %v1246_v32, 0.0 }
 0x3c5   : > { %1576 = vst [vmem:[%s2454_s4 + $0xf0] sm:$0xff] %v1381_v35  ;;  %v1262_v13 = vmul.f32 0.2, %v1246_v32  ;;  %vm1310_vm0 = vcmp.ge.f32.partialorder %v1302_v63, 0.0  ;;  %v1318_v47 = vmul.f32 0.2, %v1302_v63 }
 0x3c6   : > { %vm1366_vm1 = vcmp.ge.f32.partialorder %v1358_v36, 0.0  ;;  %v1374_v6 = vmul.f32 0.2, %v1358_v36  ;;  %v1214_v50 = vsel %vm1198_vm14, %v1190_v48, %v1206_v15 }
 0x3c7   : > { %v1270_v14 = vsel %vm1254_vm15, %v1246_v32, %v1262_v13  ;;  %1222 = vst [vmem:[%s2454_s4 + $0x38] sm:$0xff] %v1214_v50  ;;  %v1326_v17 = vsel %vm1310_vm0, %v1302_v63, %v1318_v47 }
 0x3c8   : > { %1545 = vst [vmem:[%s2454_s4 + $0x78] sm:$0xff] %v1270_v14  ;;  %v1382_v58 = vsel %vm1366_vm1, %v1358_v36, %v1374_v6  ;;  %1561 = vst [vmem:[%s2454_s4 + $0xb8] sm:$0xff] %v1326_v17 }
 0x3c9   : > { %1577 = vst [vmem:[%s2454_s4 + $0xf8] sm:$0xff] %v1382_v58 }
 0x3ca PF: > { %s14_s17 = sadd.s32 1, %s1786_s17   ;;  %s2509_s15 = smov %s1782_s16 }
 0x3cb   : > { %p11_p7 = scmp.ge.s32.totalorder %s14_s17, 6   ;;  %s2510_s16 = smov %s2512_s18 }
 0x3cd   :  { %13 = sbr.rel (!%p11_p7) target bundleno = 2 (0x2), region = 77 }

// kernel: generator_forward.8
= control target key start
LH: loop header
LB: loop body
LE: loop exit
PB: predicated region body
PF: predicated region fallthrough
CT: control target
= control target key end

     0   :  { %s2120_s15 = smov 0   ;;  %s2122_s16 = smov 0   ;;  %s3172_s0 = inlined_call_operand.vmem [shape: bf16[4,256,512], index: 0, kind: input, shape index: {}]   ;;  %s3173_s1 = inlined_call_operand.vmem [shape: bf16[4,32,256], index: 1, kind: input, shape index: {}]   ;;  %s3174_s2 = inlined_call_operand.vmem [shape: f32[32,1], index: 2, kind: input, shape index: {}]   ;;  %s3175_s3 = inlined_call_operand.vmem [shape: f32[32,1], index: 3, kind: input, shape index: {}]   ;;  %s3176_s4 = inlined_call_operand.vmem [shape: f32[4,32,512], index: 4, kind: output, shape index: {}]  }
   0x1   :  { %s2124_s17 = smov 0  }
   0x2 LB: > { %s26_s18 = sadd.s32 1, %s2087_s16  ;;  %p1695_p0 = scmp.ge.s32.totalorder %s2091_s17, 1  ;;  %s2091_s17 = sphi %s2124_s17, %s14_s17   ;;  %s2087_s16 = sphi %s2122_s16, %s3244_s16   ;;  %s2083_s15 = sphi %s2120_s15, %s3243_s15  }
   0x3   : > { %p28_p1 = scmp.ge.s32.totalorder %s26_s18, 4  ;;  %p186_p2 = scmp.lt.s32.totalorder %s2091_s17, 5 }
   0x5   : > { %s3246_s18 = smov (%p28_p1, %s26_s18), 0  ;;  %p187_p3 = pnand %p1695_p0, %p186_p2 }
   0x6   : > { %p217_p4 = scmp.lt.s32.totalorder (!%p187_p3), %s2083_s15, 3  ;;  %p231_p5 = scmp.eq.s32.totalorder (!%p187_p3), %s2083_s15, 0 }
   0x7   : > { %190 = sbr.rel (%p187_p3) target bundleno = 1010 (0x3f2), region = 36 }
   0xe   : > { %s218_s19 = scalar_select %p217_p4, %s2083_s15, 3 }
   0xf   : > { %236 = sbr.rel (!%p231_p5) target bundleno = 22 (0x16), region = 40  ;;  %vm237_vm0 = vcmask (%p231_p5), 7168   ;;  %v2093_v0 = vmov (%p231_p5), 0.0  }
  0x10   : > { %s1918_s20 = sshll.u32 %s218_s19, 9  ;;  %s1919_s21 = sshll.u32 %s218_s19, 5  ;;  %238 = vst.msk [vmem:[#allocation2] sm:$0xff] (%p231_p5), %vm237_vm0, %v2093_v0  ;;  %239 = vst.msk [vmem:[#allocation2 + $0x8] sm:$0xff] (%p231_p5), %vm237_vm0, %v2093_v0 }
  0x11   : > { %s2146_s24 = scalar_lea.vmem %s3172_s0, %s1918_s20  ;;  %s2151_s27 = scalar_lea.vmem %s3173_s1, %s1919_s21  ;;  %240 = vst.msk [vmem:[#allocation2 + $0x10] sm:$0xff] (%p231_p5), %vm237_vm0, %v2093_v0  ;;  %241 = vst.msk [vmem:[#allocation2 + $0x18] sm:$0xff] (%p231_p5), %vm237_vm0, %v2093_v0 }
  0x16 PF: > { %v1949_v1 = vld [vmem:[%s2146_s24 + $0x4] ss:$16 sps:$4 sm:$0xff]   ;;  %v1951_v2 = vld [vmem:[%s2146_s24 + $0xc] ss:$16 sps:$4 sm:$0xff]   ;;  %v1953_v3 = vld [vmem:[%s2146_s24] ss:$16 sps:$4 sm:$0xff]  }
  0x17   : > { %650 = vmatprep.subr.bf16.mxu0 %v1949_v1  ;;  %v1954_v4 = vld [vmem:[%s2146_s24 + $0x8] ss:$16 sps:$4 sm:$0xff]   ;;  %703 = vmatprep.subr.bf16.mxu1 %v1951_v2  ;;  %v1955_v5 = vld [vmem:[%s2146_s24 + $0x24] ss:$16 sps:$4 sm:$0xff]   ;;  %v1957_v6 = vld [vmem:[%s2146_s24 + $0x2c] ss:$16 sps:$4 sm:$0xff]  }
  0x18   : > { %651 = vmatpush1.bf16.msra.mxu0 %v1953_v3  ;;  %704 = vmatpush1.bf16.msra.mxu1 %v1954_v4  ;;  %v1959_v7 = vld [vmem:[%s2146_s24 + $0x20] ss:$16 sps:$4 sm:$0xff]   ;;  %v1960_v8 = vld [vmem:[%s2146_s24 + $0x28] ss:$16 sps:$4 sm:$0xff]   ;;  %v1961_v9 = vld [vmem:[%s2146_s24 + $0x44] ss:$16 sps:$4 sm:$0xff]  }
  0x19   : > { %652 = vmatprep.subr.bf16.mxu0 %v1955_v5  ;;  %705 = vmatprep.subr.bf16.mxu1 %v1957_v6  ;;  %v1963_v10 = vld [vmem:[%s2146_s24 + $0x4c] ss:$16 sps:$4 sm:$0xff]   ;;  %v1965_v11 = vld [vmem:[%s2146_s24 + $0x40] ss:$16 sps:$4 sm:$0xff]   ;;  %v1966_v12 = vld [vmem:[%s2146_s24 + $0x48] ss:$16 sps:$4 sm:$0xff]  }
  0x1a   : > { %v1967_v13 = vld [vmem:[%s2146_s24 + $0x64] ss:$16 sps:$4 sm:$0xff]   ;;  %v1969_v14 = vld [vmem:[%s2146_s24 + $0x6c] ss:$16 sps:$4 sm:$0xff]   ;;  %v1971_v15 = vld [vmem:[%s2146_s24 + $0x60] ss:$16 sps:$4 sm:$0xff]  }
  0x1b   : > { %v1972_v16 = vld [vmem:[%s2146_s24 + $0x68] ss:$16 sps:$4 sm:$0xff]   ;;  %v1973_v17 = vld [vmem:[%s2146_s24 + $0x84] ss:$16 sps:$4 sm:$0xff]   ;;  %v1975_v18 = vld [vmem:[%s2146_s24 + $0x8c] ss:$16 sps:$4 sm:$0xff]  }
  0x1c   : > { %653 = vmatpush1.bf16.msra.mxu0 %v1959_v7  ;;  %706 = vmatpush1.bf16.msra.mxu1 %v1960_v8  ;;  %v1977_v19 = vld [vmem:[%s2146_s24 + $0x80] ss:$16 sps:$4 sm:$0xff]   ;;  %v1978_v20 = vld [vmem:[%s2146_s24 + $0x88] ss:$16 sps:$4 sm:$0xff]   ;;  %v1979_v21 = vld [vmem:[%s2146_s24 + $0xa4] ss:$16 sps:$4 sm:$0xff]  }
  0x1d   : > { %654 = vmatprep.subr.bf16.mxu0 %v1961_v9  ;;  %707 = vmatprep.subr.bf16.mxu1 %v1963_v10  ;;  %v1981_v22 = vld [vmem:[%s2146_s24 + $0xac] ss:$16 sps:$4 sm:$0xff]   ;;  %v1983_v23 = vld [vmem:[%s2146_s24 + $0xa0] ss:$16 sps:$4 sm:$0xff]   ;;  %v1984_v24 = vld [vmem:[%s2146_s24 + $0xa8] ss:$16 sps:$4 sm:$0xff]  }
  0x1e   : > { %v1985_v25 = vld [vmem:[%s2146_s24 + $0xc4] ss:$16 sps:$4 sm:$0xff]   ;;  %v1987_v26 = vld [vmem:[%s2146_s24 + $0xcc] ss:$16 sps:$4 sm:$0xff]   ;;  %v1989_v27 = vld [vmem:[%s2146_s24 + $0xc0] ss:$16 sps:$4 sm:$0xff]  }
  0x1f   : > { %v1990_v28 = vld [vmem:[%s2146_s24 + $0xc8] ss:$16 sps:$4 sm:$0xff]   ;;  %v1991_v29 = vld [vmem:[%s2146_s24 + $0xe4] ss:$16 sps:$4 sm:$0xff]   ;;  %v1993_v30 = vld [vmem:[%s2146_s24 + $0xec] ss:$16 sps:$4 sm:$0xff]  }
  0x20   : > { %655 = vmatpush1.bf16.msra.mxu0 %v1965_v11  ;;  %708 = vmatpush1.bf16.msra.mxu1 %v1966_v12  ;;  %v1995_v31 = vld [vmem:[%s2146_s24 + $0xe0] ss:$16 sps:$4 sm:$0xff]   ;;  %v1996_v32 = vld [vmem:[%s2146_s24 + $0xe8] ss:$16 sps:$4 sm:$0xff]   ;;  %v1997_v33 = vld [vmem:[%s2146_s24 + $0x104] ss:$16 sps:$4 sm:$0xff]  }
  0x21   : > { %656 = vmatprep.subr.bf16.mxu0 %v1967_v13  ;;  %709 = vmatprep.subr.bf16.mxu1 %v1969_v14  ;;  %v1999_v34 = vld [vmem:[%s2146_s24 + $0x10c] ss:$16 sps:$4 sm:$0xff]   ;;  %v2001_v35 = vld [vmem:[%s2146_s24 + $0x100] ss:$16 sps:$4 sm:$0xff]   ;;  %v2002_v36 = vld [vmem:[%s2146_s24 + $0x108] ss:$16 sps:$4 sm:$0xff]  }
  0x22   : > { %v2003_v37 = vld [vmem:[%s2146_s24 + $0x124] ss:$16 sps:$4 sm:$0xff]   ;;  %v2005_v38 = vld [vmem:[%s2146_s24 + $0x12c] ss:$16 sps:$4 sm:$0xff]   ;;  %v2007_v39 = vld [vmem:[%s2146_s24 + $0x120] ss:$16 sps:$4 sm:$0xff]  }
  0x23   : > { %v2008_v40 = vld [vmem:[%s2146_s24 + $0x128] ss:$16 sps:$4 sm:$0xff]   ;;  %v2009_v41 = vld [vmem:[%s2146_s24 + $0x144] ss:$16 sps:$4 sm:$0xff]   ;;  %v2011_v42 = vld [vmem:[%s2146_s24 + $0x14c] ss:$16 sps:$4 sm:$0xff]  }
  0x24   : > { %657 = vmatpush1.bf16.msra.mxu0 %v1971_v15  ;;  %710 = vmatpush1.bf16.msra.mxu1 %v1972_v16  ;;  %v2013_v43 = vld [vmem:[%s2146_s24 + $0x140] ss:$16 sps:$4 sm:$0xff]   ;;  %v2014_v44 = vld [vmem:[%s2146_s24 + $0x148] ss:$16 sps:$4 sm:$0xff]   ;;  %v2015_v45 = vld [vmem:[%s2146_s24 + $0x164] ss:$16 sps:$4 sm:$0xff]  }
  0x25   : > { %658 = vmatprep.subr.bf16.mxu0 %v1973_v17  ;;  %711 = vmatprep.subr.bf16.mxu1 %v1975_v18  ;;  %v2017_v46 = vld [vmem:[%s2146_s24 + $0x16c] ss:$16 sps:$4 sm:$0xff]   ;;  %v2019_v47 = vld [vmem:[%s2146_s24 + $0x160] ss:$16 sps:$4 sm:$0xff]   ;;  %v2020_v49 = vld [vmem:[%s2146_s24 + $0x168] ss:$16 sps:$4 sm:$0xff]  }
  0x26   : > { %v2047_v48 = vld [vmem:[%s2151_s27 + $0x4] ss:$8 sps:$4 sm:$0xff]   ;;  %v2025_v52 = vld [vmem:[%s2146_s24 + $0x180] ss:$16 sps:$4 sm:$0xff]   ;;  %v2026_v53 = vld [vmem:[%s2146_s24 + $0x188] ss:$16 sps:$4 sm:$0xff]  }
  0x27   : > { %v2021_v50 = vld [vmem:[%s2146_s24 + $0x184] ss:$16 sps:$4 sm:$0xff]   ;;  %v2023_v51 = vld [vmem:[%s2146_s24 + $0x18c] ss:$16 sps:$4 sm:$0xff]   ;;  %682 = vmatprep.mubr.bf16.mxu0 %v2047_v48  ;;  %735 = vmatprep.mubr.bf16.mxu1 %v2047_v48  ;;  %v2031_v56 = vld [vmem:[%s2146_s24 + $0x1a0] ss:$16 sps:$4 sm:$0xff]  }
  0x28   : > { %659 = vmatpush1.bf16.msra.mxu0 %v1977_v19  ;;  %712 = vmatpush1.bf16.msra.mxu1 %v1978_v20  ;;  %v2027_v54 = vld [vmem:[%s2146_s24 + $0x1a4] ss:$16 sps:$4 sm:$0xff]   ;;  %v2029_v55 = vld [vmem:[%s2146_s24 + $0x1ac] ss:$16 sps:$4 sm:$0xff]   ;;  %v2032_v57 = vld [vmem:[%s2146_s24 + $0x1a8] ss:$16 sps:$4 sm:$0xff]  }
  0x29   : > { %660 = vmatprep.subr.bf16.mxu0 %v1979_v21  ;;  %713 = vmatprep.subr.bf16.mxu1 %v1981_v22  ;;  %v2033_v58 = vld [vmem:[%s2146_s24 + $0x1c4] ss:$16 sps:$4 sm:$0xff]   ;;  %v2035_v59 = vld [vmem:[%s2146_s24 + $0x1cc] ss:$16 sps:$4 sm:$0xff]   ;;  %v2037_v60 = vld [vmem:[%s2146_s24 + $0x1c0] ss:$16 sps:$4 sm:$0xff]  }
  0x2a   : > { %v2038_v61 = vld [vmem:[%s2146_s24 + $0x1c8] ss:$16 sps:$4 sm:$0xff]   ;;  %v2039_v62 = vld [vmem:[%s2146_s24 + $0x1e4] ss:$16 sps:$4 sm:$0xff]   ;;  %v2041_v63 = vld [vmem:[%s2146_s24 + $0x1ec] ss:$16 sps:$4 sm:$0xff]  }
  0x2b   : > { %v2043_v0 = vld [vmem:[%s2146_s24 + $0x1e0] ss:$16 sps:$4 sm:$0xff]   ;;  %v2044_v1 = vld [vmem:[%s2146_s24 + $0x1e8] ss:$16 sps:$4 sm:$0xff]   ;;  %v2048_v3 = vld [vmem:[%s2151_s27 + $0x14] ss:$8 sps:$4 sm:$0xff]  }
  0x2c   : > { %661 = vmatpush1.bf16.msra.mxu0 %v1983_v23  ;;  %714 = vmatpush1.bf16.msra.mxu1 %v1984_v24  ;;  %v2045_v2 = vld [vmem:[%s2151_s27] ss:$8 sps:$4 sm:$0xff]   ;;  %v2050_v4 = vld [vmem:[%s2151_s27 + $0x10] ss:$8 sps:$4 sm:$0xff]   ;;  %s1921_s28 = sshll.u32 %s2083_s15, 7  ;;  %p808_p6 = scmp.eq.s32.totalorder %s2083_s15, 3 }
  0x2d   : > { %662 = vmatprep.subr.bf16.mxu0 %v1985_v25  ;;  %715 = vmatprep.subr.bf16.mxu1 %v1987_v26  ;;  %s2225_s5 = scalar_lea.vmem %s3176_s4, %s1921_s28  ;;  %vm803_vm1 = vcmask 7168  }
  0x30   : > { %663 = vmatpush1.bf16.msra.mxu0 %v1989_v27  ;;  %716 = vmatpush1.bf16.msra.mxu1 %v1990_v28 }
  0x31   : > { %664 = vmatprep.subr.bf16.mxu0 %v1991_v29  ;;  %717 = vmatprep.subr.bf16.mxu1 %v1993_v30 }
  0x34   : > { %665 = vmatpush1.bf16.msra.mxu0 %v1995_v31  ;;  %718 = vmatpush1.bf16.msra.mxu1 %v1996_v32 }
  0x35   : > { %666 = vmatprep.subr.bf16.mxu0 %v1997_v33  ;;  %719 = vmatprep.subr.bf16.mxu1 %v1999_v34  ;;  %v775_v33 = vld [vmem:[#allocation2] sm:$0xff] }
  0x38   : > { %667 = vmatpush1.bf16.msra.mxu0 %v2001_v35  ;;  %720 = vmatpush1.bf16.msra.mxu1 %v2002_v36  ;;  %v776_v36 = vld [vmem:[#allocation2 + $0x8] sm:$0xff] }
  0x39   : > { %668 = vmatprep.subr.bf16.mxu0 %v2003_v37  ;;  %721 = vmatprep.subr.bf16.mxu1 %v2005_v38 }
  0x3c   : > { %669 = vmatpush1.bf16.msra.mxu0 %v2007_v39  ;;  %722 = vmatpush1.bf16.msra.mxu1 %v2008_v40  ;;  %v777_v39 = vld [vmem:[#allocation2 + $0x10] sm:$0xff] }
  0x3d   : > { %670 = vmatprep.subr.bf16.mxu0 %v2009_v41  ;;  %723 = vmatprep.subr.bf16.mxu1 %v2011_v42  ;;  %v778_v42 = vld [vmem:[#allocation2 + $0x18] sm:$0xff] }
  0x40   : > { %671 = vmatpush1.bf16.msra.mxu0 %v2013_v43  ;;  %724 = vmatpush1.bf16.msra.mxu1 %v2014_v44 }
  0x41   : > { %672 = vmatprep.subr.bf16.mxu0 %v2015_v45  ;;  %725 = vmatprep.subr.bf16.mxu1 %v2017_v46 }
  0x44   : > { %673 = vmatpush1.bf16.msra.mxu0 %v2019_v47  ;;  %726 = vmatpush1.bf16.msra.mxu1 %v2020_v49 }
  0x45   : > { %674 = vmatprep.subr.bf16.mxu0 %v2021_v50  ;;  %727 = vmatprep.subr.bf16.mxu1 %v2023_v51 }
  0x48   : > { %675 = vmatpush1.bf16.msra.mxu0 %v2025_v52  ;;  %728 = vmatpush1.bf16.msra.mxu1 %v2026_v53 }
  0x49   : > { %676 = vmatprep.subr.bf16.mxu0 %v2027_v54  ;;  %729 = vmatprep.subr.bf16.mxu1 %v2029_v55 }
  0x4c   : > { %677 = vmatpush1.bf16.msra.mxu0 %v2031_v56  ;;  %730 = vmatpush1.bf16.msra.mxu1 %v2032_v57 }
  0x4d   : > { %678 = vmatprep.subr.bf16.mxu0 %v2033_v58  ;;  %731 = vmatprep.subr.bf16.mxu1 %v2035_v59 }
  0x50   : > { %679 = vmatpush1.bf16.msra.mxu0 %v2037_v60  ;;  %732 = vmatpush1.bf16.msra.mxu1 %v2038_v61 }
  0x51   : > { %680 = vmatprep.subr.bf16.mxu0 %v2039_v62  ;;  %733 = vmatprep.subr.bf16.mxu1 %v2041_v63 }
  0x54   : > { %681 = vmatpush1.bf16.msra.mxu0 %v2043_v0  ;;  %734 = vmatpush1.bf16.msra.mxu1 %v2044_v1 }
  0x57   : > { %683 = vmatmul.mubr.bf16.vlgmr.msra.gmra.mrb[0].mxu0 %v2045_v2  ;;  %736 = vmatmul.mubr.bf16.vlgmr.msra.gmra.mrb[0].mxu1 %v2045_v2 }
  0x58   : > { %692 = vmatprep.mubr.bf16.mxu0 %v2048_v3  ;;  %745 = vmatprep.mubr.bf16.mxu1 %v2048_v3 }
  0x5f   : > { %693 = vmatmul.mubr.bf16.gmra.mrb[4].mxu0 %v2050_v4  ;;  %746 = vmatmul.mubr.bf16.gmra.mrb[4].mxu1 %v2050_v4 }
 0x12a   : > { %v684_v5 = vpop.f32.mrb[0].mxu0  ;;  %v737_v6 = vpop.f32.mrb[0].mxu1 }
 0x12b   : > { %759 = vst [vmem:[%s2225_s5] sm:$0xff] %v684_v5  ;;  %761 = vst [vmem:[%s2225_s5 + $0x10] sm:$0xff] %v737_v6  ;;  %v686_v7 = vpop.f32.mrb[1].mxu0  ;;  %v739_v8 = vpop.f32.mrb[1].mxu1 }
 0x12c   : > { %760 = vst [vmem:[%s2225_s5 + $0x8] sm:$0xff] %v686_v7  ;;  %v779_v9 = vadd.f32 %v686_v7, %v684_v5  ;;  %762 = vst [vmem:[%s2225_s5 + $0x18] sm:$0xff] %v739_v8  ;;  %v688_v10 = vpop.f32.mrb[2].mxu0  ;;  %v741_v11 = vpop.f32.mrb[2].mxu1 }
 0x12d   : > { %763 = vst [vmem:[%s2225_s5 + $0x20] sm:$0xff] %v688_v10  ;;  %765 = vst [vmem:[%s2225_s5 + $0x30] sm:$0xff] %v741_v11  ;;  %v690_v12 = vpop.f32.mrb[3].mxu0  ;;  %v743_v13 = vpop.f32.mrb[3].mxu1 }
 0x12e   : > { %764 = vst [vmem:[%s2225_s5 + $0x28] sm:$0xff] %v690_v12  ;;  %v784_v14 = vadd.f32 %v690_v12, %v688_v10  ;;  %766 = vst [vmem:[%s2225_s5 + $0x38] sm:$0xff] %v743_v13  ;;  %v780_v15 = vadd.f32 %v779_v9, %v737_v6 }
 0x130   : > { %v781_v16 = vadd.f32 %v780_v15, %v739_v8  ;;  %v785_v17 = vadd.f32 %v784_v14, %v741_v11 }
 0x132   : > { %v747_v18 = vpop.f32.mrb[4].mxu1  ;;  %782 = vadd.xlane.f32.xlu0 %v781_v16  ;;  %v694_v19 = vpop.f32.mrb[4].mxu0  ;;  %v786_v20 = vadd.f32 %v785_v17, %v743_v13 }
 0x133   : > { %769 = vst [vmem:[%s2225_s5 + $0x50] sm:$0xff] %v747_v18  ;;  %767 = vst [vmem:[%s2225_s5 + $0x40] sm:$0xff] %v694_v19  ;;  %v696_v21 = vpop.f32.mrb[5].mxu0  ;;  %v749_v22 = vpop.f32.mrb[5].mxu1 }
 0x134   : > { %768 = vst [vmem:[%s2225_s5 + $0x48] sm:$0xff] %v696_v21  ;;  %v789_v23 = vadd.f32 %v696_v21, %v694_v19  ;;  %770 = vst [vmem:[%s2225_s5 + $0x58] sm:$0xff] %v749_v22  ;;  %v698_v24 = vpop.f32.mrb[6].mxu0  ;;  %v751_v25 = vpop.f32.mrb[6].mxu1 }
 0x135   : > { %771 = vst [vmem:[%s2225_s5 + $0x60] sm:$0xff] %v698_v24  ;;  %773 = vst [vmem:[%s2225_s5 + $0x70] sm:$0xff] %v751_v25  ;;  %v700_v26 = vpop.f32.mrb[7].mxu0  ;;  %v753_v27 = vpop.f32.mrb[7].mxu1 }
 0x136   : > { %772 = vst [vmem:[%s2225_s5 + $0x68] sm:$0xff] %v700_v26  ;;  %v794_v28 = vadd.f32 %v700_v26, %v698_v24  ;;  %774 = vst [vmem:[%s2225_s5 + $0x78] sm:$0xff] %v753_v27  ;;  %787 = vadd.xlane.f32.xlu0 %v786_v20  ;;  %v790_v29 = vadd.f32 %v789_v23, %v747_v18 }
 0x138   : > { %v795_v30 = vadd.f32 %v794_v28, %v751_v25  ;;  %v791_v31 = vadd.f32 %v790_v29, %v749_v22 }
 0x13a   : > { %v796_v32 = vadd.f32 %v795_v30, %v753_v27  ;;  %792 = vadd.xlane.f32.xlu1 %v791_v31 }
 0x13e   : > { %797 = vadd.xlane.f32.xlu1 %v796_v32 }
 0x1bf   : > { %v783_v34 = vpop.xlane.xlu0 %782 }
 0x1c0   : > { %v799_v35 = vadd.f32 %v783_v34, %v775_v33 }
 0x1c2   : > { %804 = vst.msk [vmem:[#allocation2] sm:$0xff] %vm803_vm1, %v799_v35 }
 0x1c3   : > { %v788_v37 = vpop.xlane.xlu0 %787 }
 0x1c4   : > { %v800_v38 = vadd.f32 %v788_v37, %v776_v36 }
 0x1c6   : > { %805 = vst.msk [vmem:[#allocation2 + $0x8] sm:$0xff] %vm803_vm1, %v800_v38 }
 0x1c7   : > { %v793_v40 = vpop.xlane.xlu1 %792 }
 0x1c8   : > { %v801_v41 = vadd.f32 %v793_v40, %v777_v39  ;;  %812 = sbr.rel (!%p808_p6) target bundleno = 1010 (0x3f2), region = 44 }
 0x1ca   : > { %806 = vst.msk [vmem:[#allocation2 + $0x10] sm:$0xff] %vm803_vm1, %v801_v41 }
 0x1cb   : > { %v798_v43 = vpop.xlane.xlu1 %797 }
 0x1cc   : > { %v802_v44 = vadd.f32 %v798_v43, %v778_v42 }
 0x1ce   : > { %807 = vst.msk [vmem:[#allocation2 + $0x18] sm:$0xff] %vm803_vm1, %v802_v44 }
 0x1cf   : > { %v813_v46 = vld [vmem:[#allocation2] sm:$0xff]  ;;  %v2094_v48 = vmov 0   ;;  %v814_v51 = vld [vmem:[#allocation2 + $0x8] sm:$0xff]  ;;  %v2271_v56 = vld [vmem:[%s3176_s4 + $0x10] sm:$0xff] }
 0x1d0   : > { %2052 = vset.pattern.permute.xlu1 %v2094_v48  ;;  %2051 = vset.pattern.permute.xlu0 %v2094_v48  ;;  %v2248_v50 = vmul.f32 0.00048828125, %v813_v46  ;;  %v2254_v53 = vmul.f32 0.00048828125, %v814_v51  ;;  %v2261_v54 = vld [vmem:[%s3176_s4] sm:$0xff]  ;;  %v2266_v55 = vld [vmem:[%s3176_s4 + $0x8] sm:$0xff]  ;;  %v2276_v57 = vld [vmem:[%s3176_s4 + $0x18] sm:$0xff] }
 0x1d1   : > { %v815_v45 = vld [vmem:[#allocation2 + $0x10] sm:$0xff]  ;;  %v829_v58 = vld [vmem:[%s3176_s4 + $0x40] sm:$0xff]  ;;  %v830_v59 = vld [vmem:[%s3176_s4 + $0x48] sm:$0xff] }
 0x1d2   : > { %v2246_v49 = vmul.f32 0.00048828125, %v815_v45  ;;  %839 = vperm.xlu0 %2051, %v2248_v50   ;;  %v831_v60 = vld [vmem:[%s3176_s4 + $0x50] sm:$0xff]  ;;  %v832_v61 = vld [vmem:[%s3176_s4 + $0x58] sm:$0xff]  ;;  %v2309_v8 = vld [vmem:[%s3176_s4 + $0x20] sm:$0xff] }
 0x1d3   : > { %v2314_v9 = vld [vmem:[%s3176_s4 + $0x28] sm:$0xff]  ;;  %v2319_v10 = vld [vmem:[%s3176_s4 + $0x30] sm:$0xff]  ;;  %v2324_v15 = vld [vmem:[%s3176_s4 + $0x38] sm:$0xff] }
 0x1d4   : > { %849 = vperm.xlu1 %2052, %v2246_v49   ;;  %v833_v16 = vld [vmem:[%s3176_s4 + $0x60] sm:$0xff]  ;;  %v834_v17 = vld [vmem:[%s3176_s4 + $0x68] sm:$0xff]  ;;  %v835_v28 = vld [vmem:[%s3176_s4 + $0x70] sm:$0xff] }
 0x1d5   : > { %v816_v47 = vld [vmem:[#allocation2 + $0x18] sm:$0xff]  ;;  %v2355_v38 = vld [vmem:[%s3176_s4 + $0x80] sm:$0xff]  ;;  %v2362_v43 = vld [vmem:[%s3176_s4 + $0x88] sm:$0xff] }
 0x1d6   : > { %v2252_v52 = vmul.f32 0.00048828125, %v816_v47  ;;  %844 = vperm.xlu0 %2051, %v2254_v53   ;;  %v836_v29 = vld [vmem:[%s3176_s4 + $0x78] sm:$0xff]  ;;  %v2367_v44 = vld [vmem:[%s3176_s4 + $0x90] sm:$0xff] }
 0x1d7   : > { %v2372_v51 = vld [vmem:[%s3176_s4 + $0x98] sm:$0xff] }
 0x1d8   : > { %854 = vperm.xlu1 %2052, %v2252_v52  }
 0x251   : > { %v2292_v63 = vpop.permute.xlu0 %839 }
 0x252   : > { %v857_v0 = vsub.f32 %v2261_v54, %v2292_v63  ;;  %v858_v1 = vsub.f32 %v2266_v55, %v2292_v63  ;;  %v859_v2 = vsub.f32 %v2271_v56, %v2292_v63  ;;  %v860_v3 = vsub.f32 %v2276_v57, %v2292_v63 }
 0x253   : > { %v2290_v62 = vpop.permute.xlu1 %849 }
 0x254   : > { %v865_v4 = vsub.f32 %v829_v58, %v2290_v62  ;;  %v866_v5 = vsub.f32 %v830_v59, %v2290_v62  ;;  %v867_v6 = vsub.f32 %v831_v60, %v2290_v62  ;;  %v868_v7 = vsub.f32 %v832_v61, %v2290_v62  ;;  %v2377_v58 = vld [vmem:[%s3176_s4 + $0xa0] sm:$0xff]  ;;  %v2382_v59 = vld [vmem:[%s3176_s4 + $0xa8] sm:$0xff] }
 0x255   : > { %v873_v11 = vmul.f32 %v857_v0, %v857_v0  ;;  %v874_v12 = vmul.f32 %v858_v1, %v858_v1  ;;  %v875_v13 = vmul.f32 %v859_v2, %v859_v2  ;;  %v876_v14 = vmul.f32 %v860_v3, %v860_v3  ;;  %v2334_v19 = vpop.permute.xlu0 %844 }
 0x256   : > { %v881_v20 = vmul.f32 %v865_v4, %v865_v4  ;;  %v882_v21 = vmul.f32 %v866_v5, %v866_v5  ;;  %v883_v22 = vmul.f32 %v867_v6, %v867_v6  ;;  %v884_v23 = vmul.f32 %v868_v7, %v868_v7  ;;  %v2393_v6 = vld [vmem:[%s3176_s4 + $0xb0] sm:$0xff]  ;;  %v2398_v7 = vld [vmem:[%s3176_s4 + $0xb8] sm:$0xff] }
 0x257   : > { %v2332_v18 = vpop.permute.xlu1 %854  ;;  %v889_v24 = vadd.f32 %v874_v12, %v873_v11  ;;  %v861_v25 = vsub.f32 %v2309_v8, %v2334_v19  ;;  %v862_v26 = vsub.f32 %v2314_v9, %v2334_v19  ;;  %v863_v27 = vsub.f32 %v2319_v10, %v2334_v19 }
 0x258   : > { %v899_v30 = vadd.f32 %v882_v21, %v881_v20  ;;  %v864_v31 = vsub.f32 %v2324_v15, %v2334_v19  ;;  %v869_v32 = vsub.f32 %v833_v16, %v2332_v18  ;;  %v870_v33 = vsub.f32 %v834_v17, %v2332_v18 }
 0x259   : > { %v890_v34 = vadd.f32 %v889_v24, %v875_v13  ;;  %v877_v35 = vmul.f32 %v861_v25, %v861_v25  ;;  %v878_v36 = vmul.f32 %v862_v26, %v862_v26  ;;  %v879_v37 = vmul.f32 %v863_v27, %v863_v27 }
 0x25a   : > { %v900_v39 = vadd.f32 %v899_v30, %v883_v22  ;;  %v880_v40 = vmul.f32 %v864_v31, %v864_v31  ;;  %v871_v41 = vsub.f32 %v835_v28, %v2332_v18  ;;  %v872_v42 = vsub.f32 %v836_v29, %v2332_v18  ;;  %v2409_v22 = vld [vmem:[%s3176_s4 + $0xc0] sm:$0xff]  ;;  %v2423_v28 = vld [vmem:[%s3176_s4 + $0xd0] sm:$0xff]  ;;  %v2428_v29 = vld [vmem:[%s3176_s4 + $0xd8] sm:$0xff] }
 0x25b   : > { %v891_v45 = vadd.f32 %v890_v34, %v876_v14  ;;  %v894_v46 = vadd.f32 %v878_v36, %v877_v35  ;;  %v885_v47 = vmul.f32 %v869_v32, %v869_v32  ;;  %v886_v48 = vmul.f32 %v870_v33, %v870_v33  ;;  %3199 = vst [vmem:[#allocation3_spill] sm:$0xff] %v2409_v22  ;;  %v1784_v33 = vld [vmem:[%s3176_s4 + $0xe0] sm:$0xff]  ;;  %v1785_v34 = vld [vmem:[%s3176_s4 + $0xe8] sm:$0xff] }
 0x25c   : > { %v901_v60 = vadd.f32 %v900_v39, %v884_v23  ;;  %v887_v61 = vmul.f32 %v871_v41, %v871_v41  ;;  %v888_v0 = vmul.f32 %v872_v42, %v872_v42  ;;  %v930_v1 = vsub.f32 %v2355_v38, %v2292_v63  ;;  %v2414_v23 = vld [vmem:[%s3176_s4 + $0xc8] sm:$0xff]  ;;  %3201 = vst [vmem:[#allocation5_spill] sm:$0xff] %v2423_v28 }
 0x25d   : > { %892 = vadd.xlane.f32.xlu0 %v891_v45  ;;  %v895_v2 = vadd.f32 %v894_v46, %v879_v37  ;;  %v904_v3 = vadd.f32 %v886_v48, %v885_v47  ;;  %v931_v4 = vsub.f32 %v2362_v43, %v2292_v63  ;;  %v932_v5 = vsub.f32 %v2367_v44, %v2292_v63  ;;  %v1786_v46 = vld [vmem:[%s3176_s4 + $0xf0] sm:$0xff]  ;;  %v1787_v47 = vld [vmem:[%s3176_s4 + $0xf8] sm:$0xff] }
 0x25e   : > { %v933_v11 = vsub.f32 %v2372_v51, %v2292_v63  ;;  %v946_v12 = vmul.f32 %v930_v1, %v930_v1  ;;  %v934_v13 = vsub.f32 %v2377_v58, %v2334_v19  ;;  %v935_v14 = vsub.f32 %v2382_v59, %v2334_v19  ;;  %3200 = vst [vmem:[#allocation4_spill] sm:$0xff] %v2414_v23  ;;  %v2455_v1 = vld [vmem:[%s3176_s4 + $0x100] sm:$0xff] }
 0x25f   : > { %v896_v16 = vadd.f32 %v895_v2, %v880_v40  ;;  %v905_v17 = vadd.f32 %v904_v3, %v887_v61  ;;  %v947_v20 = vmul.f32 %v931_v4, %v931_v4  ;;  %v948_v21 = vmul.f32 %v932_v5, %v932_v5  ;;  %3202 = vst [vmem:[#allocation6_spill] sm:$0xff] %v2428_v29  ;;  %v2460_v2 = vld [vmem:[%s3176_s4 + $0x108] sm:$0xff] }
 0x260   : > { %v949_v24 = vmul.f32 %v933_v11, %v933_v11  ;;  %v936_v25 = vsub.f32 %v2393_v6, %v2334_v19  ;;  %v937_v26 = vsub.f32 %v2398_v7, %v2334_v19  ;;  %v950_v27 = vmul.f32 %v934_v13, %v934_v13 }
 0x261   : > { %902 = vadd.xlane.f32.xlu0 %v901_v60  ;;  %897 = vadd.xlane.f32.xlu1 %v896_v16  ;;  %v906_v30 = vadd.f32 %v905_v17, %v888_v0  ;;  %v962_v31 = vadd.f32 %v947_v20, %v946_v12  ;;  %v951_v32 = vmul.f32 %v935_v14, %v935_v14  ;;  %v2465_v12 = vld [vmem:[%s3176_s4 + $0x110] sm:$0xff]  ;;  %v2472_v20 = vld [vmem:[%s3176_s4 + $0x118] sm:$0xff] }
 0x262   : > { %v952_v35 = vmul.f32 %v936_v25, %v936_v25  ;;  %v953_v36 = vmul.f32 %v937_v26, %v937_v26  ;;  %v938_v37 = vsub.f32 %v2409_v22, %v2290_v62  ;;  %v939_v39 = vsub.f32 %v2414_v23, %v2290_v62 }
 0x263   : > { %v963_v40 = vadd.f32 %v962_v31, %v948_v21  ;;  %v967_v41 = vadd.f32 %v951_v32, %v950_v27  ;;  %v940_v42 = vsub.f32 %v2423_v28, %v2290_v62  ;;  %v941_v45 = vsub.f32 %v2428_v29, %v2290_v62  ;;  %v2481_v27 = vld [vmem:[%s3176_s4 + $0x120] sm:$0xff] }
 0x264   : > { %v954_v48 = vmul.f32 %v938_v37, %v938_v37  ;;  %v955_v60 = vmul.f32 %v939_v39, %v939_v39  ;;  %v942_v61 = vsub.f32 %v1784_v33, %v2332_v18  ;;  %v943_v0 = vsub.f32 %v1785_v34, %v2332_v18 }
 0x265   : > { %907 = vadd.xlane.f32.xlu0 %v906_v30  ;;  %v964_v3 = vadd.f32 %v963_v40, %v949_v24  ;;  %v968_v4 = vadd.f32 %v967_v41, %v952_v35  ;;  %v956_v5 = vmul.f32 %v940_v42, %v940_v42  ;;  %v957_v11 = vmul.f32 %v941_v45, %v941_v45  ;;  %v2486_v30 = vld [vmem:[%s3176_s4 + $0x128] sm:$0xff]  ;;  %v2493_v35 = vld [vmem:[%s3176_s4 + $0x130] sm:$0xff]  ;;  %v2500_v41 = vld [vmem:[%s3176_s4 + $0x138] sm:$0xff] }
 0x266   : > { %v972_v13 = vadd.f32 %v955_v60, %v954_v48  ;;  %v944_v14 = vsub.f32 %v1786_v46, %v2332_v18  ;;  %v945_v16 = vsub.f32 %v1787_v47, %v2332_v18  ;;  %v958_v17 = vmul.f32 %v942_v61, %v942_v61  ;;  %v2505_v42 = vld [vmem:[%s3176_s4 + $0x140] sm:$0xff]  ;;  %v2514_v60 = vld [vmem:[%s3176_s4 + $0x148] sm:$0xff] }
 0x267   : > { %965 = vadd.xlane.f32.xlu1 %v964_v3  ;;  %v969_v21 = vadd.f32 %v968_v4, %v953_v36  ;;  %v959_v24 = vmul.f32 %v943_v0, %v943_v0  ;;  %v1003_v25 = vsub.f32 %v2455_v1, %v2292_v63  ;;  %v1004_v26 = vsub.f32 %v2460_v2, %v2292_v63 }
 0x268   : > { %v973_v31 = vadd.f32 %v972_v13, %v956_v5  ;;  %v960_v32 = vmul.f32 %v944_v14, %v944_v14  ;;  %v961_v33 = vmul.f32 %v945_v16, %v945_v16  ;;  %v1005_v34 = vsub.f32 %v2465_v12, %v2292_v63  ;;  %3203 = vst [vmem:[#allocation7_spill] sm:$0xff] %v2505_v42  ;;  %v2521_v5 = vld [vmem:[%s3176_s4 + $0x150] sm:$0xff] }
 0x269   : > { %970 = vadd.xlane.f32.xlu0 %v969_v21  ;;  %v977_v36 = vadd.f32 %v959_v24, %v958_v17  ;;  %v1006_v37 = vsub.f32 %v2472_v20, %v2292_v63  ;;  %v1019_v39 = vmul.f32 %v1003_v25, %v1003_v25  ;;  %v1020_v40 = vmul.f32 %v1004_v26, %v1004_v26  ;;  %v2535_v21 = vld [vmem:[%s3176_s4 + $0x160] sm:$0xff] }
 0x26a   : > { %v974_v45 = vadd.f32 %v973_v31, %v957_v11  ;;  %v1021_v46 = vmul.f32 %v1005_v34, %v1005_v34  ;;  %v1007_v47 = vsub.f32 %v2481_v27, %v2334_v19  ;;  %v1008_v48 = vsub.f32 %v2486_v30, %v2334_v19  ;;  %3204 = vst [vmem:[#allocation8_spill] sm:$0xff] %v2514_v60  ;;  %v2526_v11 = vld [vmem:[%s3176_s4 + $0x158] sm:$0xff] }
 0x26b   : > { %v978_v61 = vadd.f32 %v977_v36, %v960_v32  ;;  %v1022_v0 = vmul.f32 %v1006_v37, %v1006_v37  ;;  %v1035_v3 = vadd.f32 %v1020_v40, %v1019_v39  ;;  %v1009_v4 = vsub.f32 %v2493_v35, %v2334_v19  ;;  %3205 = vst [vmem:[#allocation9_spill] sm:$0xff] %v2521_v5  ;;  %v2542_v32 = vld [vmem:[%s3176_s4 + $0x168] sm:$0xff]  ;;  %v2556_v40 = vld [vmem:[%s3176_s4 + $0x178] sm:$0xff] }
 0x26c   : > { %3206 = vst [vmem:[#allocation10_spill] sm:$0xff] %v2526_v11  ;;  %975 = vadd.xlane.f32.xlu1 %v974_v45  ;;  %v1010_v13 = vsub.f32 %v2500_v41, %v2334_v19  ;;  %v1023_v14 = vmul.f32 %v1007_v47, %v1007_v47  ;;  %v1024_v16 = vmul.f32 %v1008_v48, %v1008_v48  ;;  %3207 = vst [vmem:[#allocation11_spill] sm:$0xff] %v2535_v21 }
 0x26d   : > { %v1011_v17 = vsub.f32 %v2505_v42, %v2290_v62  ;;  %v979_v24 = vadd.f32 %v978_v61, %v961_v33  ;;  %v1036_v25 = vadd.f32 %v1035_v3, %v1021_v46  ;;  %v1025_v26 = vmul.f32 %v1009_v4, %v1009_v4  ;;  %3208 = vst [vmem:[#allocation12_spill] sm:$0xff] %v2542_v32  ;;  %v2551_v33 = vld [vmem:[%s3176_s4 + $0x170] sm:$0xff]  ;;  %v2563_v61 = vld [vmem:[%s3176_s4 + $0x180] sm:$0xff]  ;;  %v2568_v3 = vld [vmem:[%s3176_s4 + $0x188] sm:$0xff] }
 0x26e   : > { %v1012_v31 = vsub.f32 %v2514_v60, %v2290_v62  ;;  %v1026_v34 = vmul.f32 %v1010_v13, %v1010_v13  ;;  %v1040_v36 = vadd.f32 %v1024_v16, %v1023_v14  ;;  %v1013_v37 = vsub.f32 %v2521_v5, %v2290_v62  ;;  %3209 = vst [vmem:[#allocation13_spill] sm:$0xff] %v2551_v33  ;;  %v2575_v16 = vld [vmem:[%s3176_s4 + $0x190] sm:$0xff] }
 0x26f   : > { %v1014_v39 = vsub.f32 %v2526_v11, %v2290_v62  ;;  %3210 = vst [vmem:[#allocation14_spill] sm:$0xff] %v2556_v40  ;;  %980 = vadd.xlane.f32.xlu0 %v979_v24  ;;  %v1037_v45 = vadd.f32 %v1036_v25, %v1022_v0  ;;  %v1027_v46 = vmul.f32 %v1011_v17, %v1011_v17 }
 0x270   : > { %v1028_v47 = vmul.f32 %v1012_v31, %v1012_v31  ;;  %v1015_v48 = vsub.f32 %v2535_v21, %v2332_v18  ;;  %v1041_v4 = vadd.f32 %v1040_v36, %v1025_v26  ;;  %v1029_v13 = vmul.f32 %v1013_v37, %v1013_v37  ;;  %v2584_v26 = vld [vmem:[%s3176_s4 + $0x198] sm:$0xff] }
 0x271   : > { %v1030_v14 = vmul.f32 %v1014_v39, %v1014_v39  ;;  %v1016_v0 = vsub.f32 %v2542_v32, %v2332_v18  ;;  %1038 = vadd.xlane.f32.xlu1 %v1037_v45  ;;  %v1017_v24 = vsub.f32 %v2551_v33, %v2332_v18  ;;  %v1018_v25 = vsub.f32 %v2556_v40, %v2332_v18 }
 0x272   : > { %v1045_v17 = vadd.f32 %v1028_v47, %v1027_v46  ;;  %v1031_v31 = vmul.f32 %v1015_v48, %v1015_v48  ;;  %v1042_v36 = vadd.f32 %v1041_v4, %v1026_v34  ;;  %v1076_v39 = vsub.f32 %v2563_v61, %v2292_v63  ;;  %v2593_v46 = vld [vmem:[%s3176_s4 + $0x1a0] sm:$0xff]  ;;  %v2598_v47 = vld [vmem:[%s3176_s4 + $0x1a8] sm:$0xff]  ;;  %v2605_v4 = vld [vmem:[%s3176_s4 + $0x1b0] sm:$0xff] }
 0x273   : > { %v1032_v37 = vmul.f32 %v1016_v0, %v1016_v0  ;;  %v1077_v45 = vsub.f32 %v2568_v3, %v2292_v63  ;;  %v1033_v40 = vmul.f32 %v1017_v24, %v1017_v24  ;;  %v1078_v34 = vsub.f32 %v2575_v16, %v2292_v63  ;;  %3211 = vst [vmem:[#allocation15_spill] sm:$0xff] %v2605_v4 }
 0x274   : > { %v1046_v48 = vadd.f32 %v1045_v17, %v1029_v13  ;;  %1043 = vadd.xlane.f32.xlu0 %v1042_v36  ;;  %v1079_v33 = vsub.f32 %v2584_v26, %v2292_v63  ;;  %v1092_v32 = vmul.f32 %v1076_v39, %v1076_v39  ;;  %v2612_v13 = vld [vmem:[%s3176_s4 + $0x1b8] sm:$0xff]  ;;  %v2617_v17 = vld [vmem:[%s3176_s4 + $0x1c0] sm:$0xff]  ;;  %v1034_v11 = vmul.f32 %v1018_v25, %v1018_v25  ;;  %v2626_v36 = vld [vmem:[%s3176_s4 + $0x1c8] sm:$0xff] }
 0x275   : > { %v1050_v0 = vadd.f32 %v1032_v37, %v1031_v31  ;;  %v1093_v21 = vmul.f32 %v1077_v45, %v1077_v45  ;;  %3212 = vst [vmem:[#allocation16_spill] sm:$0xff] %v2612_v13  ;;  %3213 = vst [vmem:[#allocation17_spill] sm:$0xff] %v2617_v17  ;;  %v1080_v31 = vsub.f32 %v2593_v46, %v2334_v19  ;;  %v2638_v25 = vld [vmem:[%s3176_s4 + $0x1d8] sm:$0xff] }
 0x276   : > { %v1047_v24 = vadd.f32 %v1046_v48, %v1030_v14  ;;  %v1081_v63 = vsub.f32 %v2598_v47, %v2334_v19  ;;  %3214 = vst [vmem:[#allocation18_spill] sm:$0xff] %v2626_v36  ;;  %v1094_v39 = vmul.f32 %v1078_v34, %v1078_v34  ;;  %v1082_v5 = vsub.f32 %v2605_v4, %v2334_v19  ;;  %v2633_v14 = vld [vmem:[%s3176_s4 + $0x1d0] sm:$0xff] }
 0x277   : > { %v1051_v37 = vadd.f32 %v1050_v0, %v1033_v40  ;;  %v1108_v45 = vadd.f32 %v1093_v21, %v1092_v32  ;;  %3215 = vst [vmem:[#allocation19_spill] sm:$0xff] %v2633_v14  ;;  %3216 = vst [vmem:[#allocation20_spill] sm:$0xff] %v2638_v25  ;;  %v1083_v48 = vsub.f32 %v2612_v13, %v2334_v19  ;;  %v2647_v32 = vld [vmem:[%s3176_s4 + $0x1e0] sm:$0xff]  ;;  %v2654_v19 = vld [vmem:[%s3176_s4 + $0x1e8] sm:$0xff] }
 0x278   : > { %1048 = vadd.xlane.f32.xlu1 %v1047_v24  ;;  %v1096_v40 = vmul.f32 %v1080_v31, %v1080_v31  ;;  %v1097_v34 = vmul.f32 %v1081_v63, %v1081_v63  ;;  %v1084_v21 = vsub.f32 %v2617_v17, %v2290_v62  ;;  %3217 = vst [vmem:[#allocation21_spill] sm:$0xff] %v2647_v32  ;;  %3218 = vst [vmem:[#allocation22_spill] sm:$0xff] %v2654_v19 }
 0x279   : > { %v1052_v0 = vadd.f32 %v1051_v37, %v1034_v11  ;;  %v1095_v60 = vmul.f32 %v1079_v33, %v1079_v33  ;;  %v1109_v42 = vadd.f32 %v1108_v45, %v1094_v39  ;;  %v1085_v29 = vsub.f32 %v2626_v36, %v2290_v62  ;;  %v2663_v11 = vld [vmem:[%s3176_s4 + $0x1f0] sm:$0xff] }
 0x27a   : > { %v1098_v24 = vmul.f32 %v1082_v5, %v1082_v5  ;;  %v1113_v31 = vadd.f32 %v1097_v34, %v1096_v40  ;;  %v1086_v63 = vsub.f32 %v2633_v14, %v2290_v62  ;;  %v1087_v17 = vsub.f32 %v2638_v25, %v2290_v62  ;;  %3219 = vst [vmem:[#allocation23_spill] sm:$0xff] %v2663_v11  ;;  %v2668_v5 = vld [vmem:[%s3176_s4 + $0x1f8] sm:$0xff] }
 0x27b   : > { %1053 = vadd.xlane.f32.xlu0 %v1052_v0  ;;  %v1110_v33 = vadd.f32 %v1109_v42, %v1095_v60  ;;  %v1100_v37 = vmul.f32 %v1084_v21, %v1084_v21  ;;  %v1101_v39 = vmul.f32 %v1085_v29, %v1085_v29  ;;  %3220 = vst [vmem:[#allocation24_spill] sm:$0xff] %v2668_v5 }
 0x27c   : > { %v1088_v45 = vsub.f32 %v2647_v32, %v2332_v18  ;;  %v1099_v40 = vmul.f32 %v1083_v48, %v1083_v48  ;;  %v1114_v34 = vadd.f32 %v1113_v31, %v1098_v24  ;;  %v1102_v62 = vmul.f32 %v1086_v63, %v1086_v63 }
 0x27d   : > { %v1089_v25 = vsub.f32 %v2654_v19, %v2332_v18  ;;  %1111 = vadd.xlane.f32.xlu1 %v1110_v33  ;;  %v1103_v14 = vmul.f32 %v1087_v17, %v1087_v17  ;;  %v1118_v0 = vadd.f32 %v1101_v39, %v1100_v37  ;;  %v1090_v29 = vsub.f32 %v2663_v11, %v2332_v18 }
 0x27e   : > { %v1104_v42 = vmul.f32 %v1088_v45, %v1088_v45  ;;  %v1115_v60 = vadd.f32 %v1114_v34, %v1099_v40  ;;  %v1091_v21 = vsub.f32 %v2668_v5, %v2332_v18 }
 0x27f   : > { %v1105_v36 = vmul.f32 %v1089_v25, %v1089_v25  ;;  %v1119_v28 = vadd.f32 %v1118_v0, %v1102_v62  ;;  %v1106_v48 = vmul.f32 %v1090_v29, %v1090_v29 }
 0x280   : > { %1116 = vadd.xlane.f32.xlu0 %v1115_v60  ;;  %v1107_v63 = vmul.f32 %v1091_v21, %v1091_v21 }
 0x281   : > { %v1123_v24 = vadd.f32 %v1105_v36, %v1104_v42  ;;  %v1120_v31 = vadd.f32 %v1119_v28, %v1103_v14 }
 0x283   : > { %v1124_v32 = vadd.f32 %v1123_v24, %v1106_v48  ;;  %1121 = vadd.xlane.f32.xlu1 %v1120_v31 }
 0x285   : > { %v1125_v33 = vadd.f32 %v1124_v32, %v1107_v63 }
 0x287   : > { %1126 = vadd.xlane.f32.xlu0 %v1125_v33 }
 0x2ea   : > { %v893_v17 = vpop.xlane.xlu0 %892 }
 0x2ee   : > { %v898_v37 = vpop.xlane.xlu1 %897  ;;  %v903_v39 = vpop.xlane.xlu0 %902 }
 0x2f2   : > { %v908_v11 = vpop.xlane.xlu0 %907 }
 0x2f4   : > { %v966_v45 = vpop.xlane.xlu1 %965 }
 0x2f5   : > { %v982_v0 = vadd.f32 %v966_v45, %v893_v17 }
 0x2f6   : > { %v971_v40 = vpop.xlane.xlu0 %970 }
 0x2f7   : > { %v983_v28 = vadd.f32 %v971_v40, %v898_v37 }
 0x2f9   : > { %v976_v34 = vpop.xlane.xlu1 %975 }
 0x2fa   : > { %v984_v32 = vadd.f32 %v976_v34, %v903_v39  ;;  %v1136_v34 = vld [vmem:[%s3174_s2] sm:$0xff] }
 0x2fc   : > { %v981_v19 = vpop.xlane.xlu0 %980 }
 0x2fd   : > { %v985_v33 = vadd.f32 %v981_v19, %v908_v11 }
 0x2fe   : > { %v1039_v18 = vpop.xlane.xlu1 %1038 }
 0x2ff   : > { %v1055_v36 = vadd.f32 %v1039_v18, %v982_v0 }
 0x301   : > { %v1044_v25 = vpop.xlane.xlu0 %1043 }
 0x302   : > { %v1056_v60 = vadd.f32 %v1044_v25, %v983_v28  ;;  %v1152_v25 = vld [vmem:[%s3175_s3] sm:$0xff] }
 0x305   : > { %v1049_v62 = vpop.xlane.xlu1 %1048 }
 0x306   : > { %v1057_v31 = vadd.f32 %v1049_v62, %v984_v32 }
 0x308   : > { %v1054_v29 = vpop.xlane.xlu0 %1053 }
 0x309   : > { %v1058_v13 = vadd.f32 %v1054_v29, %v985_v33  ;;  %v1139_v29 = vld [vmem:[%s3174_s2 + $0x18] sm:$0xff] }
 0x30a   : > { %v1112_v14 = vpop.xlane.xlu1 %1111 }
 0x30b   : > { %v1128_v42 = vadd.f32 %v1112_v14, %v1055_v36  ;;  %v1154_v14 = vld [vmem:[%s3175_s3 + $0x10] sm:$0xff] }
 0x30d   : > { %v1132_v21 = vmul.f32 0.00048828125, %v1128_v42  ;;  %v1117_v48 = vpop.xlane.xlu0 %1116 }
 0x30e   : > { %v1129_v24 = vadd.f32 %v1117_v48, %v1056_v60 }
 0x30f   : > { %v1140_v63 = vadd.f32 1e-05, %v1132_v21  ;;  %v1153_v21 = vld [vmem:[%s3175_s3 + $0x8] sm:$0xff] }
 0x310   : > { %v1122_v5 = vpop.xlane.xlu1 %1121  ;;  %v1133_v23 = vmul.f32 0.00048828125, %v1129_v24 }
 0x311   : > { %2053 = vrsqrt.f32 %v1140_v63  ;;  %v1130_v22 = vadd.f32 %v1122_v5, %v1057_v31  ;;  %v1137_v5 = vld [vmem:[%s3174_s2 + $0x8] sm:$0xff]  ;;  %v1155_v31 = vld [vmem:[%s3175_s3 + $0x18] sm:$0xff] }
 0x312   : > { %v1141_v4 = vadd.f32 1e-05, %v1133_v23 }
 0x313   : > { %v1134_v17 = vmul.f32 0.00048828125, %v1130_v22  ;;  %v1138_v22 = vld [vmem:[%s3174_s2 + $0x10] sm:$0xff] }
 0x314   : > { %v1127_v45 = vpop.xlane.xlu0 %1126  ;;  %2055 = vrsqrt.f32 %v1141_v4 }
 0x315   : > { %v1131_v37 = vadd.f32 %v1127_v45, %v1058_v13  ;;  %v1142_v40 = vadd.f32 1e-05, %v1134_v17 }
 0x317   : > { %v1135_v18 = vmul.f32 0.00048828125, %v1131_v37  ;;  %2057 = vrsqrt.f32 %v1142_v40 }
 0x319   : > { %v1143_v39 = vadd.f32 1e-05, %v1135_v18 }
 0x31b   : > { %2059 = vrsqrt.f32 %v1143_v39  ;;  %v2054_v19 = vpop.eup %2053 }
 0x31c   : > { %v1148_v11 = vmul.f32 %v2054_v19, %v1136_v34 }
 0x31e   : > { %v2056_v23 = vpop.eup %2055  ;;  %1166 = vperm.xlu1 %2052, %v1148_v11   ;;  %v1156_v13 = vmul.f32 %v1148_v11, %v2248_v50 }
 0x31f   : > { %v1149_v4 = vmul.f32 %v2056_v23, %v1137_v5 }
 0x320   : > { %v1160_v36 = vsub.f32 %v1152_v25, %v1156_v13 }
 0x321   : > { %v2058_v62 = vpop.eup %2057  ;;  %1171 = vperm.xlu0 %2051, %v1149_v4   ;;  %v1157_v60 = vmul.f32 %v1149_v4, %v2254_v53 }
 0x322   : > { %v1150_v0 = vmul.f32 %v2058_v62, %v1138_v22 }
 0x323   : > { %v1161_v48 = vsub.f32 %v1153_v21, %v1157_v60 }
 0x324   : > { %1176 = vperm.xlu1 %2052, %v1150_v0   ;;  %v1158_v50 = vmul.f32 %v1150_v0, %v2246_v49 }
 0x325   : > { %v2060_v28 = vpop.eup %2059  ;;  %1202 = vperm.xlu0 %2051, %v1160_v36  }
 0x326   : > { %v1151_v42 = vmul.f32 %v2060_v28, %v1139_v29  ;;  %v1162_v32 = vsub.f32 %v1154_v14, %v1158_v50 }
 0x328   : > { %1181 = vperm.xlu1 %2052, %v1151_v42   ;;  %v1159_v24 = vmul.f32 %v1151_v42, %v2252_v52 }
 0x329   : > { %1212 = vperm.xlu0 %2051, %v1162_v32  }
 0x32a   : > { %v1163_v49 = vsub.f32 %v1155_v31, %v1159_v24 }
 0x32c   : > { %1207 = vperm.xlu1 %2052, %v1161_v48  }
 0x330   : > { %1217 = vperm.xlu1 %2052, %v1163_v49  }
 0x39d   : > { %v1167_v63 = vpop.permute.xlu1 %1166 }
 0x39e   : > { %v1184_v53 = vmul.f32 %v1167_v63, %v2261_v54  ;;  %v1185_v33 = vmul.f32 %v1167_v63, %v2266_v55  ;;  %v1186_v17 = vmul.f32 %v1167_v63, %v2271_v56  ;;  %v1187_v45 = vmul.f32 %v1167_v63, %v2276_v57 }
 0x39f   : > { %v1316_v37 = vmul.f32 %v2355_v38, %v1167_v63  ;;  %v1317_v52 = vmul.f32 %v2362_v43, %v1167_v63  ;;  %v1318_v40 = vmul.f32 %v2367_v44, %v1167_v63  ;;  %v1319_v18 = vmul.f32 %v2372_v51, %v1167_v63 }
 0x3a0   : > { %v1428_v39 = vmul.f32 %v2455_v1, %v1167_v63  ;;  %v1429_v34 = vmul.f32 %v2460_v2, %v1167_v63  ;;  %v1430_v54 = vmul.f32 %v2465_v12, %v1167_v63  ;;  %v1431_v55 = vmul.f32 %v2472_v20, %v1167_v63  ;;  %v1172_v19 = vpop.permute.xlu0 %1171 }
 0x3a1   : > { %v2719_v56 = vmul.f32 %v2563_v61, %v1167_v63  ;;  %v2722_v57 = vmul.f32 %v2568_v3, %v1167_v63  ;;  %v2725_v38 = vmul.f32 %v2575_v16, %v1167_v63  ;;  %v2728_v43 = vmul.f32 %v2584_v26, %v1167_v63 }
 0x3a2   : > { %v2731_v44 = vmul.f32 %v1172_v19, %v2309_v8  ;;  %v2734_v51 = vmul.f32 %v1172_v19, %v2314_v9  ;;  %v2737_v1 = vmul.f32 %v1172_v19, %v2319_v10  ;;  %v2740_v2 = vmul.f32 %v1172_v19, %v2324_v15 }
 0x3a3   : > { %v2743_v12 = vmul.f32 %v2377_v58, %v1172_v19  ;;  %v2746_v20 = vmul.f32 %v2382_v59, %v1172_v19  ;;  %v2749_v61 = vmul.f32 %v2393_v6, %v1172_v19  ;;  %v2752_v8 = vmul.f32 %v2398_v7, %v1172_v19  ;;  %v2766_v3 = vpop.permute.xlu1 %1176 }
 0x3a4   : > { %v2755_v9 = vmul.f32 %v2481_v27, %v1172_v19  ;;  %v2758_v10 = vmul.f32 %v2486_v30, %v1172_v19  ;;  %v2761_v15 = vmul.f32 %v2493_v35, %v1172_v19  ;;  %v2764_v58 = vmul.f32 %v2500_v41, %v1172_v19  ;;  %v1203_v59 = vpop.permute.xlu0 %1202  ;;  %v3221_v27 = vld [vmem:[#allocation15_spill] sm:$0xff]  ;;  %v3222_v30 = vld [vmem:[#allocation16_spill] sm:$0xff] }
 0x3a5   : > { %v2769_v6 = vmul.f32 %v2593_v46, %v1172_v19  ;;  %v2772_v7 = vmul.f32 %v2598_v47, %v1172_v19  ;;  %v2775_v16 = vmul.f32 %v3221_v27, %v1172_v19  ;;  %v2778_v26 = vmul.f32 %v3222_v30, %v1172_v19 }
 0x3a6   : > { %v1220_v35 = vadd.f32 %v1203_v59, %v1184_v53  ;;  %v1221_v11 = vadd.f32 %v1203_v59, %v1185_v33  ;;  %v1222_v5 = vadd.f32 %v1203_v59, %v1186_v17  ;;  %v1223_v41 = vadd.f32 %v1203_v59, %v1187_v45 }
 0x3a7   : > { %v1332_v23 = vadd.f32 %v1316_v37, %v1203_v59  ;;  %v1333_v22 = vadd.f32 %v1317_v52, %v1203_v59  ;;  %v1334_v4 = vadd.f32 %v1318_v40, %v1203_v59  ;;  %v1335_v13 = vadd.f32 %v1319_v18, %v1203_v59  ;;  %v2780_v29 = vpop.permute.xlu1 %1181 }
 0x3a8   : > { %vm1236_vm2 = vcmp.ge.f32.partialorder %v1220_v35, 0.0  ;;  %vm1237_vm3 = vcmp.ge.f32.partialorder %v1221_v11, 0.0  ;;  %vm1238_vm4 = vcmp.ge.f32.partialorder %v1222_v5, 0.0  ;;  %vm1239_vm5 = vcmp.ge.f32.partialorder %v1223_v41, 0.0 }
 0x3a9   : > { %v1252_v46 = vmul.f32 0.2, %v1220_v35  ;;  %v1253_v47 = vmul.f32 0.2, %v1221_v11  ;;  %v1254_v25 = vmul.f32 0.2, %v1222_v5  ;;  %v1444_v62 = vadd.f32 %v1428_v39, %v1203_v59 }
 0x3aa   : > { %v1255_v0 = vmul.f32 0.2, %v1223_v41  ;;  %vm1348_vm6 = vcmp.ge.f32.partialorder %v1332_v23, 0.0  ;;  %vm1349_vm7 = vcmp.ge.f32.partialorder %v1333_v22, 0.0  ;;  %vm1350_vm8 = vcmp.ge.f32.partialorder %v1334_v4, 0.0 }
 0x3ab   : > { %v1268_v36 = vsel %vm1236_vm2, %v1220_v35, %v1252_v46  ;;  %v1269_v28 = vsel %vm1237_vm3, %v1221_v11, %v1253_v47  ;;  %v1270_v14 = vsel %vm1238_vm4, %v1222_v5, %v1254_v25  ;;  %vm1351_vm9 = vcmp.ge.f32.partialorder %v1335_v13, 0.0 }
 0x3ac   : > { %v1271_v50 = vsel %vm1239_vm5, %v1223_v41, %v1255_v0  ;;  %1284 = vst [vmem:[%s3176_s4] sm:$0xff] %v1268_v36  ;;  %1285 = vst [vmem:[%s3176_s4 + $0x8] sm:$0xff] %v1269_v28  ;;  %v1364_v42 = vmul.f32 0.2, %v1332_v23  ;;  %v1365_v60 = vmul.f32 0.2, %v1333_v22  ;;  %v1445_v48 = vadd.f32 %v1429_v34, %v1203_v59 }
 0x3ad   : > { %1286 = vst [vmem:[%s3176_s4 + $0x10] sm:$0xff] %v1270_v14  ;;  %v1366_v32 = vmul.f32 0.2, %v1334_v4  ;;  %1287 = vst [vmem:[%s3176_s4 + $0x18] sm:$0xff] %v1271_v50  ;;  %v1367_v21 = vmul.f32 0.2, %v1335_v13  ;;  %v1446_v24 = vadd.f32 %v1430_v54, %v1203_v59  ;;  %v1447_v31 = vadd.f32 %v1431_v55, %v1203_v59  ;;  %v2814_v54 = vpop.permute.xlu1 %1207 }
 0x3ae   : > { %v1380_v49 = vsel %vm1348_vm6, %v1332_v23, %v1364_v42  ;;  %v1381_v63 = vsel %vm1349_vm7, %v1333_v22, %v1365_v60  ;;  %vm1460_vm10 = vcmp.ge.f32.partialorder %v1444_v62, 0.0  ;;  %vm1461_vm11 = vcmp.ge.f32.partialorder %v1445_v48, 0.0 }
 0x3af   : > { %v1382_v53 = vsel %vm1350_vm8, %v1334_v4, %v1366_v32  ;;  %v1383_v33 = vsel %vm1351_vm9, %v1335_v13, %v1367_v21  ;;  %1836 = vst [vmem:[%s3176_s4 + $0x80] sm:$0xff] %v1380_v49  ;;  %1837 = vst [vmem:[%s3176_s4 + $0x88] sm:$0xff] %v1381_v63  ;;  %vm1462_vm12 = vcmp.ge.f32.partialorder %v1446_v24, 0.0  ;;  %vm1463_vm13 = vcmp.ge.f32.partialorder %v1447_v31, 0.0 }
 0x3b0   : > { %1838 = vst [vmem:[%s3176_s4 + $0x90] sm:$0xff] %v1382_v53  ;;  %1839 = vst [vmem:[%s3176_s4 + $0x98] sm:$0xff] %v1383_v33  ;;  %v1476_v17 = vmul.f32 0.2, %v1444_v62  ;;  %v1477_v45 = vmul.f32 0.2, %v1445_v48  ;;  %v1556_v52 = vadd.f32 %v2719_v56, %v1203_v59  ;;  %v1557_v18 = vadd.f32 %v2722_v57, %v1203_v59 }
 0x3b1   : > { %v1478_v37 = vmul.f32 0.2, %v1446_v24  ;;  %v1479_v40 = vmul.f32 0.2, %v1447_v31  ;;  %v1558_v39 = vadd.f32 %v2725_v38, %v1203_v59  ;;  %v1559_v34 = vadd.f32 %v2728_v43, %v1203_v59 }
 0x3b2   : > { %v1492_v55 = vsel %vm1460_vm10, %v1444_v62, %v1476_v17  ;;  %v1493_v19 = vsel %vm1461_vm11, %v1445_v48, %v1477_v45  ;;  %vm1572_vm14 = vcmp.ge.f32.partialorder %v1556_v52, 0.0  ;;  %vm1573_vm15 = vcmp.ge.f32.partialorder %v1557_v18, 0.0 }
 0x3b3   : > { %v1494_v27 = vsel %vm1462_vm12, %v1446_v24, %v1478_v37  ;;  %v1495_v30 = vsel %vm1463_vm13, %v1447_v31, %v1479_v40  ;;  %1868 = vst [vmem:[%s3176_s4 + $0x100] sm:$0xff] %v1492_v55  ;;  %1869 = vst [vmem:[%s3176_s4 + $0x108] sm:$0xff] %v1493_v19  ;;  %vm1574_vm0 = vcmp.ge.f32.partialorder %v1558_v39, 0.0  ;;  %vm1575_vm1 = vcmp.ge.f32.partialorder %v1559_v34, 0.0  ;;  %v2064_v55 = vld [vmem:[%s3176_s4 + $0x58] sm:$0xff] }
 0x3b4   : > { %1870 = vst [vmem:[%s3176_s4 + $0x110] sm:$0xff] %v1494_v27  ;;  %1871 = vst [vmem:[%s3176_s4 + $0x118] sm:$0xff] %v1495_v30  ;;  %v1588_v56 = vmul.f32 0.2, %v1556_v52  ;;  %v1589_v57 = vmul.f32 0.2, %v1557_v18  ;;  %v1224_v43 = vadd.f32 %v2814_v54, %v2731_v44  ;;  %v1225_v35 = vadd.f32 %v2814_v54, %v2734_v51 }
 0x3b5   : > { %v1590_v38 = vmul.f32 0.2, %v1558_v39  ;;  %v1591_v59 = vmul.f32 0.2, %v1559_v34  ;;  %v1226_v11 = vadd.f32 %v2814_v54, %v2737_v1  ;;  %v1227_v5 = vadd.f32 %v2814_v54, %v2740_v2 }
 0x3b6   : > { %v1604_v41 = vsel %vm1572_vm14, %v1556_v52, %v1588_v56  ;;  %v1605_v23 = vsel %vm1573_vm15, %v1557_v18, %v1589_v57  ;;  %vm1240_vm2 = vcmp.ge.f32.partialorder %v1224_v43, 0.0  ;;  %vm1241_vm3 = vcmp.ge.f32.partialorder %v1225_v35, 0.0  ;;  %v2062_v18 = vld [vmem:[%s3176_s4 + $0x48] sm:$0xff]  ;;  %v3223_v57 = vld [vmem:[#allocation3_spill] sm:$0xff] }
 0x3b7   : > { %v1606_v22 = vsel %vm1574_vm0, %v1558_v39, %v1590_v38  ;;  %v1607_v4 = vsel %vm1575_vm1, %v1559_v34, %v1591_v59  ;;  %1900 = vst [vmem:[%s3176_s4 + $0x180] sm:$0xff] %v1604_v41  ;;  %1901 = vst [vmem:[%s3176_s4 + $0x188] sm:$0xff] %v1605_v23  ;;  %vm1242_vm4 = vcmp.ge.f32.partialorder %v1226_v11, 0.0  ;;  %vm1243_vm5 = vcmp.ge.f32.partialorder %v1227_v5, 0.0  ;;  %v2063_v34 = vld [vmem:[%s3176_s4 + $0x50] sm:$0xff]  ;;  %v3224_v59 = vld [vmem:[#allocation4_spill] sm:$0xff] }
 0x3b8   : > { %1902 = vst [vmem:[%s3176_s4 + $0x190] sm:$0xff] %v1606_v22  ;;  %1903 = vst [vmem:[%s3176_s4 + $0x198] sm:$0xff] %v1607_v4  ;;  %v1256_v44 = vmul.f32 0.2, %v1224_v43  ;;  %v1257_v51 = vmul.f32 0.2, %v1225_v35  ;;  %v1336_v2 = vadd.f32 %v2743_v12, %v2814_v54  ;;  %v1337_v46 = vadd.f32 %v2746_v20, %v2814_v54  ;;  %v2950_v22 = vpop.permute.xlu0 %1212 }
 0x3b9   : > { %v1258_v1 = vmul.f32 0.2, %v1226_v11  ;;  %v1259_v13 = vmul.f32 0.2, %v1227_v5  ;;  %v1338_v47 = vadd.f32 %v2749_v61, %v2814_v54  ;;  %v1339_v25 = vadd.f32 %v2752_v8, %v2814_v54  ;;  %v3226_v41 = vld [vmem:[#allocation6_spill] sm:$0xff]  ;;  %v3227_v4 = vld [vmem:[#allocation7_spill] sm:$0xff] }
 0x3ba   : > { %v1272_v62 = vsel %vm1240_vm2, %v1224_v43, %v1256_v44  ;;  %v1273_v0 = vsel %vm1241_vm3, %v1225_v35, %v1257_v51  ;;  %vm1352_vm6 = vcmp.ge.f32.partialorder %v1336_v2, 0.0  ;;  %vm1353_vm7 = vcmp.ge.f32.partialorder %v1337_v46, 0.0  ;;  %v3228_v51 = vld [vmem:[#allocation8_spill] sm:$0xff] }
 0x3bb   : > { %v1274_v36 = vsel %vm1242_vm4, %v1226_v11, %v1258_v1  ;;  %v1275_v28 = vsel %vm1243_vm5, %v1227_v5, %v1259_v13  ;;  %1288 = vst [vmem:[%s3176_s4 + $0x20] sm:$0xff] %v1272_v62  ;;  %1289 = vst [vmem:[%s3176_s4 + $0x28] sm:$0xff] %v1273_v0  ;;  %vm1354_vm8 = vcmp.ge.f32.partialorder %v1338_v47, 0.0  ;;  %vm1355_vm9 = vcmp.ge.f32.partialorder %v1339_v25, 0.0  ;;  %v3225_v11 = vld [vmem:[#allocation5_spill] sm:$0xff]  ;;  %v3232_v0 = vld [vmem:[#allocation18_spill] sm:$0xff] }
 0x3bc   : > { %1290 = vst [vmem:[%s3176_s4 + $0x30] sm:$0xff] %v1274_v36  ;;  %1291 = vst [vmem:[%s3176_s4 + $0x38] sm:$0xff] %v1275_v28  ;;  %v1368_v12 = vmul.f32 0.2, %v1336_v2  ;;  %v1369_v20 = vmul.f32 0.2, %v1337_v46  ;;  %v1448_v8 = vadd.f32 %v2755_v9, %v2814_v54  ;;  %v1449_v50 = vadd.f32 %v2758_v10, %v2814_v54 }
 0x3bd   : > { %v1370_v61 = vmul.f32 0.2, %v1338_v47  ;;  %v1371_v14 = vmul.f32 0.2, %v1339_v25  ;;  %v1450_v42 = vadd.f32 %v2761_v15, %v2814_v54  ;;  %v1451_v60 = vadd.f32 %v2764_v58, %v2814_v54  ;;  %v3233_v28 = vld [vmem:[#allocation19_spill] sm:$0xff] }
 0x3be   : > { %v1384_v32 = vsel %vm1352_vm6, %v1336_v2, %v1368_v12  ;;  %v1385_v21 = vsel %vm1353_vm7, %v1337_v46, %v1369_v20  ;;  %vm1464_vm10 = vcmp.ge.f32.partialorder %v1448_v8, 0.0  ;;  %vm1465_vm11 = vcmp.ge.f32.partialorder %v1449_v50, 0.0  ;;  %v3229_v2 = vld [vmem:[#allocation9_spill] sm:$0xff]  ;;  %v3230_v46 = vld [vmem:[#allocation10_spill] sm:$0xff]  ;;  %v3234_v20 = vld [vmem:[#allocation20_spill] sm:$0xff] }
 0x3bf   : > { %v1386_v48 = vsel %vm1354_vm8, %v1338_v47, %v1370_v61  ;;  %v1387_v24 = vsel %vm1355_vm9, %v1339_v25, %v1371_v14  ;;  %1840 = vst [vmem:[%s3176_s4 + $0xa0] sm:$0xff] %v1384_v32  ;;  %1841 = vst [vmem:[%s3176_s4 + $0xa8] sm:$0xff] %v1385_v21  ;;  %vm1466_vm12 = vcmp.ge.f32.partialorder %v1450_v42, 0.0  ;;  %vm1467_vm13 = vcmp.ge.f32.partialorder %v1451_v60, 0.0  ;;  %v3231_v25 = vld [vmem:[#allocation17_spill] sm:$0xff] }
 0x3c0   : > { %1842 = vst [vmem:[%s3176_s4 + $0xb0] sm:$0xff] %v1386_v48  ;;  %1843 = vst [vmem:[%s3176_s4 + $0xb8] sm:$0xff] %v1387_v24  ;;  %v1480_v9 = vmul.f32 0.2, %v1448_v8  ;;  %v1481_v10 = vmul.f32 0.2, %v1449_v50  ;;  %v1560_v58 = vadd.f32 %v2769_v6, %v2814_v54  ;;  %v1561_v49 = vadd.f32 %v2772_v7, %v2814_v54 }
 0x3c1   : > { %v1482_v15 = vmul.f32 0.2, %v1450_v42  ;;  %v1483_v31 = vmul.f32 0.2, %v1451_v60  ;;  %v1562_v63 = vadd.f32 %v2775_v16, %v2814_v54  ;;  %v1563_v53 = vadd.f32 %v2778_v26, %v2814_v54  ;;  %v2061_v26 = vld [vmem:[%s3176_s4 + $0x40] sm:$0xff] }
 0x3c2   : > { %v1496_v33 = vsel %vm1464_vm10, %v1448_v8, %v1480_v9  ;;  %v1497_v17 = vsel %vm1465_vm11, %v1449_v50, %v1481_v10  ;;  %vm1576_vm14 = vcmp.ge.f32.partialorder %v1560_v58, 0.0  ;;  %vm1577_vm15 = vcmp.ge.f32.partialorder %v1561_v49, 0.0 }
 0x3c3   : > { %v1498_v45 = vsel %vm1466_vm12, %v1450_v42, %v1482_v15  ;;  %v1499_v37 = vsel %vm1467_vm13, %v1451_v60, %v1483_v31  ;;  %1872 = vst [vmem:[%s3176_s4 + $0x120] sm:$0xff] %v1496_v33  ;;  %1873 = vst [vmem:[%s3176_s4 + $0x128] sm:$0xff] %v1497_v17  ;;  %vm1578_vm0 = vcmp.ge.f32.partialorder %v1562_v63, 0.0  ;;  %vm1579_vm1 = vcmp.ge.f32.partialorder %v1563_v53, 0.0 }
 0x3c4   : > { %1874 = vst [vmem:[%s3176_s4 + $0x130] sm:$0xff] %v1498_v45  ;;  %1875 = vst [vmem:[%s3176_s4 + $0x138] sm:$0xff] %v1499_v37  ;;  %v1592_v6 = vmul.f32 0.2, %v1560_v58  ;;  %v1593_v7 = vmul.f32 0.2, %v1561_v49  ;;  %v1192_v52 = vmul.f32 %v2061_v26, %v2766_v3  ;;  %v1193_v39 = vmul.f32 %v2062_v18, %v2766_v3 }
 0x3c5   : > { %v1594_v16 = vmul.f32 0.2, %v1562_v63  ;;  %v1595_v40 = vmul.f32 0.2, %v1563_v53  ;;  %v1194_v54 = vmul.f32 %v2063_v34, %v2766_v3  ;;  %v1195_v19 = vmul.f32 %v2064_v55, %v2766_v3 }
 0x3c6   : > { %v1608_v27 = vsel %vm1576_vm14, %v1560_v58, %v1592_v6  ;;  %v1609_v30 = vsel %vm1577_vm15, %v1561_v49, %v1593_v7  ;;  %v1324_v38 = vmul.f32 %v3223_v57, %v2766_v3  ;;  %v1325_v35 = vmul.f32 %v3224_v59, %v2766_v3 }
 0x3c7   : > { %v1610_v56 = vsel %vm1578_vm0, %v1562_v63, %v1594_v16  ;;  %v1611_v43 = vsel %vm1579_vm1, %v1563_v53, %v1595_v40  ;;  %1904 = vst [vmem:[%s3176_s4 + $0x1a0] sm:$0xff] %v1608_v27  ;;  %1905 = vst [vmem:[%s3176_s4 + $0x1a8] sm:$0xff] %v1609_v30  ;;  %v1326_v5 = vmul.f32 %v3225_v11, %v2766_v3  ;;  %v1834_v11 = vld [vmem:[%s3176_s4 + $0xf0] sm:$0xff] }
 0x3c8   : > { %1906 = vst [vmem:[%s3176_s4 + $0x1b0] sm:$0xff] %v1610_v56  ;;  %v1327_v23 = vmul.f32 %v3226_v41, %v2766_v3  ;;  %1907 = vst [vmem:[%s3176_s4 + $0x1b8] sm:$0xff] %v1611_v43  ;;  %v1436_v44 = vmul.f32 %v3227_v4, %v2766_v3  ;;  %v1437_v1 = vmul.f32 %v3228_v51, %v2766_v3  ;;  %v1832_v43 = vld [vmem:[%s3176_s4 + $0xe0] sm:$0xff] }
 0x3c9   : > { %v1438_v13 = vmul.f32 %v3229_v2, %v2766_v3  ;;  %v1439_v47 = vmul.f32 %v3230_v46, %v2766_v3  ;;  %v1548_v62 = vmul.f32 %v3231_v25, %v2766_v3  ;;  %v1549_v36 = vmul.f32 %v3232_v0, %v2766_v3  ;;  %v2065_v4 = vld [vmem:[%s3176_s4 + $0x60] sm:$0xff] }
 0x3ca   : > { %v1550_v12 = vmul.f32 %v3233_v28, %v2766_v3  ;;  %v1551_v61 = vmul.f32 %v3234_v20, %v2766_v3  ;;  %v1228_v8 = vadd.f32 %v2950_v22, %v1192_v52  ;;  %v1229_v14 = vadd.f32 %v2950_v22, %v1193_v39 }
 0x3cb   : > { %v1230_v50 = vadd.f32 %v2950_v22, %v1194_v54  ;;  %v1231_v42 = vadd.f32 %v2950_v22, %v1195_v19  ;;  %v1340_v60 = vadd.f32 %v1324_v38, %v2950_v22  ;;  %v1341_v32 = vadd.f32 %v1325_v35, %v2950_v22  ;;  %v1833_v35 = vld [vmem:[%s3176_s4 + $0xe8] sm:$0xff] }
 0x3cc   : > { %v1342_v21 = vadd.f32 %v1326_v5, %v2950_v22  ;;  %v1343_v48 = vadd.f32 %v1327_v23, %v2950_v22  ;;  %vm1244_vm2 = vcmp.ge.f32.partialorder %v1228_v8, 0.0  ;;  %vm1245_vm3 = vcmp.ge.f32.partialorder %v1229_v14, 0.0  ;;  %v1835_v5 = vld [vmem:[%s3176_s4 + $0xf8] sm:$0xff] }
 0x3cd   : > { %vm1246_vm4 = vcmp.ge.f32.partialorder %v1230_v50, 0.0  ;;  %vm1247_vm5 = vcmp.ge.f32.partialorder %v1231_v42, 0.0  ;;  %v1260_v3 = vmul.f32 0.2, %v1228_v8  ;;  %v1261_v24 = vmul.f32 0.2, %v1229_v14 }
 0x3ce   : > { %v1262_v9 = vmul.f32 0.2, %v1230_v50  ;;  %v1452_v10 = vadd.f32 %v1436_v44, %v2950_v22  ;;  %v1263_v15 = vmul.f32 0.2, %v1231_v42  ;;  %vm1356_vm6 = vcmp.ge.f32.partialorder %v1340_v60, 0.0 }
 0x3cf   : > { %vm1357_vm7 = vcmp.ge.f32.partialorder %v1341_v32, 0.0  ;;  %vm1358_vm8 = vcmp.ge.f32.partialorder %v1342_v21, 0.0  ;;  %v1276_v58 = vsel %vm1244_vm2, %v1228_v8, %v1260_v3  ;;  %v1277_v31 = vsel %vm1245_vm3, %v1229_v14, %v1261_v24  ;;  %v3073_v14 = vpop.permute.xlu1 %1217  ;;  %v3238_v3 = vld [vmem:[#allocation14_spill] sm:$0xff] }
 0x3d0   : > { %v1278_v49 = vsel %vm1246_vm4, %v1230_v50, %v1262_v9  ;;  %vm1359_vm9 = vcmp.ge.f32.partialorder %v1343_v48, 0.0  ;;  %v1279_v63 = vsel %vm1247_vm5, %v1231_v42, %v1263_v15  ;;  %1292 = vst [vmem:[%s3176_s4 + $0x40] sm:$0xff] %v1276_v58  ;;  %1293 = vst [vmem:[%s3176_s4 + $0x48] sm:$0xff] %v1277_v31  ;;  %v1372_v53 = vmul.f32 0.2, %v1340_v60  ;;  %v3235_v50 = vld [vmem:[#allocation11_spill] sm:$0xff] }
 0x3d1   : > { %1294 = vst [vmem:[%s3176_s4 + $0x50] sm:$0xff] %v1278_v49  ;;  %v1373_v33 = vmul.f32 0.2, %v1341_v32  ;;  %v1374_v17 = vmul.f32 0.2, %v1342_v21  ;;  %1295 = vst [vmem:[%s3176_s4 + $0x58] sm:$0xff] %v1279_v63  ;;  %v1453_v37 = vadd.f32 %v1437_v1, %v2950_v22  ;;  %v1454_v6 = vadd.f32 %v1438_v13, %v2950_v22 }
 0x3d2   : > { %v1375_v45 = vmul.f32 0.2, %v1343_v48  ;;  %v1455_v7 = vadd.f32 %v1439_v47, %v2950_v22  ;;  %v1388_v16 = vsel %vm1356_vm6, %v1340_v60, %v1372_v53  ;;  %vm1468_vm10 = vcmp.ge.f32.partialorder %v1452_v10, 0.0  ;;  %v2066_v1 = vld [vmem:[%s3176_s4 + $0x68] sm:$0xff]  ;;  %v2067_v13 = vld [vmem:[%s3176_s4 + $0x70] sm:$0xff]  ;;  %v2068_v47 = vld [vmem:[%s3176_s4 + $0x78] sm:$0xff] }
 0x3d3   : > { %v1389_v26 = vsel %vm1357_vm7, %v1341_v32, %v1373_v33  ;;  %v1390_v52 = vsel %vm1358_vm8, %v1342_v21, %v1374_v17  ;;  %1844 = vst [vmem:[%s3176_s4 + $0xc0] sm:$0xff] %v1388_v16  ;;  %vm1469_vm11 = vcmp.ge.f32.partialorder %v1453_v37, 0.0  ;;  %vm1470_vm12 = vcmp.ge.f32.partialorder %v1454_v6, 0.0  ;;  %v3236_v60 = vld [vmem:[#allocation12_spill] sm:$0xff]  ;;  %v3237_v21 = vld [vmem:[#allocation13_spill] sm:$0xff]  ;;  %v3240_v15 = vld [vmem:[#allocation22_spill] sm:$0xff] }
 0x3d4   : > { %v1391_v40 = vsel %vm1359_vm9, %v1343_v48, %v1375_v45  ;;  %1845 = vst [vmem:[%s3176_s4 + $0xc8] sm:$0xff] %v1389_v26  ;;  %1846 = vst [vmem:[%s3176_s4 + $0xd0] sm:$0xff] %v1390_v52  ;;  %vm1471_vm13 = vcmp.ge.f32.partialorder %v1455_v7, 0.0  ;;  %v1484_v18 = vmul.f32 0.2, %v1452_v10  ;;  %v1564_v54 = vadd.f32 %v1548_v62, %v2950_v22  ;;  %v3239_v9 = vld [vmem:[#allocation21_spill] sm:$0xff] }
 0x3d5   : > { %1847 = vst [vmem:[%s3176_s4 + $0xd8] sm:$0xff] %v1391_v40  ;;  %v1485_v39 = vmul.f32 0.2, %v1453_v37  ;;  %v1486_v34 = vmul.f32 0.2, %v1454_v6  ;;  %v1565_v19 = vadd.f32 %v1549_v36, %v2950_v22  ;;  %v1566_v27 = vadd.f32 %v1550_v12, %v2950_v22  ;;  %v3241_v31 = vld [vmem:[#allocation23_spill] sm:$0xff] }
 0x3d6   : > { %v1487_v55 = vmul.f32 0.2, %v1455_v7  ;;  %v1567_v30 = vadd.f32 %v1551_v61, %v2950_v22  ;;  %v1500_v56 = vsel %vm1468_vm10, %v1452_v10, %v1484_v18  ;;  %vm1580_vm14 = vcmp.ge.f32.partialorder %v1564_v54, 0.0  ;;  %v3242_v63 = vld [vmem:[#allocation24_spill] sm:$0xff] }
 0x3d7   : > { %v1501_v57 = vsel %vm1469_vm11, %v1453_v37, %v1485_v39  ;;  %v1502_v38 = vsel %vm1470_vm12, %v1454_v6, %v1486_v34  ;;  %1876 = vst [vmem:[%s3176_s4 + $0x140] sm:$0xff] %v1500_v56  ;;  %vm1581_vm15 = vcmp.ge.f32.partialorder %v1565_v19, 0.0  ;;  %vm1582_vm0 = vcmp.ge.f32.partialorder %v1566_v27, 0.0 }
 0x3d8   : > { %v1503_v59 = vsel %vm1471_vm13, %v1455_v7, %v1487_v55  ;;  %1877 = vst [vmem:[%s3176_s4 + $0x148] sm:$0xff] %v1501_v57  ;;  %1878 = vst [vmem:[%s3176_s4 + $0x150] sm:$0xff] %v1502_v38  ;;  %vm1583_vm1 = vcmp.ge.f32.partialorder %v1567_v30, 0.0  ;;  %v1596_v41 = vmul.f32 0.2, %v1564_v54  ;;  %v1196_v44 = vmul.f32 %v2065_v4, %v2780_v29 }
 0x3d9   : > { %1879 = vst [vmem:[%s3176_s4 + $0x158] sm:$0xff] %v1503_v59  ;;  %v1597_v23 = vmul.f32 0.2, %v1565_v19  ;;  %v1598_v22 = vmul.f32 0.2, %v1566_v27  ;;  %v1197_v2 = vmul.f32 %v2066_v1, %v2780_v29  ;;  %v1198_v46 = vmul.f32 %v2067_v13, %v2780_v29 }
 0x3da   : > { %v1599_v51 = vmul.f32 0.2, %v1567_v30  ;;  %v1199_v25 = vmul.f32 %v2068_v47, %v2780_v29  ;;  %v1612_v62 = vsel %vm1580_vm14, %v1564_v54, %v1596_v41  ;;  %v1328_v28 = vmul.f32 %v1832_v43, %v2780_v29 }
 0x3db   : > { %v1613_v0 = vsel %vm1581_vm15, %v1565_v19, %v1597_v23  ;;  %v1614_v36 = vsel %vm1582_vm0, %v1566_v27, %v1598_v22  ;;  %1908 = vst [vmem:[%s3176_s4 + $0x1c0] sm:$0xff] %v1612_v62  ;;  %v1329_v20 = vmul.f32 %v1833_v35, %v2780_v29  ;;  %v1330_v61 = vmul.f32 %v1834_v11, %v2780_v29 }
 0x3dc   : > { %v1615_v12 = vsel %vm1583_vm1, %v1567_v30, %v1599_v51  ;;  %1909 = vst [vmem:[%s3176_s4 + $0x1c8] sm:$0xff] %v1613_v0  ;;  %1910 = vst [vmem:[%s3176_s4 + $0x1d0] sm:$0xff] %v1614_v36  ;;  %v1331_v8 = vmul.f32 %v1835_v5, %v2780_v29  ;;  %v1440_v42 = vmul.f32 %v3235_v50, %v2780_v29 }
 0x3dd   : > { %1911 = vst [vmem:[%s3176_s4 + $0x1d8] sm:$0xff] %v1615_v12  ;;  %v1441_v32 = vmul.f32 %v3236_v60, %v2780_v29  ;;  %v1442_v48 = vmul.f32 %v3237_v21, %v2780_v29  ;;  %v1443_v24 = vmul.f32 %v3238_v3, %v2780_v29  ;;  %v1552_v10 = vmul.f32 %v3239_v9, %v2780_v29 }
 0x3de   : > { %v1553_v58 = vmul.f32 %v3240_v15, %v2780_v29  ;;  %v1554_v49 = vmul.f32 %v3241_v31, %v2780_v29  ;;  %v1555_v53 = vmul.f32 %v3242_v63, %v2780_v29  ;;  %v1232_v33 = vadd.f32 %v3073_v14, %v1196_v44 }
 0x3df   : > { %v1233_v17 = vadd.f32 %v3073_v14, %v1197_v2  ;;  %v1234_v45 = vadd.f32 %v3073_v14, %v1198_v46  ;;  %v1235_v37 = vadd.f32 %v3073_v14, %v1199_v25  ;;  %v1344_v6 = vadd.f32 %v1328_v28, %v3073_v14 }
 0x3e0   : > { %v1345_v7 = vadd.f32 %v1329_v20, %v3073_v14  ;;  %v1346_v16 = vadd.f32 %v1330_v61, %v3073_v14  ;;  %v1347_v26 = vadd.f32 %v1331_v8, %v3073_v14  ;;  %vm1248_vm2 = vcmp.ge.f32.partialorder %v1232_v33, 0.0 }
 0x3e1   : > { %vm1249_vm3 = vcmp.ge.f32.partialorder %v1233_v17, 0.0  ;;  %vm1250_vm4 = vcmp.ge.f32.partialorder %v1234_v45, 0.0  ;;  %vm1251_vm5 = vcmp.ge.f32.partialorder %v1235_v37, 0.0  ;;  %v1264_v29 = vmul.f32 0.2, %v1232_v33 }
 0x3e2   : > { %v1265_v52 = vmul.f32 0.2, %v1233_v17  ;;  %v1266_v40 = vmul.f32 0.2, %v1234_v45  ;;  %v1456_v18 = vadd.f32 %v1440_v42, %v3073_v14  ;;  %v1267_v39 = vmul.f32 0.2, %v1235_v37 }
 0x3e3   : > { %vm1360_vm6 = vcmp.ge.f32.partialorder %v1344_v6, 0.0  ;;  %vm1361_vm7 = vcmp.ge.f32.partialorder %v1345_v7, 0.0  ;;  %vm1362_vm8 = vcmp.ge.f32.partialorder %v1346_v16, 0.0  ;;  %v1280_v34 = vsel %vm1248_vm2, %v1232_v33, %v1264_v29 }
 0x3e4   : > { %v1281_v54 = vsel %vm1249_vm3, %v1233_v17, %v1265_v52  ;;  %v1282_v55 = vsel %vm1250_vm4, %v1234_v45, %v1266_v40  ;;  %vm1363_vm9 = vcmp.ge.f32.partialorder %v1347_v26, 0.0  ;;  %v1283_v19 = vsel %vm1251_vm5, %v1235_v37, %v1267_v39  ;;  %1296 = vst [vmem:[%s3176_s4 + $0x60] sm:$0xff] %v1280_v34 }
 0x3e5   : > { %1297 = vst [vmem:[%s3176_s4 + $0x68] sm:$0xff] %v1281_v54  ;;  %1298 = vst [vmem:[%s3176_s4 + $0x70] sm:$0xff] %v1282_v55  ;;  %v1376_v27 = vmul.f32 0.2, %v1344_v6  ;;  %v1377_v30 = vmul.f32 0.2, %v1345_v7  ;;  %v1457_v38 = vadd.f32 %v1441_v32, %v3073_v14  ;;  %v1458_v43 = vadd.f32 %v1442_v48, %v3073_v14 }
 0x3e6   : > { %v1378_v56 = vmul.f32 0.2, %v1346_v16  ;;  %1299 = vst [vmem:[%s3176_s4 + $0x78] sm:$0xff] %v1283_v19  ;;  %v1379_v57 = vmul.f32 0.2, %v1347_v26  ;;  %v1459_v59 = vadd.f32 %v1443_v24, %v3073_v14  ;;  %vm1472_vm10 = vcmp.ge.f32.partialorder %v1456_v18, 0.0 }
 0x3e7   : > { %v1392_v35 = vsel %vm1360_vm6, %v1344_v6, %v1376_v27  ;;  %v1393_v11 = vsel %vm1361_vm7, %v1345_v7, %v1377_v30  ;;  %vm1473_vm11 = vcmp.ge.f32.partialorder %v1457_v38, 0.0  ;;  %vm1474_vm12 = vcmp.ge.f32.partialorder %v1458_v43, 0.0 }
 0x3e8   : > { %v1394_v5 = vsel %vm1362_vm8, %v1346_v16, %v1378_v56  ;;  %v1395_v41 = vsel %vm1363_vm9, %v1347_v26, %v1379_v57  ;;  %1848 = vst [vmem:[%s3176_s4 + $0xe0] sm:$0xff] %v1392_v35  ;;  %1849 = vst [vmem:[%s3176_s4 + $0xe8] sm:$0xff] %v1393_v11  ;;  %vm1475_vm13 = vcmp.ge.f32.partialorder %v1459_v59, 0.0  ;;  %v1488_v23 = vmul.f32 0.2, %v1456_v18 }
 0x3e9   : > { %1850 = vst [vmem:[%s3176_s4 + $0xf0] sm:$0xff] %v1394_v5  ;;  %1851 = vst [vmem:[%s3176_s4 + $0xf8] sm:$0xff] %v1395_v41  ;;  %v1489_v22 = vmul.f32 0.2, %v1457_v38  ;;  %v1490_v4 = vmul.f32 0.2, %v1458_v43  ;;  %v1568_v44 = vadd.f32 %v1552_v10, %v3073_v14  ;;  %v1569_v1 = vadd.f32 %v1553_v58, %v3073_v14 }
 0x3ea   : > { %v1491_v51 = vmul.f32 0.2, %v1459_v59  ;;  %v1570_v2 = vadd.f32 %v1554_v49, %v3073_v14  ;;  %v1571_v13 = vadd.f32 %v1555_v53, %v3073_v14  ;;  %v1504_v46 = vsel %vm1472_vm10, %v1456_v18, %v1488_v23 }
 0x3eb   : > { %v1505_v47 = vsel %vm1473_vm11, %v1457_v38, %v1489_v22  ;;  %v1506_v25 = vsel %vm1474_vm12, %v1458_v43, %v1490_v4  ;;  %vm1584_vm14 = vcmp.ge.f32.partialorder %v1568_v44, 0.0  ;;  %1880 = vst [vmem:[%s3176_s4 + $0x160] sm:$0xff] %v1504_v46  ;;  %vm1585_vm15 = vcmp.ge.f32.partialorder %v1569_v1, 0.0 }
 0x3ec   : > { %v1507_v62 = vsel %vm1475_vm13, %v1459_v59, %v1491_v51  ;;  %1881 = vst [vmem:[%s3176_s4 + $0x168] sm:$0xff] %v1505_v47  ;;  %1882 = vst [vmem:[%s3176_s4 + $0x170] sm:$0xff] %v1506_v25  ;;  %vm1586_vm0 = vcmp.ge.f32.partialorder %v1570_v2, 0.0  ;;  %vm1587_vm1 = vcmp.ge.f32.partialorder %v1571_v13, 0.0  ;;  %v1600_v0 = vmul.f32 0.2, %v1568_v44 }
 0x3ed   : > { %1883 = vst [vmem:[%s3176_s4 + $0x178] sm:$0xff] %v1507_v62  ;;  %v1601_v36 = vmul.f32 0.2, %v1569_v1  ;;  %v1602_v28 = vmul.f32 0.2, %v1570_v2 }
 0x3ee   : > { %v1603_v12 = vmul.f32 0.2, %v1571_v13  ;;  %v1616_v20 = vsel %vm1584_vm14, %v1568_v44, %v1600_v0 }
 0x3ef   : > { %v1617_v61 = vsel %vm1585_vm15, %v1569_v1, %v1601_v36  ;;  %v1618_v8 = vsel %vm1586_vm0, %v1570_v2, %v1602_v28  ;;  %1912 = vst [vmem:[%s3176_s4 + $0x1e0] sm:$0xff] %v1616_v20 }
 0x3f0   : > { %v1619_v14 = vsel %vm1587_vm1, %v1571_v13, %v1603_v12  ;;  %1913 = vst [vmem:[%s3176_s4 + $0x1e8] sm:$0xff] %v1617_v61  ;;  %1914 = vst [vmem:[%s3176_s4 + $0x1f0] sm:$0xff] %v1618_v8 }
 0x3f1   : > { %1915 = vst [vmem:[%s3176_s4 + $0x1f8] sm:$0xff] %v1619_v14 }
 0x3f2 PF: > { %s14_s17 = sadd.s32 1, %s2091_s17   ;;  %s3243_s15 = smov %s2087_s16 }
 0x3f3   : > { %p11_p7 = scmp.ge.s32.totalorder %s14_s17, 6   ;;  %s3244_s16 = smov %s3246_s18 }
 0x3f5   :  { %13 = sbr.rel (!%p11_p7) target bundleno = 2 (0x2), region = 77 }

// kernel: generator_forward.9
= control target key start
LH: loop header
LB: loop body
LE: loop exit
PB: predicated region body
PF: predicated region fallthrough
CT: control target
= control target key end

     0   :  { %s1731_s12 = smov 0   ;;  %s1733_s13 = smov 0   ;;  %s1952_s0 = inlined_call_operand.vmem [shape: bf16[4,128,2048], index: 0, kind: input, shape index: {}]   ;;  %s1953_s1 = inlined_call_operand.vmem [shape: bf16[4,3,128], index: 1, kind: input, shape index: {}]   ;;  %s1954_s2 = inlined_call_operand.vmem [shape: f32[3,1], index: 2, kind: input, shape index: {}]   ;;  %s1955_s3 = inlined_call_operand.vmem [shape: f32[4,3,2048], index: 3, kind: output, shape index: {}]  }
   0x1   :  { %s1735_s14 = smov 0  }
   0x2 LB: > { %s25_s15 = sadd.s32 1, %s1704_s13  ;;  %p1490_p0 = scmp.ge.s32.totalorder %s1708_s14, 1  ;;  %s1708_s14 = sphi %s1735_s14, %s13_s14   ;;  %s1704_s13 = sphi %s1733_s13, %s1957_s13   ;;  %s1700_s12 = sphi %s1731_s12, %s1956_s12  }
   0x3   : > { %p27_p1 = scmp.ge.s32.totalorder %s25_s15, 4  ;;  %p167_p2 = scmp.lt.s32.totalorder %s1708_s14, 5 }
   0x5   : > { %s1959_s15 = smov (%p27_p1, %s25_s15), 0  ;;  %p168_p3 = pnand %p1490_p0, %p167_p2 }
   0x6   : > { %p204_p4 = scmp.lt.s32.totalorder (!%p168_p3), %s1700_s12, 3  ;;  %v357_v0 = vld [vmem:[%s1954_s2] sm:$0x7] (!%p168_p3)  ;;  %v1710_v1 = vmov (!%p168_p3), 0  }
   0x7   : > { %171 = sbr.rel (%p168_p3) target bundleno = 380 (0x17c), region = 32  ;;  %1035 = vmatprep.mubr.bf16.mxu0 (!%p168_p3), %v1710_v1  ;;  %1076 = vmatprep.mubr.bf16.mxu1 (!%p168_p3), %v1710_v1 }
   0x8   : > { %1653 = vset.pattern.permute.xlu0 (!%p168_p3), %v1710_v1 }
   0x9   : > { %360 = vperm.xlu0 (!%p168_p3), %1653, %v357_v0  }
   0xe   : > { %s1961_s12 = smov (!%p204_p4, %s1700_s12), 3 }
   0xf   : > { %s1626_s18 = sshll.u32 %s1961_s12, 10  ;;  %s1493_s22 = sshll.u32 %s1961_s12, 1 }
  0x10   : > { %s1761_s21 = scalar_lea.vmem %s1952_s0, %s1626_s18  ;;  %s216_s25 = scalar_lea.vmem %s1953_s1, %s1493_s22 }
  0x11   : > { %v229_v2 = vld [vmem:[%s1761_s21] sm:$0xff]  ;;  %v230_v4 = vld [vmem:[%s1761_s21 + $0x8] sm:$0xff]  ;;  %v231_v0 = vld [vmem:[%s1761_s21 + $0x10] sm:$0xff]  ;;  %s1627_s26 = sshll.u32 %s1961_s12, 6 }
  0x12   : > { %v237_v3 = vld [vmem:[%s1761_s21 + $0x40] sm:$0xff]  ;;  %v238_v6 = vld [vmem:[%s1761_s21 + $0x48] sm:$0xff]  ;;  %s1921_s29 = scalar_lea.vmem %s1955_s3, %s1627_s26 }
  0x13   : > { %v1497_v5 = vcombine.high %v229_v2, %v237_v3  ;;  %v1496_v7 = vcombine.low %v229_v2, %v237_v3  ;;  %v245_v8 = vld [vmem:[%s1761_s21 + $0x80] sm:$0xff]  ;;  %v1499_v10 = vcombine.high %v230_v4, %v238_v6  ;;  %v1498_v11 = vcombine.low %v230_v4, %v238_v6  ;;  %v246_v13 = vld [vmem:[%s1761_s21 + $0x88] sm:$0xff]  ;;  %v239_v2 = vld [vmem:[%s1761_s21 + $0x50] sm:$0xff] }
  0x14   : > { %v253_v9 = vld [vmem:[%s1761_s21 + $0xc0] sm:$0xff]  ;;  %v254_v14 = vld [vmem:[%s1761_s21 + $0xc8] sm:$0xff]  ;;  %v232_v3 = vld [vmem:[%s1761_s21 + $0x18] sm:$0xff] }
  0x15   : > { %v1513_v12 = vcombine.high %v245_v8, %v253_v9  ;;  %v261_v15 = vld [vmem:[%s1761_s21 + $0x100] sm:$0xff]  ;;  %1003 = vmatprep.subr.bf16.mxu0 %v1497_v5  ;;  %v1515_v16 = vcombine.high %v246_v13, %v254_v14  ;;  %v262_v18 = vld [vmem:[%s1761_s21 + $0x108] sm:$0xff]  ;;  %1044 = vmatprep.subr.bf16.mxu1 %v1499_v10  ;;  %v1512_v20 = vcombine.low %v245_v8, %v253_v9  ;;  %v240_v4 = vld [vmem:[%s1761_s21 + $0x58] sm:$0xff] }
  0x16   : > { %v269_v17 = vld [vmem:[%s1761_s21 + $0x140] sm:$0xff]  ;;  %v270_v19 = vld [vmem:[%s1761_s21 + $0x148] sm:$0xff]  ;;  %1004 = vmatpush1.bf16.msra.mxu0 %v1496_v7  ;;  %1045 = vmatpush1.bf16.msra.mxu1 %v1498_v11  ;;  %v1514_v21 = vcombine.low %v246_v13, %v254_v14  ;;  %v1501_v7 = vcombine.high %v231_v0, %v239_v2  ;;  %v1503_v8 = vcombine.high %v232_v3, %v240_v4  ;;  %v247_v9 = vld [vmem:[%s1761_s21 + $0x90] sm:$0xff] }
  0x17   : > { %1005 = vmatprep.subr.bf16.mxu0 %v1513_v12  ;;  %v1529_v22 = vcombine.high %v261_v15, %v269_v17  ;;  %1046 = vmatprep.subr.bf16.mxu1 %v1515_v16  ;;  %v1531_v23 = vcombine.high %v262_v18, %v270_v19  ;;  %v277_v24 = vld [vmem:[%s1761_s21 + $0x180] sm:$0xff]  ;;  %v278_v26 = vld [vmem:[%s1761_s21 + $0x188] sm:$0xff]  ;;  %v1528_v28 = vcombine.low %v261_v15, %v269_v17  ;;  %v255_v10 = vld [vmem:[%s1761_s21 + $0xd0] sm:$0xff] }
  0x18   : > { %v285_v25 = vld [vmem:[%s1761_s21 + $0x1c0] sm:$0xff]  ;;  %v286_v27 = vld [vmem:[%s1761_s21 + $0x1c8] sm:$0xff]  ;;  %v1530_v29 = vcombine.low %v262_v18, %v270_v19  ;;  %v248_v11 = vld [vmem:[%s1761_s21 + $0x98] sm:$0xff]  ;;  %v1500_v14 = vcombine.low %v231_v0, %v239_v2  ;;  %v1502_v15 = vcombine.low %v232_v3, %v240_v4  ;;  %v1517_v16 = vcombine.high %v247_v9, %v255_v10 }
  0x19   : > { %v1545_v30 = vcombine.high %v277_v24, %v285_v25  ;;  %v1547_v31 = vcombine.high %v278_v26, %v286_v27  ;;  %v293_v32 = vld [vmem:[%s1761_s21 + $0x200] sm:$0xff]  ;;  %v294_v34 = vld [vmem:[%s1761_s21 + $0x208] sm:$0xff]  ;;  %v1544_v36 = vcombine.low %v277_v24, %v285_v25  ;;  %v1546_v37 = vcombine.low %v278_v26, %v286_v27  ;;  %v256_v12 = vld [vmem:[%s1761_s21 + $0xd8] sm:$0xff] }
  0x1a   : > { %1006 = vmatpush1.bf16.msra.mxu0 %v1512_v20  ;;  %1047 = vmatpush1.bf16.msra.mxu1 %v1514_v21  ;;  %v301_v33 = vld [vmem:[%s1761_s21 + $0x240] sm:$0xff]  ;;  %v302_v35 = vld [vmem:[%s1761_s21 + $0x248] sm:$0xff]  ;;  %v1519_v17 = vcombine.high %v248_v11, %v256_v12  ;;  %v263_v18 = vld [vmem:[%s1761_s21 + $0x110] sm:$0xff] }
  0x1b   : > { %1007 = vmatprep.subr.bf16.mxu0 %v1529_v22  ;;  %1048 = vmatprep.subr.bf16.mxu1 %v1531_v23  ;;  %v1561_v38 = vcombine.high %v293_v32, %v301_v33  ;;  %v1563_v39 = vcombine.high %v294_v34, %v302_v35  ;;  %v309_v40 = vld [vmem:[%s1761_s21 + $0x280] sm:$0xff]  ;;  %v310_v42 = vld [vmem:[%s1761_s21 + $0x288] sm:$0xff]  ;;  %v1560_v44 = vcombine.low %v293_v32, %v301_v33  ;;  %v271_v19 = vld [vmem:[%s1761_s21 + $0x150] sm:$0xff] }
  0x1c   : > { %v317_v41 = vld [vmem:[%s1761_s21 + $0x2c0] sm:$0xff]  ;;  %v318_v43 = vld [vmem:[%s1761_s21 + $0x2c8] sm:$0xff]  ;;  %v1562_v45 = vcombine.low %v294_v34, %v302_v35  ;;  %v264_v20 = vld [vmem:[%s1761_s21 + $0x118] sm:$0xff]  ;;  %v1516_v22 = vcombine.low %v247_v9, %v255_v10  ;;  %v1518_v23 = vcombine.low %v248_v11, %v256_v12  ;;  %v1533_v24 = vcombine.high %v263_v18, %v271_v19 }
  0x1d   : > { %v1577_v46 = vcombine.high %v309_v40, %v317_v41  ;;  %v1579_v47 = vcombine.high %v310_v42, %v318_v43  ;;  %v325_v48 = vld [vmem:[%s1761_s21 + $0x300] sm:$0xff]  ;;  %v326_v50 = vld [vmem:[%s1761_s21 + $0x308] sm:$0xff]  ;;  %v1576_v52 = vcombine.low %v309_v40, %v317_v41  ;;  %v1578_v53 = vcombine.low %v310_v42, %v318_v43  ;;  %v272_v21 = vld [vmem:[%s1761_s21 + $0x158] sm:$0xff] }
  0x1e   : > { %1008 = vmatpush1.bf16.msra.mxu0 %v1528_v28  ;;  %1049 = vmatpush1.bf16.msra.mxu1 %v1530_v29  ;;  %v333_v49 = vld [vmem:[%s1761_s21 + $0x340] sm:$0xff]  ;;  %v334_v51 = vld [vmem:[%s1761_s21 + $0x348] sm:$0xff]  ;;  %v1535_v25 = vcombine.high %v264_v20, %v272_v21  ;;  %v279_v26 = vld [vmem:[%s1761_s21 + $0x190] sm:$0xff] }
  0x1f   : > { %1009 = vmatprep.subr.bf16.mxu0 %v1545_v30  ;;  %1050 = vmatprep.subr.bf16.mxu1 %v1547_v31  ;;  %v1593_v54 = vcombine.high %v325_v48, %v333_v49  ;;  %v1595_v55 = vcombine.high %v326_v50, %v334_v51  ;;  %v341_v56 = vld [vmem:[%s1761_s21 + $0x380] sm:$0xff]  ;;  %v342_v58 = vld [vmem:[%s1761_s21 + $0x388] sm:$0xff]  ;;  %v1592_v60 = vcombine.low %v325_v48, %v333_v49  ;;  %v287_v27 = vld [vmem:[%s1761_s21 + $0x1d0] sm:$0xff] }
  0x20   : > { %v349_v57 = vld [vmem:[%s1761_s21 + $0x3c0] sm:$0xff]  ;;  %v350_v59 = vld [vmem:[%s1761_s21 + $0x3c8] sm:$0xff]  ;;  %v1594_v61 = vcombine.low %v326_v50, %v334_v51  ;;  %v280_v28 = vld [vmem:[%s1761_s21 + $0x198] sm:$0xff]  ;;  %v1532_v30 = vcombine.low %v263_v18, %v271_v19  ;;  %v1534_v31 = vcombine.low %v264_v20, %v272_v21  ;;  %v1549_v32 = vcombine.high %v279_v26, %v287_v27 }
  0x21   : > { %v1609_v62 = vcombine.high %v341_v56, %v349_v57  ;;  %v1611_v63 = vcombine.high %v342_v58, %v350_v59  ;;  %v1608_v5 = vcombine.low %v341_v56, %v349_v57  ;;  %v1610_v6 = vcombine.low %v342_v58, %v350_v59  ;;  %v1807_v13 = vld [vmem:[%s216_s25] sm:$0x3]  ;;  %v288_v29 = vld [vmem:[%s1761_s21 + $0x1d8] sm:$0xff]  ;;  %v295_v34 = vld [vmem:[%s1761_s21 + $0x210] sm:$0xff] }
  0x22   : > { %1010 = vmatpush1.bf16.msra.mxu0 %v1544_v36  ;;  %1051 = vmatpush1.bf16.msra.mxu1 %v1546_v37  ;;  %v1551_v33 = vcombine.high %v280_v28, %v288_v29  ;;  %v303_v35 = vld [vmem:[%s1761_s21 + $0x250] sm:$0xff]  ;;  %v296_v36 = vld [vmem:[%s1761_s21 + $0x218] sm:$0xff]  ;;  %v233_v3 = vld [vmem:[%s1761_s21 + $0x20] sm:$0xff] }
  0x23   : > { %1011 = vmatprep.subr.bf16.mxu0 %v1561_v38  ;;  %1052 = vmatprep.subr.bf16.mxu1 %v1563_v39  ;;  %v304_v37 = vld [vmem:[%s1761_s21 + $0x258] sm:$0xff]  ;;  %v1548_v38 = vcombine.low %v279_v26, %v287_v27  ;;  %v1550_v39 = vcombine.low %v280_v28, %v288_v29  ;;  %v1565_v40 = vcombine.high %v295_v34, %v303_v35  ;;  %v311_v42 = vld [vmem:[%s1761_s21 + $0x290] sm:$0xff]  ;;  %v241_v4 = vld [vmem:[%s1761_s21 + $0x60] sm:$0xff] }
  0x24   : > { %v1567_v41 = vcombine.high %v296_v36, %v304_v37  ;;  %v319_v43 = vld [vmem:[%s1761_s21 + $0x2d0] sm:$0xff]  ;;  %v1505_v9 = vcombine.high %v233_v3, %v241_v4  ;;  %v249_v11 = vld [vmem:[%s1761_s21 + $0xa0] sm:$0xff] }
  0x25   : > { %v1581_v48 = vcombine.high %v311_v42, %v319_v43  ;;  %v327_v50 = vld [vmem:[%s1761_s21 + $0x310] sm:$0xff]  ;;  %v257_v12 = vld [vmem:[%s1761_s21 + $0xe0] sm:$0xff] }
  0x26   : > { %1012 = vmatpush1.bf16.msra.mxu0 %v1560_v44  ;;  %1053 = vmatpush1.bf16.msra.mxu1 %v1562_v45  ;;  %v312_v44 = vld [vmem:[%s1761_s21 + $0x298] sm:$0xff]  ;;  %v335_v51 = vld [vmem:[%s1761_s21 + $0x350] sm:$0xff]  ;;  %v1521_v18 = vcombine.high %v249_v11, %v257_v12  ;;  %v265_v20 = vld [vmem:[%s1761_s21 + $0x120] sm:$0xff] }
  0x27   : > { %1013 = vmatprep.subr.bf16.mxu0 %v1577_v46  ;;  %1054 = vmatprep.subr.bf16.mxu1 %v1579_v47  ;;  %v320_v45 = vld [vmem:[%s1761_s21 + $0x2d8] sm:$0xff]  ;;  %v1564_v46 = vcombine.low %v295_v34, %v303_v35  ;;  %v1566_v47 = vcombine.low %v296_v36, %v304_v37  ;;  %v1597_v56 = vcombine.high %v327_v50, %v335_v51  ;;  %v343_v58 = vld [vmem:[%s1761_s21 + $0x390] sm:$0xff]  ;;  %v273_v21 = vld [vmem:[%s1761_s21 + $0x160] sm:$0xff] }
  0x28   : > { %v1583_v49 = vcombine.high %v312_v44, %v320_v45  ;;  %v351_v59 = vld [vmem:[%s1761_s21 + $0x3d0] sm:$0xff]  ;;  %v1537_v26 = vcombine.high %v265_v20, %v273_v21  ;;  %v281_v28 = vld [vmem:[%s1761_s21 + $0x1a0] sm:$0xff] }
  0x29   : > { %v1613_v0 = vcombine.high %v343_v58, %v351_v59  ;;  %v289_v29 = vld [vmem:[%s1761_s21 + $0x1e0] sm:$0xff] }
  0x2a   : > { %1014 = vmatpush1.bf16.msra.mxu0 %v1576_v52  ;;  %1055 = vmatpush1.bf16.msra.mxu1 %v1578_v53  ;;  %v328_v52 = vld [vmem:[%s1761_s21 + $0x318] sm:$0xff]  ;;  %v1553_v34 = vcombine.high %v281_v28, %v289_v29  ;;  %v297_v36 = vld [vmem:[%s1761_s21 + $0x220] sm:$0xff] }
  0x2b   : > { %1015 = vmatprep.subr.bf16.mxu0 %v1593_v54  ;;  %1056 = vmatprep.subr.bf16.mxu1 %v1595_v55  ;;  %v336_v53 = vld [vmem:[%s1761_s21 + $0x358] sm:$0xff]  ;;  %v1580_v54 = vcombine.low %v311_v42, %v319_v43  ;;  %v1582_v55 = vcombine.low %v312_v44, %v320_v45  ;;  %v305_v37 = vld [vmem:[%s1761_s21 + $0x260] sm:$0xff] }
  0x2c   : > { %v1599_v57 = vcombine.high %v328_v52, %v336_v53  ;;  %v1569_v42 = vcombine.high %v297_v36, %v305_v37  ;;  %v313_v44 = vld [vmem:[%s1761_s21 + $0x2a0] sm:$0xff] }
  0x2d   : > { %v321_v45 = vld [vmem:[%s1761_s21 + $0x2e0] sm:$0xff] }
  0x2e   : > { %1016 = vmatpush1.bf16.msra.mxu0 %v1592_v60  ;;  %1057 = vmatpush1.bf16.msra.mxu1 %v1594_v61  ;;  %v344_v60 = vld [vmem:[%s1761_s21 + $0x398] sm:$0xff] }
  0x2f   : > { %1017 = vmatprep.subr.bf16.mxu0 %v1609_v62  ;;  %1058 = vmatprep.subr.bf16.mxu1 %v1611_v63  ;;  %v352_v61 = vld [vmem:[%s1761_s21 + $0x3d8] sm:$0xff]  ;;  %v1596_v62 = vcombine.low %v327_v50, %v335_v51  ;;  %v1598_v63 = vcombine.low %v328_v52, %v336_v53  ;;  %v1585_v50 = vcombine.high %v313_v44, %v321_v45  ;;  %v329_v52 = vld [vmem:[%s1761_s21 + $0x320] sm:$0xff] }
  0x30   : > { %v1615_v2 = vcombine.high %v344_v60, %v352_v61  ;;  %v337_v53 = vld [vmem:[%s1761_s21 + $0x360] sm:$0xff] }
  0x32   : > { %1018 = vmatpush1.bf16.msra.mxu0 %v1608_v5  ;;  %1059 = vmatpush1.bf16.msra.mxu1 %v1610_v6  ;;  %v234_v5 = vld [vmem:[%s1761_s21 + $0x28] sm:$0xff] }
  0x33   : > { %1085 = vmatprep.subr.bf16.mxu0 %v1501_v7  ;;  %1126 = vmatprep.subr.bf16.mxu1 %v1503_v8  ;;  %v242_v6 = vld [vmem:[%s1761_s21 + $0x68] sm:$0xff]  ;;  %v1612_v7 = vcombine.low %v343_v58, %v351_v59  ;;  %v1614_v8 = vcombine.low %v344_v60, %v352_v61  ;;  %v1601_v58 = vcombine.high %v329_v52, %v337_v53  ;;  %v345_v60 = vld [vmem:[%s1761_s21 + $0x3a0] sm:$0xff] }
  0x34   : > { %v1507_v10 = vcombine.high %v234_v5, %v242_v6  ;;  %v353_v61 = vld [vmem:[%s1761_s21 + $0x3e0] sm:$0xff] }
  0x35   : > { %1036 = vmatmul.mubr.bf16.vlgmr.msra.gmra.mrb[0].mxu0 %v1807_v13  ;;  %1077 = vmatmul.mubr.bf16.vlgmr.msra.gmra.mrb[0].mxu1 %v1807_v13 }
  0x36   : > { %1086 = vmatpush1.bf16.msra.mxu0 %v1500_v14  ;;  %1127 = vmatpush1.bf16.msra.mxu1 %v1502_v15  ;;  %v250_v14 = vld [vmem:[%s1761_s21 + $0xa8] sm:$0xff] }
  0x37   : > { %1087 = vmatprep.subr.bf16.mxu0 %v1517_v16  ;;  %1128 = vmatprep.subr.bf16.mxu1 %v1519_v17  ;;  %v258_v15 = vld [vmem:[%s1761_s21 + $0xe8] sm:$0xff]  ;;  %v1504_v16 = vcombine.low %v233_v3, %v241_v4  ;;  %v1506_v17 = vcombine.low %v234_v5, %v242_v6  ;;  %v1617_v3 = vcombine.high %v345_v60, %v353_v61  ;;  %v235_v5 = vld [vmem:[%s1761_s21 + $0x30] sm:$0xff] }
  0x38   : > { %1117 = vmatprep.mubr.bf16.mxu0 %v1710_v1  ;;  %1158 = vmatprep.mubr.bf16.mxu1 %v1710_v1  ;;  %v1523_v19 = vcombine.high %v250_v14, %v258_v15  ;;  %v243_v6 = vld [vmem:[%s1761_s21 + $0x70] sm:$0xff] }
  0x3a   : > { %1088 = vmatpush1.bf16.msra.mxu0 %v1516_v22  ;;  %1129 = vmatpush1.bf16.msra.mxu1 %v1518_v23  ;;  %v266_v22 = vld [vmem:[%s1761_s21 + $0x128] sm:$0xff] }
  0x3b   : > { %1089 = vmatprep.subr.bf16.mxu0 %v1533_v24  ;;  %1130 = vmatprep.subr.bf16.mxu1 %v1535_v25  ;;  %v274_v23 = vld [vmem:[%s1761_s21 + $0x168] sm:$0xff]  ;;  %v1520_v24 = vcombine.low %v249_v11, %v257_v12  ;;  %v1522_v25 = vcombine.low %v250_v14, %v258_v15  ;;  %v1509_v11 = vcombine.high %v235_v5, %v243_v6  ;;  %v251_v14 = vld [vmem:[%s1761_s21 + $0xb0] sm:$0xff] }
  0x3c   : > { %v1539_v27 = vcombine.high %v266_v22, %v274_v23  ;;  %v259_v15 = vld [vmem:[%s1761_s21 + $0xf0] sm:$0xff] }
  0x3e   : > { %1090 = vmatpush1.bf16.msra.mxu0 %v1532_v30  ;;  %1131 = vmatpush1.bf16.msra.mxu1 %v1534_v31  ;;  %v282_v30 = vld [vmem:[%s1761_s21 + $0x1a8] sm:$0xff] }
  0x3f   : > { %1091 = vmatprep.subr.bf16.mxu0 %v1549_v32  ;;  %1132 = vmatprep.subr.bf16.mxu1 %v1551_v33  ;;  %v290_v31 = vld [vmem:[%s1761_s21 + $0x1e8] sm:$0xff]  ;;  %v1536_v32 = vcombine.low %v265_v20, %v273_v21  ;;  %v1538_v33 = vcombine.low %v266_v22, %v274_v23  ;;  %v1525_v20 = vcombine.high %v251_v14, %v259_v15  ;;  %v267_v22 = vld [vmem:[%s1761_s21 + $0x130] sm:$0xff] }
  0x40   : > { %v1555_v35 = vcombine.high %v282_v30, %v290_v31  ;;  %v275_v23 = vld [vmem:[%s1761_s21 + $0x170] sm:$0xff] }
  0x42   : > { %1092 = vmatpush1.bf16.msra.mxu0 %v1548_v38  ;;  %1133 = vmatpush1.bf16.msra.mxu1 %v1550_v39  ;;  %v298_v38 = vld [vmem:[%s1761_s21 + $0x228] sm:$0xff] }
  0x43   : > { %1093 = vmatprep.subr.bf16.mxu0 %v1565_v40  ;;  %1134 = vmatprep.subr.bf16.mxu1 %v1567_v41  ;;  %v306_v39 = vld [vmem:[%s1761_s21 + $0x268] sm:$0xff]  ;;  %v1552_v40 = vcombine.low %v281_v28, %v289_v29  ;;  %v1554_v41 = vcombine.low %v282_v30, %v290_v31  ;;  %v1541_v28 = vcombine.high %v267_v22, %v275_v23  ;;  %v283_v30 = vld [vmem:[%s1761_s21 + $0x1b0] sm:$0xff] }
  0x44   : > { %v1571_v43 = vcombine.high %v298_v38, %v306_v39  ;;  %v291_v31 = vld [vmem:[%s1761_s21 + $0x1f0] sm:$0xff] }
  0x46   : > { %1094 = vmatpush1.bf16.msra.mxu0 %v1564_v46  ;;  %1135 = vmatpush1.bf16.msra.mxu1 %v1566_v47  ;;  %v314_v46 = vld [vmem:[%s1761_s21 + $0x2a8] sm:$0xff] }
  0x47   : > { %1095 = vmatprep.subr.bf16.mxu0 %v1581_v48  ;;  %1136 = vmatprep.subr.bf16.mxu1 %v1583_v49  ;;  %v322_v47 = vld [vmem:[%s1761_s21 + $0x2e8] sm:$0xff]  ;;  %v1568_v48 = vcombine.low %v297_v36, %v305_v37  ;;  %v1570_v49 = vcombine.low %v298_v38, %v306_v39  ;;  %v1557_v36 = vcombine.high %v283_v30, %v291_v31  ;;  %v299_v38 = vld [vmem:[%s1761_s21 + $0x230] sm:$0xff] }
  0x48   : > { %v1587_v51 = vcombine.high %v314_v46, %v322_v47  ;;  %v307_v39 = vld [vmem:[%s1761_s21 + $0x270] sm:$0xff] }
  0x4a   : > { %1096 = vmatpush1.bf16.msra.mxu0 %v1580_v54  ;;  %1137 = vmatpush1.bf16.msra.mxu1 %v1582_v55  ;;  %v330_v54 = vld [vmem:[%s1761_s21 + $0x328] sm:$0xff] }
  0x4b   : > { %1097 = vmatprep.subr.bf16.mxu0 %v1597_v56  ;;  %1138 = vmatprep.subr.bf16.mxu1 %v1599_v57  ;;  %v338_v55 = vld [vmem:[%s1761_s21 + $0x368] sm:$0xff]  ;;  %v1584_v56 = vcombine.low %v313_v44, %v321_v45  ;;  %v1586_v57 = vcombine.low %v314_v46, %v322_v47  ;;  %v315_v45 = vld [vmem:[%s1761_s21 + $0x2b0] sm:$0xff]  ;;  %v316_v47 = vld [vmem:[%s1761_s21 + $0x2b8] sm:$0xff] }
  0x4c   : > { %v1603_v59 = vcombine.high %v330_v54, %v338_v55  ;;  %v323_v46 = vld [vmem:[%s1761_s21 + $0x2f0] sm:$0xff] }
  0x4e   : > { %1098 = vmatpush1.bf16.msra.mxu0 %v1596_v62  ;;  %1139 = vmatpush1.bf16.msra.mxu1 %v1598_v63  ;;  %v346_v62 = vld [vmem:[%s1761_s21 + $0x3a8] sm:$0xff] }
  0x4f   : > { %1099 = vmatprep.subr.bf16.mxu0 %v1613_v0  ;;  %1140 = vmatprep.subr.bf16.mxu1 %v1615_v2  ;;  %v354_v63 = vld [vmem:[%s1761_s21 + $0x3e8] sm:$0xff]  ;;  %v1600_v0 = vcombine.low %v329_v52, %v337_v53  ;;  %v1602_v2 = vcombine.low %v330_v54, %v338_v55  ;;  %v331_v53 = vld [vmem:[%s1761_s21 + $0x330] sm:$0xff]  ;;  %v332_v55 = vld [vmem:[%s1761_s21 + $0x338] sm:$0xff] }
  0x50   : > { %v1619_v4 = vcombine.high %v346_v62, %v354_v63  ;;  %v339_v54 = vld [vmem:[%s1761_s21 + $0x370] sm:$0xff] }
  0x52   : > { %1100 = vmatpush1.bf16.msra.mxu0 %v1612_v7  ;;  %1141 = vmatpush1.bf16.msra.mxu1 %v1614_v8  ;;  %v236_v7 = vld [vmem:[%s1761_s21 + $0x38] sm:$0xff] }
  0x53   : > { %1167 = vmatprep.subr.bf16.mxu0 %v1505_v9  ;;  %1208 = vmatprep.subr.bf16.mxu1 %v1507_v10  ;;  %v244_v8 = vld [vmem:[%s1761_s21 + $0x78] sm:$0xff]  ;;  %v1616_v9 = vcombine.low %v345_v60, %v353_v61  ;;  %v1618_v10 = vcombine.low %v346_v62, %v354_v63  ;;  %v347_v61 = vld [vmem:[%s1761_s21 + $0x3b0] sm:$0xff] }
  0x54   : > { %v1511_v12 = vcombine.high %v236_v7, %v244_v8  ;;  %v355_v62 = vld [vmem:[%s1761_s21 + $0x3f0] sm:$0xff]  ;;  %v348_v63 = vld [vmem:[%s1761_s21 + $0x3b8] sm:$0xff] }
  0x55   : > { %1118 = vmatmul.mubr.bf16.vlgmr.msra.gmra.mrb[4].mxu0 %v1807_v13  ;;  %1159 = vmatmul.mubr.bf16.vlgmr.msra.gmra.mrb[4].mxu1 %v1807_v13 }
  0x56   : > { %1168 = vmatpush1.bf16.msra.mxu0 %v1504_v16  ;;  %1209 = vmatpush1.bf16.msra.mxu1 %v1506_v17  ;;  %v252_v16 = vld [vmem:[%s1761_s21 + $0xb8] sm:$0xff] }
  0x57   : > { %1169 = vmatprep.subr.bf16.mxu0 %v1521_v18  ;;  %1210 = vmatprep.subr.bf16.mxu1 %v1523_v19  ;;  %v260_v17 = vld [vmem:[%s1761_s21 + $0xf8] sm:$0xff]  ;;  %v1508_v18 = vcombine.low %v235_v5, %v243_v6  ;;  %v1510_v19 = vcombine.low %v236_v7, %v244_v8  ;;  %v1620_v6 = vcombine.low %v347_v61, %v355_v62 }
  0x58   : > { %1199 = vmatprep.mubr.bf16.mxu0 %v1710_v1  ;;  %1240 = vmatprep.mubr.bf16.mxu1 %v1710_v1  ;;  %v1527_v21 = vcombine.high %v252_v16, %v260_v17 }
  0x5a   : > { %1170 = vmatpush1.bf16.msra.mxu0 %v1520_v24  ;;  %1211 = vmatpush1.bf16.msra.mxu1 %v1522_v25  ;;  %v268_v24 = vld [vmem:[%s1761_s21 + $0x138] sm:$0xff] }
  0x5b   : > { %1171 = vmatprep.subr.bf16.mxu0 %v1537_v26  ;;  %1212 = vmatprep.subr.bf16.mxu1 %v1539_v27  ;;  %v276_v25 = vld [vmem:[%s1761_s21 + $0x178] sm:$0xff]  ;;  %v1524_v26 = vcombine.low %v251_v14, %v259_v15  ;;  %v1526_v27 = vcombine.low %v252_v16, %v260_v17 }
  0x5c   : > { %v1543_v29 = vcombine.high %v268_v24, %v276_v25 }
  0x5e   : > { %1172 = vmatpush1.bf16.msra.mxu0 %v1536_v32  ;;  %1213 = vmatpush1.bf16.msra.mxu1 %v1538_v33  ;;  %v284_v32 = vld [vmem:[%s1761_s21 + $0x1b8] sm:$0xff] }
  0x5f   : > { %1173 = vmatprep.subr.bf16.mxu0 %v1553_v34  ;;  %1214 = vmatprep.subr.bf16.mxu1 %v1555_v35  ;;  %v292_v33 = vld [vmem:[%s1761_s21 + $0x1f8] sm:$0xff]  ;;  %v1540_v34 = vcombine.low %v267_v22, %v275_v23  ;;  %v1542_v35 = vcombine.low %v268_v24, %v276_v25 }
  0x60   : > { %v1559_v37 = vcombine.high %v284_v32, %v292_v33 }
  0x62   : > { %1174 = vmatpush1.bf16.msra.mxu0 %v1552_v40  ;;  %1215 = vmatpush1.bf16.msra.mxu1 %v1554_v41  ;;  %v300_v40 = vld [vmem:[%s1761_s21 + $0x238] sm:$0xff] }
  0x63   : > { %1175 = vmatprep.subr.bf16.mxu0 %v1569_v42  ;;  %1216 = vmatprep.subr.bf16.mxu1 %v1571_v43  ;;  %v308_v41 = vld [vmem:[%s1761_s21 + $0x278] sm:$0xff]  ;;  %v1556_v42 = vcombine.low %v283_v30, %v291_v31  ;;  %v1573_v43 = vcombine.high %v299_v38, %v307_v39 }
  0x64   : > { %v1575_v44 = vcombine.high %v300_v40, %v308_v41 }
  0x66   : > { %1176 = vmatpush1.bf16.msra.mxu0 %v1568_v48  ;;  %1217 = vmatpush1.bf16.msra.mxu1 %v1570_v49  ;;  %v324_v48 = vld [vmem:[%s1761_s21 + $0x2f8] sm:$0xff]  ;;  %v1572_v49 = vcombine.low %v299_v38, %v307_v39 }
  0x67   : > { %1177 = vmatprep.subr.bf16.mxu0 %v1585_v50  ;;  %1218 = vmatprep.subr.bf16.mxu1 %v1587_v51  ;;  %v1574_v50 = vcombine.low %v300_v40, %v308_v41  ;;  %v1589_v51 = vcombine.high %v315_v45, %v323_v46  ;;  %v1591_v52 = vcombine.high %v316_v47, %v324_v48 }
  0x6a   : > { %1178 = vmatpush1.bf16.msra.mxu0 %v1584_v56  ;;  %1219 = vmatpush1.bf16.msra.mxu1 %v1586_v57  ;;  %v340_v56 = vld [vmem:[%s1761_s21 + $0x378] sm:$0xff]  ;;  %v1588_v57 = vcombine.low %v315_v45, %v323_v46 }
  0x6b   : > { %1179 = vmatprep.subr.bf16.mxu0 %v1601_v58  ;;  %1220 = vmatprep.subr.bf16.mxu1 %v1603_v59  ;;  %v1590_v58 = vcombine.low %v316_v47, %v324_v48  ;;  %v1605_v59 = vcombine.high %v331_v53, %v339_v54  ;;  %v1607_v60 = vcombine.high %v332_v55, %v340_v56 }
  0x6e   : > { %1180 = vmatpush1.bf16.msra.mxu0 %v1600_v0  ;;  %1221 = vmatpush1.bf16.msra.mxu1 %v1602_v2  ;;  %v356_v0 = vld [vmem:[%s1761_s21 + $0x3f8] sm:$0xff]  ;;  %v1604_v2 = vcombine.low %v331_v53, %v339_v54 }
  0x6f   : > { %1181 = vmatprep.subr.bf16.mxu0 %v1617_v3  ;;  %1222 = vmatprep.subr.bf16.mxu1 %v1619_v4  ;;  %v1606_v3 = vcombine.low %v332_v55, %v340_v56  ;;  %v1621_v4 = vcombine.high %v347_v61, %v355_v62  ;;  %v1623_v5 = vcombine.high %v348_v63, %v356_v0 }
  0x70   : > { %v1622_v7 = vcombine.low %v348_v63, %v356_v0 }
  0x72   : > { %1182 = vmatpush1.bf16.msra.mxu0 %v1616_v9  ;;  %1223 = vmatpush1.bf16.msra.mxu1 %v1618_v10 }
  0x73   : > { %1249 = vmatprep.subr.bf16.mxu0 %v1509_v11  ;;  %1290 = vmatprep.subr.bf16.mxu1 %v1511_v12 }
  0x75   : > { %1200 = vmatmul.mubr.bf16.vlgmr.msra.gmra.mrb[8].mxu0 %v1807_v13  ;;  %1241 = vmatmul.mubr.bf16.vlgmr.msra.gmra.mrb[8].mxu1 %v1807_v13 }
  0x76   : > { %1250 = vmatpush1.bf16.msra.mxu0 %v1508_v18  ;;  %1291 = vmatpush1.bf16.msra.mxu1 %v1510_v19 }
  0x77   : > { %1251 = vmatprep.subr.bf16.mxu0 %v1525_v20  ;;  %1292 = vmatprep.subr.bf16.mxu1 %v1527_v21 }
  0x78   : > { %1281 = vmatprep.mubr.bf16.mxu0 %v1710_v1  ;;  %1322 = vmatprep.mubr.bf16.mxu1 %v1710_v1  ;;  %v1558_v1 = vcombine.low %v284_v32, %v292_v33 }
  0x7a   : > { %1252 = vmatpush1.bf16.msra.mxu0 %v1524_v26  ;;  %1293 = vmatpush1.bf16.msra.mxu1 %v1526_v27 }
  0x7b   : > { %1253 = vmatprep.subr.bf16.mxu0 %v1541_v28  ;;  %1294 = vmatprep.subr.bf16.mxu1 %v1543_v29 }
  0x7e   : > { %1254 = vmatpush1.bf16.msra.mxu0 %v1540_v34  ;;  %1295 = vmatpush1.bf16.msra.mxu1 %v1542_v35 }
  0x7f   : > { %1255 = vmatprep.subr.bf16.mxu0 %v1557_v36  ;;  %1296 = vmatprep.subr.bf16.mxu1 %v1559_v37 }
  0x82   : > { %1256 = vmatpush1.bf16.msra.mxu0 %v1556_v42  ;;  %1297 = vmatpush1.bf16.msra.mxu1 %v1558_v1 }
  0x83   : > { %1257 = vmatprep.subr.bf16.mxu0 %v1573_v43  ;;  %1298 = vmatprep.subr.bf16.mxu1 %v1575_v44 }
  0x86   : > { %1258 = vmatpush1.bf16.msra.mxu0 %v1572_v49  ;;  %1299 = vmatpush1.bf16.msra.mxu1 %v1574_v50 }
  0x87   : > { %1259 = vmatprep.subr.bf16.mxu0 %v1589_v51  ;;  %1300 = vmatprep.subr.bf16.mxu1 %v1591_v52 }
  0x88   : > { %v1911_v8 = vpop.permute.xlu0 %360 }
  0x8a   : > { %1260 = vmatpush1.bf16.msra.mxu0 %v1588_v57  ;;  %1301 = vmatpush1.bf16.msra.mxu1 %v1590_v58 }
  0x8b   : > { %1261 = vmatprep.subr.bf16.mxu0 %v1605_v59  ;;  %1302 = vmatprep.subr.bf16.mxu1 %v1607_v60 }
  0x8e   : > { %1262 = vmatpush1.bf16.msra.mxu0 %v1604_v2  ;;  %1303 = vmatpush1.bf16.msra.mxu1 %v1606_v3 }
  0x8f   : > { %1263 = vmatprep.subr.bf16.mxu0 %v1621_v4  ;;  %1304 = vmatprep.subr.bf16.mxu1 %v1623_v5 }
  0x92   : > { %1264 = vmatpush1.bf16.msra.mxu0 %v1620_v6  ;;  %1305 = vmatpush1.bf16.msra.mxu1 %v1622_v7 }
  0x95   : > { %1282 = vmatmul.mubr.bf16.vlgmr.msra.gmra.mrb[12].mxu0 %v1807_v13  ;;  %1323 = vmatmul.mubr.bf16.vlgmr.msra.gmra.mrb[12].mxu1 %v1807_v13 }
 0x108   : > { %v1037_v9 = vpop.f32.mrb[0].mxu0  ;;  %v1078_v10 = vpop.f32.mrb[0].mxu1 }
 0x109   : > { %v1038_v11 = vadd.f32 %v1037_v9, %v1911_v8  ;;  %v1039_v12 = vpop.f32.mrb[1].mxu0  ;;  %v1079_v15 = vadd.f32 %v1078_v10, %v1911_v8  ;;  %v1080_v16 = vpop.f32.mrb[1].mxu1 }
 0x10a   : > { %v1040_v14 = vadd.f32 %v1039_v12, %v1911_v8  ;;  %v1041_v17 = vpop.f32.mrb[2].mxu0  ;;  %v1081_v18 = vadd.f32 %v1080_v16, %v1911_v8  ;;  %v1082_v19 = vpop.f32.mrb[2].mxu1 }
 0x10b   : > { %1654 = vtanh.f32 %v1038_v11  ;;  %v1042_v20 = vpop.f32.mrb[3].mxu0  ;;  %v1083_v13 = vpop.f32.mrb[3].mxu1 }
 0x10c   : > { %1656 = vtanh.f32 %v1040_v14 }
 0x10d   : > { %1658 = vtanh.f32 %v1079_v15 }
 0x10e   : > { %1660 = vtanh.f32 %v1081_v18 }
 0x115   : > { %v1655_v21 = vpop.eup %1654 }
 0x116   : > { %v1657_v22 = vpop.eup %1656 }
 0x117   : > { %v1659_v23 = vpop.eup %1658  ;;  %v1363_v24 = vcombine.low %v1655_v21, %v1657_v22 }
 0x118   : > { %v1661_v25 = vpop.eup %1660 }
 0x119   : > { %1379 = vst [vmem:[%s1921_s29] sm:$0x77] %v1363_v24  ;;  %v1364_v26 = vcombine.low %v1659_v23, %v1661_v25 }
 0x11b   : > { %1380 = vst [vmem:[%s1921_s29 + $0x8] sm:$0x77] %v1364_v26 }
 0x128   : > { %v1119_v27 = vpop.f32.mrb[4].mxu0  ;;  %v1160_v29 = vpop.f32.mrb[4].mxu1 }
 0x129   : > { %v1120_v28 = vadd.f32 %v1119_v27, %v1911_v8  ;;  %v1121_v30 = vpop.f32.mrb[5].mxu0  ;;  %v1161_v31 = vadd.f32 %v1160_v29, %v1911_v8  ;;  %v1162_v33 = vpop.f32.mrb[5].mxu1 }
 0x12a   : > { %v1122_v32 = vadd.f32 %v1121_v30, %v1911_v8  ;;  %v1123_v34 = vpop.f32.mrb[6].mxu0  ;;  %v1163_v35 = vadd.f32 %v1162_v33, %v1911_v8  ;;  %v1164_v36 = vpop.f32.mrb[6].mxu1 }
 0x12b   : > { %1662 = vtanh.f32 %v1120_v28  ;;  %v1124_v37 = vpop.f32.mrb[7].mxu0  ;;  %v1165_v38 = vpop.f32.mrb[7].mxu1 }
 0x12c   : > { %1664 = vtanh.f32 %v1161_v31 }
 0x12d   : > { %1666 = vtanh.f32 %v1122_v32 }
 0x12e   : > { %1668 = vtanh.f32 %v1163_v35 }
 0x135   : > { %v1663_v39 = vpop.eup %1662 }
 0x136   : > { %v1665_v40 = vpop.eup %1664 }
 0x137   : > { %v1667_v41 = vpop.eup %1666 }
 0x138   : > { %v1669_v42 = vpop.eup %1668  ;;  %v1365_v1 = vcombine.low %v1663_v39, %v1667_v41 }
 0x139   : > { %v1366_v43 = vcombine.low %v1665_v40, %v1669_v42 }
 0x13a   : > { %1381 = vst [vmem:[%s1921_s29 + $0x10] sm:$0x77] %v1365_v1 }
 0x13b   : > { %1382 = vst [vmem:[%s1921_s29 + $0x18] sm:$0x77] %v1366_v43 }
 0x148   : > { %v1201_v44 = vpop.f32.mrb[8].mxu0  ;;  %v1242_v46 = vpop.f32.mrb[8].mxu1 }
 0x149   : > { %v1202_v45 = vadd.f32 %v1201_v44, %v1911_v8  ;;  %v1203_v47 = vpop.f32.mrb[9].mxu0  ;;  %v1243_v48 = vadd.f32 %v1242_v46, %v1911_v8  ;;  %v1244_v50 = vpop.f32.mrb[9].mxu1 }
 0x14a   : > { %v1204_v49 = vadd.f32 %v1203_v47, %v1911_v8  ;;  %v1205_v51 = vpop.f32.mrb[10].mxu0  ;;  %v1245_v52 = vadd.f32 %v1244_v50, %v1911_v8  ;;  %v1246_v53 = vpop.f32.mrb[10].mxu1 }
 0x14b   : > { %1670 = vtanh.f32 %v1202_v45  ;;  %v1206_v54 = vpop.f32.mrb[11].mxu0  ;;  %v1247_v55 = vpop.f32.mrb[11].mxu1 }
 0x14c   : > { %1672 = vtanh.f32 %v1243_v48 }
 0x14d   : > { %1674 = vtanh.f32 %v1204_v49 }
 0x14e   : > { %1676 = vtanh.f32 %v1245_v52 }
 0x155   : > { %v1671_v56 = vpop.eup %1670 }
 0x156   : > { %v1673_v57 = vpop.eup %1672 }
 0x157   : > { %v1675_v58 = vpop.eup %1674 }
 0x158   : > { %v1677_v59 = vpop.eup %1676  ;;  %v1367_v60 = vcombine.low %v1671_v56, %v1675_v58 }
 0x159   : > { %v1368_v61 = vcombine.low %v1673_v57, %v1677_v59 }
 0x15a   : > { %1383 = vst [vmem:[%s1921_s29 + $0x20] sm:$0x77] %v1367_v60 }
 0x15b   : > { %1384 = vst [vmem:[%s1921_s29 + $0x28] sm:$0x77] %v1368_v61 }
 0x168   : > { %v1283_v62 = vpop.f32.mrb[12].mxu0  ;;  %v1324_v0 = vpop.f32.mrb[12].mxu1 }
 0x169   : > { %v1284_v63 = vadd.f32 %v1283_v62, %v1911_v8  ;;  %v1285_v2 = vpop.f32.mrb[13].mxu0  ;;  %v1325_v3 = vadd.f32 %v1324_v0, %v1911_v8  ;;  %v1326_v5 = vpop.f32.mrb[13].mxu1 }
 0x16a   : > { %v1286_v4 = vadd.f32 %v1285_v2, %v1911_v8  ;;  %v1287_v6 = vpop.f32.mrb[14].mxu0  ;;  %v1327_v7 = vadd.f32 %v1326_v5, %v1911_v8  ;;  %v1328_v9 = vpop.f32.mrb[14].mxu1 }
 0x16b   : > { %1678 = vtanh.f32 %v1284_v63  ;;  %v1288_v10 = vpop.f32.mrb[15].mxu0  ;;  %v1329_v11 = vpop.f32.mrb[15].mxu1 }
 0x16c   : > { %1680 = vtanh.f32 %v1325_v3 }
 0x16d   : > { %1682 = vtanh.f32 %v1286_v4 }
 0x16e   : > { %1684 = vtanh.f32 %v1327_v7 }
 0x175   : > { %v1679_v12 = vpop.eup %1678 }
 0x176   : > { %v1681_v14 = vpop.eup %1680 }
 0x177   : > { %v1683_v15 = vpop.eup %1682 }
 0x178   : > { %v1685_v16 = vpop.eup %1684  ;;  %v1369_v17 = vcombine.low %v1679_v12, %v1683_v15 }
 0x179   : > { %v1370_v18 = vcombine.low %v1681_v14, %v1685_v16 }
 0x17a   : > { %1385 = vst [vmem:[%s1921_s29 + $0x30] sm:$0x77] %v1369_v17 }
 0x17b   : > { %1386 = vst [vmem:[%s1921_s29 + $0x38] sm:$0x77] %v1370_v18 }
 0x17c PF: > { %s13_s14 = sadd.s32 1, %s1708_s14   ;;  %s1956_s12 = smov %s1704_s13 }
 0x17d   : > { %p10_p5 = scmp.ge.s32.totalorder %s13_s14, 6   ;;  %s1957_s13 = smov %s1959_s15 }
 0x17f   :  { %12 = sbr.rel (!%p10_p5) target bundleno = 2 (0x2), region = 65 }

</bundles_post_ra>
